<compile_context>
chip_gen: v6e
topology: v6e:2x2x1
jax: 0.10.0
libtpu: 0.0.40
codegen_flags: <defaults>
</compile_context>

<pallas_src>
import functools

import numpy as np

import jax
import jax.numpy as jnp
from jax.experimental import pallas as pl
from jax.experimental.pallas import tpu as pltpu

_VMEM_LIMIT = 32 * 1024 * 1024   # safe scoped-VMEM budget on v5e/v6e/v7x
_SMPL_PAD = 128                  # smpl-param lane padding   (88  -> 128)
_VERT_PAD = 256                  # flattened-vertex padding  (192 -> 256)


# ------------------------- constant-matrix builders -------------------------

def _conv_out(h, k=3, stride=2, pad=1):
    return (h + 2 * pad - k) // stride + 1


def _selection_mats(batch, h, w, k=3, stride=2, pad=1):
    """Per-tap 0/1 row-selection matrices F[t] such that F[t] @ X equals the
    shifted, strided, zero-padded slice of the NHWC activation X whose rows are
    ordered  b*h*w + y*w + x.  This is the "in-kernel im2col": all spatial
    logic lives in these compile-time constants, the kernel only does matmuls."""
    oh, ow = _conv_out(h), _conv_out(w)
    f = np.zeros((k * k, batch * oh * ow, batch * h * w), np.float32)
    for b in range(batch):
        for oy in range(oh):
            for ox in range(ow):
                m = b * oh * ow + oy * ow + ox
                for ki in range(k):
                    for kj in range(k):
                        hy = stride * oy + ki - pad
                        wx = stride * ox + kj - pad
                        if 0 <= hy < h and 0 <= wx < w:
                            f[ki * k + kj, m, b * h * w + hy * w + wx] = 1.0
    return jnp.asarray(f, jnp.bfloat16), oh, ow


# ------------------------------ Pallas kernel -------------------------------

def _conv_taps(y, f_ref, w_ref, b_ref):
    """ReLU(3x3 stride-2 pad-1 conv) as 9 (select, matmul) pairs on the MXU.
    f_ref: [9, M_out, M_in] 0/1 bf16, w_ref: [9, C_in, C_out] bf16, b_ref f32."""
    m_out, n_out = f_ref.shape[1], w_ref.shape[2]
    acc = jnp.zeros((m_out, n_out), jnp.float32)
    for t in range(f_ref.shape[0]):
        # 0/1 selection -> the bf16 cast of the patch is exact.
        p = jnp.dot(f_ref[t], y,
                    preferred_element_type=jnp.float32).astype(jnp.bfloat16)
        acc = acc + jnp.dot(p, w_ref[t], preferred_element_type=jnp.float32)
    return jnp.maximum(acc + b_ref[...], 0.0).astype(jnp.bfloat16)


def _pmm_fused_kernel(x_ref,
                      f1_ref, w1_ref, b1_ref,
                      f2_ref, w2_ref, b2_ref,
                      f3_ref, w3_ref, b3_ref,
                      gap_ref,
                      fc1_w_ref, fc1_b_ref, fc2_w_ref, fc2_b_ref,
                      gender_ref, tmpl_ref, meshw_ref,
                      out_ref):
    # --- encoder: 3x (3x3, stride-2, pad-1 conv + ReLU), lane-dense channels ---
    y1 = _conv_taps(x_ref[...], f1_ref, w1_ref, b1_ref)   # [B*8*8, 128]
    y2 = _conv_taps(y1, f2_ref, w2_ref, b2_ref)           # [B*4*4, 128]
    y3 = _conv_taps(y2, f3_ref, w3_ref, b3_ref)           # [B*2*2, 512]

    # --- global average pool: per-batch segment mean as one matmul ----------
    feat = jnp.dot(gap_ref[...], y3, preferred_element_type=jnp.float32)  # [B, 512]

    # --- MLP regressor: 512 -> 256 -> 88 (padded to 128) --------------------
    h = jnp.dot(feat.astype(jnp.bfloat16), fc1_w_ref[...],
                preferred_element_type=jnp.float32) + fc1_b_ref[...]
    h = jnp.maximum(h, 0.0).astype(jnp.bfloat16)
    smpl = jnp.dot(h, fc2_w_ref[...],
                   preferred_element_type=jnp.float32) + fc2_b_ref[...]   # [B, 128]

    # --- mesh estimator: gender template + shape blend + root translation ---
    verts = jnp.dot(gender_ref[...], tmpl_ref[...],
                    preferred_element_type=jnp.float32)
    verts = verts + jnp.dot(smpl.astype(jnp.bfloat16), meshw_ref[...],
                            preferred_element_type=jnp.float32)           # [B, 256]

    # Single lane-dense output slab: [0:128] padded smpl params, [128:384] verts.
    out_ref[...] = jnp.concatenate([smpl, verts], axis=1)                 # [B, 384]


def pmm_fused_call(x, params, batch_gender):
    B = batch_gender.shape[0]
    return pl.pallas_call(
        _pmm_fused_kernel,
        out_shape=jax.ShapeDtypeStruct((B, _SMPL_PAD + _VERT_PAD), jnp.float32),
        compiler_params=pltpu.CompilerParams(vmem_limit_bytes=_VMEM_LIMIT),
    )(x,
      params["f1"], params["conv1_w"], params["conv1_b"],
      params["f2"], params["conv2_w"], params["conv2_b"],
      params["f3"], params["conv3_w"], params["conv3_b"],
      params["gap"],
      params["fc1_w"], params["fc1_b"], params["fc2_w"], params["fc2_b"],
      batch_gender.astype(jnp.bfloat16), params["v_template"], params["mesh_w"])


# --------------------------------- params -----------------------------------

def init_params(key, channel, feature_channels, param_size, vertex_size,
                batch_size, image_size):
    keys = jax.random.split(key, 8)

    def glorot(k, shape, fan_in):
        return jax.random.normal(k, shape, jnp.float32) / jnp.sqrt(float(fan_in))

    c0 = channel
    c1, c2, c3 = feature_channels, feature_channels * 4, 512  # encoder_out_channels == 512
    c0p, c1p, c2p = 8, 128, 128                               # lane/sublane-dense padding
    assert c0 <= c0p and c1 <= c1p and c2 <= c2p and c3 == 512
    assert param_size <= _SMPL_PAD and vertex_size * 3 <= _VERT_PAD

    # Per-tap conv weights, layout [tap = ki*3+kj, c_in(+pad), c_out(+pad)].
    # NOTE: a real PyTorch Conv2d weight [c_out, c_in, kh, kw] maps here as
    #       w_pallas[ki*3+kj, ci, co] = w_torch[co, ci, ki, kj].
    w1 = glorot(keys[0], (9, c0, c1), 9 * c0)
    conv1_w = jnp.zeros((9, c0p, c1p), jnp.float32).at[:, :c0, :c1].set(w1)
    w2 = glorot(keys[1], (9, c1, c2), 9 * c1)
    conv2_w = jnp.zeros((9, c1p, c2p), jnp.float32).at[:, :c1, :c2].set(w2)
    w3 = glorot(keys[2], (9, c2, c3), 9 * c2)
    conv3_w = jnp.zeros((9, c2p, c3), jnp.float32).at[:, :c2, :].set(w3)

    # Constant spatial-selection matrices (in-kernel im2col) + GAP matrix.
    f1, oh1, ow1 = _selection_mats(batch_size, image_size, image_size)
    f2, oh2, ow2 = _selection_mats(batch_size, oh1, ow1)
    f3, oh3, ow3 = _selection_mats(batch_size, oh2, ow2)
    s3 = oh3 * ow3
    gap = np.zeros((batch_size, batch_size * s3), np.float32)
    for b in range(batch_size):
        gap[b, b * s3:(b + 1) * s3] = 1.0 / s3

    # MLPRegressor: 512 -> 256 -> param_size (zero-padded to 128 lanes, exact).
    fc1_w = glorot(keys[3], (c3, 256), c3)
    fc2_w = jnp.zeros((256, _SMPL_PAD), jnp.float32).at[:, :param_size].set(
        glorot(keys[4], (256, param_size), 256))

    # MeshEstimator (synthetic SMPL-like): gender templates + shape blend dirs.
    # mesh_w rows 0-9 = shapedirs, rows 10-12 replicate root (x,y,z) over every
    # vertex so  smpl @ mesh_w == betas @ shapedirs + tile(root_xyz); rest zero.
    n3 = vertex_size * 3
    v_template = jnp.zeros((2, _VERT_PAD), jnp.float32).at[:, :n3].set(
        jax.random.normal(keys[5], (2, n3), jnp.float32) * 0.1)
    shapedirs = jax.random.normal(keys[6], (10, n3), jnp.float32) * 0.01
    trans_basis = jnp.tile(jnp.eye(3, dtype=jnp.float32), (1, vertex_size))  # [3, n3]
    mesh_w = (jnp.zeros((_SMPL_PAD, _VERT_PAD), jnp.float32)
              .at[0:10, :n3].set(shapedirs)
              .at[10:13, :n3].set(trans_basis))

    bf16 = jnp.bfloat16
    return {
        "f1": f1, "f2": f2, "f3": f3, "gap": jnp.asarray(gap, bf16),
        "conv1_w": conv1_w.astype(bf16), "conv1_b": jnp.zeros((1, c1p), jnp.float32),
        "conv2_w": conv2_w.astype(bf16), "conv2_b": jnp.zeros((1, c2p), jnp.float32),
        "conv3_w": conv3_w.astype(bf16), "conv3_b": jnp.zeros((1, c3), jnp.float32),
        "fc1_w": fc1_w.astype(bf16),     "fc1_b": jnp.zeros((1, 256), jnp.float32),
        "fc2_w": fc2_w.astype(bf16),     "fc2_b": jnp.zeros((1, _SMPL_PAD), jnp.float32),
        "v_template": v_template.astype(bf16),
        "mesh_w": mesh_w.astype(bf16),
    }


# ------------------------------ forward (glue) -------------------------------

def pmm_forward(params, batch_gender, img, *, param_size=88, vertex_size=64):
    """Mirrors PMMModel.forward: encoder -> regressor -> mesh estimator.

    batch_gender: [B, 2] one-hot, img: [B, 2, C, H, W] (NCHW like PyTorch).
    Batch size / image size are baked into the constant selection matrices at
    init (same as MeshEstimator(batch_size) in the original module).
    """
    B, _, C, H, W = img.shape
    assert params["f1"].shape[2] == B * H * W, "batch/image size must match init"
    assert params["conv3_w"].shape[2] == 512          # `assert feature.shape[1] == 512`

    # Depth-modality slice -> NHWC rows [B*H*W, C], channels padded to 8 lanes.
    x = img[:, 1].astype(jnp.float32)
    x = jnp.transpose(x, (0, 2, 3, 1)).reshape(B * H * W, C)
    c0p = params["conv1_w"].shape[1]
    x = jnp.pad(x, ((0, 0), (0, c0p - C))).astype(jnp.bfloat16)

    slab = pmm_fused_call(x, params, batch_gender)    # [B, 384] f32, one launch

    smpl_param_pred = slab[:, :param_size]            # [B, 88]
    n3 = vertex_size * 3
    vertices = slab[:, _SMPL_PAD:_SMPL_PAD + n3].reshape(B, vertex_size, 3)

    # Decode 88 params (betas 0-10, root xyz 10-13, atan2 rot 13-19, joints 19-88).
    root_xyz = smpl_param_pred[:, 10:13]
    rot6 = smpl_param_pred[:, 13:19]
    root_angle = jnp.arctan2(rot6[:, 0:3], rot6[:, 3:6])
    # TODO(synk): full SMPL pose-dependent LBS (Rodrigues of the 69 joint angles +
    # skinning weights) is not reproduced; the synthetic mesh uses gender template
    # + shape blend + root translation only.

    return {
        "vertices": vertices,              # [B, N, 3]
        "root_xyz": root_xyz,              # [B, 3]
        "root_angle": root_angle,          # [B, 3]
        "smpl_param": smpl_param_pred,     # [B, 88]
    }


# ---------------------------------- main -------------------------------------

if __name__ == "__main__":
    key = jax.random.PRNGKey(0)
    B, C, H, W = 2, 2, 16, 16              # C = len(modality)
    param_size, vertex_size, feature_channels = 88, 64, 16

    kp, ki, kg = jax.random.split(key, 3)
    params = init_params(kp, C, feature_channels, param_size, vertex_size, B, H)
    img = jax.random.normal(ki, (B, 2, C, H, W), jnp.float32)
    gender_idx = jax.random.bernoulli(kg, 0.5, (B,)).astype(jnp.int32)
    batch_gender = jax.nn.one_hot(gender_idx, 2, dtype=jnp.float32)

    fwd = jax.jit(functools.partial(pmm_forward, param_size=param_size,
                                    vertex_size=vertex_size))
    mesh_pred = fwd(params, batch_gender, img)
    jax.block_until_ready(mesh_pred)

    assert mesh_pred["vertices"].shape == (B, vertex_size, 3)
    assert mesh_pred["smpl_param"].shape == (B, param_size)
    assert mesh_pred["root_xyz"].shape == (B, 3)
    assert mesh_pred["root_angle"].shape == (B, 3)
    assert bool(jnp.all(jnp.isfinite(mesh_pred["vertices"])))
    print("KERNEL_OK")
</pallas_src>

<mosaic_0001>
module attributes {stable_mosaic.version = 11 : i64} {
  func.func @_pmm_fused_kernel(%arg0: memref<512x8xbf16, #tpu.memory_space<vmem>>, %arg1: memref<9x128x512xbf16, #tpu.memory_space<vmem>>, %arg2: memref<9x8x128xbf16, #tpu.memory_space<vmem>>, %arg3: memref<1x128xf32, #tpu.memory_space<vmem>>, %arg4: memref<9x32x128xbf16, #tpu.memory_space<vmem>>, %arg5: memref<9x128x128xbf16, #tpu.memory_space<vmem>>, %arg6: memref<1x128xf32, #tpu.memory_space<vmem>>, %arg7: memref<9x8x32xbf16, #tpu.memory_space<vmem>>, %arg8: memref<9x128x512xbf16, #tpu.memory_space<vmem>>, %arg9: memref<1x512xf32, #tpu.memory_space<vmem>>, %arg10: memref<2x8xbf16, #tpu.memory_space<vmem>>, %arg11: memref<512x256xbf16, #tpu.memory_space<vmem>>, %arg12: memref<1x256xf32, #tpu.memory_space<vmem>>, %arg13: memref<256x128xbf16, #tpu.memory_space<vmem>>, %arg14: memref<1x128xf32, #tpu.memory_space<vmem>>, %arg15: memref<2x2xbf16, #tpu.memory_space<vmem>>, %arg16: memref<2x256xbf16, #tpu.memory_space<vmem>>, %arg17: memref<128x256xbf16, #tpu.memory_space<vmem>>, %arg18: memref<2x384xf32, #tpu.memory_space<vmem>>) attributes {dimension_semantics = [], scalar_prefetch = 0 : i64, scratch_operands = 0 : i64, tpu.core_type = #tpu.core_type<tc>} {
    %c0 = arith.constant 0 : index
    %c0_0 = arith.constant 0 : index
    %0 = vector.load %arg0[%c0, %c0_0] : memref<512x8xbf16, #tpu.memory_space<vmem>>, vector<512x8xbf16>
    %cst = arith.constant 0.000000e+00 : f32
    %1 = vector.broadcast %cst : f32 to vector<128x128xf32>
    %c0_1 = arith.constant 0 : index
    %c0_2 = arith.constant 0 : index
    %c0_3 = arith.constant 0 : index
    %2 = vector.load %arg1[%c0_1, %c0_2, %c0_3] : memref<9x128x512xbf16, #tpu.memory_space<vmem>>, vector<1x128x512xbf16>
    %3 = vector.shape_cast %2 : vector<1x128x512xbf16> to vector<128x512xbf16>
    %cst_4 = arith.constant dense<0.000000e+00> : vector<128x8xf32>
    %4 = tpu.matmul %3, %0, %cst_4 {dimension_numbers = #tpu.dot_dimension_numbers<[1], [0], [0], [1], [0, 0, 1, 1], [], []>} : vector<128x512xbf16>, vector<512x8xbf16>, vector<128x8xf32> -> vector<128x8xf32>
    %5 = arith.truncf %4 : vector<128x8xf32> to vector<128x8xbf16>
    %c0_5 = arith.constant 0 : index
    %c0_6 = arith.constant 0 : index
    %c0_7 = arith.constant 0 : index
    %6 = vector.load %arg2[%c0_5, %c0_6, %c0_7] : memref<9x8x128xbf16, #tpu.memory_space<vmem>>, vector<1x8x128xbf16>
    %7 = vector.shape_cast %6 : vector<1x8x128xbf16> to vector<8x128xbf16>
    %cst_8 = arith.constant dense<0.000000e+00> : vector<128x128xf32>
    %8 = tpu.matmul %5, %7, %cst_8 {dimension_numbers = #tpu.dot_dimension_numbers<[1], [0], [0], [1], [0, 0, 1, 1], [], []>} : vector<128x8xbf16>, vector<8x128xbf16>, vector<128x128xf32> -> vector<128x128xf32>
    %9 = arith.addf %1, %8 : vector<128x128xf32>
    %c1 = arith.constant 1 : index
    %c0_9 = arith.constant 0 : index
    %c0_10 = arith.constant 0 : index
    %10 = vector.load %arg1[%c1, %c0_9, %c0_10] : memref<9x128x512xbf16, #tpu.memory_space<vmem>>, vector<1x128x512xbf16>
    %11 = vector.shape_cast %10 : vector<1x128x512xbf16> to vector<128x512xbf16>
    %cst_11 = arith.constant dense<0.000000e+00> : vector<128x8xf32>
    %12 = tpu.matmul %11, %0, %cst_11 {dimension_numbers = #tpu.dot_dimension_numbers<[1], [0], [0], [1], [0, 0, 1, 1], [], []>} : vector<128x512xbf16>, vector<512x8xbf16>, vector<128x8xf32> -> vector<128x8xf32>
    %13 = arith.truncf %12 : vector<128x8xf32> to vector<128x8xbf16>
    %c1_12 = arith.constant 1 : index
    %c0_13 = arith.constant 0 : index
    %c0_14 = arith.constant 0 : index
    %14 = vector.load %arg2[%c1_12, %c0_13, %c0_14] : memref<9x8x128xbf16, #tpu.memory_space<vmem>>, vector<1x8x128xbf16>
    %15 = vector.shape_cast %14 : vector<1x8x128xbf16> to vector<8x128xbf16>
    %cst_15 = arith.constant dense<0.000000e+00> : vector<128x128xf32>
    %16 = tpu.matmul %13, %15, %cst_15 {dimension_numbers = #tpu.dot_dimension_numbers<[1], [0], [0], [1], [0, 0, 1, 1], [], []>} : vector<128x8xbf16>, vector<8x128xbf16>, vector<128x128xf32> -> vector<128x128xf32>
    %17 = arith.addf %9, %16 : vector<128x128xf32>
    %c2 = arith.constant 2 : index
    %c0_16 = arith.constant 0 : index
    %c0_17 = arith.constant 0 : index
    %18 = vector.load %arg1[%c2, %c0_16, %c0_17] : memref<9x128x512xbf16, #tpu.memory_space<vmem>>, vector<1x128x512xbf16>
    %19 = vector.shape_cast %18 : vector<1x128x512xbf16> to vector<128x512xbf16>
    %cst_18 = arith.constant dense<0.000000e+00> : vector<128x8xf32>
    %20 = tpu.matmul %19, %0, %cst_18 {dimension_numbers = #tpu.dot_dimension_numbers<[1], [0], [0], [1], [0, 0, 1, 1], [], []>} : vector<128x512xbf16>, vector<512x8xbf16>, vector<128x8xf32> -> vector<128x8xf32>
    %21 = arith.truncf %20 : vector<128x8xf32> to vector<128x8xbf16>
    %c2_19 = arith.constant 2 : index
    %c0_20 = arith.constant 0 : index
    %c0_21 = arith.constant 0 : index
    %22 = vector.load %arg2[%c2_19, %c0_20, %c0_21] : memref<9x8x128xbf16, #tpu.memory_space<vmem>>, vector<1x8x128xbf16>
    %23 = vector.shape_cast %22 : vector<1x8x128xbf16> to vector<8x128xbf16>
    %cst_22 = arith.constant dense<0.000000e+00> : vector<128x128xf32>
    %24 = tpu.matmul %21, %23, %cst_22 {dimension_numbers = #tpu.dot_dimension_numbers<[1], [0], [0], [1], [0, 0, 1, 1], [], []>} : vector<128x8xbf16>, vector<8x128xbf16>, vector<128x128xf32> -> vector<128x128xf32>
    %25 = arith.addf %17, %24 : vector<128x128xf32>
    %c3 = arith.constant 3 : index
    %c0_23 = arith.constant 0 : index
    %c0_24 = arith.constant 0 : index
    %26 = vector.load %arg1[%c3, %c0_23, %c0_24] : memref<9x128x512xbf16, #tpu.memory_space<vmem>>, vector<1x128x512xbf16>
    %27 = vector.shape_cast %26 : vector<1x128x512xbf16> to vector<128x512xbf16>
    %cst_25 = arith.constant dense<0.000000e+00> : vector<128x8xf32>
    %28 = tpu.matmul %27, %0, %cst_25 {dimension_numbers = #tpu.dot_dimension_numbers<[1], [0], [0], [1], [0, 0, 1, 1], [], []>} : vector<128x512xbf16>, vector<512x8xbf16>, vector<128x8xf32> -> vector<128x8xf32>
    %29 = arith.truncf %28 : vector<128x8xf32> to vector<128x8xbf16>
    %c3_26 = arith.constant 3 : index
    %c0_27 = arith.constant 0 : index
    %c0_28 = arith.constant 0 : index
    %30 = vector.load %arg2[%c3_26, %c0_27, %c0_28] : memref<9x8x128xbf16, #tpu.memory_space<vmem>>, vector<1x8x128xbf16>
    %31 = vector.shape_cast %30 : vector<1x8x128xbf16> to vector<8x128xbf16>
    %cst_29 = arith.constant dense<0.000000e+00> : vector<128x128xf32>
    %32 = tpu.matmul %29, %31, %cst_29 {dimension_numbers = #tpu.dot_dimension_numbers<[1], [0], [0], [1], [0, 0, 1, 1], [], []>} : vector<128x8xbf16>, vector<8x128xbf16>, vector<128x128xf32> -> vector<128x128xf32>
    %33 = arith.addf %25, %32 : vector<128x128xf32>
    %c4 = arith.constant 4 : index
    %c0_30 = arith.constant 0 : index
    %c0_31 = arith.constant 0 : index
    %34 = vector.load %arg1[%c4, %c0_30, %c0_31] : memref<9x128x512xbf16, #tpu.memory_space<vmem>>, vector<1x128x512xbf16>
    %35 = vector.shape_cast %34 : vector<1x128x512xbf16> to vector<128x512xbf16>
    %cst_32 = arith.constant dense<0.000000e+00> : vector<128x8xf32>
    %36 = tpu.matmul %35, %0, %cst_32 {dimension_numbers = #tpu.dot_dimension_numbers<[1], [0], [0], [1], [0, 0, 1, 1], [], []>} : vector<128x512xbf16>, vector<512x8xbf16>, vector<128x8xf32> -> vector<128x8xf32>
    %37 = arith.truncf %36 : vector<128x8xf32> to vector<128x8xbf16>
    %c4_33 = arith.constant 4 : index
    %c0_34 = arith.constant 0 : index
    %c0_35 = arith.constant 0 : index
    %38 = vector.load %arg2[%c4_33, %c0_34, %c0_35] : memref<9x8x128xbf16, #tpu.memory_space<vmem>>, vector<1x8x128xbf16>
    %39 = vector.shape_cast %38 : vector<1x8x128xbf16> to vector<8x128xbf16>
    %cst_36 = arith.constant dense<0.000000e+00> : vector<128x128xf32>
    %40 = tpu.matmul %37, %39, %cst_36 {dimension_numbers = #tpu.dot_dimension_numbers<[1], [0], [0], [1], [0, 0, 1, 1], [], []>} : vector<128x8xbf16>, vector<8x128xbf16>, vector<128x128xf32> -> vector<128x128xf32>
    %41 = arith.addf %33, %40 : vector<128x128xf32>
    %c5 = arith.constant 5 : index
    %c0_37 = arith.constant 0 : index
    %c0_38 = arith.constant 0 : index
    %42 = vector.load %arg1[%c5, %c0_37, %c0_38] : memref<9x128x512xbf16, #tpu.memory_space<vmem>>, vector<1x128x512xbf16>
    %43 = vector.shape_cast %42 : vector<1x128x512xbf16> to vector<128x512xbf16>
    %cst_39 = arith.constant dense<0.000000e+00> : vector<128x8xf32>
    %44 = tpu.matmul %43, %0, %cst_39 {dimension_numbers = #tpu.dot_dimension_numbers<[1], [0], [0], [1], [0, 0, 1, 1], [], []>} : vector<128x512xbf16>, vector<512x8xbf16>, vector<128x8xf32> -> vector<128x8xf32>
    %45 = arith.truncf %44 : vector<128x8xf32> to vector<128x8xbf16>
    %c5_40 = arith.constant 5 : index
    %c0_41 = arith.constant 0 : index
    %c0_42 = arith.constant 0 : index
    %46 = vector.load %arg2[%c5_40, %c0_41, %c0_42] : memref<9x8x128xbf16, #tpu.memory_space<vmem>>, vector<1x8x128xbf16>
    %47 = vector.shape_cast %46 : vector<1x8x128xbf16> to vector<8x128xbf16>
    %cst_43 = arith.constant dense<0.000000e+00> : vector<128x128xf32>
    %48 = tpu.matmul %45, %47, %cst_43 {dimension_numbers = #tpu.dot_dimension_numbers<[1], [0], [0], [1], [0, 0, 1, 1], [], []>} : vector<128x8xbf16>, vector<8x128xbf16>, vector<128x128xf32> -> vector<128x128xf32>
    %49 = arith.addf %41, %48 : vector<128x128xf32>
    %c6 = arith.constant 6 : index
    %c0_44 = arith.constant 0 : index
    %c0_45 = arith.constant 0 : index
    %50 = vector.load %arg1[%c6, %c0_44, %c0_45] : memref<9x128x512xbf16, #tpu.memory_space<vmem>>, vector<1x128x512xbf16>
    %51 = vector.shape_cast %50 : vector<1x128x512xbf16> to vector<128x512xbf16>
    %cst_46 = arith.constant dense<0.000000e+00> : vector<128x8xf32>
    %52 = tpu.matmul %51, %0, %cst_46 {dimension_numbers = #tpu.dot_dimension_numbers<[1], [0], [0], [1], [0, 0, 1, 1], [], []>} : vector<128x512xbf16>, vector<512x8xbf16>, vector<128x8xf32> -> vector<128x8xf32>
    %53 = arith.truncf %52 : vector<128x8xf32> to vector<128x8xbf16>
    %c6_47 = arith.constant 6 : index
    %c0_48 = arith.constant 0 : index
    %c0_49 = arith.constant 0 : index
    %54 = vector.load %arg2[%c6_47, %c0_48, %c0_49] : memref<9x8x128xbf16, #tpu.memory_space<vmem>>, vector<1x8x128xbf16>
    %55 = vector.shape_cast %54 : vector<1x8x128xbf16> to vector<8x128xbf16>
    %cst_50 = arith.constant dense<0.000000e+00> : vector<128x128xf32>
    %56 = tpu.matmul %53, %55, %cst_50 {dimension_numbers = #tpu.dot_dimension_numbers<[1], [0], [0], [1], [0, 0, 1, 1], [], []>} : vector<128x8xbf16>, vector<8x128xbf16>, vector<128x128xf32> -> vector<128x128xf32>
    %57 = arith.addf %49, %56 : vector<128x128xf32>
    %c7 = arith.constant 7 : index
    %c0_51 = arith.constant 0 : index
    %c0_52 = arith.constant 0 : index
    %58 = vector.load %arg1[%c7, %c0_51, %c0_52] : memref<9x128x512xbf16, #tpu.memory_space<vmem>>, vector<1x128x512xbf16>
    %59 = vector.shape_cast %58 : vector<1x128x512xbf16> to vector<128x512xbf16>
    %cst_53 = arith.constant dense<0.000000e+00> : vector<128x8xf32>
    %60 = tpu.matmul %59, %0, %cst_53 {dimension_numbers = #tpu.dot_dimension_numbers<[1], [0], [0], [1], [0, 0, 1, 1], [], []>} : vector<128x512xbf16>, vector<512x8xbf16>, vector<128x8xf32> -> vector<128x8xf32>
    %61 = arith.truncf %60 : vector<128x8xf32> to vector<128x8xbf16>
    %c7_54 = arith.constant 7 : index
    %c0_55 = arith.constant 0 : index
    %c0_56 = arith.constant 0 : index
    %62 = vector.load %arg2[%c7_54, %c0_55, %c0_56] : memref<9x8x128xbf16, #tpu.memory_space<vmem>>, vector<1x8x128xbf16>
    %63 = vector.shape_cast %62 : vector<1x8x128xbf16> to vector<8x128xbf16>
    %cst_57 = arith.constant dense<0.000000e+00> : vector<128x128xf32>
    %64 = tpu.matmul %61, %63, %cst_57 {dimension_numbers = #tpu.dot_dimension_numbers<[1], [0], [0], [1], [0, 0, 1, 1], [], []>} : vector<128x8xbf16>, vector<8x128xbf16>, vector<128x128xf32> -> vector<128x128xf32>
    %65 = arith.addf %57, %64 : vector<128x128xf32>
    %c8 = arith.constant 8 : index
    %c0_58 = arith.constant 0 : index
    %c0_59 = arith.constant 0 : index
    %66 = vector.load %arg1[%c8, %c0_58, %c0_59] : memref<9x128x512xbf16, #tpu.memory_space<vmem>>, vector<1x128x512xbf16>
    %67 = vector.shape_cast %66 : vector<1x128x512xbf16> to vector<128x512xbf16>
    %cst_60 = arith.constant dense<0.000000e+00> : vector<128x8xf32>
    %68 = tpu.matmul %67, %0, %cst_60 {dimension_numbers = #tpu.dot_dimension_numbers<[1], [0], [0], [1], [0, 0, 1, 1], [], []>} : vector<128x512xbf16>, vector<512x8xbf16>, vector<128x8xf32> -> vector<128x8xf32>
    %69 = arith.truncf %68 : vector<128x8xf32> to vector<128x8xbf16>
    %c8_61 = arith.constant 8 : index
    %c0_62 = arith.constant 0 : index
    %c0_63 = arith.constant 0 : index
    %70 = vector.load %arg2[%c8_61, %c0_62, %c0_63] : memref<9x8x128xbf16, #tpu.memory_space<vmem>>, vector<1x8x128xbf16>
    %71 = vector.shape_cast %70 : vector<1x8x128xbf16> to vector<8x128xbf16>
    %cst_64 = arith.constant dense<0.000000e+00> : vector<128x128xf32>
    %72 = tpu.matmul %69, %71, %cst_64 {dimension_numbers = #tpu.dot_dimension_numbers<[1], [0], [0], [1], [0, 0, 1, 1], [], []>} : vector<128x8xbf16>, vector<8x128xbf16>, vector<128x128xf32> -> vector<128x128xf32>
    %73 = arith.addf %65, %72 : vector<128x128xf32>
    %c0_65 = arith.constant 0 : index
    %c0_66 = arith.constant 0 : index
    %74 = vector.load %arg3[%c0_65, %c0_66] : memref<1x128xf32, #tpu.memory_space<vmem>>, vector<1x128xf32>
    %75 = vector.broadcast %74 : vector<1x128xf32> to vector<128x128xf32>
    %76 = arith.addf %73, %75 : vector<128x128xf32>
    %cst_67 = arith.constant 0.000000e+00 : f32
    %77 = vector.broadcast %cst_67 : f32 to vector<128x128xf32>
    %78 = arith.maximumf %76, %77 : vector<128x128xf32>
    %79 = arith.truncf %78 : vector<128x128xf32> to vector<128x128xbf16>
    %cst_68 = arith.constant 0.000000e+00 : f32
    %80 = vector.broadcast %cst_68 : f32 to vector<32x128xf32>
    %c0_69 = arith.constant 0 : index
    %c0_70 = arith.constant 0 : index
    %c0_71 = arith.constant 0 : index
    %81 = vector.load %arg4[%c0_69, %c0_70, %c0_71] : memref<9x32x128xbf16, #tpu.memory_space<vmem>>, vector<1x32x128xbf16>
    %82 = vector.shape_cast %81 : vector<1x32x128xbf16> to vector<32x128xbf16>
    %cst_72 = arith.constant dense<0.000000e+00> : vector<32x128xf32>
    %83 = tpu.matmul %82, %79, %cst_72 {dimension_numbers = #tpu.dot_dimension_numbers<[1], [0], [0], [1], [0, 0, 1, 1], [], []>} : vector<32x128xbf16>, vector<128x128xbf16>, vector<32x128xf32> -> vector<32x128xf32>
    %84 = arith.truncf %83 : vector<32x128xf32> to vector<32x128xbf16>
    %c0_73 = arith.constant 0 : index
    %c0_74 = arith.constant 0 : index
    %c0_75 = arith.constant 0 : index
    %85 = vector.load %arg5[%c0_73, %c0_74, %c0_75] : memref<9x128x128xbf16, #tpu.memory_space<vmem>>, vector<1x128x128xbf16>
    %86 = vector.shape_cast %85 : vector<1x128x128xbf16> to vector<128x128xbf16>
    %cst_76 = arith.constant dense<0.000000e+00> : vector<32x128xf32>
    %87 = tpu.matmul %84, %86, %cst_76 {dimension_numbers = #tpu.dot_dimension_numbers<[1], [0], [0], [1], [0, 0, 1, 1], [], []>} : vector<32x128xbf16>, vector<128x128xbf16>, vector<32x128xf32> -> vector<32x128xf32>
    %88 = arith.addf %80, %87 : vector<32x128xf32>
    %c1_77 = arith.constant 1 : index
    %c0_78 = arith.constant 0 : index
    %c0_79 = arith.constant 0 : index
    %89 = vector.load %arg4[%c1_77, %c0_78, %c0_79] : memref<9x32x128xbf16, #tpu.memory_space<vmem>>, vector<1x32x128xbf16>
    %90 = vector.shape_cast %89 : vector<1x32x128xbf16> to vector<32x128xbf16>
    %cst_80 = arith.constant dense<0.000000e+00> : vector<32x128xf32>
    %91 = tpu.matmul %90, %79, %cst_80 {dimension_numbers = #tpu.dot_dimension_numbers<[1], [0], [0], [1], [0, 0, 1, 1], [], []>} : vector<32x128xbf16>, vector<128x128xbf16>, vector<32x128xf32> -> vector<32x128xf32>
    %92 = arith.truncf %91 : vector<32x128xf32> to vector<32x128xbf16>
    %c1_81 = arith.constant 1 : index
    %c0_82 = arith.constant 0 : index
    %c0_83 = arith.constant 0 : index
    %93 = vector.load %arg5[%c1_81, %c0_82, %c0_83] : memref<9x128x128xbf16, #tpu.memory_space<vmem>>, vector<1x128x128xbf16>
    %94 = vector.shape_cast %93 : vector<1x128x128xbf16> to vector<128x128xbf16>
    %cst_84 = arith.constant dense<0.000000e+00> : vector<32x128xf32>
    %95 = tpu.matmul %92, %94, %cst_84 {dimension_numbers = #tpu.dot_dimension_numbers<[1], [0], [0], [1], [0, 0, 1, 1], [], []>} : vector<32x128xbf16>, vector<128x128xbf16>, vector<32x128xf32> -> vector<32x128xf32>
    %96 = arith.addf %88, %95 : vector<32x128xf32>
    %c2_85 = arith.constant 2 : index
    %c0_86 = arith.constant 0 : index
    %c0_87 = arith.constant 0 : index
    %97 = vector.load %arg4[%c2_85, %c0_86, %c0_87] : memref<9x32x128xbf16, #tpu.memory_space<vmem>>, vector<1x32x128xbf16>
    %98 = vector.shape_cast %97 : vector<1x32x128xbf16> to vector<32x128xbf16>
    %cst_88 = arith.constant dense<0.000000e+00> : vector<32x128xf32>
    %99 = tpu.matmul %98, %79, %cst_88 {dimension_numbers = #tpu.dot_dimension_numbers<[1], [0], [0], [1], [0, 0, 1, 1], [], []>} : vector<32x128xbf16>, vector<128x128xbf16>, vector<32x128xf32> -> vector<32x128xf32>
    %100 = arith.truncf %99 : vector<32x128xf32> to vector<32x128xbf16>
    %c2_89 = arith.constant 2 : index
    %c0_90 = arith.constant 0 : index
    %c0_91 = arith.constant 0 : index
    %101 = vector.load %arg5[%c2_89, %c0_90, %c0_91] : memref<9x128x128xbf16, #tpu.memory_space<vmem>>, vector<1x128x128xbf16>
    %102 = vector.shape_cast %101 : vector<1x128x128xbf16> to vector<128x128xbf16>
    %cst_92 = arith.constant dense<0.000000e+00> : vector<32x128xf32>
    %103 = tpu.matmul %100, %102, %cst_92 {dimension_numbers = #tpu.dot_dimension_numbers<[1], [0], [0], [1], [0, 0, 1, 1], [], []>} : vector<32x128xbf16>, vector<128x128xbf16>, vector<32x128xf32> -> vector<32x128xf32>
    %104 = arith.addf %96, %103 : vector<32x128xf32>
    %c3_93 = arith.constant 3 : index
    %c0_94 = arith.constant 0 : index
    %c0_95 = arith.constant 0 : index
    %105 = vector.load %arg4[%c3_93, %c0_94, %c0_95] : memref<9x32x128xbf16, #tpu.memory_space<vmem>>, vector<1x32x128xbf16>
    %106 = vector.shape_cast %105 : vector<1x32x128xbf16> to vector<32x128xbf16>
    %cst_96 = arith.constant dense<0.000000e+00> : vector<32x128xf32>
    %107 = tpu.matmul %106, %79, %cst_96 {dimension_numbers = #tpu.dot_dimension_numbers<[1], [0], [0], [1], [0, 0, 1, 1], [], []>} : vector<32x128xbf16>, vector<128x128xbf16>, vector<32x128xf32> -> vector<32x128xf32>
    %108 = arith.truncf %107 : vector<32x128xf32> to vector<32x128xbf16>
    %c3_97 = arith.constant 3 : index
    %c0_98 = arith.constant 0 : index
    %c0_99 = arith.constant 0 : index
    %109 = vector.load %arg5[%c3_97, %c0_98, %c0_99] : memref<9x128x128xbf16, #tpu.memory_space<vmem>>, vector<1x128x128xbf16>
    %110 = vector.shape_cast %109 : vector<1x128x128xbf16> to vector<128x128xbf16>
    %cst_100 = arith.constant dense<0.000000e+00> : vector<32x128xf32>
    %111 = tpu.matmul %108, %110, %cst_100 {dimension_numbers = #tpu.dot_dimension_numbers<[1], [0], [0], [1], [0, 0, 1, 1], [], []>} : vector<32x128xbf16>, vector<128x128xbf16>, vector<32x128xf32> -> vector<32x128xf32>
    %112 = arith.addf %104, %111 : vector<32x128xf32>
    %c4_101 = arith.constant 4 : index
    %c0_102 = arith.constant 0 : index
    %c0_103 = arith.constant 0 : index
    %113 = vector.load %arg4[%c4_101, %c0_102, %c0_103] : memref<9x32x128xbf16, #tpu.memory_space<vmem>>, vector<1x32x128xbf16>
    %114 = vector.shape_cast %113 : vector<1x32x128xbf16> to vector<32x128xbf16>
    %cst_104 = arith.constant dense<0.000000e+00> : vector<32x128xf32>
    %115 = tpu.matmul %114, %79, %cst_104 {dimension_numbers = #tpu.dot_dimension_numbers<[1], [0], [0], [1], [0, 0, 1, 1], [], []>} : vector<32x128xbf16>, vector<128x128xbf16>, vector<32x128xf32> -> vector<32x128xf32>
    %116 = arith.truncf %115 : vector<32x128xf32> to vector<32x128xbf16>
    %c4_105 = arith.constant 4 : index
    %c0_106 = arith.constant 0 : index
    %c0_107 = arith.constant 0 : index
    %117 = vector.load %arg5[%c4_105, %c0_106, %c0_107] : memref<9x128x128xbf16, #tpu.memory_space<vmem>>, vector<1x128x128xbf16>
    %118 = vector.shape_cast %117 : vector<1x128x128xbf16> to vector<128x128xbf16>
    %cst_108 = arith.constant dense<0.000000e+00> : vector<32x128xf32>
    %119 = tpu.matmul %116, %118, %cst_108 {dimension_numbers = #tpu.dot_dimension_numbers<[1], [0], [0], [1], [0, 0, 1, 1], [], []>} : vector<32x128xbf16>, vector<128x128xbf16>, vector<32x128xf32> -> vector<32x128xf32>
    %120 = arith.addf %112, %119 : vector<32x128xf32>
    %c5_109 = arith.constant 5 : index
    %c0_110 = arith.constant 0 : index
    %c0_111 = arith.constant 0 : index
    %121 = vector.load %arg4[%c5_109, %c0_110, %c0_111] : memref<9x32x128xbf16, #tpu.memory_space<vmem>>, vector<1x32x128xbf16>
    %122 = vector.shape_cast %121 : vector<1x32x128xbf16> to vector<32x128xbf16>
    %cst_112 = arith.constant dense<0.000000e+00> : vector<32x128xf32>
    %123 = tpu.matmul %122, %79, %cst_112 {dimension_numbers = #tpu.dot_dimension_numbers<[1], [0], [0], [1], [0, 0, 1, 1], [], []>} : vector<32x128xbf16>, vector<128x128xbf16>, vector<32x128xf32> -> vector<32x128xf32>
    %124 = arith.truncf %123 : vector<32x128xf32> to vector<32x128xbf16>
    %c5_113 = arith.constant 5 : index
    %c0_114 = arith.constant 0 : index
    %c0_115 = arith.constant 0 : index
    %125 = vector.load %arg5[%c5_113, %c0_114, %c0_115] : memref<9x128x128xbf16, #tpu.memory_space<vmem>>, vector<1x128x128xbf16>
    %126 = vector.shape_cast %125 : vector<1x128x128xbf16> to vector<128x128xbf16>
    %cst_116 = arith.constant dense<0.000000e+00> : vector<32x128xf32>
    %127 = tpu.matmul %124, %126, %cst_116 {dimension_numbers = #tpu.dot_dimension_numbers<[1], [0], [0], [1], [0, 0, 1, 1], [], []>} : vector<32x128xbf16>, vector<128x128xbf16>, vector<32x128xf32> -> vector<32x128xf32>
    %128 = arith.addf %120, %127 : vector<32x128xf32>
    %c6_117 = arith.constant 6 : index
    %c0_118 = arith.constant 0 : index
    %c0_119 = arith.constant 0 : index
    %129 = vector.load %arg4[%c6_117, %c0_118, %c0_119] : memref<9x32x128xbf16, #tpu.memory_space<vmem>>, vector<1x32x128xbf16>
    %130 = vector.shape_cast %129 : vector<1x32x128xbf16> to vector<32x128xbf16>
    %cst_120 = arith.constant dense<0.000000e+00> : vector<32x128xf32>
    %131 = tpu.matmul %130, %79, %cst_120 {dimension_numbers = #tpu.dot_dimension_numbers<[1], [0], [0], [1], [0, 0, 1, 1], [], []>} : vector<32x128xbf16>, vector<128x128xbf16>, vector<32x128xf32> -> vector<32x128xf32>
    %132 = arith.truncf %131 : vector<32x128xf32> to vector<32x128xbf16>
    %c6_121 = arith.constant 6 : index
    %c0_122 = arith.constant 0 : index
    %c0_123 = arith.constant 0 : index
    %133 = vector.load %arg5[%c6_121, %c0_122, %c0_123] : memref<9x128x128xbf16, #tpu.memory_space<vmem>>, vector<1x128x128xbf16>
    %134 = vector.shape_cast %133 : vector<1x128x128xbf16> to vector<128x128xbf16>
    %cst_124 = arith.constant dense<0.000000e+00> : vector<32x128xf32>
    %135 = tpu.matmul %132, %134, %cst_124 {dimension_numbers = #tpu.dot_dimension_numbers<[1], [0], [0], [1], [0, 0, 1, 1], [], []>} : vector<32x128xbf16>, vector<128x128xbf16>, vector<32x128xf32> -> vector<32x128xf32>
    %136 = arith.addf %128, %135 : vector<32x128xf32>
    %c7_125 = arith.constant 7 : index
    %c0_126 = arith.constant 0 : index
    %c0_127 = arith.constant 0 : index
    %137 = vector.load %arg4[%c7_125, %c0_126, %c0_127] : memref<9x32x128xbf16, #tpu.memory_space<vmem>>, vector<1x32x128xbf16>
    %138 = vector.shape_cast %137 : vector<1x32x128xbf16> to vector<32x128xbf16>
    %cst_128 = arith.constant dense<0.000000e+00> : vector<32x128xf32>
    %139 = tpu.matmul %138, %79, %cst_128 {dimension_numbers = #tpu.dot_dimension_numbers<[1], [0], [0], [1], [0, 0, 1, 1], [], []>} : vector<32x128xbf16>, vector<128x128xbf16>, vector<32x128xf32> -> vector<32x128xf32>
    %140 = arith.truncf %139 : vector<32x128xf32> to vector<32x128xbf16>
    %c7_129 = arith.constant 7 : index
    %c0_130 = arith.constant 0 : index
    %c0_131 = arith.constant 0 : index
    %141 = vector.load %arg5[%c7_129, %c0_130, %c0_131] : memref<9x128x128xbf16, #tpu.memory_space<vmem>>, vector<1x128x128xbf16>
    %142 = vector.shape_cast %141 : vector<1x128x128xbf16> to vector<128x128xbf16>
    %cst_132 = arith.constant dense<0.000000e+00> : vector<32x128xf32>
    %143 = tpu.matmul %140, %142, %cst_132 {dimension_numbers = #tpu.dot_dimension_numbers<[1], [0], [0], [1], [0, 0, 1, 1], [], []>} : vector<32x128xbf16>, vector<128x128xbf16>, vector<32x128xf32> -> vector<32x128xf32>
    %144 = arith.addf %136, %143 : vector<32x128xf32>
    %c8_133 = arith.constant 8 : index
    %c0_134 = arith.constant 0 : index
    %c0_135 = arith.constant 0 : index
    %145 = vector.load %arg4[%c8_133, %c0_134, %c0_135] : memref<9x32x128xbf16, #tpu.memory_space<vmem>>, vector<1x32x128xbf16>
    %146 = vector.shape_cast %145 : vector<1x32x128xbf16> to vector<32x128xbf16>
    %cst_136 = arith.constant dense<0.000000e+00> : vector<32x128xf32>
    %147 = tpu.matmul %146, %79, %cst_136 {dimension_numbers = #tpu.dot_dimension_numbers<[1], [0], [0], [1], [0, 0, 1, 1], [], []>} : vector<32x128xbf16>, vector<128x128xbf16>, vector<32x128xf32> -> vector<32x128xf32>
    %148 = arith.truncf %147 : vector<32x128xf32> to vector<32x128xbf16>
    %c8_137 = arith.constant 8 : index
    %c0_138 = arith.constant 0 : index
    %c0_139 = arith.constant 0 : index
    %149 = vector.load %arg5[%c8_137, %c0_138, %c0_139] : memref<9x128x128xbf16, #tpu.memory_space<vmem>>, vector<1x128x128xbf16>
    %150 = vector.shape_cast %149 : vector<1x128x128xbf16> to vector<128x128xbf16>
    %cst_140 = arith.constant dense<0.000000e+00> : vector<32x128xf32>
    %151 = tpu.matmul %148, %150, %cst_140 {dimension_numbers = #tpu.dot_dimension_numbers<[1], [0], [0], [1], [0, 0, 1, 1], [], []>} : vector<32x128xbf16>, vector<128x128xbf16>, vector<32x128xf32> -> vector<32x128xf32>
    %152 = arith.addf %144, %151 : vector<32x128xf32>
    %c0_141 = arith.constant 0 : index
    %c0_142 = arith.constant 0 : index
    %153 = vector.load %arg6[%c0_141, %c0_142] : memref<1x128xf32, #tpu.memory_space<vmem>>, vector<1x128xf32>
    %154 = vector.broadcast %153 : vector<1x128xf32> to vector<32x128xf32>
    %155 = arith.addf %152, %154 : vector<32x128xf32>
    %cst_143 = arith.constant 0.000000e+00 : f32
    %156 = vector.broadcast %cst_143 : f32 to vector<32x128xf32>
    %157 = arith.maximumf %155, %156 : vector<32x128xf32>
    %158 = arith.truncf %157 : vector<32x128xf32> to vector<32x128xbf16>
    %cst_144 = arith.constant 0.000000e+00 : f32
    %159 = vector.broadcast %cst_144 : f32 to vector<8x512xf32>
    %c0_145 = arith.constant 0 : index
    %c0_146 = arith.constant 0 : index
    %c0_147 = arith.constant 0 : index
    %160 = vector.load %arg7[%c0_145, %c0_146, %c0_147] : memref<9x8x32xbf16, #tpu.memory_space<vmem>>, vector<1x8x32xbf16>
    %161 = vector.shape_cast %160 : vector<1x8x32xbf16> to vector<8x32xbf16>
    %cst_148 = arith.constant dense<0.000000e+00> : vector<8x128xf32>
    %162 = tpu.matmul %161, %158, %cst_148 {dimension_numbers = #tpu.dot_dimension_numbers<[1], [0], [0], [1], [0, 0, 1, 1], [], []>} : vector<8x32xbf16>, vector<32x128xbf16>, vector<8x128xf32> -> vector<8x128xf32>
    %163 = arith.truncf %162 : vector<8x128xf32> to vector<8x128xbf16>
    %c0_149 = arith.constant 0 : index
    %c0_150 = arith.constant 0 : index
    %c0_151 = arith.constant 0 : index
    %164 = vector.load %arg8[%c0_149, %c0_150, %c0_151] : memref<9x128x512xbf16, #tpu.memory_space<vmem>>, vector<1x128x512xbf16>
    %165 = vector.shape_cast %164 : vector<1x128x512xbf16> to vector<128x512xbf16>
    %cst_152 = arith.constant dense<0.000000e+00> : vector<8x512xf32>
    %166 = tpu.matmul %163, %165, %cst_152 {dimension_numbers = #tpu.dot_dimension_numbers<[1], [0], [0], [1], [0, 0, 1, 1], [], []>} : vector<8x128xbf16>, vector<128x512xbf16>, vector<8x512xf32> -> vector<8x512xf32>
    %167 = arith.addf %159, %166 : vector<8x512xf32>
    %c1_153 = arith.constant 1 : index
    %c0_154 = arith.constant 0 : index
    %c0_155 = arith.constant 0 : index
    %168 = vector.load %arg7[%c1_153, %c0_154, %c0_155] : memref<9x8x32xbf16, #tpu.memory_space<vmem>>, vector<1x8x32xbf16>
    %169 = vector.shape_cast %168 : vector<1x8x32xbf16> to vector<8x32xbf16>
    %cst_156 = arith.constant dense<0.000000e+00> : vector<8x128xf32>
    %170 = tpu.matmul %169, %158, %cst_156 {dimension_numbers = #tpu.dot_dimension_numbers<[1], [0], [0], [1], [0, 0, 1, 1], [], []>} : vector<8x32xbf16>, vector<32x128xbf16>, vector<8x128xf32> -> vector<8x128xf32>
    %171 = arith.truncf %170 : vector<8x128xf32> to vector<8x128xbf16>
    %c1_157 = arith.constant 1 : index
    %c0_158 = arith.constant 0 : index
    %c0_159 = arith.constant 0 : index
    %172 = vector.load %arg8[%c1_157, %c0_158, %c0_159] : memref<9x128x512xbf16, #tpu.memory_space<vmem>>, vector<1x128x512xbf16>
    %173 = vector.shape_cast %172 : vector<1x128x512xbf16> to vector<128x512xbf16>
    %cst_160 = arith.constant dense<0.000000e+00> : vector<8x512xf32>
    %174 = tpu.matmul %171, %173, %cst_160 {dimension_numbers = #tpu.dot_dimension_numbers<[1], [0], [0], [1], [0, 0, 1, 1], [], []>} : vector<8x128xbf16>, vector<128x512xbf16>, vector<8x512xf32> -> vector<8x512xf32>
    %175 = arith.addf %167, %174 : vector<8x512xf32>
    %c2_161 = arith.constant 2 : index
    %c0_162 = arith.constant 0 : index
    %c0_163 = arith.constant 0 : index
    %176 = vector.load %arg7[%c2_161, %c0_162, %c0_163] : memref<9x8x32xbf16, #tpu.memory_space<vmem>>, vector<1x8x32xbf16>
    %177 = vector.shape_cast %176 : vector<1x8x32xbf16> to vector<8x32xbf16>
    %cst_164 = arith.constant dense<0.000000e+00> : vector<8x128xf32>
    %178 = tpu.matmul %177, %158, %cst_164 {dimension_numbers = #tpu.dot_dimension_numbers<[1], [0], [0], [1], [0, 0, 1, 1], [], []>} : vector<8x32xbf16>, vector<32x128xbf16>, vector<8x128xf32> -> vector<8x128xf32>
    %179 = arith.truncf %178 : vector<8x128xf32> to vector<8x128xbf16>
    %c2_165 = arith.constant 2 : index
    %c0_166 = arith.constant 0 : index
    %c0_167 = arith.constant 0 : index
    %180 = vector.load %arg8[%c2_165, %c0_166, %c0_167] : memref<9x128x512xbf16, #tpu.memory_space<vmem>>, vector<1x128x512xbf16>
    %181 = vector.shape_cast %180 : vector<1x128x512xbf16> to vector<128x512xbf16>
    %cst_168 = arith.constant dense<0.000000e+00> : vector<8x512xf32>
    %182 = tpu.matmul %179, %181, %cst_168 {dimension_numbers = #tpu.dot_dimension_numbers<[1], [0], [0], [1], [0, 0, 1, 1], [], []>} : vector<8x128xbf16>, vector<128x512xbf16>, vector<8x512xf32> -> vector<8x512xf32>
    %183 = arith.addf %175, %182 : vector<8x512xf32>
    %c3_169 = arith.constant 3 : index
    %c0_170 = arith.constant 0 : index
    %c0_171 = arith.constant 0 : index
    %184 = vector.load %arg7[%c3_169, %c0_170, %c0_171] : memref<9x8x32xbf16, #tpu.memory_space<vmem>>, vector<1x8x32xbf16>
    %185 = vector.shape_cast %184 : vector<1x8x32xbf16> to vector<8x32xbf16>
    %cst_172 = arith.constant dense<0.000000e+00> : vector<8x128xf32>
    %186 = tpu.matmul %185, %158, %cst_172 {dimension_numbers = #tpu.dot_dimension_numbers<[1], [0], [0], [1], [0, 0, 1, 1], [], []>} : vector<8x32xbf16>, vector<32x128xbf16>, vector<8x128xf32> -> vector<8x128xf32>
    %187 = arith.truncf %186 : vector<8x128xf32> to vector<8x128xbf16>
    %c3_173 = arith.constant 3 : index
    %c0_174 = arith.constant 0 : index
    %c0_175 = arith.constant 0 : index
    %188 = vector.load %arg8[%c3_173, %c0_174, %c0_175] : memref<9x128x512xbf16, #tpu.memory_space<vmem>>, vector<1x128x512xbf16>
    %189 = vector.shape_cast %188 : vector<1x128x512xbf16> to vector<128x512xbf16>
    %cst_176 = arith.constant dense<0.000000e+00> : vector<8x512xf32>
    %190 = tpu.matmul %187, %189, %cst_176 {dimension_numbers = #tpu.dot_dimension_numbers<[1], [0], [0], [1], [0, 0, 1, 1], [], []>} : vector<8x128xbf16>, vector<128x512xbf16>, vector<8x512xf32> -> vector<8x512xf32>
    %191 = arith.addf %183, %190 : vector<8x512xf32>
    %c4_177 = arith.constant 4 : index
    %c0_178 = arith.constant 0 : index
    %c0_179 = arith.constant 0 : index
    %192 = vector.load %arg7[%c4_177, %c0_178, %c0_179] : memref<9x8x32xbf16, #tpu.memory_space<vmem>>, vector<1x8x32xbf16>
    %193 = vector.shape_cast %192 : vector<1x8x32xbf16> to vector<8x32xbf16>
    %cst_180 = arith.constant dense<0.000000e+00> : vector<8x128xf32>
    %194 = tpu.matmul %193, %158, %cst_180 {dimension_numbers = #tpu.dot_dimension_numbers<[1], [0], [0], [1], [0, 0, 1, 1], [], []>} : vector<8x32xbf16>, vector<32x128xbf16>, vector<8x128xf32> -> vector<8x128xf32>
    %195 = arith.truncf %194 : vector<8x128xf32> to vector<8x128xbf16>
    %c4_181 = arith.constant 4 : index
    %c0_182 = arith.constant 0 : index
    %c0_183 = arith.constant 0 : index
    %196 = vector.load %arg8[%c4_181, %c0_182, %c0_183] : memref<9x128x512xbf16, #tpu.memory_space<vmem>>, vector<1x128x512xbf16>
    %197 = vector.shape_cast %196 : vector<1x128x512xbf16> to vector<128x512xbf16>
    %cst_184 = arith.constant dense<0.000000e+00> : vector<8x512xf32>
    %198 = tpu.matmul %195, %197, %cst_184 {dimension_numbers = #tpu.dot_dimension_numbers<[1], [0], [0], [1], [0, 0, 1, 1], [], []>} : vector<8x128xbf16>, vector<128x512xbf16>, vector<8x512xf32> -> vector<8x512xf32>
    %199 = arith.addf %191, %198 : vector<8x512xf32>
    %c5_185 = arith.constant 5 : index
    %c0_186 = arith.constant 0 : index
    %c0_187 = arith.constant 0 : index
    %200 = vector.load %arg7[%c5_185, %c0_186, %c0_187] : memref<9x8x32xbf16, #tpu.memory_space<vmem>>, vector<1x8x32xbf16>
    %201 = vector.shape_cast %200 : vector<1x8x32xbf16> to vector<8x32xbf16>
    %cst_188 = arith.constant dense<0.000000e+00> : vector<8x128xf32>
    %202 = tpu.matmul %201, %158, %cst_188 {dimension_numbers = #tpu.dot_dimension_numbers<[1], [0], [0], [1], [0, 0, 1, 1], [], []>} : vector<8x32xbf16>, vector<32x128xbf16>, vector<8x128xf32> -> vector<8x128xf32>
    %203 = arith.truncf %202 : vector<8x128xf32> to vector<8x128xbf16>
    %c5_189 = arith.constant 5 : index
    %c0_190 = arith.constant 0 : index
    %c0_191 = arith.constant 0 : index
    %204 = vector.load %arg8[%c5_189, %c0_190, %c0_191] : memref<9x128x512xbf16, #tpu.memory_space<vmem>>, vector<1x128x512xbf16>
    %205 = vector.shape_cast %204 : vector<1x128x512xbf16> to vector<128x512xbf16>
    %cst_192 = arith.constant dense<0.000000e+00> : vector<8x512xf32>
    %206 = tpu.matmul %203, %205, %cst_192 {dimension_numbers = #tpu.dot_dimension_numbers<[1], [0], [0], [1], [0, 0, 1, 1], [], []>} : vector<8x128xbf16>, vector<128x512xbf16>, vector<8x512xf32> -> vector<8x512xf32>
    %207 = arith.addf %199, %206 : vector<8x512xf32>
    %c6_193 = arith.constant 6 : index
    %c0_194 = arith.constant 0 : index
    %c0_195 = arith.constant 0 : index
    %208 = vector.load %arg7[%c6_193, %c0_194, %c0_195] : memref<9x8x32xbf16, #tpu.memory_space<vmem>>, vector<1x8x32xbf16>
    %209 = vector.shape_cast %208 : vector<1x8x32xbf16> to vector<8x32xbf16>
    %cst_196 = arith.constant dense<0.000000e+00> : vector<8x128xf32>
    %210 = tpu.matmul %209, %158, %cst_196 {dimension_numbers = #tpu.dot_dimension_numbers<[1], [0], [0], [1], [0, 0, 1, 1], [], []>} : vector<8x32xbf16>, vector<32x128xbf16>, vector<8x128xf32> -> vector<8x128xf32>
    %211 = arith.truncf %210 : vector<8x128xf32> to vector<8x128xbf16>
    %c6_197 = arith.constant 6 : index
    %c0_198 = arith.constant 0 : index
    %c0_199 = arith.constant 0 : index
    %212 = vector.load %arg8[%c6_197, %c0_198, %c0_199] : memref<9x128x512xbf16, #tpu.memory_space<vmem>>, vector<1x128x512xbf16>
    %213 = vector.shape_cast %212 : vector<1x128x512xbf16> to vector<128x512xbf16>
    %cst_200 = arith.constant dense<0.000000e+00> : vector<8x512xf32>
    %214 = tpu.matmul %211, %213, %cst_200 {dimension_numbers = #tpu.dot_dimension_numbers<[1], [0], [0], [1], [0, 0, 1, 1], [], []>} : vector<8x128xbf16>, vector<128x512xbf16>, vector<8x512xf32> -> vector<8x512xf32>
    %215 = arith.addf %207, %214 : vector<8x512xf32>
    %c7_201 = arith.constant 7 : index
    %c0_202 = arith.constant 0 : index
    %c0_203 = arith.constant 0 : index
    %216 = vector.load %arg7[%c7_201, %c0_202, %c0_203] : memref<9x8x32xbf16, #tpu.memory_space<vmem>>, vector<1x8x32xbf16>
    %217 = vector.shape_cast %216 : vector<1x8x32xbf16> to vector<8x32xbf16>
    %cst_204 = arith.constant dense<0.000000e+00> : vector<8x128xf32>
    %218 = tpu.matmul %217, %158, %cst_204 {dimension_numbers = #tpu.dot_dimension_numbers<[1], [0], [0], [1], [0, 0, 1, 1], [], []>} : vector<8x32xbf16>, vector<32x128xbf16>, vector<8x128xf32> -> vector<8x128xf32>
    %219 = arith.truncf %218 : vector<8x128xf32> to vector<8x128xbf16>
    %c7_205 = arith.constant 7 : index
    %c0_206 = arith.constant 0 : index
    %c0_207 = arith.constant 0 : index
    %220 = vector.load %arg8[%c7_205, %c0_206, %c0_207] : memref<9x128x512xbf16, #tpu.memory_space<vmem>>, vector<1x128x512xbf16>
    %221 = vector.shape_cast %220 : vector<1x128x512xbf16> to vector<128x512xbf16>
    %cst_208 = arith.constant dense<0.000000e+00> : vector<8x512xf32>
    %222 = tpu.matmul %219, %221, %cst_208 {dimension_numbers = #tpu.dot_dimension_numbers<[1], [0], [0], [1], [0, 0, 1, 1], [], []>} : vector<8x128xbf16>, vector<128x512xbf16>, vector<8x512xf32> -> vector<8x512xf32>
    %223 = arith.addf %215, %222 : vector<8x512xf32>
    %c8_209 = arith.constant 8 : index
    %c0_210 = arith.constant 0 : index
    %c0_211 = arith.constant 0 : index
    %224 = vector.load %arg7[%c8_209, %c0_210, %c0_211] : memref<9x8x32xbf16, #tpu.memory_space<vmem>>, vector<1x8x32xbf16>
    %225 = vector.shape_cast %224 : vector<1x8x32xbf16> to vector<8x32xbf16>
    %cst_212 = arith.constant dense<0.000000e+00> : vector<8x128xf32>
    %226 = tpu.matmul %225, %158, %cst_212 {dimension_numbers = #tpu.dot_dimension_numbers<[1], [0], [0], [1], [0, 0, 1, 1], [], []>} : vector<8x32xbf16>, vector<32x128xbf16>, vector<8x128xf32> -> vector<8x128xf32>
    %227 = arith.truncf %226 : vector<8x128xf32> to vector<8x128xbf16>
    %c8_213 = arith.constant 8 : index
    %c0_214 = arith.constant 0 : index
    %c0_215 = arith.constant 0 : index
    %228 = vector.load %arg8[%c8_213, %c0_214, %c0_215] : memref<9x128x512xbf16, #tpu.memory_space<vmem>>, vector<1x128x512xbf16>
    %229 = vector.shape_cast %228 : vector<1x128x512xbf16> to vector<128x512xbf16>
    %cst_216 = arith.constant dense<0.000000e+00> : vector<8x512xf32>
    %230 = tpu.matmul %227, %229, %cst_216 {dimension_numbers = #tpu.dot_dimension_numbers<[1], [0], [0], [1], [0, 0, 1, 1], [], []>} : vector<8x128xbf16>, vector<128x512xbf16>, vector<8x512xf32> -> vector<8x512xf32>
    %231 = arith.addf %223, %230 : vector<8x512xf32>
    %c0_217 = arith.constant 0 : index
    %c0_218 = arith.constant 0 : index
    %232 = vector.load %arg9[%c0_217, %c0_218] : memref<1x512xf32, #tpu.memory_space<vmem>>, vector<1x512xf32>
    %233 = vector.broadcast %232 : vector<1x512xf32> to vector<8x512xf32>
    %234 = arith.addf %231, %233 : vector<8x512xf32>
    %cst_219 = arith.constant 0.000000e+00 : f32
    %235 = vector.broadcast %cst_219 : f32 to vector<8x512xf32>
    %236 = arith.maximumf %234, %235 : vector<8x512xf32>
    %237 = arith.truncf %236 : vector<8x512xf32> to vector<8x512xbf16>
    %c0_220 = arith.constant 0 : index
    %c0_221 = arith.constant 0 : index
    %238 = vector.load %arg10[%c0_220, %c0_221] : memref<2x8xbf16, #tpu.memory_space<vmem>>, vector<2x8xbf16>
    %cst_222 = arith.constant dense<0.000000e+00> : vector<2x512xf32>
    %239 = tpu.matmul %238, %237, %cst_222 {dimension_numbers = #tpu.dot_dimension_numbers<[1], [0], [0], [1], [0, 0, 1, 1], [], []>} : vector<2x8xbf16>, vector<8x512xbf16>, vector<2x512xf32> -> vector<2x512xf32>
    %240 = arith.truncf %239 : vector<2x512xf32> to vector<2x512xbf16>
    %c0_223 = arith.constant 0 : index
    %c0_224 = arith.constant 0 : index
    %241 = vector.load %arg11[%c0_223, %c0_224] : memref<512x256xbf16, #tpu.memory_space<vmem>>, vector<512x256xbf16>
    %cst_225 = arith.constant dense<0.000000e+00> : vector<2x256xf32>
    %242 = tpu.matmul %240, %241, %cst_225 {dimension_numbers = #tpu.dot_dimension_numbers<[1], [0], [0], [1], [0, 0, 1, 1], [], []>} : vector<2x512xbf16>, vector<512x256xbf16>, vector<2x256xf32> -> vector<2x256xf32>
    %c0_226 = arith.constant 0 : index
    %c0_227 = arith.constant 0 : index
    %243 = vector.load %arg12[%c0_226, %c0_227] : memref<1x256xf32, #tpu.memory_space<vmem>>, vector<1x256xf32>
    %244 = vector.broadcast %243 : vector<1x256xf32> to vector<2x256xf32>
    %245 = arith.addf %242, %244 : vector<2x256xf32>
    %cst_228 = arith.constant 0.000000e+00 : f32
    %246 = vector.broadcast %cst_228 : f32 to vector<2x256xf32>
    %247 = arith.maximumf %245, %246 : vector<2x256xf32>
    %248 = arith.truncf %247 : vector<2x256xf32> to vector<2x256xbf16>
    %c0_229 = arith.constant 0 : index
    %c0_230 = arith.constant 0 : index
    %249 = vector.load %arg13[%c0_229, %c0_230] : memref<256x128xbf16, #tpu.memory_space<vmem>>, vector<256x128xbf16>
    %cst_231 = arith.constant dense<0.000000e+00> : vector<2x128xf32>
    %250 = tpu.matmul %248, %249, %cst_231 {dimension_numbers = #tpu.dot_dimension_numbers<[1], [0], [0], [1], [0, 0, 1, 1], [], []>} : vector<2x256xbf16>, vector<256x128xbf16>, vector<2x128xf32> -> vector<2x128xf32>
    %c0_232 = arith.constant 0 : index
    %c0_233 = arith.constant 0 : index
    %251 = vector.load %arg14[%c0_232, %c0_233] : memref<1x128xf32, #tpu.memory_space<vmem>>, vector<1x128xf32>
    %252 = vector.broadcast %251 : vector<1x128xf32> to vector<2x128xf32>
    %253 = arith.addf %250, %252 : vector<2x128xf32>
    %c0_234 = arith.constant 0 : index
    %c0_235 = arith.constant 0 : index
    %254 = vector.load %arg15[%c0_234, %c0_235] : memref<2x2xbf16, #tpu.memory_space<vmem>>, vector<2x2xbf16>
    %c0_236 = arith.constant 0 : index
    %c0_237 = arith.constant 0 : index
    %255 = vector.load %arg16[%c0_236, %c0_237] : memref<2x256xbf16, #tpu.memory_space<vmem>>, vector<2x256xbf16>
    %cst_238 = arith.constant dense<0.000000e+00> : vector<2x256xf32>
    %256 = tpu.matmul %254, %255, %cst_238 {dimension_numbers = #tpu.dot_dimension_numbers<[1], [0], [0], [1], [0, 0, 1, 1], [], []>} : vector<2x2xbf16>, vector<2x256xbf16>, vector<2x256xf32> -> vector<2x256xf32>
    %257 = arith.truncf %253 : vector<2x128xf32> to vector<2x128xbf16>
    %c0_239 = arith.constant 0 : index
    %c0_240 = arith.constant 0 : index
    %258 = vector.load %arg17[%c0_239, %c0_240] : memref<128x256xbf16, #tpu.memory_space<vmem>>, vector<128x256xbf16>
    %cst_241 = arith.constant dense<0.000000e+00> : vector<2x256xf32>
    %259 = tpu.matmul %257, %258, %cst_241 {dimension_numbers = #tpu.dot_dimension_numbers<[1], [0], [0], [1], [0, 0, 1, 1], [], []>} : vector<2x128xbf16>, vector<128x256xbf16>, vector<2x256xf32> -> vector<2x256xf32>
    %260 = arith.addf %256, %259 : vector<2x256xf32>
    %261 = tpu.concatenate %253, %260 in 1 : vector<2x128xf32>, vector<2x256xf32> -> vector<2x384xf32>
    %c0_242 = arith.constant 0 : index
    %c0_243 = arith.constant 0 : index
    %262 = vector.load %arg18[%c0_242, %c0_243] : memref<2x384xf32, #tpu.memory_space<vmem>>, vector<2x384xf32>
    tpu.vector_store %arg18[%c0_242, %c0_243], %261 {strides = array<i32>} : memref<2x384xf32, #tpu.memory_space<vmem>>, vector<2x384xf32>,
    return
  }
}

</mosaic_0001>

<bundles_post_ra>
// kernel: pmm_forward.1
= control target key start
LH: loop header
LB: loop body
LE: loop exit
PB: predicated region body
PF: predicated region fallthrough
CT: control target
= control target key end

     0   :  { %s17913_s0 = inlined_call_operand.vmem [shape: bf16[512,8], index: 0, kind: input, shape index: {}]   ;;  %s17914_s1 = inlined_call_operand.hbm [shape: bf16[9,128,512], index: 1, kind: input, shape index: {}]   ;;  %s17915_s2 = inlined_call_operand.hbm [shape: bf16[9,8,128], index: 2, kind: input, shape index: {}]   ;;  %s17916_s3 = inlined_call_operand.hbm [shape: f32[1,128], index: 3, kind: input, shape index: {}]   ;;  %s17917_s4 = inlined_call_operand.hbm [shape: bf16[9,32,128], index: 4, kind: input, shape index: {}]   ;;  %s17918_s5 = inlined_call_operand.hbm [shape: bf16[9,128,128], index: 5, kind: input, shape index: {}]   ;;  %s17919_s6 = inlined_call_operand.hbm [shape: f32[1,128], index: 6, kind: input, shape index: {}]   ;;  %s17920_s7 = inlined_call_operand.hbm [shape: bf16[9,8,32], index: 7, kind: input, shape index: {}]   ;;  %s17921_s8 = inlined_call_operand.hbm [shape: bf16[9,128,512], index: 8, kind: input, shape index: {}]   ;;  %s17922_s9 = inlined_call_operand.hbm [shape: f32[1,512], index: 9, kind: input, shape index: {}]   ;;  %s17923_s10 = inlined_call_operand.hbm [shape: bf16[2,8], index: 10, kind: input, shape index: {}]   ;;  %s17924_s11 = inlined_call_operand.hbm [shape: bf16[512,256], index: 11, kind: input, shape index: {}]   ;;  %s17925_s12 = inlined_call_operand.hbm [shape: f32[1,256], index: 12, kind: input, shape index: {}]   ;;  %s17926_s13 = inlined_call_operand.hbm [shape: bf16[256,128], index: 13, kind: input, shape index: {}]   ;;  %s17927_s14 = inlined_call_operand.hbm [shape: f32[1,128], index: 14, kind: input, shape index: {}]   ;;  %s17928_s15 = inlined_call_operand.vmem [shape: bf16[2,2], index: 15, kind: input, shape index: {}]   ;;  %s17929_s16 = inlined_call_operand.hbm [shape: bf16[2,256], index: 16, kind: input, shape index: {}]   ;;  %s17930_s17 = inlined_call_operand.hbm [shape: bf16[128,256], index: 17, kind: input, shape index: {}]   ;;  %s17931_s18 = inlined_call_operand.vmem [shape: f32[2,384], index: 18, kind: output, shape index: {}]  }
   0x1   :  { %17938 = sst [smem:[#allocation62_spill]] %s17913_s0 }
   0x2   :  { %17939 = sst [smem:[#allocation63_spill]] %s17914_s1 }
   0x3   :  { %17940 = sst [smem:[#allocation64_spill]] %s17915_s2 }
   0x4   :  { %23 = vsyncpa [#allocation3], 0 }
   0x5   :  { %24 = vsyncpa [#allocation5], 0 }
   0x6   :  { %25 = vsyncpa [#allocation8], 0 }
   0x7   :  { %26 = vsyncpa [#allocation11], 0 }
   0x8   :  { %27 = vsyncpa [#allocation14], 0 }
   0x9   :  { %28 = vsyncpa [#allocation17], 0 }
   0xa   :  { %29 = vsyncpa [#allocation20], 0 }
   0xb   :  { %30 = vsyncpa [#allocation23], 0 }
   0xc   :  { %31 = vsyncpa [#allocation26], 0  ;;  %s15560_s27 = smov [#allocation4]  }
   0xd   :  { %s51_s28 = sshll.u32 %s15560_s27, 4  ;;  %s52_s28 = int_to_ptr.vmem [resolvable:$true] %s51_s28 }
   0xe   :  { %s15230_s29 = scalar_lea.vmem %s52_s28, 576  ;;  %p15235_p1 = scmp.lt.s32.totalorder %s52_s28, %s52_s28 }
   0xf   :  { %p15231_p0 = scmp.ne.s32.totalorder %s52_s28, %s15230_s29  ;;  %p15236_p2 = scmp.lt.s32.totalorder %s15230_s29, %s15230_s29 }
  0x11   :  { %p15237_p3 = por %p15236_p2, %p15235_p1 }
  0x13   :  { %p15238_p4 = pnand %p15237_p3, %p15231_p0 }
  0x15   :  { %15241 = shalt.err (!%p15238_p4)
}
  0x16   :  { %s15561_s30 = smov 64   ;;  %s15562_s0 = smov 4  }
  0x17   :  { %s17941_s20 = sld [smem:[#allocation64_spill]]  ;;  %s15563_s21 = smov [#allocation7]  }
  0x18   :  { %s73_s22 = sshll.u32 %s15563_s21, 4  ;;  %s15564_s2 = smov [#allocation10]   ;;  %s74_s22 = int_to_ptr.vmem [resolvable:$true] %s73_s22 }
  0x19   :  { %s98_s23 = sshll.u32 %s15564_s2, 4  ;;  %s15250_s24 = scalar_lea.vmem %s74_s22, 2304  ;;  %s99_s23 = int_to_ptr.vmem [resolvable:$true] %s98_s23 }
  0x1a   :  { %p15251_p5 = scmp.ne.s32.totalorder %s74_s22, %s15250_s24  ;;  %p15255_p6 = scmp.lt.s32.totalorder %s74_s22, %s74_s22 }
  0x1b   :  { %p15256_p7 = scmp.lt.s32.totalorder %s15250_s24, %s15250_s24 }
  0x1d   :  { %57 = dma.hbm_to_vmem [thread:$0]  %s17941_s20, 576, %s52_s28, [#allocation5], %s15561_s30, %s15561_s30, %s15562_s0  }
  0x1e   :  { %p15257_p8 = por %p15256_p7, %p15255_p6 }
  0x20   :  { %p15258_p9 = pnand %p15257_p8, %p15251_p5 }
  0x22   :  { %15261 = shalt.err (!%p15258_p9)
}
  0x23   :  { %79 = dma.hbm_to_vmem [thread:$0]  %s17917_s4, 2304, %s74_s22, [#allocation8], %s15561_s30, %s15561_s30, %s15562_s0  }
  0x24   :  { %s15270_s27 = scalar_lea.vmem %s99_s23, 16  ;;  %s15274_s28 = scalar_lea.vmem %s99_s23, 32 }
  0x25   :  { %p15271_p10 = scmp.ne.s32.totalorder %s99_s23, %s15270_s27  ;;  %p15275_p11 = scmp.lt.s32.totalorder %s99_s23, %s99_s23 }
  0x26   :  { %p15276_p12 = scmp.lt.s32.totalorder %s15274_s28, %s15270_s27 }
  0x28   :  { %p15277_p13 = por %p15276_p12, %p15275_p11 }
  0x2a   :  { %p15278_p0 = pnand %p15277_p13, %p15271_p10 }
  0x2c   :  { %15281 = shalt.err (!%p15278_p0)
}
  0x2d   :  { %101 = dma.hbm_to_vmem [thread:$0]  %s17919_s6, 16, %s99_s23, [#allocation11]  }
  0x2e   :  { %s15565_s1 = smov [#allocation13]   ;;  %s15566_s21 = smov [#allocation16]  }
  0x2f   :  { %s119_s20 = sshll.u32 %s15565_s1, 4  ;;  %s142_s2 = sshll.u32 %s15566_s21, 4  ;;  %s120_s20 = int_to_ptr.vmem [resolvable:$true] %s119_s20  ;;  %s143_s2 = int_to_ptr.vmem [resolvable:$true] %s142_s2 }
  0x30   :  { %s15290_s24 = scalar_lea.vmem %s120_s20, 36864  ;;  %p15295_p2 = scmp.lt.s32.totalorder %s120_s20, %s120_s20 }
  0x31   :  { %p15291_p1 = scmp.ne.s32.totalorder %s120_s20, %s15290_s24  ;;  %p15296_p3 = scmp.lt.s32.totalorder %s15290_s24, %s15290_s24 }
  0x33   :  { %p15297_p4 = por %p15296_p3, %p15295_p2 }
  0x35   :  { %p15298_p5 = pnand %p15297_p4, %p15291_p1 }
  0x37   :  { %15301 = shalt.err (!%p15298_p5)
}
  0x38   :  { %s15567_s4 = smov 256   ;;  %s15568_s22 = smov 16  }
  0x39   :  { %125 = dma.hbm_to_vmem [thread:$0]  %s17921_s8, 36864, %s120_s20, [#allocation14], %s15567_s4, %s15567_s4, %s15568_s22  }
  0x3a   :  { %s15310_s6 = scalar_lea.vmem %s143_s2, 16  ;;  %s15314_s23 = scalar_lea.vmem %s143_s2, 32 }
  0x3b   :  { %p15311_p6 = scmp.ne.s32.totalorder %s143_s2, %s15310_s6  ;;  %p15315_p7 = scmp.lt.s32.totalorder %s143_s2, %s143_s2 }
  0x3c   :  { %p15316_p8 = scmp.lt.s32.totalorder %s15314_s23, %s15310_s6 }
  0x3e   :  { %p15317_p9 = por %p15316_p8, %p15315_p7 }
  0x40   :  { %p15318_p10 = pnand %p15317_p9, %p15311_p6 }
  0x42   :  { %15321 = shalt.err (!%p15318_p10)
}
  0x43   :  { %145 = dma.hbm_to_vmem [thread:$0]  %s17923_s10, 16, %s143_s2, [#allocation17]  }
  0x44   :  { %s15569_s29 = smov [#allocation19]   ;;  %s15570_s1 = smov [#allocation22]  }
  0x45   :  { %s164_s19 = sshll.u32 %s15569_s29, 4  ;;  %s186_s21 = sshll.u32 %s15570_s1, 4  ;;  %s165_s19 = int_to_ptr.vmem [resolvable:$true] %s164_s19  ;;  %s187_s21 = int_to_ptr.vmem [resolvable:$true] %s186_s21 }
  0x46   :  { %s15330_s24 = scalar_lea.vmem %s165_s19, 32  ;;  %p15335_p12 = scmp.lt.s32.totalorder %s165_s19, %s165_s19 }
  0x47   :  { %p15331_p11 = scmp.ne.s32.totalorder %s165_s19, %s15330_s24  ;;  %p15336_p13 = scmp.lt.s32.totalorder %s15330_s24, %s15330_s24 }
  0x49   :  { %p15337_p0 = por %p15336_p13, %p15335_p12 }
  0x4b   :  { %p15338_p1 = pnand %p15337_p0, %p15331_p11 }
  0x4d   :  { %15341 = shalt.err (!%p15338_p1)
}
  0x4e   :  { %167 = dma.hbm_to_vmem [thread:$0]  %s17925_s12, 32, %s165_s19, [#allocation20]  }
  0x4f   :  { %s15350_s25 = scalar_lea.vmem %s187_s21, 16  ;;  %s15354_s10 = scalar_lea.vmem %s187_s21, 32 }
  0x50   :  { %p15351_p2 = scmp.ne.s32.totalorder %s187_s21, %s15350_s25  ;;  %p15355_p3 = scmp.lt.s32.totalorder %s187_s21, %s187_s21 }
  0x51   :  { %p15356_p4 = scmp.lt.s32.totalorder %s15354_s10, %s15350_s25 }
  0x53   :  { %p15357_p5 = por %p15356_p4, %p15355_p3 }
  0x55   :  { %p15358_p6 = pnand %p15357_p5, %p15351_p2 }
  0x57   :  { %15361 = shalt.err (!%p15358_p6)
}
  0x58   :  { %189 = dma.hbm_to_vmem [thread:$0]  %s17927_s14, 16, %s187_s21, [#allocation23]  }
  0x59   :  { %s15571_s6 = smov [#allocation2]   ;;  %s15572_s27 = smov [#allocation6]  }
  0x5a   :  { %s39_s23 = sshll.u32 %s15571_s6, 4  ;;  %s64_s28 = sshll.u32 %s15572_s27, 4  ;;  %s40_s23 = int_to_ptr.vmem [resolvable:$true] %s39_s23  ;;  %s65_s28 = int_to_ptr.vmem [resolvable:$true] %s64_s28 }
  0x5b   :  { %s15370_s29 = scalar_lea.vmem %s40_s23, 36864  ;;  %p15375_p8 = scmp.lt.s32.totalorder %s40_s23, %s40_s23 }
  0x5c   :  { %p15371_p7 = scmp.ne.s32.totalorder %s40_s23, %s15370_s29  ;;  %p15376_p9 = scmp.lt.s32.totalorder %s15370_s29, %s15370_s29 }
  0x5e   :  { %p15377_p10 = por %p15376_p9, %p15375_p8 }
  0x60   :  { %p15378_p11 = pnand %p15377_p10, %p15371_p7 }
  0x62   :  { %15381 = shalt.err (!%p15378_p11)
}
  0x63   :  { %s17942_s1 = sld [smem:[#allocation63_spill]]  ;;  %s15390_s14 = scalar_lea.vmem %s65_s28, 16 }
  0x64   :  { %p15391_p12 = scmp.ne.s32.totalorder %s65_s28, %s15390_s14  ;;  %s15394_s21 = scalar_lea.vmem %s65_s28, 32 }
  0x65   :  { %p15395_p13 = scmp.lt.s32.totalorder %s65_s28, %s65_s28  ;;  %p15396_p0 = scmp.lt.s32.totalorder %s15394_s21, %s15390_s14 }
  0x67   :  { %p15397_p1 = por %p15396_p0, %p15395_p13 }
  0x69   :  { %45 = dma.hbm_to_vmem [thread:$0]  %s17942_s1, 36864, %s40_s23, [#allocation3], %s15567_s4, %s15567_s4, %s15568_s22  }
  0x6a   :  { %p15398_p2 = pnand %p15397_p1, %p15391_p12 }
  0x6c   :  { %15401 = shalt.err (!%p15398_p2)
}
  0x6d   :  { %67 = dma.hbm_to_vmem [thread:$0]  %s17916_s3, 16, %s65_s28, [#allocation5]  }
  0x6e   :  { %s15573_s20 = smov [#allocation9]   ;;  %s15574_s10 = smov [#allocation12]  }
  0x6f   :  { %s85_s25 = sshll.u32 %s15573_s20, 4  ;;  %s107_s2 = sshll.u32 %s15574_s10, 4  ;;  %s86_s25 = int_to_ptr.vmem [resolvable:$true] %s85_s25  ;;  %s108_s2 = int_to_ptr.vmem [resolvable:$true] %s107_s2 }
  0x70   :  { %s15410_s26 = scalar_lea.vmem %s86_s25, 9216  ;;  %p15415_p4 = scmp.lt.s32.totalorder %s86_s25, %s86_s25 }
  0x71   :  { %p15411_p3 = scmp.ne.s32.totalorder %s86_s25, %s15410_s26  ;;  %p15416_p5 = scmp.lt.s32.totalorder %s15410_s26, %s15410_s26 }
  0x73   :  { %p15417_p6 = por %p15416_p5, %p15415_p4 }
  0x75   :  { %p15418_p7 = pnand %p15417_p6, %p15411_p3 }
  0x77   :  { %15421 = shalt.err (!%p15418_p7)
}
  0x78   :  { %91 = dma.hbm_to_vmem [thread:$0]  %s17918_s5, 9216, %s86_s25, [#allocation8], %s15561_s30, %s15561_s30, %s15562_s0  }
  0x79   :  { %s15430_s3 = scalar_lea.vmem %s108_s2, 576  ;;  %p15435_p9 = scmp.lt.s32.totalorder %s108_s2, %s108_s2 }
  0x7a   :  { %p15431_p8 = scmp.ne.s32.totalorder %s108_s2, %s15430_s3  ;;  %p15436_p10 = scmp.lt.s32.totalorder %s15430_s3, %s15430_s3 }
  0x7c   :  { %p15437_p11 = por %p15436_p10, %p15435_p9 }
  0x7e   :  { %p15438_p12 = pnand %p15437_p11, %p15431_p8 }
  0x80   :  { %15441 = shalt.err (!%p15438_p12)
}
  0x81   :  { %113 = dma.hbm_to_vmem [thread:$0]  %s17920_s7, 576, %s108_s2, [#allocation11], %s15561_s30, %s15561_s30, %s15562_s0  }
  0x82   :  { %s15575_s27 = smov [#allocation15]   ;;  %s15576_s29 = smov [#allocation18]  }
  0x83   :  { %s132_s28 = sshll.u32 %s15575_s27, 4  ;;  %s151_s5 = sshll.u32 %s15576_s29, 4  ;;  %s133_s28 = int_to_ptr.vmem [resolvable:$true] %s132_s28  ;;  %s152_s5 = int_to_ptr.vmem [resolvable:$true] %s151_s5 }
  0x84   :  { %s15450_s12 = scalar_lea.vmem %s133_s28, 64  ;;  %p15455_p0 = scmp.lt.s32.totalorder %s133_s28, %s133_s28 }
  0x85   :  { %p15451_p13 = scmp.ne.s32.totalorder %s133_s28, %s15450_s12  ;;  %p15456_p1 = scmp.lt.s32.totalorder %s15450_s12, %s15450_s12 }
  0x87   :  { %p15457_p2 = por %p15456_p1, %p15455_p0 }
  0x89   :  { %p15458_p3 = pnand %p15457_p2, %p15451_p13 }
  0x8b   :  { %15461 = shalt.err (!%p15458_p3)
}
  0x8c   :  { %135 = dma.hbm_to_vmem [thread:$0]  %s17922_s9, 64, %s133_s28, [#allocation14]  }
  0x8d   :  { %s15470_s14 = scalar_lea.vmem %s152_s5, 8192  ;;  %p15475_p5 = scmp.lt.s32.totalorder %s152_s5, %s152_s5 }
  0x8e   :  { %p15471_p4 = scmp.ne.s32.totalorder %s152_s5, %s15470_s14  ;;  %p15476_p6 = scmp.lt.s32.totalorder %s15470_s14, %s15470_s14 }
  0x90   :  { %p15477_p7 = por %p15476_p6, %p15475_p5 }
  0x92   :  { %p15478_p8 = pnand %p15477_p7, %p15471_p4 }
  0x94   :  { %15481 = shalt.err (!%p15478_p8)
}
  0x95   :  { %s15577_s7 = smov 128   ;;  %s15578_s21 = smov 8  }
  0x96   :  { %157 = dma.hbm_to_vmem [thread:$0]  %s17924_s11, 8192, %s152_s5, [#allocation17], %s15577_s7, %s15577_s7, %s15578_s21  }
  0x97   :  { %s15579_s20 = smov [#allocation21]   ;;  %s15580_s9 = smov [#allocation24]  }
  0x98   :  { %s173_s25 = sshll.u32 %s15579_s20, 4  ;;  %s198_s10 = sshll.u32 %s15580_s9, 4  ;;  %s174_s25 = int_to_ptr.vmem [resolvable:$true] %s173_s25  ;;  %s199_s10 = int_to_ptr.vmem [resolvable:$true] %s198_s10 }
  0x99   :  { %s15490_s2 = scalar_lea.vmem %s174_s25, 2048  ;;  %p15495_p10 = scmp.lt.s32.totalorder %s174_s25, %s174_s25 }
  0x9a   :  { %p15491_p9 = scmp.ne.s32.totalorder %s174_s25, %s15490_s2  ;;  %p15496_p11 = scmp.lt.s32.totalorder %s15490_s2, %s15490_s2 }
  0x9c   :  { %p15497_p12 = por %p15496_p11, %p15495_p10 }
  0x9e   :  { %p15498_p13 = pnand %p15497_p12, %p15491_p9 }
  0xa0   :  { %15501 = shalt.err (!%p15498_p13)
}
  0xa1   :  { %179 = dma.hbm_to_vmem [thread:$0]  %s17926_s13, 2048, %s174_s25, [#allocation20], %s15561_s30, %s15561_s30, %s15562_s0  }
  0xa2   :  { %s15510_s11 = scalar_lea.vmem %s199_s10, 32  ;;  %p15515_p1 = scmp.lt.s32.totalorder %s199_s10, %s199_s10 }
  0xa3   :  { %p15511_p0 = scmp.ne.s32.totalorder %s199_s10, %s15510_s11  ;;  %p15516_p2 = scmp.lt.s32.totalorder %s15510_s11, %s15510_s11 }
  0xa5   :  { %p15517_p3 = por %p15516_p2, %p15515_p1 }
  0xa7   :  { %p15518_p4 = pnand %p15517_p3, %p15511_p0 }
  0xa9   :  { %15521 = shalt.err (!%p15518_p4)
}
  0xaa   :  { %201 = dma.hbm_to_vmem [thread:$0]  %s17929_s16, 32, %s199_s10, [#allocation23]  }
  0xab   :  { %s15581_s6 = smov [#allocation25]  }
  0xac   :  { %s207_s23 = sshll.u32 %s15581_s6, 4  ;;  %s208_s23 = int_to_ptr.vmem [resolvable:$true] %s207_s23 }
  0xad   :  { %s15530_s27 = scalar_lea.vmem %s208_s23, 2048  ;;  %p15535_p6 = scmp.lt.s32.totalorder %s208_s23, %s208_s23 }
  0xae   :  { %p15531_p5 = scmp.ne.s32.totalorder %s208_s23, %s15530_s27  ;;  %p15536_p7 = scmp.lt.s32.totalorder %s15530_s27, %s15530_s27 }
  0xb0   :  { %p15537_p8 = por %p15536_p7, %p15535_p6 }
  0xb2   :  { %p15538_p9 = pnand %p15537_p8, %p15531_p5 }
  0xb4   :  { %15541 = shalt.err (!%p15538_p9)
}
  0xb5   :  { %213 = dma.hbm_to_vmem [thread:$0]  %s17930_s17, 2048, %s208_s23, [#allocation26], %s15577_s7, %s15577_s7, %s15578_s21  }
  0xb6   :  { %15542 = dma.done.wait [#allocation3], 36864  }
  0xb7   :  { %15543 = vsyncadd [#allocation3], 4294930432 }
  0xb8   :  { %15544 = dma.done.wait [#allocation5], 592  }
  0xb9   :  { %15545 = vsyncadd [#allocation5], 4294966704 }
  0xba   :  { %15546 = dma.done.wait [#allocation8], 11520  }
  0xbb   :  { %15547 = vsyncadd [#allocation8], 4294955776 }
  0xbc   :  { %15548 = dma.done.wait [#allocation11], 592  }
  0xbd   :  { %15549 = vsyncadd [#allocation11], 4294966704 }
  0xbe   :  { %15550 = dma.done.wait [#allocation14], 36928  }
  0xbf   :  { %15551 = vsyncadd [#allocation14], 4294930368 }
  0xc0   :  { %15552 = dma.done.wait [#allocation17], 8208  }
  0xc1   :  { %15553 = vsyncadd [#allocation17], 4294959088 }
  0xc2   :  { %15554 = dma.done.wait [#allocation20], 2080  }
  0xc3   :  { %15555 = vsyncadd [#allocation20], 4294965216 }
  0xc4   :  { %15556 = dma.done.wait [#allocation23], 48  }
  0xc5   :  { %15557 = vsyncadd [#allocation23], 4294967248 }
  0xc6   :  { %15558 = dma.done.wait [#allocation26], 2048  }
  0xc7   :  { %15559 = vsyncadd [#allocation26], 4294965248  ;;  %s17943_s0 = sld [smem:[#allocation62_spill]]  ;;  %v14015_v32 = vld [vmem:[#allocation2] ss:$16 sps:$4 sm:$0xff]   ;;  %vm1336_vm0 = vcmask 1043456  }
  0xc8   :  { %v14017_v33 = vld [vmem:[#allocation2 + $0x4] ss:$16 sps:$4 sm:$0xff]   ;;  %v14018_v34 = vld [vmem:[#allocation2 + $0x8] ss:$16 sps:$4 sm:$0xff]   ;;  %v14020_v35 = vld [vmem:[#allocation2 + $0xc] ss:$16 sps:$4 sm:$0xff]  }
  0xc9   :  { %743 = vmatprep.mubr.bf16.mxu0 %v14017_v33  ;;  %v14021_v36 = vld [vmem:[#allocation2 + $0x24] ss:$16 sps:$4 sm:$0xff]   ;;  %840 = vmatprep.mubr.bf16.mxu1 %v14020_v35  ;;  %v14023_v37 = vld [vmem:[#allocation2 + $0x2c] ss:$16 sps:$4 sm:$0xff]   ;;  %v14025_v38 = vld [vmem:[#allocation2 + $0x20] ss:$16 sps:$4 sm:$0xff]  }
  0xca   :  { %v14026_v39 = vld [vmem:[#allocation2 + $0x28] ss:$16 sps:$4 sm:$0xff]   ;;  %v14027_v40 = vld [vmem:[#allocation2 + $0x44] ss:$16 sps:$4 sm:$0xff]   ;;  %v14029_v41 = vld [vmem:[#allocation2 + $0x4c] ss:$16 sps:$4 sm:$0xff]  }
  0xcb   :  { %v14031_v42 = vld [vmem:[#allocation2 + $0x40] ss:$16 sps:$4 sm:$0xff]   ;;  %v14032_v43 = vld [vmem:[#allocation2 + $0x48] ss:$16 sps:$4 sm:$0xff]   ;;  %v14033_v44 = vld [vmem:[#allocation2 + $0x64] ss:$16 sps:$4 sm:$0xff]  }
  0xcc   :  { %v14035_v45 = vld [vmem:[#allocation2 + $0x6c] ss:$16 sps:$4 sm:$0xff]   ;;  %v14037_v46 = vld [vmem:[#allocation2 + $0x60] ss:$16 sps:$4 sm:$0xff]   ;;  %v14038_v47 = vld [vmem:[#allocation2 + $0x68] ss:$16 sps:$4 sm:$0xff]  }
  0xcd   :  { %v15760_v0 = vld [vmem:[%s17943_s0 + $0x78] sm:$0xff]   ;;  %v15783_v4 = vld [vmem:[%s17943_s0 + $0x70] sm:$0xff]   ;;  %v15807_v8 = vld [vmem:[%s17943_s0 + $0x68] sm:$0xff]   ;;  %vm1311_vm1 = vcmask 64512   ;;  %vm15583_vm2 = vmmov 0   ;;  %vm7049_vm3 = vcmask 261120  }
  0xce   :  { %v15765_v1 = vld [vmem:[%s17943_s0 + $0xf8] sm:$0xff]   ;;  %11891 = vmatprep.subr.bf16.mxu0 %v15760_v0  ;;  %v15789_v5 = vld [vmem:[%s17943_s0 + $0xf0] sm:$0xff]   ;;  %v15813_v9 = vld [vmem:[%s17943_s0 + $0xe8] sm:$0xff]   ;;  %vm10924_vm4 = vcmask 1040384   ;;  %vm10920_vm5 = vcmask 15360  }
  0xcf   :  { %v15771_v2 = vld [vmem:[%s17943_s0 + $0x38] sm:$0xff]   ;;  %11955 = vmatprep.subr.bf16.mxu1 %v15765_v1  ;;  %v15795_v6 = vld [vmem:[%s17943_s0 + $0x30] sm:$0xff]   ;;  %v15819_v10 = vld [vmem:[%s17943_s0 + $0x28] sm:$0xff]  }
  0xd0   :  { %v15777_v3 = vld [vmem:[%s17943_s0 + $0xb8] sm:$0xff]   ;;  %11892 = vmatpush3.bf16.msra.mxu0 %v15771_v2  ;;  %v15801_v7 = vld [vmem:[%s17943_s0 + $0xb0] sm:$0xff]   ;;  %v15825_v11 = vld [vmem:[%s17943_s0 + $0xa8] sm:$0xff]  }
  0xd1   :  { %11956 = vmatpush3.bf16.msra.mxu1 %v15777_v3  ;;  %11893 = vmatprep.subr.bf16.mxu0 %v15783_v4  ;;  %v15831_v12 = vld [vmem:[%s17943_s0 + $0x60] sm:$0xff]   ;;  %v15855_v16 = vld [vmem:[%s17943_s0 + $0x58] sm:$0xff]   ;;  %v15879_v20 = vld [vmem:[%s17943_s0 + $0x50] sm:$0xff]  }
  0xd2   :  { %11957 = vmatprep.subr.bf16.mxu1 %v15789_v5  ;;  %v15837_v13 = vld [vmem:[%s17943_s0 + $0xe0] sm:$0xff]   ;;  %v15861_v17 = vld [vmem:[%s17943_s0 + $0xd8] sm:$0xff]   ;;  %v15885_v21 = vld [vmem:[%s17943_s0 + $0xd0] sm:$0xff]  }
  0xd3   :  { %v15843_v14 = vld [vmem:[%s17943_s0 + $0x20] sm:$0xff]   ;;  %v15867_v18 = vld [vmem:[%s17943_s0 + $0x18] sm:$0xff]   ;;  %v15891_v22 = vld [vmem:[%s17943_s0 + $0x10] sm:$0xff]  }
  0xd4   :  { %11894 = vmatpush3.bf16.msra.mxu0 %v15795_v6  ;;  %v15849_v15 = vld [vmem:[%s17943_s0 + $0xa0] sm:$0xff]   ;;  %v15873_v19 = vld [vmem:[%s17943_s0 + $0x98] sm:$0xff]   ;;  %v15897_v23 = vld [vmem:[%s17943_s0 + $0x90] sm:$0xff]  }
  0xd5   :  { %11958 = vmatpush3.bf16.msra.mxu1 %v15801_v7  ;;  %11895 = vmatprep.subr.bf16.mxu0 %v15807_v8  ;;  %v15903_v24 = vld [vmem:[%s17943_s0 + $0x48] sm:$0xff]   ;;  %v15927_v28 = vld [vmem:[%s17943_s0 + $0x40] sm:$0xff]  }
  0xd6   :  { %11959 = vmatprep.subr.bf16.mxu1 %v15813_v9  ;;  %v15909_v25 = vld [vmem:[%s17943_s0 + $0xc8] sm:$0xff]   ;;  %v15933_v29 = vld [vmem:[%s17943_s0 + $0xc0] sm:$0xff]  }
  0xd7   :  { %v15915_v26 = vld [vmem:[%s17943_s0 + $0x8] sm:$0xff]   ;;  %v15939_v30 = vld [vmem:[%s17943_s0] sm:$0xff]  }
  0xd8   :  { %11896 = vmatpush3.bf16.msra.mxu0 %v15819_v10  ;;  %v15921_v27 = vld [vmem:[%s17943_s0 + $0x88] sm:$0xff]   ;;  %v15945_v31 = vld [vmem:[%s17943_s0 + $0x80] sm:$0xff]  }
  0xd9   :  { %11960 = vmatpush3.bf16.msra.mxu1 %v15825_v11  ;;  %11897 = vmatprep.subr.bf16.mxu0 %v15831_v12  ;;  %v14039_v48 = vld [vmem:[#allocation2 + $0x84] ss:$16 sps:$4 sm:$0xff]   ;;  %v14041_v49 = vld [vmem:[#allocation2 + $0x8c] ss:$16 sps:$4 sm:$0xff]   ;;  %v14043_v50 = vld [vmem:[#allocation2 + $0x80] ss:$16 sps:$4 sm:$0xff]  }
  0xda   :  { %11961 = vmatprep.subr.bf16.mxu1 %v15837_v13  ;;  %v14044_v51 = vld [vmem:[#allocation2 + $0x88] ss:$16 sps:$4 sm:$0xff]   ;;  %v14045_v52 = vld [vmem:[#allocation2 + $0xa4] ss:$16 sps:$4 sm:$0xff]   ;;  %v14047_v53 = vld [vmem:[#allocation2 + $0xac] ss:$16 sps:$4 sm:$0xff]  }
  0xdb   :  { %v14049_v54 = vld [vmem:[#allocation2 + $0xa0] ss:$16 sps:$4 sm:$0xff]   ;;  %v14050_v55 = vld [vmem:[#allocation2 + $0xa8] ss:$16 sps:$4 sm:$0xff]   ;;  %v14051_v56 = vld [vmem:[#allocation2 + $0xc4] ss:$16 sps:$4 sm:$0xff]  }
  0xdc   :  { %11898 = vmatpush3.bf16.msra.mxu0 %v15843_v14  ;;  %v14053_v57 = vld [vmem:[#allocation2 + $0xcc] ss:$16 sps:$4 sm:$0xff]   ;;  %v14055_v58 = vld [vmem:[#allocation2 + $0xc0] ss:$16 sps:$4 sm:$0xff]   ;;  %v14056_v59 = vld [vmem:[#allocation2 + $0xc8] ss:$16 sps:$4 sm:$0xff]  }
  0xdd   :  { %11962 = vmatpush3.bf16.msra.mxu1 %v15849_v15  ;;  %11899 = vmatprep.subr.bf16.mxu0 %v15855_v16  ;;  %v14057_v60 = vld [vmem:[#allocation2 + $0xe4] ss:$16 sps:$4 sm:$0xff]   ;;  %v14059_v61 = vld [vmem:[#allocation2 + $0xec] ss:$16 sps:$4 sm:$0xff]   ;;  %v14061_v62 = vld [vmem:[#allocation2 + $0xe0] ss:$16 sps:$4 sm:$0xff]  }
  0xde   :  { %11963 = vmatprep.subr.bf16.mxu1 %v15861_v17  ;;  %v14062_v63 = vld [vmem:[#allocation2 + $0xe8] ss:$16 sps:$4 sm:$0xff]  }
  0xdf   :  { %v14110_v33 = vld [vmem:[#allocation2 + $0x1e8] ss:$16 sps:$4 sm:$0xff]  }
  0xe0   :  { %11900 = vmatpush3.bf16.msra.mxu0 %v15867_v18 }
  0xe1   :  { %11964 = vmatpush3.bf16.msra.mxu1 %v15873_v19  ;;  %11901 = vmatprep.subr.bf16.mxu0 %v15879_v20 }
  0xe2   :  { %11965 = vmatprep.subr.bf16.mxu1 %v15885_v21 }
  0xe4   :  { %11902 = vmatpush3.bf16.msra.mxu0 %v15891_v22 }
  0xe5   :  { %11966 = vmatpush3.bf16.msra.mxu1 %v15897_v23  ;;  %11903 = vmatprep.subr.bf16.mxu0 %v15903_v24 }
  0xe6   :  { %11967 = vmatprep.subr.bf16.mxu1 %v15909_v25 }
  0xe8   :  { %11904 = vmatpush3.bf16.msra.mxu0 %v15915_v26 }
  0xe9   :  { %11968 = vmatpush3.bf16.msra.mxu1 %v15921_v27  ;;  %11905 = vmatprep.subr.bf16.mxu0 %v15927_v28 }
  0xea   :  { %11969 = vmatprep.subr.bf16.mxu1 %v15933_v29 }
  0xec   :  { %11906 = vmatpush3.bf16.msra.mxu0 %v15939_v30 }
  0xed   :  { %11970 = vmatpush3.bf16.msra.mxu1 %v15945_v31  ;;  %12019 = vmatprep.subr.bf16.mxu0 %v15760_v0  ;;  %v14065_v0 = vld [vmem:[#allocation2 + $0x104] ss:$16 sps:$4 sm:$0xff]  }
  0xee   :  { %12083 = vmatprep.subr.bf16.mxu1 %v15765_v1 }
  0xef   :  { %744 = vmatmul.mubr.bf16.vlgmr.msra.gmra.mxu0 %v14015_v32  ;;  %v14109_v32 = vld [vmem:[#allocation2 + $0x1e0] ss:$16 sps:$4 sm:$0xff]  }
  0xf0   :  { %841 = vmatmul.mubr.bf16.vlgmr.msra.gmra.mxu1 %v14018_v34  ;;  %12020 = vmatpush3.bf16.msra.mxu0 %v15771_v2  ;;  %v14068_v2 = vld [vmem:[#allocation2 + $0x10c] ss:$16 sps:$4 sm:$0xff]   ;;  %v1310_v34 = vld [vmem:[#allocation4 + $0x4] sm:$0xf] }
  0xf1   :  { %12084 = vmatpush3.bf16.msra.mxu1 %v15777_v3  ;;  %751 = vmatprep.mubr.bf16.mxu0 %v14021_v36  ;;  %v14063_v3 = vld [vmem:[#allocation2 + $0x100] ss:$16 sps:$4 sm:$0xff]   ;;  %v1338_v35 = vsel %vm1336_vm0, %v1310_v34, 0  ;;  %v15989_v36 = vld [vmem:[%s17943_s0 + $0x78] sm:$0xff]  }
  0xf2   :  { %848 = vmatprep.mubr.bf16.mxu1 %v14023_v37  ;;  %12021 = vmatprep.subr.bf16.mxu0 %v15783_v4  ;;  %v14066_v4 = vld [vmem:[#allocation2 + $0x108] ss:$16 sps:$4 sm:$0xff]  }
  0xf3   :  { %12085 = vmatprep.subr.bf16.mxu1 %v15789_v5  ;;  %v14069_v5 = vld [vmem:[#allocation2 + $0x124] ss:$16 sps:$4 sm:$0xff]  }
  0xf4   :  { %12022 = vmatpush3.bf16.msra.mxu0 %v15795_v6  ;;  %v14071_v6 = vld [vmem:[#allocation2 + $0x12c] ss:$16 sps:$4 sm:$0xff]  }
  0xf5   :  { %12086 = vmatpush3.bf16.msra.mxu1 %v15801_v7  ;;  %12023 = vmatprep.subr.bf16.mxu0 %v15807_v8  ;;  %v14073_v7 = vld [vmem:[#allocation2 + $0x120] ss:$16 sps:$4 sm:$0xff]   ;;  %v14074_v8 = vld [vmem:[#allocation2 + $0x128] ss:$16 sps:$4 sm:$0xff]  }
  0xf6   :  { %12087 = vmatprep.subr.bf16.mxu1 %v15813_v9  ;;  %v14075_v9 = vld [vmem:[#allocation2 + $0x144] ss:$16 sps:$4 sm:$0xff]  }
  0xf7   :  { %752 = vmatmul.mubr.bf16.gmra.mxu0 %v14025_v38 }
  0xf8   :  { %849 = vmatmul.mubr.bf16.gmra.mxu1 %v14026_v39  ;;  %759 = vmatprep.mubr.bf16.mxu0 %v14027_v40 }
  0xf9   :  { %856 = vmatprep.mubr.bf16.mxu1 %v14029_v41  ;;  %12024 = vmatpush3.bf16.msra.mxu0 %v15819_v10  ;;  %v14077_v10 = vld [vmem:[#allocation2 + $0x14c] ss:$16 sps:$4 sm:$0xff]  }
  0xfa   :  { %12088 = vmatpush3.bf16.msra.mxu1 %v15825_v11  ;;  %12025 = vmatprep.subr.bf16.mxu0 %v15831_v12  ;;  %v14079_v11 = vld [vmem:[#allocation2 + $0x140] ss:$16 sps:$4 sm:$0xff]   ;;  %v14080_v12 = vld [vmem:[#allocation2 + $0x148] ss:$16 sps:$4 sm:$0xff]  }
  0xfb   :  { %12089 = vmatprep.subr.bf16.mxu1 %v15837_v13  ;;  %v14081_v13 = vld [vmem:[#allocation2 + $0x164] ss:$16 sps:$4 sm:$0xff]  }
  0xfd   :  { %12026 = vmatpush3.bf16.msra.mxu0 %v15843_v14  ;;  %v14083_v14 = vld [vmem:[#allocation2 + $0x16c] ss:$16 sps:$4 sm:$0xff]  }
  0xfe   :  { %12090 = vmatpush3.bf16.msra.mxu1 %v15849_v15  ;;  %12027 = vmatprep.subr.bf16.mxu0 %v15855_v16  ;;  %v913_v15 = vld [vmem:[#allocation4] sm:$0xf] }
  0xff   :  { %760 = vmatmul.mubr.bf16.gmra.mxu0 %v14031_v42  ;;  %12091 = vmatprep.subr.bf16.mxu1 %v15861_v17  ;;  %v14085_v16 = vld [vmem:[#allocation2 + $0x160] ss:$16 sps:$4 sm:$0xff]   ;;  %v1462_v17 = vsel %vm1336_vm0, %v913_v15, 0 }
 0x100   :  { %857 = vmatmul.mubr.bf16.gmra.mxu1 %v14032_v43  ;;  %767 = vmatprep.mubr.bf16.mxu0 %v14033_v44 }
 0x101   :  { %864 = vmatprep.mubr.bf16.mxu1 %v14035_v45  ;;  %12028 = vmatpush3.bf16.msra.mxu0 %v15867_v18  ;;  %v14086_v18 = vld [vmem:[#allocation2 + $0x168] ss:$16 sps:$4 sm:$0xff]  }
 0x102   :  { %12092 = vmatpush3.bf16.msra.mxu1 %v15873_v19  ;;  %12029 = vmatprep.subr.bf16.mxu0 %v15879_v20  ;;  %v14087_v19 = vld [vmem:[#allocation2 + $0x184] ss:$16 sps:$4 sm:$0xff]   ;;  %v14089_v20 = vld [vmem:[#allocation2 + $0x18c] ss:$16 sps:$4 sm:$0xff]  }
 0x103   :  { %12093 = vmatprep.subr.bf16.mxu1 %v15885_v21  ;;  %v14091_v21 = vld [vmem:[#allocation2 + $0x180] ss:$16 sps:$4 sm:$0xff]  }
 0x105   :  { %12030 = vmatpush3.bf16.msra.mxu0 %v15891_v22  ;;  %v14092_v22 = vld [vmem:[#allocation2 + $0x188] ss:$16 sps:$4 sm:$0xff]  }
 0x106   :  { %12094 = vmatpush3.bf16.msra.mxu1 %v15897_v23  ;;  %12031 = vmatprep.subr.bf16.mxu0 %v15903_v24  ;;  %v14093_v23 = vld [vmem:[#allocation2 + $0x1a4] ss:$16 sps:$4 sm:$0xff]   ;;  %v14095_v24 = vld [vmem:[#allocation2 + $0x1ac] ss:$16 sps:$4 sm:$0xff]  }
 0x107   :  { %768 = vmatmul.mubr.bf16.gmra.mxu0 %v14037_v46  ;;  %12095 = vmatprep.subr.bf16.mxu1 %v15909_v25  ;;  %v14097_v25 = vld [vmem:[#allocation2 + $0x1a0] ss:$16 sps:$4 sm:$0xff]  }
 0x108   :  { %865 = vmatmul.mubr.bf16.gmra.mxu1 %v14038_v47  ;;  %775 = vmatprep.mubr.bf16.mxu0 %v14039_v48 }
 0x109   :  { %872 = vmatprep.mubr.bf16.mxu1 %v14041_v49  ;;  %12032 = vmatpush3.bf16.msra.mxu0 %v15915_v26  ;;  %v14098_v26 = vld [vmem:[#allocation2 + $0x1a8] ss:$16 sps:$4 sm:$0xff]  }
 0x10a   :  { %12096 = vmatpush3.bf16.msra.mxu1 %v15921_v27  ;;  %12033 = vmatprep.subr.bf16.mxu0 %v15927_v28  ;;  %v14099_v27 = vld [vmem:[#allocation2 + $0x1c4] ss:$16 sps:$4 sm:$0xff]   ;;  %v14101_v28 = vld [vmem:[#allocation2 + $0x1cc] ss:$16 sps:$4 sm:$0xff]  }
 0x10b   :  { %12097 = vmatprep.subr.bf16.mxu1 %v15933_v29  ;;  %v14104_v29 = vld [vmem:[#allocation2 + $0x1c8] ss:$16 sps:$4 sm:$0xff]  }
 0x10d   :  { %12034 = vmatpush3.bf16.msra.mxu0 %v15939_v30  ;;  %v14105_v30 = vld [vmem:[#allocation2 + $0x1e4] ss:$16 sps:$4 sm:$0xff]  }
 0x10e   :  { %12098 = vmatpush3.bf16.msra.mxu1 %v15945_v31  ;;  %v14107_v31 = vld [vmem:[#allocation2 + $0x1ec] ss:$16 sps:$4 sm:$0xff]   ;;  %13947 = vmatprep.subr.msk.bf16.mxu0 %vm1336_vm0, %v1310_v34 }
 0x10f   :  { %776 = vmatmul.mubr.bf16.gmra.mxu0 %v14043_v50  ;;  %13948 = vmatprep.subr.msk.bf16.mxu1 %vm1336_vm0, %v913_v15  ;;  %v15106_v15 = vld [vmem:[%s17943_s0 + $0xb8] sm:$0xff]  }
 0x110   :  { %873 = vmatmul.mubr.bf16.gmra.mxu1 %v14044_v51  ;;  %783 = vmatprep.mubr.bf16.mxu0 %v14045_v52 }
 0x111   :  { %880 = vmatprep.mubr.bf16.mxu1 %v14047_v53 }
 0x117   :  { %784 = vmatmul.mubr.bf16.gmra.mxu0 %v14049_v54 }
 0x118   :  { %881 = vmatmul.mubr.bf16.gmra.mxu1 %v14050_v55  ;;  %791 = vmatprep.mubr.bf16.mxu0 %v14051_v56 }
 0x119   :  { %888 = vmatprep.mubr.bf16.mxu1 %v14053_v57 }
 0x11f   :  { %792 = vmatmul.mubr.bf16.gmra.mxu0 %v14055_v58 }
 0x120   :  { %889 = vmatmul.mubr.bf16.gmra.mxu1 %v14056_v59  ;;  %799 = vmatprep.mubr.bf16.mxu0 %v14057_v60 }
 0x121   :  { %896 = vmatprep.mubr.bf16.mxu1 %v14059_v61 }
 0x127   :  { %800 = vmatmul.mubr.bf16.gmra.mxu0 %v14061_v62 }
 0x128   :  { %897 = vmatmul.mubr.bf16.gmra.mxu1 %v14062_v63  ;;  %1139 = vmatprep.mubr.bf16.mxu0 %v14065_v0 }
 0x129   :  { %1236 = vmatprep.mubr.bf16.mxu1 %v14068_v2 }
 0x12f   :  { %1140 = vmatmul.mubr.bf16.vlgmr.msra.gmra.mxu0 %v14063_v3 }
 0x130   :  { %1237 = vmatmul.mubr.bf16.vlgmr.msra.gmra.mxu1 %v14066_v4  ;;  %1147 = vmatprep.mubr.bf16.mxu0 %v14069_v5 }
 0x131   :  { %1244 = vmatprep.mubr.bf16.mxu1 %v14071_v6  ;;  %13372 = vmatpush3.bf16.msra.mxu1 %v1462_v17 }
 0x132   :  { %12229 = vmatprep.subr.bf16.mxu1 %v15765_v1  ;;  %v14103_v1 = vld [vmem:[#allocation2 + $0x1c0] ss:$16 sps:$4 sm:$0xff]   ;;  %13354 = vmatpush3.bf16.msra.mxu0 %v1338_v35 }
 0x133   :  { %12165 = vmatprep.subr.bf16.mxu0 %v15989_v36 }
 0x137   :  { %1148 = vmatmul.mubr.bf16.gmra.mxu0 %v14073_v7 }
 0x138   :  { %1245 = vmatmul.mubr.bf16.gmra.mxu1 %v14074_v8  ;;  %1155 = vmatprep.mubr.bf16.mxu0 %v14075_v9 }
 0x139   :  { %1252 = vmatprep.mubr.bf16.mxu1 %v14077_v10 }
 0x13f   :  { %1156 = vmatmul.mubr.bf16.gmra.mxu0 %v14079_v11 }
 0x140   :  { %1253 = vmatmul.mubr.bf16.gmra.mxu1 %v14080_v12  ;;  %1163 = vmatprep.mubr.bf16.mxu0 %v14081_v13 }
 0x141   :  { %1260 = vmatprep.mubr.bf16.mxu1 %v14083_v14 }
 0x147   :  { %1164 = vmatmul.mubr.bf16.gmra.mxu0 %v14085_v16 }
 0x148   :  { %1261 = vmatmul.mubr.bf16.gmra.mxu1 %v14086_v18  ;;  %1171 = vmatprep.mubr.bf16.mxu0 %v14087_v19  ;;  %v15107_v18 = vld [vmem:[%s17943_s0 + $0xf0] sm:$0xff]  }
 0x149   :  { %1268 = vmatprep.mubr.bf16.mxu1 %v14089_v20 }
 0x14f   :  { %1172 = vmatmul.mubr.bf16.gmra.mxu0 %v14091_v21 }
 0x150   :  { %1269 = vmatmul.mubr.bf16.gmra.mxu1 %v14092_v22  ;;  %1179 = vmatprep.mubr.bf16.mxu0 %v14093_v23 }
 0x151   :  { %1276 = vmatprep.mubr.bf16.mxu1 %v14095_v24  ;;  %v15108_v24 = vld [vmem:[%s17943_s0 + $0xb0] sm:$0xff]  }
 0x157   :  { %1180 = vmatmul.mubr.bf16.gmra.mxu0 %v14097_v25 }
 0x158   :  { %1277 = vmatmul.mubr.bf16.gmra.mxu1 %v14098_v26  ;;  %1187 = vmatprep.mubr.bf16.mxu0 %v14099_v27  ;;  %v15109_v27 = vld [vmem:[%s17943_s0 + $0xe8] sm:$0xff]  }
 0x159   :  { %1284 = vmatprep.mubr.bf16.mxu1 %v14101_v28 }
 0x15f   :  { %1188 = vmatmul.mubr.bf16.gmra.mxu0 %v14103_v1 }
 0x160   :  { %1285 = vmatmul.mubr.bf16.gmra.mxu1 %v14104_v29  ;;  %1195 = vmatprep.mubr.bf16.mxu0 %v14105_v30 }
 0x161   :  { %1292 = vmatprep.mubr.bf16.mxu1 %v14107_v31 }
 0x167   :  { %1196 = vmatmul.mubr.bf16.gmra.mxu0 %v14109_v32 }
 0x168   :  { %1293 = vmatmul.mubr.bf16.gmra.mxu1 %v14110_v33  ;;  %v15110_v33 = vld [vmem:[%s17943_s0 + $0xa8] sm:$0xff]  }
 0x1af   :  { %v11907_v37 = vpop.f32.mrf.mxu0 }
 0x1b0   :  { %v11971_v38 = vpop.f32.mrf.mxu1 }
 0x1b1   :  { %v11908_v39 = vpop.f32.mrf.mxu0 }
 0x1b2   :  { %v11972_v40 = vpop.f32.mrf.mxu1  ;;  %v11909_v43 = vadd.f32 %v11908_v39, %v11907_v37  ;;  %v15111_v37 = vld [vmem:[%s17943_s0 + $0xe0] sm:$0xff]  }
 0x1b3   :  { %v11910_v41 = vpop.f32.mrf.mxu0  ;;  %v11973_v44 = vadd.f32 %v11972_v40, %v11971_v38 }
 0x1b4   :  { %v11974_v42 = vpop.f32.mrf.mxu1 }
 0x1b5   :  { %v11911_v45 = vpop.f32.mrf.mxu0  ;;  %v843_v51 = vadd.f32 %v11973_v44, %v11909_v43  ;;  %v15112_v43 = vld [vmem:[%s17943_s0 + $0xa0] sm:$0xff]  }
 0x1b6   :  { %v11912_v46 = vadd.f32 %v11911_v45, %v11910_v41  ;;  %v11975_v47 = vpop.f32.mrf.mxu1 }
 0x1b7   :  { %v11976_v48 = vadd.f32 %v11975_v47, %v11974_v42  ;;  %v11913_v49 = vpop.f32.mrf.mxu0 }
 0x1b8   :  { %v11977_v50 = vpop.f32.mrf.mxu1 }
 0x1b9   :  { %v846_v52 = vadd.f32 %v11976_v48, %v11912_v46  ;;  %v11914_v53 = vpop.f32.mrf.mxu0  ;;  %v15113_v46 = vld [vmem:[%s17943_s0 + $0xd8] sm:$0xff]  }
 0x1ba   :  { %v11978_v54 = vpop.f32.mrf.mxu1  ;;  %v11915_v58 = vadd.f32 %v11914_v53, %v11913_v49  ;;  %v15114_v53 = vld [vmem:[%s17943_s0 + $0x98] sm:$0xff]  }
 0x1bb   :  { %v905_v55 = vpack.c.bf16 %v846_v52, %v843_v51  ;;  %v11916_v56 = vpop.f32.mrf.mxu0  ;;  %v11979_v59 = vadd.f32 %v11978_v54, %v11977_v50 }
 0x1bc   :  { %v11980_v57 = vpop.f32.mrf.mxu1 }
 0x1bd   :  { %13373 = vmatprep.mubr.msk.bf16.mxu1 %vm1311_vm1, %v905_v55  ;;  %v11917_v60 = vpop.f32.mrf.mxu0  ;;  %v851_v3 = vadd.f32 %v11979_v59, %v11915_v58 }
 0x1be   :  { %v11918_v61 = vadd.f32 %v11917_v60, %v11916_v56  ;;  %v11981_v62 = vpop.f32.mrf.mxu1  ;;  %v15115_v56 = vld [vmem:[%s17943_s0 + $0xd0] sm:$0xff]  }
 0x1bf   :  { %v11982_v63 = vadd.f32 %v11981_v62, %v11980_v57  ;;  %v11919_v0 = vpop.f32.mrf.mxu0  ;;  %v15116_v62 = vld [vmem:[%s17943_s0 + $0x90] sm:$0xff]  }
 0x1c0   :  { %v11983_v2 = vpop.f32.mrf.mxu1 }
 0x1c1   :  { %v854_v4 = vadd.f32 %v11982_v63, %v11918_v61  ;;  %v11920_v5 = vpop.f32.mrf.mxu0 }
 0x1c2   :  { %v11984_v6 = vpop.f32.mrf.mxu1  ;;  %v11921_v10 = vadd.f32 %v11920_v5, %v11919_v0 }
 0x1c3   :  { %v906_v7 = vpack.c.bf16 %v854_v4, %v851_v3  ;;  %v11922_v8 = vpop.f32.mrf.mxu0  ;;  %v11985_v11 = vadd.f32 %v11984_v6, %v11983_v2  ;;  %v15117_v2 = vld [vmem:[%s17943_s0 + $0xc8] sm:$0xff]  }
 0x1c4   :  { %v11986_v9 = vpop.f32.mrf.mxu1 }
 0x1c5   :  { %13374 = vmatmul.mubr.msk.bf16.vlgmr.msra.gmra.mxu1 %vm1311_vm1, %v906_v7  ;;  %v11923_v12 = vpop.f32.mrf.mxu0  ;;  %v859_v20 = vadd.f32 %v11985_v11, %v11921_v10 }
 0x1c6   :  { %v11924_v13 = vadd.f32 %v11923_v12, %v11922_v8  ;;  %v11987_v14 = vpop.f32.mrf.mxu1  ;;  %12230 = vmatpush3.bf16.msra.mxu1 %v15106_v15  ;;  %v15119_v12 = vld [vmem:[%s17943_s0 + $0xc0] sm:$0xff]  }
 0x1c7   :  { %v11988_v16 = vadd.f32 %v11987_v14, %v11986_v9  ;;  %v11925_v17 = vpop.f32.mrf.mxu0  ;;  %12231 = vmatprep.subr.bf16.mxu1 %v15107_v18  ;;  %v15118_v9 = vld [vmem:[%s17943_s0 + $0x88] sm:$0xff]   ;;  %v15120_v18 = vld [vmem:[%s17943_s0 + $0x80] sm:$0xff]  }
 0x1c8   :  { %v11989_v19 = vpop.f32.mrf.mxu1 }
 0x1c9   :  { %v862_v21 = vadd.f32 %v11988_v16, %v11924_v13  ;;  %v11926_v22 = vpop.f32.mrf.mxu0 }
 0x1ca   :  { %v11990_v23 = vpop.f32.mrf.mxu1  ;;  %12232 = vmatpush3.bf16.msra.mxu1 %v15108_v24  ;;  %v11927_v1 = vadd.f32 %v11926_v22, %v11925_v17 }
 0x1cb   :  { %v907_v25 = vpack.c.bf16 %v862_v21, %v859_v20  ;;  %v11928_v26 = vpop.f32.mrf.mxu0  ;;  %12233 = vmatprep.subr.bf16.mxu1 %v15109_v27  ;;  %v11991_v29 = vadd.f32 %v11990_v23, %v11989_v19 }
 0x1cc   :  { %v11992_v28 = vpop.f32.mrf.mxu1 }
 0x1cd   :  { %13377 = vmatprep.mubr.msk.bf16.mxu1 %vm1311_vm1, %v907_v25  ;;  %v11929_v30 = vpop.f32.mrf.mxu0  ;;  %v867_v39 = vadd.f32 %v11991_v29, %v11927_v1 }
 0x1ce   :  { %v11930_v31 = vadd.f32 %v11929_v30, %v11928_v26  ;;  %v11993_v32 = vpop.f32.mrf.mxu1  ;;  %12234 = vmatpush3.bf16.msra.mxu1 %v15110_v33 }
 0x1cf   :  { %v11994_v34 = vadd.f32 %v11993_v32, %v11992_v28  ;;  %v11931_v35 = vpop.f32.mrf.mxu0  ;;  %12235 = vmatprep.subr.bf16.mxu1 %v15111_v37 }
 0x1d0   :  { %v11995_v38 = vpop.f32.mrf.mxu1 }
 0x1d1   :  { %v870_v40 = vadd.f32 %v11994_v34, %v11930_v31  ;;  %v11932_v41 = vpop.f32.mrf.mxu0 }
 0x1d2   :  { %v11996_v42 = vpop.f32.mrf.mxu1  ;;  %12236 = vmatpush3.bf16.msra.mxu1 %v15112_v43  ;;  %v11933_v48 = vadd.f32 %v11932_v41, %v11931_v35 }
 0x1d3   :  { %v908_v44 = vpack.c.bf16 %v870_v40, %v867_v39  ;;  %v11934_v45 = vpop.f32.mrf.mxu0  ;;  %12237 = vmatprep.subr.bf16.mxu1 %v15113_v46  ;;  %v11997_v49 = vadd.f32 %v11996_v42, %v11995_v38 }
 0x1d4   :  { %v11998_v47 = vpop.f32.mrf.mxu1 }
 0x1d5   :  { %13378 = vmatmul.mubr.msk.bf16.gmra.mxu1 %vm1311_vm1, %v908_v44  ;;  %v11935_v50 = vpop.f32.mrf.mxu0  ;;  %v875_v58 = vadd.f32 %v11997_v49, %v11933_v48  ;;  %v14113_v44 = vld [vmem:[#allocation2 + $0x20c] ss:$16 sps:$4 sm:$0xff]  }
 0x1d6   :  { %v11936_v51 = vadd.f32 %v11935_v50, %v11934_v45  ;;  %v11999_v52 = vpop.f32.mrf.mxu1  ;;  %12238 = vmatpush3.bf16.msra.mxu1 %v15114_v53 }
 0x1d7   :  { %v12000_v54 = vadd.f32 %v11999_v52, %v11998_v47  ;;  %v11937_v55 = vpop.f32.mrf.mxu0  ;;  %12239 = vmatprep.subr.bf16.mxu1 %v15115_v56 }
 0x1d8   :  { %v12001_v57 = vpop.f32.mrf.mxu1 }
 0x1d9   :  { %v878_v59 = vadd.f32 %v12000_v54, %v11936_v51  ;;  %v11938_v60 = vpop.f32.mrf.mxu0 }
 0x1da   :  { %v12002_v61 = vpop.f32.mrf.mxu1  ;;  %12240 = vmatpush3.bf16.msra.mxu1 %v15116_v62  ;;  %v11939_v4 = vadd.f32 %v11938_v60, %v11937_v55 }
 0x1db   :  { %v909_v63 = vpack.c.bf16 %v878_v59, %v875_v58  ;;  %v11940_v0 = vpop.f32.mrf.mxu0  ;;  %12241 = vmatprep.subr.bf16.mxu1 %v15117_v2  ;;  %v12003_v5 = vadd.f32 %v12002_v61, %v12001_v57  ;;  %v14111_v59 = vld [vmem:[#allocation2 + $0x208] ss:$16 sps:$4 sm:$0xff]   ;;  %v14117_v61 = vld [vmem:[#allocation2 + $0x22c] ss:$16 sps:$4 sm:$0xff]  }
 0x1dc   :  { %v12004_v3 = vpop.f32.mrf.mxu1 }
 0x1dd   :  { %13381 = vmatprep.mubr.msk.bf16.mxu1 %vm1311_vm1, %v909_v63  ;;  %v11941_v6 = vpop.f32.mrf.mxu0  ;;  %v883_v14 = vadd.f32 %v12003_v5, %v11939_v4 }
 0x1de   :  { %v11942_v7 = vadd.f32 %v11941_v6, %v11940_v0  ;;  %v12005_v8 = vpop.f32.mrf.mxu1  ;;  %12242 = vmatpush3.bf16.msra.mxu1 %v15118_v9 }
 0x1df   :  { %v12006_v10 = vadd.f32 %v12005_v8, %v12004_v3  ;;  %v11943_v11 = vpop.f32.mrf.mxu0  ;;  %12243 = vmatprep.subr.bf16.mxu1 %v15119_v12 }
 0x1e0   :  { %v12007_v13 = vpop.f32.mrf.mxu1 }
 0x1e1   :  { %v886_v15 = vadd.f32 %v12006_v10, %v11942_v7  ;;  %v11944_v16 = vpop.f32.mrf.mxu0 }
 0x1e2   :  { %v12008_v17 = vpop.f32.mrf.mxu1  ;;  %12244 = vmatpush3.bf16.msra.mxu1 %v15120_v18  ;;  %v11945_v22 = vadd.f32 %v11944_v16, %v11943_v11  ;;  %v15121_v11 = vld [vmem:[%s17943_s0 + $0x38] sm:$0xff]  }
 0x1e3   :  { %v910_v19 = vpack.c.bf16 %v886_v15, %v883_v14  ;;  %v11946_v20 = vpop.f32.mrf.mxu0  ;;  %12302 = vmatprep.subr.bf16.mxu1 %v15989_v36  ;;  %v12009_v23 = vadd.f32 %v12008_v17, %v12007_v13  ;;  %v14119_v14 = vld [vmem:[#allocation2 + $0x228] ss:$16 sps:$4 sm:$0xff]   ;;  %v15122_v15 = vld [vmem:[%s17943_s0 + $0x70] sm:$0xff]   ;;  %v14123_v17 = vld [vmem:[#allocation2 + $0x24c] ss:$16 sps:$4 sm:$0xff]  }
 0x1e4   :  { %v12010_v21 = vpop.f32.mrf.mxu1 }
 0x1e5   :  { %13382 = vmatmul.mubr.msk.bf16.gmra.mxu1 %vm1311_vm1, %v910_v19  ;;  %v11947_v24 = vpop.f32.mrf.mxu0  ;;  %v891_v29 = vadd.f32 %v12009_v23, %v11945_v22  ;;  %v15123_v22 = vld [vmem:[%s17943_s0 + $0x30] sm:$0xff]  }
 0x1e6   :  { %v11948_v25 = vadd.f32 %v11947_v24, %v11946_v20  ;;  %v12011_v26 = vpop.f32.mrf.mxu1 }
 0x1e7   :  { %v12012_v27 = vadd.f32 %v12011_v26, %v12010_v21  ;;  %v11949_v28 = vpop.f32.mrf.mxu0 }
 0x1e8   :  { %v12013_v1 = vpop.f32.mrf.mxu1 }
 0x1e9   :  { %v894_v30 = vadd.f32 %v12012_v27, %v11948_v25  ;;  %v11950_v31 = vpop.f32.mrf.mxu0  ;;  %v15124_v25 = vld [vmem:[%s17943_s0 + $0x68] sm:$0xff]  }
 0x1ea   :  { %v12014_v32 = vpop.f32.mrf.mxu1  ;;  %v11951_v37 = vadd.f32 %v11950_v31, %v11949_v28 }
 0x1eb   :  { %v911_v33 = vpack.c.bf16 %v894_v30, %v891_v29  ;;  %v11952_v34 = vpop.f32.mrf.mxu0  ;;  %v12015_v36 = vadd.f32 %v12014_v32, %v12013_v1 }
 0x1ec   :  { %v12016_v35 = vpop.f32.mrf.mxu1 }
 0x1ed   :  { %13385 = vmatprep.mubr.msk.bf16.mxu1 %vm1311_vm1, %v911_v33  ;;  %v11953_v38 = vpop.f32.mrf.mxu0  ;;  %v899_v45 = vadd.f32 %v12015_v36, %v11951_v37  ;;  %v14125_v33 = vld [vmem:[#allocation2 + $0x248] ss:$16 sps:$4 sm:$0xff]   ;;  %v14129_v37 = vld [vmem:[#allocation2 + $0x26c] ss:$16 sps:$4 sm:$0xff]   ;;  %v16066_v36 = vld [vmem:[%s17943_s0 + $0x60] sm:$0xff]  }
 0x1ee   :  { %v11954_v39 = vadd.f32 %v11953_v38, %v11952_v34  ;;  %v12017_v40 = vpop.f32.mrf.mxu1  ;;  %v15125_v34 = vld [vmem:[%s17943_s0 + $0x28] sm:$0xff]  }
 0x1ef   :  { %v12018_v41 = vadd.f32 %v12017_v40, %v12016_v35  ;;  %v12035_v42 = vpop.f32.mrf.mxu0 }
 0x1f0   :  { %v12099_v43 = vpop.f32.mrf.mxu1 }
 0x1f1   :  { %v902_v46 = vadd.f32 %v12018_v41, %v11954_v39  ;;  %v12036_v47 = vpop.f32.mrf.mxu0 }
 0x1f2   :  { %v12100_v48 = vpop.f32.mrf.mxu1  ;;  %v12037_v52 = vadd.f32 %v12036_v47, %v12035_v42 }
 0x1f3   :  { %v912_v49 = vpack.c.bf16 %v902_v46, %v899_v45  ;;  %v12038_v50 = vpop.f32.mrf.mxu0  ;;  %v12101_v53 = vadd.f32 %v12100_v48, %v12099_v43  ;;  %v16078_v46 = vld [vmem:[%s17943_s0 + $0x58] sm:$0xff]  }
 0x1f4   :  { %v12102_v51 = vpop.f32.mrf.mxu1 }
 0x1f5   :  { %13386 = vmatmul.mubr.msk.bf16.gmra.mxu1 %vm1311_vm1, %v912_v49  ;;  %v12039_v54 = vpop.f32.mrf.mxu0  ;;  %v1239_v62 = vadd.f32 %v12101_v53, %v12037_v52 }
 0x1f6   :  { %v12040_v55 = vadd.f32 %v12039_v54, %v12038_v50  ;;  %v12103_v56 = vpop.f32.mrf.mxu1  ;;  %1883 = vmatprep.mubr.bf16.mxu1 %v14113_v44  ;;  %v16072_v44 = vld [vmem:[%s17943_s0 + $0x20] sm:$0xff]   ;;  %v14131_v54 = vld [vmem:[#allocation2 + $0x268] ss:$16 sps:$4 sm:$0xff]  }
 0x1f7   :  { %v12104_v57 = vadd.f32 %v12103_v56, %v12102_v51  ;;  %v12041_v58 = vpop.f32.mrf.mxu0 }
 0x1f8   :  { %v12105_v60 = vpop.f32.mrf.mxu1 }
 0x1f9   :  { %v1242_v63 = vadd.f32 %v12104_v57, %v12040_v55  ;;  %v12042_v0 = vpop.f32.mrf.mxu0  ;;  %v16086_v55 = vld [vmem:[%s17943_s0 + $0x18] sm:$0xff]  }
 0x1fa   :  { %v12106_v2 = vpop.f32.mrf.mxu1  ;;  %v12043_v6 = vadd.f32 %v12042_v0, %v12041_v58  ;;  %v14135_v57 = vld [vmem:[#allocation2 + $0x28c] ss:$16 sps:$4 sm:$0xff]   ;;  %v16092_v58 = vld [vmem:[%s17943_s0 + $0x50] sm:$0xff]  }
 0x1fb   :  { %v1301_v3 = vpack.c.bf16 %v1242_v63, %v1239_v62  ;;  %v12044_v4 = vpop.f32.mrf.mxu0  ;;  %v12107_v7 = vadd.f32 %v12106_v2, %v12105_v60  ;;  %v16100_v2 = vld [vmem:[%s17943_s0 + $0x10] sm:$0xff]  }
 0x1fc   :  { %v12108_v5 = vpop.f32.mrf.mxu1 }
 0x1fd   :  { %13355 = vmatprep.mubr.msk.bf16.mxu0 %vm1311_vm1, %v1301_v3  ;;  %v12045_v8 = vpop.f32.mrf.mxu0  ;;  %1884 = vmatmul.mubr.bf16.vlgmr.msra.gmra.mxu1 %v14111_v59  ;;  %v1247_v18 = vadd.f32 %v12107_v7, %v12043_v6 }
 0x1fe   :  { %v12046_v9 = vadd.f32 %v12045_v8, %v12044_v4  ;;  %v12109_v10 = vpop.f32.mrf.mxu1  ;;  %1891 = vmatprep.mubr.bf16.mxu1 %v14117_v61  ;;  %12303 = vmatpush3.bf16.msra.mxu1 %v15121_v11  ;;  %v16106_v4 = vld [vmem:[%s17943_s0 + $0x48] sm:$0xff]  }
 0x1ff   :  { %v12110_v12 = vadd.f32 %v12109_v10, %v12108_v5  ;;  %v12047_v13 = vpop.f32.mrf.mxu0  ;;  %12304 = vmatprep.subr.bf16.mxu1 %v15122_v15 }
 0x200   :  { %v12111_v16 = vpop.f32.mrf.mxu1 }
 0x201   :  { %v1250_v19 = vadd.f32 %v12110_v12, %v12046_v9  ;;  %v12048_v20 = vpop.f32.mrf.mxu0  ;;  %v14137_v12 = vld [vmem:[#allocation2 + $0x288] ss:$16 sps:$4 sm:$0xff]  }
 0x202   :  { %v12112_v21 = vpop.f32.mrf.mxu1  ;;  %12305 = vmatpush3.bf16.msra.mxu1 %v15123_v22  ;;  %v12049_v27 = vadd.f32 %v12048_v20, %v12047_v13  ;;  %v16115_v13 = vld [vmem:[%s17943_s0 + $0x8] sm:$0xff]  }
 0x203   :  { %v1302_v23 = vpack.c.bf16 %v1250_v19, %v1247_v18  ;;  %v12050_v24 = vpop.f32.mrf.mxu0  ;;  %12306 = vmatprep.subr.bf16.mxu1 %v15124_v25  ;;  %v12113_v28 = vadd.f32 %v12112_v21, %v12111_v16  ;;  %v16121_v16 = vld [vmem:[%s17943_s0 + $0x40] sm:$0xff]  }
 0x204   :  { %v12114_v26 = vpop.f32.mrf.mxu1 }
 0x205   :  { %13356 = vmatmul.mubr.msk.bf16.vlgmr.msra.gmra.mxu0 %vm1311_vm1, %v1302_v23  ;;  %v12051_v1 = vpop.f32.mrf.mxu0  ;;  %1892 = vmatmul.mubr.bf16.gmra.mxu1 %v14119_v14  ;;  %v1255_v38 = vadd.f32 %v12113_v28, %v12049_v27  ;;  %v16129_v23 = vld [vmem:[%s17943_s0] sm:$0xff]  }
 0x206   :  { %v12052_v29 = vadd.f32 %v12051_v1, %v12050_v24  ;;  %v12115_v30 = vpop.f32.mrf.mxu1  ;;  %12166 = vmatpush3.bf16.msra.mxu0 %v15121_v11  ;;  %1899 = vmatprep.mubr.bf16.mxu1 %v14123_v17 }
 0x207   :  { %v12116_v31 = vadd.f32 %v12115_v30, %v12114_v26  ;;  %v12053_v32 = vpop.f32.mrf.mxu0  ;;  %12167 = vmatprep.subr.bf16.mxu0 %v15122_v15  ;;  %12307 = vmatpush3.bf16.msra.mxu1 %v15125_v34  ;;  %v14141_v15 = vld [vmem:[#allocation2 + $0x2ac] ss:$16 sps:$4 sm:$0xff]  }
 0x208   :  { %v12117_v35 = vpop.f32.mrf.mxu1  ;;  %12308 = vmatprep.subr.bf16.mxu1 %v16066_v36 }
 0x209   :  { %v1258_v39 = vadd.f32 %v12116_v31, %v12052_v29  ;;  %v12054_v40 = vpop.f32.mrf.mxu0  ;;  %v14143_v31 = vld [vmem:[#allocation2 + $0x2a8] ss:$16 sps:$4 sm:$0xff]  }
 0x20a   :  { %v12118_v41 = vpop.f32.mrf.mxu1  ;;  %12168 = vmatpush3.bf16.msra.mxu0 %v15123_v22  ;;  %v12055_v47 = vadd.f32 %v12054_v40, %v12053_v32 }
 0x20b   :  { %v1303_v42 = vpack.c.bf16 %v1258_v39, %v1255_v38  ;;  %v12056_v43 = vpop.f32.mrf.mxu0  ;;  %12169 = vmatprep.subr.bf16.mxu0 %v15124_v25  ;;  %12309 = vmatpush3.bf16.msra.mxu1 %v16072_v44  ;;  %v12119_v48 = vadd.f32 %v12118_v41, %v12117_v35 }
 0x20c   :  { %v12120_v45 = vpop.f32.mrf.mxu1  ;;  %12310 = vmatprep.subr.bf16.mxu1 %v16078_v46 }
 0x20d   :  { %13359 = vmatprep.mubr.msk.bf16.mxu0 %vm1311_vm1, %v1303_v42  ;;  %v12057_v49 = vpop.f32.mrf.mxu0  ;;  %1900 = vmatmul.mubr.bf16.gmra.mxu1 %v14125_v33  ;;  %v1263_v59 = vadd.f32 %v12119_v48, %v12055_v47  ;;  %v14147_v33 = vld [vmem:[#allocation2 + $0x2cc] ss:$16 sps:$4 sm:$0xff]  }
 0x20e   :  { %v12058_v50 = vadd.f32 %v12057_v49, %v12056_v43  ;;  %v12121_v51 = vpop.f32.mrf.mxu1  ;;  %12170 = vmatpush3.bf16.msra.mxu0 %v15125_v34  ;;  %1907 = vmatprep.mubr.bf16.mxu1 %v14129_v37 }
 0x20f   :  { %v12122_v52 = vadd.f32 %v12121_v51, %v12120_v45  ;;  %v12059_v53 = vpop.f32.mrf.mxu0  ;;  %12171 = vmatprep.subr.bf16.mxu0 %v16066_v36  ;;  %12311 = vmatpush3.bf16.msra.mxu1 %v16086_v55  ;;  %v14149_v51 = vld [vmem:[#allocation2 + $0x2c8] ss:$16 sps:$4 sm:$0xff]  }
 0x210   :  { %v12123_v56 = vpop.f32.mrf.mxu1  ;;  %12312 = vmatprep.subr.bf16.mxu1 %v16092_v58 }
 0x211   :  { %v1266_v60 = vadd.f32 %v12122_v52, %v12058_v50  ;;  %v12060_v61 = vpop.f32.mrf.mxu0 }
 0x212   :  { %v12124_v62 = vpop.f32.mrf.mxu1  ;;  %12172 = vmatpush3.bf16.msra.mxu0 %v16072_v44  ;;  %v12061_v5 = vadd.f32 %v12060_v61, %v12059_v53  ;;  %v14153_v53 = vld [vmem:[#allocation2 + $0x2ec] ss:$16 sps:$4 sm:$0xff]  }
 0x213   :  { %v1304_v63 = vpack.c.bf16 %v1266_v60, %v1263_v59  ;;  %v12062_v0 = vpop.f32.mrf.mxu0  ;;  %12173 = vmatprep.subr.bf16.mxu0 %v16078_v46  ;;  %12313 = vmatpush3.bf16.msra.mxu1 %v16100_v2  ;;  %v12125_v6 = vadd.f32 %v12124_v62, %v12123_v56 }
 0x214   :  { %v12126_v3 = vpop.f32.mrf.mxu1  ;;  %12314 = vmatprep.subr.bf16.mxu1 %v16106_v4 }
 0x215   :  { %13360 = vmatmul.mubr.msk.bf16.gmra.mxu0 %vm1311_vm1, %v1304_v63  ;;  %v12063_v7 = vpop.f32.mrf.mxu0  ;;  %1908 = vmatmul.mubr.bf16.gmra.mxu1 %v14131_v54  ;;  %v1271_v17 = vadd.f32 %v12125_v6, %v12061_v5 }
 0x216   :  { %v12064_v8 = vadd.f32 %v12063_v7, %v12062_v0  ;;  %v12127_v9 = vpop.f32.mrf.mxu1  ;;  %12174 = vmatpush3.bf16.msra.mxu0 %v16086_v55  ;;  %1915 = vmatprep.mubr.bf16.mxu1 %v14135_v57 }
 0x217   :  { %v12128_v10 = vadd.f32 %v12127_v9, %v12126_v3  ;;  %v12065_v11 = vpop.f32.mrf.mxu0  ;;  %12175 = vmatprep.subr.bf16.mxu0 %v16092_v58  ;;  %12315 = vmatpush3.bf16.msra.mxu1 %v16115_v13 }
 0x218   :  { %v12129_v14 = vpop.f32.mrf.mxu1  ;;  %12316 = vmatprep.subr.bf16.mxu1 %v16121_v16 }
 0x219   :  { %v1274_v18 = vadd.f32 %v12128_v10, %v12064_v8  ;;  %v12066_v19 = vpop.f32.mrf.mxu0  ;;  %v14155_v10 = vld [vmem:[#allocation2 + $0x2e8] ss:$16 sps:$4 sm:$0xff]  }
 0x21a   :  { %v12130_v20 = vpop.f32.mrf.mxu1  ;;  %12176 = vmatpush3.bf16.msra.mxu0 %v16100_v2  ;;  %v12067_v25 = vadd.f32 %v12066_v19, %v12065_v11  ;;  %v14116_v11 = vld [vmem:[#allocation2 + $0x204] ss:$16 sps:$4 sm:$0xff]   ;;  %v14128_v19 = vld [vmem:[#allocation2 + $0x240] ss:$16 sps:$4 sm:$0xff]  }
 0x21b   :  { %v1305_v21 = vpack.c.bf16 %v1274_v18, %v1271_v17  ;;  %v12068_v22 = vpop.f32.mrf.mxu0  ;;  %12177 = vmatprep.subr.bf16.mxu0 %v16106_v4  ;;  %12317 = vmatpush3.bf16.msra.mxu1 %v16129_v23  ;;  %v12131_v26 = vadd.f32 %v12130_v20, %v12129_v14  ;;  %v14114_v14 = vld [vmem:[#allocation2 + $0x200] ss:$16 sps:$4 sm:$0xff]   ;;  %v14126_v18 = vld [vmem:[#allocation2 + $0x244] ss:$16 sps:$4 sm:$0xff]  }
 0x21c   :  { %v12132_v24 = vpop.f32.mrf.mxu1  ;;  %v14122_v17 = vld [vmem:[#allocation2 + $0x220] ss:$16 sps:$4 sm:$0xff]   ;;  %v14132_v20 = vld [vmem:[#allocation2 + $0x264] ss:$16 sps:$4 sm:$0xff]  }
 0x21d   :  { %13363 = vmatprep.mubr.msk.bf16.mxu0 %vm1311_vm1, %v1305_v21  ;;  %v12069_v27 = vpop.f32.mrf.mxu0  ;;  %1916 = vmatmul.mubr.bf16.gmra.mxu1 %v14137_v12  ;;  %v1279_v34 = vadd.f32 %v12131_v26, %v12067_v25  ;;  %v14134_v21 = vld [vmem:[#allocation2 + $0x260] ss:$16 sps:$4 sm:$0xff]   ;;  %v14144_v25 = vld [vmem:[#allocation2 + $0x2a4] ss:$16 sps:$4 sm:$0xff]  }
 0x21e   :  { %v12070_v28 = vadd.f32 %v12069_v27, %v12068_v22  ;;  %v12133_v1 = vpop.f32.mrf.mxu1  ;;  %12178 = vmatpush3.bf16.msra.mxu0 %v16115_v13  ;;  %1923 = vmatprep.mubr.bf16.mxu1 %v14141_v15  ;;  %v14120_v15 = vld [vmem:[#allocation2 + $0x224] ss:$16 sps:$4 sm:$0xff]   ;;  %v14146_v26 = vld [vmem:[#allocation2 + $0x2a0] ss:$16 sps:$4 sm:$0xff]  }
 0x21f   :  { %v12134_v29 = vadd.f32 %v12133_v1, %v12132_v24  ;;  %v12071_v30 = vpop.f32.mrf.mxu0  ;;  %12179 = vmatprep.subr.bf16.mxu0 %v16121_v16  ;;  %v14138_v22 = vld [vmem:[#allocation2 + $0x284] ss:$16 sps:$4 sm:$0xff]   ;;  %v14140_v24 = vld [vmem:[#allocation2 + $0x280] ss:$16 sps:$4 sm:$0xff]  }
 0x220   :  { %v12135_v32 = vpop.f32.mrf.mxu1  ;;  %v14150_v27 = vld [vmem:[#allocation2 + $0x2c4] ss:$16 sps:$4 sm:$0xff]  }
 0x221   :  { %v1282_v35 = vadd.f32 %v12134_v29, %v12070_v28  ;;  %v12072_v37 = vpop.f32.mrf.mxu0  ;;  %v14152_v28 = vld [vmem:[#allocation2 + $0x2c0] ss:$16 sps:$4 sm:$0xff]   ;;  %v14156_v1 = vld [vmem:[#allocation2 + $0x2e4] ss:$16 sps:$4 sm:$0xff]   ;;  %v1957_v29 = vld [vmem:[#allocation4 + $0x8] sm:$0xf] }
 0x222   :  { %v12136_v38 = vpop.f32.mrf.mxu1  ;;  %12180 = vmatpush3.bf16.msra.mxu0 %v16129_v23  ;;  %v12073_v42 = vadd.f32 %v12072_v37, %v12071_v30  ;;  %v1983_v30 = vsel %vm1336_vm0, %v1957_v29, 0 }
 0x223   :  { %v1306_v39 = vpack.c.bf16 %v1282_v35, %v1279_v34  ;;  %v12074_v40 = vpop.f32.mrf.mxu0  ;;  %v12137_v43 = vadd.f32 %v12136_v38, %v12135_v32  ;;  %13949 = vmatprep.subr.msk.bf16.mxu0 %vm1336_vm0, %v1957_v29  ;;  %v14158_v32 = vld [vmem:[#allocation2 + $0x2e0] ss:$16 sps:$4 sm:$0xff]  }
 0x224   :  { %v12138_v41 = vpop.f32.mrf.mxu1 }
 0x225   :  { %13364 = vmatmul.mubr.msk.bf16.gmra.mxu0 %vm1311_vm1, %v1306_v39  ;;  %v12075_v45 = vpop.f32.mrf.mxu0  ;;  %1924 = vmatmul.mubr.bf16.gmra.mxu1 %v14143_v31  ;;  %v1287_v54 = vadd.f32 %v12137_v43, %v12073_v42  ;;  %v16144_v31 = vld [vmem:[%s17943_s0 + $0xf8] sm:$0xff]  }
 0x226   :  { %v12076_v47 = vadd.f32 %v12075_v45, %v12074_v40  ;;  %v12139_v48 = vpop.f32.mrf.mxu1  ;;  %1931 = vmatprep.mubr.bf16.mxu1 %v14147_v33 }
 0x227   :  { %v12140_v49 = vadd.f32 %v12139_v48, %v12138_v41  ;;  %v12077_v50 = vpop.f32.mrf.mxu0 }
 0x228   :  { %v12141_v52 = vpop.f32.mrf.mxu1 }
 0x229   :  { %v1290_v56 = vadd.f32 %v12140_v49, %v12076_v47  ;;  %v12078_v57 = vpop.f32.mrf.mxu0 }
 0x22a   :  { %v12142_v59 = vpop.f32.mrf.mxu1  ;;  %v12079_v63 = vadd.f32 %v12078_v57, %v12077_v50 }
 0x22b   :  { %v1307_v60 = vpack.c.bf16 %v1290_v56, %v1287_v54  ;;  %v12080_v61 = vpop.f32.mrf.mxu0  ;;  %v12143_v0 = vadd.f32 %v12142_v59, %v12141_v52  ;;  %v14161_v54 = vld [vmem:[#allocation2 + $0x304] ss:$16 sps:$4 sm:$0xff]   ;;  %v14159_v56 = vld [vmem:[#allocation2 + $0x300] ss:$16 sps:$4 sm:$0xff]  }
 0x22c   :  { %v12144_v62 = vpop.f32.mrf.mxu1 }
 0x22d   :  { %13367 = vmatprep.mubr.msk.bf16.mxu0 %vm1311_vm1, %v1307_v60  ;;  %v12081_v3 = vpop.f32.mrf.mxu0  ;;  %1932 = vmatmul.mubr.bf16.gmra.mxu1 %v14149_v51  ;;  %v1295_v8 = vadd.f32 %v12143_v0, %v12079_v63 }
 0x22e   :  { %v12082_v5 = vadd.f32 %v12081_v3, %v12080_v61  ;;  %v12145_v6 = vpop.f32.mrf.mxu1  ;;  %1939 = vmatprep.mubr.bf16.mxu1 %v14153_v53  ;;  %v14167_v3 = vld [vmem:[#allocation2 + $0x324] ss:$16 sps:$4 sm:$0xff]  }
 0x22f   :  { %v12146_v7 = vadd.f32 %v12145_v6, %v12144_v62  ;;  %v14165_v6 = vld [vmem:[#allocation2 + $0x320] ss:$16 sps:$4 sm:$0xff]  }
 0x231   :  { %v1298_v9 = vadd.f32 %v12146_v7, %v12082_v5 }
 0x233   :  { %v1308_v12 = vpack.c.bf16 %v1298_v9, %v1295_v8  ;;  %v14173_v9 = vld [vmem:[#allocation2 + $0x344] ss:$16 sps:$4 sm:$0xff]  }
 0x235   :  { %13368 = vmatmul.mubr.msk.bf16.gmra.mxu0 %vm1311_vm1, %v1308_v12  ;;  %1940 = vmatmul.mubr.bf16.gmra.mxu1 %v14155_v10  ;;  %v14171_v10 = vld [vmem:[#allocation2 + $0x340] ss:$16 sps:$4 sm:$0xff]  }
 0x236   :  { %1786 = vmatprep.mubr.bf16.mxu0 %v14116_v11  ;;  %2323 = vmatprep.mubr.bf16.mxu1 %v14161_v54  ;;  %v14189_v54 = vld [vmem:[#allocation2 + $0x3a0] ss:$16 sps:$4 sm:$0xff]  }
 0x23d   :  { %1787 = vmatmul.mubr.bf16.vlgmr.msra.gmra.mxu0 %v14114_v14  ;;  %2324 = vmatmul.mubr.bf16.vlgmr.msra.gmra.mxu1 %v14159_v56 }
 0x23e   :  { %1794 = vmatprep.mubr.bf16.mxu0 %v14120_v15  ;;  %13390 = vmatpush3.bf16.msra.mxu0 %v1983_v30 }
 0x23f   :  { %12366 = vmatprep.subr.bf16.mxu0 %v16144_v31  ;;  %2331 = vmatprep.mubr.bf16.mxu1 %v14167_v3 }
 0x245   :  { %1795 = vmatmul.mubr.bf16.gmra.mxu0 %v14122_v17  ;;  %2332 = vmatmul.mubr.bf16.gmra.mxu1 %v14165_v6 }
 0x246   :  { %1802 = vmatprep.mubr.bf16.mxu0 %v14126_v18  ;;  %2339 = vmatprep.mubr.bf16.mxu1 %v14173_v9 }
 0x24d   :  { %1803 = vmatmul.mubr.bf16.gmra.mxu0 %v14128_v19  ;;  %2340 = vmatmul.mubr.bf16.gmra.mxu1 %v14171_v10 }
 0x24e   :  { %1810 = vmatprep.mubr.bf16.mxu0 %v14132_v20 }
 0x255   :  { %1811 = vmatmul.mubr.bf16.gmra.mxu0 %v14134_v21  ;;  %v14179_v21 = vld [vmem:[#allocation2 + $0x364] ss:$16 sps:$4 sm:$0xff]  }
 0x256   :  { %1818 = vmatprep.mubr.bf16.mxu0 %v14138_v22  ;;  %2347 = vmatprep.mubr.bf16.mxu1 %v14179_v21  ;;  %v14201_v21 = vld [vmem:[#allocation2 + $0x3e0] ss:$16 sps:$4 sm:$0xff]  }
 0x25d   :  { %1819 = vmatmul.mubr.bf16.gmra.mxu0 %v14140_v24  ;;  %v14177_v24 = vld [vmem:[#allocation2 + $0x360] ss:$16 sps:$4 sm:$0xff]  }
 0x25e   :  { %1826 = vmatprep.mubr.bf16.mxu0 %v14144_v25  ;;  %2348 = vmatmul.mubr.bf16.gmra.mxu1 %v14177_v24 }
 0x265   :  { %1827 = vmatmul.mubr.bf16.gmra.mxu0 %v14146_v26 }
 0x266   :  { %1834 = vmatprep.mubr.bf16.mxu0 %v14150_v27  ;;  %v14185_v27 = vld [vmem:[#allocation2 + $0x384] ss:$16 sps:$4 sm:$0xff]  }
 0x267   :  { %2355 = vmatprep.mubr.bf16.mxu1 %v14185_v27 }
 0x26d   :  { %1835 = vmatmul.mubr.bf16.gmra.mxu0 %v14152_v28  ;;  %v14183_v28 = vld [vmem:[#allocation2 + $0x380] ss:$16 sps:$4 sm:$0xff]  }
 0x26e   :  { %1842 = vmatprep.mubr.bf16.mxu0 %v14156_v1  ;;  %2356 = vmatmul.mubr.bf16.gmra.mxu1 %v14183_v28 }
 0x275   :  { %1843 = vmatmul.mubr.bf16.gmra.mxu0 %v14158_v32 }
 0x285   :  { %v13375_v33 = vpop.f32.mrf.mxu1 }
 0x287   :  { %v1498_v34 = vpop.f32.mrf.mxu1 }
 0x289   :  { %v13376_v35 = vpop.f32.mrf.mxu1 }
 0x28b   :  { %v16147_v37 = vpop.f32.mrf.mxu1 }
 0x28c   :  { %17944 = vst [vmem:[#allocation36_spill] sm:$0xff] %v16147_v37 }
 0x295   :  { %v13379_v38 = vpop.f32.mrf.mxu1 }
 0x297   :  { %v1514_v39 = vpop.f32.mrf.mxu1 }
 0x299   :  { %v13380_v40 = vpop.f32.mrf.mxu1 }
 0x29b   :  { %v16149_v41 = vpop.f32.mrf.mxu1 }
 0x29c   :  { %17945 = vst [vmem:[#allocation37_spill] sm:$0xff] %v16149_v41 }
 0x2a5   :  { %v13383_v42 = vpop.f32.mrf.mxu1 }
 0x2a7   :  { %v1530_v43 = vpop.f32.mrf.mxu1 }
 0x2a9   :  { %v13384_v45 = vpop.f32.mrf.mxu1 }
 0x2ab   :  { %v16151_v47 = vpop.f32.mrf.mxu1 }
 0x2ac   :  { %17946 = vst [vmem:[#allocation38_spill] sm:$0xff] %v16151_v47 }
 0x2b5   :  { %v16153_v48 = vpop.f32.mrf.mxu1 }
 0x2b7   :  { %v16155_v49 = vpop.f32.mrf.mxu1 }
 0x2b9   :  { %v16157_v50 = vpop.f32.mrf.mxu1 }
 0x2bb   :  { %v16159_v51 = vpop.f32.mrf.mxu1 }
 0x2bc   :  { %17947 = vst [vmem:[#allocation39_spill] sm:$0xff] %v16159_v51 }
 0x2bd   :  { %v16161_v52 = vpop.f32.mrf.mxu1 }
 0x2bf   :  { %v16163_v53 = vpop.f32.mrf.mxu1 }
 0x2c1   :  { %v16165_v59 = vpop.f32.mrf.mxu1 }
 0x2c3   :  { %v16171_v0 = vpop.f32.mrf.mxu1 }
 0x2c5   :  { %v13357_v57 = vpop.f32.mrf.mxu0  ;;  %v16175_v7 = vpop.f32.mrf.mxu1 }
 0x2c6   :  { %v16167_v60 = vadd.f32 %v13375_v33, %v13357_v57 }
 0x2c7   :  { %v1374_v61 = vpop.f32.mrf.mxu0  ;;  %v16177_v8 = vpop.f32.mrf.mxu1 }
 0x2c8   :  { %v16169_v62 = vadd.f32 %v1498_v34, %v1374_v61  ;;  %v14197_v61 = vld [vmem:[#allocation2 + $0x3c4] ss:$16 sps:$4 sm:$0xff]  }
 0x2c9   :  { %v13358_v63 = vpop.f32.mrf.mxu0  ;;  %v16181_v14 = vpop.f32.mrf.mxu1 }
 0x2ca   :  { %v16173_v5 = vadd.f32 %v13376_v35, %v13358_v63  ;;  %v14195_v63 = vld [vmem:[#allocation2 + $0x3c0] ss:$16 sps:$4 sm:$0xff]  }
 0x2cb   :  { %v16179_v11 = vpop.f32.mrf.mxu0  ;;  %v16187_v20 = vpop.f32.mrf.mxu1 }
 0x2cc   :  { %17948 = vst [vmem:[#allocation40_spill] sm:$0xff] %v16179_v11 }
 0x2cd   :  { %v16191_v25 = vpop.f32.mrf.mxu1 }
 0x2cf   :  { %v16193_v26 = vpop.f32.mrf.mxu1 }
 0x2d1   :  { %v16197_v30 = vpop.f32.mrf.mxu1 }
 0x2d5   :  { %v13361_v12 = vpop.f32.mrf.mxu0 }
 0x2d6   :  { %v16183_v15 = vadd.f32 %v13379_v38, %v13361_v12  ;;  %v16203_v38 = vpop.f32.mrf.mxu1 }
 0x2d7   :  { %v1390_v17 = vpop.f32.mrf.mxu0 }
 0x2d8   :  { %v16185_v18 = vadd.f32 %v1514_v39, %v1390_v17  ;;  %v14191_v39 = vld [vmem:[#allocation2 + $0x3a4] ss:$16 sps:$4 sm:$0xff]   ;;  %v16207_v56 = vpop.f32.mrf.mxu1 }
 0x2d9   :  { %v13362_v19 = vpop.f32.mrf.mxu0  ;;  %2363 = vmatprep.mubr.bf16.mxu1 %v14191_v39  ;;  %v14203_v17 = vld [vmem:[#allocation2 + $0x3e4] ss:$16 sps:$4 sm:$0xff]   ;;  %v12247_v39 = vadd.f32 %v16163_v53, %v16161_v52  ;;  %v12253_v52 = vadd.f32 %v16177_v8, %v16175_v7  ;;  %v12256_v53 = vadd.f32 %v16187_v20, %v16181_v14  ;;  %v16253_v7 = vld [vmem:[%s17943_s0 + $0xb8] sm:$0xff]   ;;  %v12259_v8 = vadd.f32 %v16193_v26, %v16191_v25 }
 0x2da   :  { %v16189_v22 = vadd.f32 %v13380_v40, %v13362_v19  ;;  %2364 = vmatmul.mubr.bf16.gmra.mxu1 %v14189_v54  ;;  %v16209_v57 = vpop.f32.mrf.mxu1  ;;  %v16263_v20 = vld [vmem:[%s17943_s0 + $0xf0] sm:$0xff]  }
 0x2db   :  { %v16195_v1 = vpop.f32.mrf.mxu0  ;;  %2371 = vmatprep.mubr.bf16.mxu1 %v14197_v61  ;;  %v16269_v25 = vld [vmem:[%s17943_s0 + $0xb0] sm:$0xff]  }
 0x2dc   :  { %17949 = vst [vmem:[#allocation41_spill] sm:$0xff] %v16195_v1  ;;  %v16213_v3 = vpop.f32.mrf.mxu1 }
 0x2de   :  { %v16221_v12 = vpop.f32.mrf.mxu1 }
 0x2e0   :  { %v16228_v28 = vpop.f32.mrf.mxu1 }
 0x2e2   :  { %2372 = vmatmul.mubr.bf16.gmra.mxu1 %v14195_v63 }
 0x2e3   :  { %2379 = vmatprep.mubr.bf16.mxu1 %v14203_v17 }
 0x2e5   :  { %v13365_v29 = vpop.f32.mrf.mxu0 }
 0x2e6   :  { %v16199_v32 = vadd.f32 %v13383_v42, %v13365_v29 }
 0x2e7   :  { %v1406_v33 = vpop.f32.mrf.mxu0 }
 0x2e8   :  { %v16201_v34 = vadd.f32 %v1530_v43, %v1406_v33  ;;  %v16230_v33 = vpop.f32.mrf.mxu1 }
 0x2e9   :  { %v13366_v35 = vpop.f32.mrf.mxu0 }
 0x2ea   :  { %v16205_v40 = vadd.f32 %v13384_v45, %v13366_v35  ;;  %2380 = vmatmul.mubr.bf16.gmra.mxu1 %v14201_v21  ;;  %v16236_v63 = vpop.f32.mrf.mxu1 }
 0x2eb   :  { %v16211_v42 = vpop.f32.mrf.mxu0 }
 0x2ec   :  { %17950 = vst [vmem:[#allocation42_spill] sm:$0xff] %v16211_v42  ;;  %v16238_v37 = vpop.f32.mrf.mxu1 }
 0x2f5   :  { %v13369_v43 = vpop.f32.mrf.mxu0 }
 0x2f6   :  { %v16216_v6 = vadd.f32 %v16153_v48, %v13369_v43 }
 0x2f7   :  { %v1422_v45 = vpop.f32.mrf.mxu0 }
 0x2f8   :  { %v16219_v9 = vadd.f32 %v16155_v49, %v1422_v45 }
 0x2f9   :  { %v13370_v10 = vpop.f32.mrf.mxu0 }
 0x2fa   :  { %v16224_v19 = vadd.f32 %v16157_v50, %v13370_v10  ;;  %v12250_v50 = vadd.f32 %v16171_v0, %v16165_v59 }
 0x2fb   :  { %v16226_v24 = vpop.f32.mrf.mxu0 }
 0x2fc   :  { %17951 = vst [vmem:[#allocation43_spill] sm:$0xff] %v16226_v24 }
 0x2fd   :  { %v12181_v27 = vpop.f32.mrf.mxu0 }
 0x2ff   :  { %v12182_v48 = vpop.f32.mrf.mxu0 }
 0x300   :  { %v12183_v49 = vadd.f32 %v12182_v48, %v12181_v27  ;;  %v16245_v48 = vpop.f32.mrf.mxu1 }
 0x301   :  { %v12184_v29 = vpop.f32.mrf.mxu0 }
 0x302   :  { %v1886_v43 = vadd.f32 %v12247_v39, %v12183_v49 }
 0x303   :  { %v12185_v35 = vpop.f32.mrf.mxu0 }
 0x304   :  { %v12186_v54 = vadd.f32 %v12185_v35, %v12184_v29 }
 0x305   :  { %v12187_v61 = vpop.f32.mrf.mxu0 }
 0x306   :  { %v1889_v45 = vadd.f32 %v12250_v50, %v12186_v54  ;;  %v16247_v54 = vpop.f32.mrf.mxu1 }
 0x307   :  { %v12188_v10 = vpop.f32.mrf.mxu0 }
 0x308   :  { %v1948_v17 = vpack.c.bf16 %v1889_v45, %v1886_v43  ;;  %v12189_v11 = vadd.f32 %v12188_v10, %v12187_v61  ;;  %v12278_v10 = vpop.f32.mrf.mxu1 }
 0x309   :  { %v12190_v21 = vpop.f32.mrf.mxu0 }
 0x30a   :  { %13391 = vmatprep.mubr.msk.bf16.mxu0 %vm1311_vm1, %v1948_v17  ;;  %v1894_v29 = vadd.f32 %v12253_v52, %v12189_v11  ;;  %v12262_v11 = vadd.f32 %v16203_v38, %v16197_v30  ;;  %v16275_v30 = vld [vmem:[%s17943_s0 + $0xe8] sm:$0xff]   ;;  %v12279_v52 = vpop.f32.mrf.mxu1 }
 0x30b   :  { %v12191_v27 = vpop.f32.mrf.mxu0 }
 0x30c   :  { %v12192_v59 = vadd.f32 %v12191_v27, %v12190_v21 }
 0x30d   :  { %v12193_v0 = vpop.f32.mrf.mxu0 }
 0x30e   :  { %v1897_v49 = vadd.f32 %v12256_v53, %v12192_v59 }
 0x30f   :  { %v12194_v35 = vpop.f32.mrf.mxu0 }
 0x310   :  { %v1949_v39 = vpack.c.bf16 %v1897_v49, %v1894_v29  ;;  %v12195_v61 = vadd.f32 %v12194_v35, %v12193_v0  ;;  %v16282_v0 = vld [vmem:[%s17943_s0 + $0xa8] sm:$0xff]   ;;  %v12265_v29 = vadd.f32 %v16209_v57, %v16207_v56  ;;  %v12268_v49 = vadd.f32 %v16221_v12, %v16213_v3  ;;  %v16298_v56 = vld [vmem:[%s17943_s0 + $0xa0] sm:$0xff]   ;;  %v16304_v3 = vld [vmem:[%s17943_s0 + $0xd8] sm:$0xff]  }
 0x311   :  { %v12196_v50 = vpop.f32.mrf.mxu0 }
 0x312   :  { %13392 = vmatmul.mubr.msk.bf16.vlgmr.msra.gmra.mxu0 %vm1311_vm1, %v1949_v39  ;;  %v1902_v17 = vadd.f32 %v12259_v8, %v12195_v61  ;;  %v16292_v39 = vld [vmem:[%s17943_s0 + $0xe0] sm:$0xff]   ;;  %v12281_v61 = vpop.f32.mrf.mxu1 }
 0x313   :  { %v12197_v43 = vpop.f32.mrf.mxu0  ;;  %12367 = vmatpush3.bf16.msra.mxu0 %v16253_v7 }
 0x314   :  { %v12198_v14 = vadd.f32 %v12197_v43, %v12196_v50  ;;  %12368 = vmatprep.subr.bf16.mxu0 %v16263_v20 }
 0x315   :  { %v12199_v45 = vpop.f32.mrf.mxu0 }
 0x316   :  { %v1905_v21 = vadd.f32 %v12262_v11, %v12198_v14  ;;  %v12282_v14 = vpop.f32.mrf.mxu1 }
 0x317   :  { %v12200_v27 = vpop.f32.mrf.mxu0  ;;  %12369 = vmatpush3.bf16.msra.mxu0 %v16269_v25 }
 0x318   :  { %v1950_v26 = vpack.c.bf16 %v1905_v21, %v1902_v17  ;;  %12370 = vmatprep.subr.bf16.mxu0 %v16275_v30  ;;  %v12201_v53 = vadd.f32 %v12200_v27, %v12199_v45  ;;  %v16311_v21 = vld [vmem:[%s17943_s0 + $0x98] sm:$0xff]   ;;  %v12271_v27 = vadd.f32 %v16230_v33, %v16228_v28  ;;  %v16327_v28 = vld [vmem:[%s17943_s0 + $0x90] sm:$0xff]   ;;  %v16333_v33 = vld [vmem:[%s17943_s0 + $0xc8] sm:$0xff]  }
 0x319   :  { %v12202_v38 = vpop.f32.mrf.mxu0 }
 0x31a   :  { %13395 = vmatprep.mubr.msk.bf16.mxu0 %vm1311_vm1, %v1950_v26  ;;  %v1910_v43 = vadd.f32 %v12265_v29, %v12201_v53  ;;  %v12274_v26 = vadd.f32 %v16238_v37, %v16236_v63  ;;  %v16321_v53 = vld [vmem:[%s17943_s0 + $0xd0] sm:$0xff]   ;;  %v12284_v29 = vpop.f32.mrf.mxu1 }
 0x31b   :  { %v12203_v59 = vpop.f32.mrf.mxu0  ;;  %12371 = vmatpush3.bf16.msra.mxu0 %v16282_v0 }
 0x31c   :  { %v12204_v35 = vadd.f32 %v12203_v59, %v12202_v38  ;;  %12372 = vmatprep.subr.bf16.mxu0 %v16292_v39 }
 0x31d   :  { %v12205_v50 = vpop.f32.mrf.mxu0 }
 0x31e   :  { %v1913_v8 = vadd.f32 %v12268_v49, %v12204_v35 }
 0x31f   :  { %v12206_v11 = vpop.f32.mrf.mxu0  ;;  %12373 = vmatpush3.bf16.msra.mxu0 %v16298_v56 }
 0x320   :  { %v1951_v57 = vpack.c.bf16 %v1913_v8, %v1910_v43  ;;  %12374 = vmatprep.subr.bf16.mxu0 %v16304_v3  ;;  %v12207_v45 = vadd.f32 %v12206_v11, %v12205_v50  ;;  %v12285_v43 = vpop.f32.mrf.mxu1 }
 0x321   :  { %v12208_v12 = vpop.f32.mrf.mxu0 }
 0x322   :  { %13396 = vmatmul.mubr.msk.bf16.gmra.mxu0 %vm1311_vm1, %v1951_v57  ;;  %v1918_v49 = vadd.f32 %v12271_v27, %v12207_v45  ;;  %v16340_v57 = vld [vmem:[%s17943_s0 + $0x88] sm:$0xff]   ;;  %v12280_v45 = vadd.f32 %v12279_v52, %v12278_v10  ;;  %v16348_v27 = vld [vmem:[%s17943_s0 + $0xc0] sm:$0xff]  }
 0x323   :  { %v12209_v17 = vpop.f32.mrf.mxu0  ;;  %12375 = vmatpush3.bf16.msra.mxu0 %v16311_v21 }
 0x324   :  { %v12210_v38 = vadd.f32 %v12209_v17, %v12208_v12  ;;  %12376 = vmatprep.subr.bf16.mxu0 %v16321_v53  ;;  %v12277_v12 = vadd.f32 %v16247_v54, %v16245_v48  ;;  %v16360_v54 = vld [vmem:[%s17943_s0 + $0x78] sm:$0xff]  }
 0x325   :  { %v12211_v59 = vpop.f32.mrf.mxu0  ;;  %17953 = vst [vmem:[#allocation45_spill] sm:$0xff] %v16360_v54 }
 0x326   :  { %v1921_v35 = vadd.f32 %v12274_v26, %v12210_v38  ;;  %v12287_v38 = vpop.f32.mrf.mxu1 }
 0x327   :  { %v12212_v50 = vpop.f32.mrf.mxu0  ;;  %12377 = vmatpush3.bf16.msra.mxu0 %v16327_v28 }
 0x328   :  { %v1952_v37 = vpack.c.bf16 %v1921_v35, %v1918_v49  ;;  %12378 = vmatprep.subr.bf16.mxu0 %v16333_v33  ;;  %v12213_v8 = vadd.f32 %v12212_v50, %v12211_v59  ;;  %v16354_v50 = vld [vmem:[%s17943_s0 + $0x80] sm:$0xff]   ;;  %v12288_v52 = vpop.f32.mrf.mxu1 }
 0x329   :  { %v12214_v63 = vpop.f32.mrf.mxu0  ;;  %17952 = vst [vmem:[#allocation44_spill] sm:$0xff] %v16354_v50 }
 0x32a   :  { %13399 = vmatprep.mubr.msk.bf16.mxu0 %vm1311_vm1, %v1952_v37  ;;  %v1926_v59 = vadd.f32 %v12277_v12, %v12213_v8  ;;  %v12283_v8 = vadd.f32 %v12282_v14, %v12281_v61  ;;  %v14164_v61 = vld [vmem:[#allocation2 + $0x30c] ss:$16 sps:$4 sm:$0xff]  }
 0x32b   :  { %v12215_v11 = vpop.f32.mrf.mxu0  ;;  %12379 = vmatpush3.bf16.msra.mxu0 %v16340_v57 }
 0x32c   :  { %v12216_v17 = vadd.f32 %v12215_v11, %v12214_v63  ;;  %12380 = vmatprep.subr.bf16.mxu0 %v16348_v27  ;;  %v12286_v11 = vadd.f32 %v12285_v43, %v12284_v29  ;;  %v14162_v29 = vld [vmem:[#allocation2 + $0x308] ss:$16 sps:$4 sm:$0xff]   ;;  %v14170_v43 = vld [vmem:[#allocation2 + $0x32c] ss:$16 sps:$4 sm:$0xff]  }
 0x32d   :  { %v12217_v26 = vpop.f32.mrf.mxu0 }
 0x32e   :  { %v1929_v49 = vadd.f32 %v12280_v45, %v12216_v17  ;;  %v12290_v45 = vpop.f32.mrf.mxu1 }
 0x32f   :  { %v12218_v35 = vpop.f32.mrf.mxu0  ;;  %12381 = vmatpush3.bf16.msra.mxu0 %v16354_v50 }
 0x330   :  { %v1953_v48 = vpack.c.bf16 %v1929_v49, %v1926_v59  ;;  %12439 = vmatprep.subr.bf16.mxu0 %v16360_v54  ;;  %v12219_v37 = vadd.f32 %v12218_v35, %v12217_v26  ;;  %v12291_v47 = vpop.f32.mrf.mxu1  ;;  %v12289_v54 = vadd.f32 %v12288_v52, %v12287_v38  ;;  %v16393_v38 = vld [vmem:[%s17943_s0 + $0x28] sm:$0xff]  }
 0x331   :  { %v12220_v10 = vpop.f32.mrf.mxu0  ;;  %v12292_v26 = vadd.f32 %v12291_v47, %v12290_v45  ;;  %v16375_v47 = vld [vmem:[%s17943_s0 + $0x70] sm:$0xff]   ;;  %v14188_v52 = vld [vmem:[#allocation2 + $0x38c] ss:$16 sps:$4 sm:$0xff]  }
 0x332   :  { %13400 = vmatmul.mubr.msk.bf16.gmra.mxu0 %vm1311_vm1, %v1953_v48  ;;  %v1934_v41 = vadd.f32 %v12283_v8, %v12219_v37  ;;  %v2494_v37 = vld [vmem:[#allocation4 + $0xc] sm:$0xf]  ;;  %v14207_v8 = vld [vmem:[#allocation2 + $0x400] ss:$16 sps:$4 sm:$0xff]  }
 0x333   :  { %v12221_v63 = vpop.f32.mrf.mxu0  ;;  %13950 = vmatprep.subr.msk.bf16.mxu1 %vm1336_vm0, %v2494_v37 }
 0x334   :  { %v12222_v12 = vadd.f32 %v12221_v63, %v12220_v10  ;;  %v14180_v10 = vld [vmem:[#allocation2 + $0x368] ss:$16 sps:$4 sm:$0xff]   ;;  %v14209_v63 = vld [vmem:[#allocation2 + $0x404] ss:$16 sps:$4 sm:$0xff]  }
 0x335   :  { %v12223_v17 = vpop.f32.mrf.mxu0 }
 0x336   :  { %v1937_v59 = vadd.f32 %v12286_v11, %v12222_v12 }
 0x337   :  { %v12224_v49 = vpop.f32.mrf.mxu0 }
 0x338   :  { %v1954_v1 = vpack.c.bf16 %v1937_v59, %v1934_v41  ;;  %v12225_v51 = vadd.f32 %v12224_v49, %v12223_v17  ;;  %v16369_v41 = vld [vmem:[%s17943_s0 + $0x38] sm:$0xff]  }
 0x339   :  { %v12226_v42 = vpop.f32.mrf.mxu0 }
 0x33a   :  { %13403 = vmatprep.mubr.msk.bf16.mxu0 %vm1311_vm1, %v1954_v1  ;;  %v1942_v48 = vadd.f32 %v12289_v54, %v12225_v51  ;;  %v14168_v51 = vld [vmem:[#allocation2 + $0x328] ss:$16 sps:$4 sm:$0xff]   ;;  %v14176_v1 = vld [vmem:[#allocation2 + $0x34c] ss:$16 sps:$4 sm:$0xff]  }
 0x33b   :  { %v12227_v24 = vpop.f32.mrf.mxu0  ;;  %v14182_v54 = vld [vmem:[#allocation2 + $0x36c] ss:$16 sps:$4 sm:$0xff]  }
 0x33c   :  { %v12228_v35 = vadd.f32 %v12227_v24, %v12226_v42  ;;  %v16381_v42 = vld [vmem:[%s17943_s0 + $0x30] sm:$0xff]   ;;  %v16387_v24 = vld [vmem:[%s17943_s0 + $0x68] sm:$0xff]  }
 0x33e   :  { %v1945_v50 = vadd.f32 %v12292_v26, %v12228_v35  ;;  %v14215_v26 = vld [vmem:[#allocation2 + $0x424] ss:$16 sps:$4 sm:$0xff]  }
 0x340   :  { %v1955_v14 = vpack.c.bf16 %v1945_v50, %v1942_v48  ;;  %v14174_v50 = vld [vmem:[#allocation2 + $0x348] ss:$16 sps:$4 sm:$0xff]   ;;  %v14213_v48 = vld [vmem:[#allocation2 + $0x420] ss:$16 sps:$4 sm:$0xff]  }
 0x342   :  { %13404 = vmatmul.mubr.msk.bf16.gmra.mxu0 %vm1311_vm1, %v1955_v14 }
 0x343   :  { %2420 = vmatprep.mubr.bf16.mxu0 %v14164_v61 }
 0x34a   :  { %2421 = vmatmul.mubr.bf16.vlgmr.msra.gmra.mxu0 %v14162_v29  ;;  %v14219_v29 = vld [vmem:[#allocation2 + $0x440] ss:$16 sps:$4 sm:$0xff]  }
 0x34b   :  { %2428 = vmatprep.mubr.bf16.mxu0 %v14170_v43  ;;  %12440 = vmatpush3.bf16.msra.mxu0 %v16369_v41 }
 0x34c   :  { %12441 = vmatprep.subr.bf16.mxu0 %v16375_v47 }
 0x34f   :  { %12442 = vmatpush3.bf16.msra.mxu0 %v16381_v42 }
 0x350   :  { %12443 = vmatprep.subr.bf16.mxu0 %v16387_v24 }
 0x352   :  { %2429 = vmatmul.mubr.bf16.gmra.mxu0 %v14168_v51 }
 0x353   :  { %2436 = vmatprep.mubr.bf16.mxu0 %v14176_v1  ;;  %12444 = vmatpush3.bf16.msra.mxu0 %v16393_v38 }
 0x354   :  { %12445 = vmatprep.subr.bf16.mxu0 %v16066_v36  ;;  %v14186_v36 = vld [vmem:[#allocation2 + $0x388] ss:$16 sps:$4 sm:$0xff]  }
 0x357   :  { %12446 = vmatpush3.bf16.msra.mxu0 %v16072_v44  ;;  %v14194_v44 = vld [vmem:[#allocation2 + $0x3ac] ss:$16 sps:$4 sm:$0xff]  }
 0x358   :  { %12447 = vmatprep.subr.bf16.mxu0 %v16078_v46  ;;  %v14192_v46 = vld [vmem:[#allocation2 + $0x3a8] ss:$16 sps:$4 sm:$0xff]  }
 0x35a   :  { %2437 = vmatmul.mubr.bf16.gmra.mxu0 %v14174_v50 }
 0x35b   :  { %2444 = vmatprep.mubr.bf16.mxu0 %v14182_v54  ;;  %12448 = vmatpush3.bf16.msra.mxu0 %v16086_v55  ;;  %v14200_v55 = vld [vmem:[#allocation2 + $0x3cc] ss:$16 sps:$4 sm:$0xff]  }
 0x35c   :  { %12449 = vmatprep.subr.bf16.mxu0 %v16092_v58  ;;  %v14198_v58 = vld [vmem:[#allocation2 + $0x3c8] ss:$16 sps:$4 sm:$0xff]  }
 0x35f   :  { %12450 = vmatpush3.bf16.msra.mxu0 %v16100_v2  ;;  %v14206_v2 = vld [vmem:[#allocation2 + $0x3ec] ss:$16 sps:$4 sm:$0xff]  }
 0x360   :  { %12451 = vmatprep.subr.bf16.mxu0 %v16106_v4  ;;  %v2520_v4 = vsel %vm1336_vm0, %v2494_v37, 0 }
 0x361   :  { %13408 = vmatpush3.bf16.msra.mxu1 %v2520_v4 }
 0x362   :  { %2445 = vmatmul.mubr.bf16.gmra.mxu0 %v14180_v10  ;;  %12503 = vmatprep.subr.bf16.mxu1 %v16144_v31 }
 0x363   :  { %2452 = vmatprep.mubr.bf16.mxu0 %v14188_v52  ;;  %12452 = vmatpush3.bf16.msra.mxu0 %v16115_v13  ;;  %v14204_v13 = vld [vmem:[#allocation2 + $0x3e8] ss:$16 sps:$4 sm:$0xff]   ;;  %v14227_v52 = vld [vmem:[#allocation2 + $0x464] ss:$16 sps:$4 sm:$0xff]  }
 0x364   :  { %12453 = vmatprep.subr.bf16.mxu0 %v16121_v16  ;;  %v16409_v16 = vpop.f32.mrf.mxu1 }
 0x367   :  { %12454 = vmatpush3.bf16.msra.mxu0 %v16129_v23  ;;  %v16411_v23 = vpop.f32.mrf.mxu1 }
 0x369   :  { %v16413_v12 = vpop.f32.mrf.mxu1 }
 0x36a   :  { %2453 = vmatmul.mubr.bf16.gmra.mxu0 %v14186_v36 }
 0x36b   :  { %2460 = vmatprep.mubr.bf16.mxu0 %v14194_v44  ;;  %v16421_v49 = vpop.f32.mrf.mxu1  ;;  %v14225_v44 = vld [vmem:[#allocation2 + $0x460] ss:$16 sps:$4 sm:$0xff]  }
 0x36d   :  { %v16426_v61 = vpop.f32.mrf.mxu1 }
 0x36f   :  { %v16428_v14 = vpop.f32.mrf.mxu1 }
 0x371   :  { %v16432_v51 = vpop.f32.mrf.mxu1 }
 0x372   :  { %2461 = vmatmul.mubr.bf16.gmra.mxu0 %v14192_v46 }
 0x373   :  { %2468 = vmatprep.mubr.bf16.mxu0 %v14200_v55  ;;  %v16440_v10 = vpop.f32.mrf.mxu1 }
 0x375   :  { %v16445_v46 = vpop.f32.mrf.mxu1 }
 0x377   :  { %v16447_v55 = vpop.f32.mrf.mxu1 }
 0x379   :  { %v16451_v37 = vpop.f32.mrf.mxu1 }
 0x37a   :  { %2469 = vmatmul.mubr.bf16.gmra.mxu0 %v14198_v58  ;;  %v14231_v58 = vld [vmem:[#allocation2 + $0x480] ss:$16 sps:$4 sm:$0xff]  }
 0x37b   :  { %2476 = vmatprep.mubr.bf16.mxu0 %v14206_v2 }
 0x382   :  { %2477 = vmatmul.mubr.bf16.gmra.mxu0 %v14204_v13 }
 0x383   :  { %2860 = vmatprep.mubr.bf16.mxu0 %v14209_v63 }
 0x38a   :  { %2861 = vmatmul.mubr.bf16.vlgmr.msra.gmra.mxu0 %v14207_v8  ;;  %v16459_v8 = vpop.f32.mrf.mxu1 }
 0x38b   :  { %2868 = vmatprep.mubr.bf16.mxu0 %v14215_v26 }
 0x38c   :  { %v16464_v26 = vpop.f32.mrf.mxu1 }
 0x392   :  { %2869 = vmatmul.mubr.bf16.gmra.mxu0 %v14213_v48  ;;  %v16466_v48 = vpop.f32.mrf.mxu1 }
 0x3d2   :  { %v13393_v11 = vpop.f32.mrf.mxu0 }
 0x3d3   :  { %v16416_v45 = vadd.f32 %v13393_v11, %v16167_v60  ;;  %v14221_v60 = vld [vmem:[#allocation2 + $0x444] ss:$16 sps:$4 sm:$0xff]  }
 0x3d4   :  { %v2019_v17 = vpop.f32.mrf.mxu0  ;;  %2876 = vmatprep.mubr.bf16.mxu0 %v14221_v60  ;;  %v14239_v11 = vld [vmem:[#allocation2 + $0x4a4] ss:$16 sps:$4 sm:$0xff]   ;;  %v14243_v60 = vld [vmem:[#allocation2 + $0x4c0] ss:$16 sps:$4 sm:$0xff]  }
 0x3d5   :  { %v16419_v59 = vadd.f32 %v2019_v17, %v16169_v62  ;;  %2877 = vmatmul.mubr.bf16.gmra.mxu0 %v14219_v29 }
 0x3d6   :  { %v13394_v31 = vpop.f32.mrf.mxu0  ;;  %2884 = vmatprep.mubr.bf16.mxu0 %v14227_v52 }
 0x3d7   :  { %v16424_v35 = vadd.f32 %v13394_v31, %v16173_v5  ;;  %v14237_v31 = vld [vmem:[#allocation2 + $0x4a0] ss:$16 sps:$4 sm:$0xff]  }
 0x3d8   :  { %v16430_v43 = vpop.f32.mrf.mxu0 }
 0x3d9   :  { %17954 = vst [vmem:[#allocation46_spill] sm:$0xff] %v16430_v43 }
 0x3dd   :  { %2885 = vmatmul.mubr.bf16.gmra.mxu0 %v14225_v44 }
 0x3e2   :  { %v13397_v62 = vpop.f32.mrf.mxu0 }
 0x3e3   :  { %v16435_v1 = vadd.f32 %v13397_v62, %v16183_v15  ;;  %v14233_v15 = vld [vmem:[#allocation2 + $0x484] ss:$16 sps:$4 sm:$0xff]   ;;  %v16470_v62 = vpop.f32.mrf.mxu1 }
 0x3e4   :  { %v2035_v5 = vpop.f32.mrf.mxu0  ;;  %2892 = vmatprep.mubr.bf16.mxu0 %v14233_v15  ;;  %v14251_v15 = vld [vmem:[#allocation2 + $0x4e4] ss:$16 sps:$4 sm:$0xff]  }
 0x3e5   :  { %v16438_v50 = vadd.f32 %v2035_v5, %v16185_v18  ;;  %2893 = vmatmul.mubr.bf16.gmra.mxu0 %v14231_v58  ;;  %v12340_v44 = vpop.f32.mrf.mxu1 }
 0x3e6   :  { %v13398_v54 = vpop.f32.mrf.mxu0  ;;  %2900 = vmatprep.mubr.bf16.mxu0 %v14239_v11 }
 0x3e7   :  { %v16443_v36 = vadd.f32 %v13398_v54, %v16189_v22  ;;  %v16483_v11 = vpop.f32.mrf.mxu1 }
 0x3e8   :  { %v16449_v2 = vpop.f32.mrf.mxu0 }
 0x3e9   :  { %17955 = vst [vmem:[#allocation47_spill] sm:$0xff] %v16449_v2 }
 0x3ed   :  { %2901 = vmatmul.mubr.bf16.gmra.mxu0 %v14237_v31 }
 0x3f2   :  { %v13401_v18 = vpop.f32.mrf.mxu0 }
 0x3f3   :  { %v16454_v4 = vadd.f32 %v13401_v18, %v16199_v32  ;;  %v14245_v32 = vld [vmem:[#allocation2 + $0x4c4] ss:$16 sps:$4 sm:$0xff]   ;;  %v14249_v18 = vld [vmem:[#allocation2 + $0x4e0] ss:$16 sps:$4 sm:$0xff]  }
 0x3f4   :  { %v2051_v22 = vpop.f32.mrf.mxu0  ;;  %2908 = vmatprep.mubr.bf16.mxu0 %v14245_v32  ;;  %v16485_v32 = vpop.f32.mrf.mxu1 }
 0x3f5   :  { %v16457_v13 = vadd.f32 %v2051_v22, %v16201_v34  ;;  %2909 = vmatmul.mubr.bf16.gmra.mxu0 %v14243_v60 }
 0x3f6   :  { %v13402_v63 = vpop.f32.mrf.mxu0  ;;  %2916 = vmatprep.mubr.bf16.mxu0 %v14251_v15  ;;  %v12345_v43 = vpop.f32.mrf.mxu1 }
 0x3f7   :  { %v16462_v17 = vadd.f32 %v13402_v63, %v16205_v40 }
 0x3f8   :  { %v16468_v29 = vpop.f32.mrf.mxu0 }
 0x3f9   :  { %17956 = vst [vmem:[#allocation48_spill] sm:$0xff] %v16468_v29 }
 0x3fd   :  { %2917 = vmatmul.mubr.bf16.gmra.mxu0 %v14249_v18 }
 0x402   :  { %v13405_v34 = vpop.f32.mrf.mxu0 }
 0x403   :  { %v16473_v5 = vadd.f32 %v13405_v34, %v16216_v6  ;;  %v12320_v34 = vadd.f32 %v16411_v23, %v16409_v16  ;;  %v12329_v16 = vadd.f32 %v16440_v10, %v16432_v51 }
 0x404   :  { %v2067_v40 = vpop.f32.mrf.mxu0 }
 0x405   :  { %v16476_v54 = vadd.f32 %v2067_v40, %v16219_v9 }
 0x406   :  { %v13406_v52 = vpop.f32.mrf.mxu0 }
 0x407   :  { %17957 = vst [vmem:[#allocation49_spill] sm:$0xff] %v16476_v54  ;;  %v16479_v58 = vadd.f32 %v13406_v52, %v16224_v19  ;;  %v12323_v19 = vadd.f32 %v16421_v49, %v16413_v12 }
 0x408   :  { %v16481_v22 = vpop.f32.mrf.mxu0 }
 0x409   :  { %17958 = vst [vmem:[#allocation50_spill] sm:$0xff] %v16479_v58  ;;  %17959 = vst [vmem:[#allocation51_spill] sm:$0xff] %v16481_v22  ;;  %v12346_v58 = vpop.f32.mrf.mxu1 }
 0x40a   :  { %v12382_v63 = vpop.f32.mrf.mxu0 }
 0x40b   :  { %v16496_v49 = vpop.f32.mrf.mxu1 }
 0x40c   :  { %v12383_v6 = vpop.f32.mrf.mxu0 }
 0x40d   :  { %v12384_v9 = vadd.f32 %v12383_v6, %v12382_v63  ;;  %v12326_v6 = vadd.f32 %v16428_v14, %v16426_v61  ;;  %v12332_v61 = vadd.f32 %v16447_v55, %v16445_v46  ;;  %v12335_v14 = vadd.f32 %v16459_v8, %v16451_v37 }
 0x40e   :  { %v12385_v31 = vpop.f32.mrf.mxu0  ;;  %v12341_v55 = vadd.f32 %v12340_v44, %v16470_v62 }
 0x40f   :  { %v2423_v15 = vadd.f32 %v12384_v9, %v12320_v34 }
 0x410   :  { %v12386_v60 = vpop.f32.mrf.mxu0 }
 0x411   :  { %v12387_v40 = vadd.f32 %v12386_v60, %v12385_v31 }
 0x412   :  { %v12388_v52 = vpop.f32.mrf.mxu0 }
 0x413   :  { %v2426_v18 = vadd.f32 %v12387_v40, %v12323_v19  ;;  %v12349_v40 = vpop.f32.mrf.mxu1 }
 0x414   :  { %v12389_v2 = vpop.f32.mrf.mxu0 }
 0x415   :  { %v2485_v29 = vpack.c.bf16 %v2426_v18, %v2423_v15  ;;  %v12390_v54 = vadd.f32 %v12389_v2, %v12388_v52 }
 0x416   :  { %v12391_v22 = vpop.f32.mrf.mxu0 }
 0x417   :  { %13409 = vmatprep.mubr.msk.bf16.mxu1 %vm1311_vm1, %v2485_v29  ;;  %v2431_v31 = vadd.f32 %v12390_v54, %v12326_v6  ;;  %v12351_v54 = vpop.f32.mrf.mxu1 }
 0x418   :  { %v12392_v63 = vpop.f32.mrf.mxu0 }
 0x419   :  { %v12393_v23 = vadd.f32 %v12392_v63, %v12391_v22  ;;  %v12352_v63 = vpop.f32.mrf.mxu1 }
 0x41a   :  { %v12394_v12 = vpop.f32.mrf.mxu0 }
 0x41b   :  { %v2434_v9 = vadd.f32 %v12393_v23, %v12329_v16  ;;  %v12354_v8 = vpop.f32.mrf.mxu1 }
 0x41c   :  { %v12395_v60 = vpop.f32.mrf.mxu0 }
 0x41d   :  { %v2486_v34 = vpack.c.bf16 %v2434_v9, %v2431_v31  ;;  %v12396_v2 = vadd.f32 %v12395_v60, %v12394_v12 }
 0x41e   :  { %v12397_v19 = vpop.f32.mrf.mxu0 }
 0x41f   :  { %13410 = vmatmul.mubr.msk.bf16.vlgmr.msra.gmra.mxu1 %vm1311_vm1, %v2486_v34  ;;  %v2439_v22 = vadd.f32 %v12396_v2, %v12332_v61 }
 0x420   :  { %v12398_v29 = vpop.f32.mrf.mxu0  ;;  %12504 = vmatpush3.bf16.msra.mxu1 %v16253_v7 }
 0x421   :  { %v12399_v51 = vadd.f32 %v12398_v29, %v12397_v19  ;;  %12505 = vmatprep.subr.bf16.mxu1 %v16263_v20  ;;  %v12338_v20 = vadd.f32 %v16466_v48, %v16464_v26  ;;  %v12347_v48 = vadd.f32 %v12346_v58, %v12345_v43  ;;  %v12353_v43 = vadd.f32 %v12352_v63, %v12351_v54 }
 0x422   :  { %v12400_v10 = vpop.f32.mrf.mxu0 }
 0x423   :  { %v2442_v52 = vadd.f32 %v12399_v51, %v12335_v14 }
 0x424   :  { %v12401_v15 = vpop.f32.mrf.mxu0  ;;  %12506 = vmatpush3.bf16.msra.mxu1 %v16269_v25 }
 0x425   :  { %v2487_v18 = vpack.c.bf16 %v2442_v52, %v2439_v22  ;;  %12507 = vmatprep.subr.bf16.mxu1 %v16275_v30  ;;  %v12402_v6 = vadd.f32 %v12401_v15, %v12400_v10  ;;  %v17961_v22 = vld [vmem:[#allocation45_spill] sm:$0xff] }
 0x426   :  { %v12403_v7 = vpop.f32.mrf.mxu0 }
 0x427   :  { %13413 = vmatprep.mubr.msk.bf16.mxu1 %vm1311_vm1, %v2487_v18  ;;  %v2447_v16 = vadd.f32 %v12402_v6, %v12338_v20 }
 0x428   :  { %v12404_v46 = vpop.f32.mrf.mxu0  ;;  %12508 = vmatpush3.bf16.msra.mxu1 %v16282_v0  ;;  %v12355_v0 = vpop.f32.mrf.mxu1 }
 0x429   :  { %v12405_v37 = vadd.f32 %v12404_v46, %v12403_v7  ;;  %12509 = vmatprep.subr.bf16.mxu1 %v16292_v39  ;;  %v12344_v39 = vadd.f32 %v16485_v32, %v16483_v11 }
 0x42a   :  { %v12406_v25 = vpop.f32.mrf.mxu0 }
 0x42b   :  { %v2450_v30 = vadd.f32 %v12405_v37, %v12341_v55 }
 0x42c   :  { %v12407_v23 = vpop.f32.mrf.mxu0  ;;  %12510 = vmatpush3.bf16.msra.mxu1 %v16298_v56  ;;  %v12357_v56 = vpop.f32.mrf.mxu1 }
 0x42d   :  { %v2488_v12 = vpack.c.bf16 %v2450_v30, %v2447_v16  ;;  %12511 = vmatprep.subr.bf16.mxu1 %v16304_v3  ;;  %v12408_v9 = vadd.f32 %v12407_v23, %v12406_v25 }
 0x42e   :  { %v12409_v31 = vpop.f32.mrf.mxu0  ;;  %v12358_v29 = vpop.f32.mrf.mxu1 }
 0x42f   :  { %13414 = vmatmul.mubr.msk.bf16.gmra.mxu1 %vm1311_vm1, %v2488_v12  ;;  %v2455_v60 = vadd.f32 %v12408_v9, %v12344_v39  ;;  %v14218_v39 = vld [vmem:[#allocation2 + $0x42c] ss:$16 sps:$4 sm:$0xff]  }
 0x430   :  { %v12410_v26 = vpop.f32.mrf.mxu0  ;;  %12512 = vmatpush3.bf16.msra.mxu1 %v16311_v21  ;;  %v12360_v61 = vpop.f32.mrf.mxu1 }
 0x431   :  { %v12411_v62 = vadd.f32 %v12410_v26, %v12409_v31  ;;  %12513 = vmatprep.subr.bf16.mxu1 %v16321_v53  ;;  %v12350_v53 = vadd.f32 %v12349_v40, %v16496_v49  ;;  %v12356_v49 = vadd.f32 %v12355_v0, %v12354_v8  ;;  %v12359_v40 = vadd.f32 %v12358_v29, %v12357_v56  ;;  %v14212_v8 = vld [vmem:[#allocation2 + $0x40c] ss:$16 sps:$4 sm:$0xff]   ;;  %v14210_v26 = vld [vmem:[#allocation2 + $0x408] ss:$16 sps:$4 sm:$0xff]   ;;  %v16587_v29 = vld [vmem:[%s17943_s0 + $0x40] sm:$0xff]  }
 0x432   :  { %v12412_v44 = vpop.f32.mrf.mxu0  ;;  %v12361_v52 = vpop.f32.mrf.mxu1  ;;  %v14230_v56 = vld [vmem:[#allocation2 + $0x46c] ss:$16 sps:$4 sm:$0xff]  }
 0x433   :  { %v2458_v34 = vadd.f32 %v12411_v62, %v12347_v48  ;;  %v12362_v30 = vadd.f32 %v12361_v52, %v12360_v61  ;;  %v14216_v48 = vld [vmem:[#allocation2 + $0x428] ss:$16 sps:$4 sm:$0xff]   ;;  %v14224_v62 = vld [vmem:[#allocation2 + $0x44c] ss:$16 sps:$4 sm:$0xff]   ;;  %v14257_v52 = vld [vmem:[#allocation2 + $0x504] ss:$16 sps:$4 sm:$0xff]  }
 0x434   :  { %v12413_v3 = vpop.f32.mrf.mxu0  ;;  %12514 = vmatpush3.bf16.msra.mxu1 %v16327_v28  ;;  %v14254_v61 = vld [vmem:[#allocation2 + $0x4ec] ss:$16 sps:$4 sm:$0xff]  }
 0x435   :  { %v2489_v19 = vpack.c.bf16 %v2458_v34, %v2455_v60  ;;  %12515 = vmatprep.subr.bf16.mxu1 %v16333_v33  ;;  %v12414_v21 = vadd.f32 %v12413_v3, %v12412_v44  ;;  %v17960_v33 = vld [vmem:[#allocation44_spill] sm:$0xff]  ;;  %v16539_v44 = vld [vmem:[%s17943_s0 + $0x60] sm:$0xff]   ;;  %v16569_v3 = vld [vmem:[%s17943_s0 + $0x10] sm:$0xff]  }
 0x436   :  { %v12415_v2 = vpop.f32.mrf.mxu0  ;;  %v14228_v60 = vld [vmem:[#allocation2 + $0x468] ss:$16 sps:$4 sm:$0xff]   ;;  %v14236_v34 = vld [vmem:[#allocation2 + $0x48c] ss:$16 sps:$4 sm:$0xff]  }
 0x437   :  { %13417 = vmatprep.mubr.msk.bf16.mxu1 %vm1311_vm1, %v2489_v19  ;;  %v2463_v28 = vadd.f32 %v12414_v21, %v12350_v53  ;;  %v16575_v19 = vld [vmem:[%s17943_s0 + $0x48] sm:$0xff]   ;;  %v16593_v53 = vld [vmem:[%s17943_s0] sm:$0xff]  }
 0x438   :  { %v12416_v11 = vpop.f32.mrf.mxu0  ;;  %12516 = vmatpush3.bf16.msra.mxu1 %v16340_v57  ;;  %v14234_v21 = vld [vmem:[#allocation2 + $0x488] ss:$16 sps:$4 sm:$0xff]  }
 0x439   :  { %v12417_v58 = vadd.f32 %v12416_v11, %v12415_v2  ;;  %12517 = vmatprep.subr.bf16.mxu1 %v16348_v27  ;;  %v12363_v27 = vpop.f32.mrf.mxu1  ;;  %v16581_v2 = vld [vmem:[%s17943_s0 + $0x8] sm:$0xff]  }
 0x43a   :  { %v12418_v32 = vpop.f32.mrf.mxu0  ;;  %v14242_v11 = vld [vmem:[#allocation2 + $0x4ac] ss:$16 sps:$4 sm:$0xff]  }
 0x43b   :  { %v2466_v14 = vadd.f32 %v12417_v58, %v12353_v43  ;;  %v12364_v55 = vpop.f32.mrf.mxu1  ;;  %v14240_v43 = vld [vmem:[#allocation2 + $0x4a8] ss:$16 sps:$4 sm:$0xff]   ;;  %v14248_v58 = vld [vmem:[#allocation2 + $0x4cc] ss:$16 sps:$4 sm:$0xff]  }
 0x43c   :  { %v12419_v51 = vpop.f32.mrf.mxu0  ;;  %12518 = vmatpush3.bf16.msra.mxu1 %v17960_v33  ;;  %v12365_v23 = vadd.f32 %v12364_v55, %v12363_v27  ;;  %v14252_v33 = vld [vmem:[#allocation2 + $0x4e8] ss:$16 sps:$4 sm:$0xff]  }
 0x43d   :  { %v2490_v10 = vpack.c.bf16 %v2466_v14, %v2463_v28  ;;  %12576 = vmatprep.subr.bf16.mxu1 %v17961_v22  ;;  %v12420_v18 = vadd.f32 %v12419_v51, %v12418_v32  ;;  %v14246_v32 = vld [vmem:[#allocation2 + $0x4c8] ss:$16 sps:$4 sm:$0xff]   ;;  %v3031_v28 = vld [vmem:[#allocation4 + $0x10] sm:$0xf] }
 0x43e   :  { %v12421_v15 = vpop.f32.mrf.mxu0  ;;  %13951 = vmatprep.subr.msk.bf16.mxu0 %vm1336_vm0, %v3031_v28  ;;  %v3057_v14 = vsel %vm1336_vm0, %v3031_v28, 0  ;;  %v16601_v51 = vld [vmem:[%s17943_s0 + $0xf8] sm:$0xff]   ;;  %v14291_v28 = vld [vmem:[#allocation2 + $0x5c0] ss:$16 sps:$4 sm:$0xff]  }
 0x43f   :  { %13418 = vmatmul.mubr.msk.bf16.gmra.mxu1 %vm1311_vm1, %v2490_v10  ;;  %v2471_v63 = vadd.f32 %v12420_v18, %v12356_v49  ;;  %13426 = vmatpush3.bf16.msra.mxu0 %v3057_v14 }
 0x440   :  { %v12422_v57 = vpop.f32.mrf.mxu0  ;;  %12640 = vmatprep.subr.bf16.mxu0 %v16601_v51 }
 0x441   :  { %v12423_v54 = vadd.f32 %v12422_v57, %v12421_v15  ;;  %v14255_v15 = vld [vmem:[#allocation2 + $0x500] ss:$16 sps:$4 sm:$0xff]  }
 0x442   :  { %v12424_v7 = vpop.f32.mrf.mxu0 }
 0x443   :  { %v2474_v6 = vadd.f32 %v12423_v54, %v12359_v40 }
 0x444   :  { %v12425_v46 = vpop.f32.mrf.mxu0 }
 0x445   :  { %v2491_v20 = vpack.c.bf16 %v2474_v6, %v2471_v63  ;;  %v12426_v25 = vadd.f32 %v12425_v46, %v12424_v7  ;;  %v14263_v63 = vld [vmem:[#allocation2 + $0x524] ss:$16 sps:$4 sm:$0xff]   ;;  %v14261_v46 = vld [vmem:[#allocation2 + $0x520] ss:$16 sps:$4 sm:$0xff]  }
 0x446   :  { %v12427_v37 = vpop.f32.mrf.mxu0 }
 0x447   :  { %13421 = vmatprep.mubr.msk.bf16.mxu1 %vm1311_vm1, %v2491_v20  ;;  %v2479_v31 = vadd.f32 %v12426_v25, %v12362_v30 }
 0x448   :  { %v12428_v16 = vpop.f32.mrf.mxu0 }
 0x449   :  { %v12429_v12 = vadd.f32 %v12428_v16, %v12427_v37  ;;  %v14267_v37 = vld [vmem:[#allocation2 + $0x540] ss:$16 sps:$4 sm:$0xff]  }
 0x44a   :  { %v16604_v10 = vpop.f32.mrf.mxu0 }
 0x44b   :  { %v2482_v9 = vadd.f32 %v12429_v12, %v12365_v23 }
 0x44c   :  { %v16606_v22 = vpop.f32.mrf.mxu0 }
 0x44d   :  { %v2492_v0 = vpack.c.bf16 %v2482_v9, %v2479_v31  ;;  %v14275_v9 = vld [vmem:[#allocation2 + $0x564] ss:$16 sps:$4 sm:$0xff]  }
 0x44e   :  { %v16608_v57 = vpop.f32.mrf.mxu0 }
 0x44f   :  { %13422 = vmatmul.mubr.msk.bf16.gmra.mxu1 %vm1311_vm1, %v2492_v0  ;;  %v14273_v0 = vld [vmem:[#allocation2 + $0x560] ss:$16 sps:$4 sm:$0xff]  }
 0x450   :  { %2957 = vmatprep.mubr.bf16.mxu1 %v14212_v8  ;;  %v16616_v7 = vpop.f32.mrf.mxu0 }
 0x452   :  { %v16621_v20 = vpop.f32.mrf.mxu0 }
 0x454   :  { %v16623_v55 = vpop.f32.mrf.mxu0 }
 0x456   :  { %v16627_v16 = vpop.f32.mrf.mxu0 }
 0x457   :  { %2958 = vmatmul.mubr.bf16.vlgmr.msra.gmra.mxu1 %v14210_v26 }
 0x458   :  { %2965 = vmatprep.mubr.bf16.mxu1 %v14218_v39  ;;  %12577 = vmatpush3.bf16.msra.mxu1 %v16369_v41  ;;  %v14222_v41 = vld [vmem:[#allocation2 + $0x448] ss:$16 sps:$4 sm:$0xff]   ;;  %v16635_v31 = vpop.f32.mrf.mxu0 }
 0x459   :  { %12578 = vmatprep.subr.bf16.mxu1 %v16375_v47  ;;  %v16545_v47 = vld [vmem:[%s17943_s0 + $0x20] sm:$0xff]  }
 0x45c   :  { %12579 = vmatpush3.bf16.msra.mxu1 %v16381_v42  ;;  %v16551_v42 = vld [vmem:[%s17943_s0 + $0x58] sm:$0xff]  }
 0x45d   :  { %12580 = vmatprep.subr.bf16.mxu1 %v16387_v24  ;;  %v16557_v24 = vld [vmem:[%s17943_s0 + $0x18] sm:$0xff]  }
 0x45f   :  { %2966 = vmatmul.mubr.bf16.gmra.mxu1 %v14216_v48  ;;  %v14279_v48 = vld [vmem:[#allocation2 + $0x580] ss:$16 sps:$4 sm:$0xff]  }
 0x460   :  { %2973 = vmatprep.mubr.bf16.mxu1 %v14224_v62  ;;  %12581 = vmatpush3.bf16.msra.mxu1 %v16393_v38  ;;  %v16563_v38 = vld [vmem:[%s17943_s0 + $0x50] sm:$0xff]  }
 0x461   :  { %12582 = vmatprep.subr.bf16.mxu1 %v16539_v44 }
 0x464   :  { %12583 = vmatpush3.bf16.msra.mxu1 %v16545_v47 }
 0x465   :  { %12584 = vmatprep.subr.bf16.mxu1 %v16551_v42 }
 0x467   :  { %2974 = vmatmul.mubr.bf16.gmra.mxu1 %v14222_v41 }
 0x468   :  { %2981 = vmatprep.mubr.bf16.mxu1 %v14230_v56  ;;  %12585 = vmatpush3.bf16.msra.mxu1 %v16557_v24 }
 0x469   :  { %12586 = vmatprep.subr.bf16.mxu1 %v16563_v38 }
 0x46c   :  { %12587 = vmatpush3.bf16.msra.mxu1 %v16569_v3 }
 0x46d   :  { %12588 = vmatprep.subr.bf16.mxu1 %v16575_v19 }
 0x46f   :  { %2982 = vmatmul.mubr.bf16.gmra.mxu1 %v14228_v60 }
 0x470   :  { %2989 = vmatprep.mubr.bf16.mxu1 %v14236_v34  ;;  %12589 = vmatpush3.bf16.msra.mxu1 %v16581_v2 }
 0x471   :  { %12590 = vmatprep.subr.bf16.mxu1 %v16587_v29 }
 0x474   :  { %12591 = vmatpush3.bf16.msra.mxu1 %v16593_v53 }
 0x477   :  { %2990 = vmatmul.mubr.bf16.gmra.mxu1 %v14234_v21 }
 0x478   :  { %2997 = vmatprep.mubr.bf16.mxu1 %v14242_v11  ;;  %v14287_v11 = vld [vmem:[#allocation2 + $0x5a4] ss:$16 sps:$4 sm:$0xff]  }
 0x47f   :  { %2998 = vmatmul.mubr.bf16.gmra.mxu1 %v14240_v43 }
 0x480   :  { %3005 = vmatprep.mubr.bf16.mxu1 %v14248_v58  ;;  %v14285_v58 = vld [vmem:[#allocation2 + $0x5a0] ss:$16 sps:$4 sm:$0xff]  }
 0x487   :  { %3006 = vmatmul.mubr.bf16.gmra.mxu1 %v14246_v32 }
 0x488   :  { %3013 = vmatprep.mubr.bf16.mxu1 %v14254_v61 }
 0x48f   :  { %3014 = vmatmul.mubr.bf16.gmra.mxu1 %v14252_v33 }
 0x490   :  { %3397 = vmatprep.mubr.bf16.mxu1 %v14257_v52 }
 0x495   :  { %v16640_v26 = vpop.f32.mrf.mxu0 }
 0x497   :  { %3398 = vmatmul.mubr.bf16.vlgmr.msra.gmra.mxu1 %v14255_v15  ;;  %v16642_v39 = vpop.f32.mrf.mxu0  ;;  %v17965_v15 = vld [vmem:[#allocation49_spill] sm:$0xff] }
 0x498   :  { %3405 = vmatprep.mubr.bf16.mxu1 %v14263_v63  ;;  %v14299_v63 = vld [vmem:[#allocation2 + $0x5e4] ss:$16 sps:$4 sm:$0xff]  }
 0x499   :  { %v16646_v41 = vpop.f32.mrf.mxu0 }
 0x49b   :  { %v16654_v21 = vpop.f32.mrf.mxu0 }
 0x49d   :  { %v16659_v32 = vpop.f32.mrf.mxu0 }
 0x49f   :  { %3406 = vmatmul.mubr.bf16.gmra.mxu1 %v14261_v46  ;;  %v16661_v61 = vpop.f32.mrf.mxu0  ;;  %v17966_v46 = vld [vmem:[#allocation50_spill] sm:$0xff] }
 0x4a1   :  { %v16665_v33 = vpop.f32.mrf.mxu0 }
 0x4df   :  { %v13411_v18 = vpop.f32.mrf.mxu1 }
 0x4e0   :  { %v16611_v49 = vadd.f32 %v13411_v18, %v16416_v45  ;;  %v14269_v45 = vld [vmem:[#allocation2 + $0x544] ss:$16 sps:$4 sm:$0xff]  }
 0x4e1   :  { %v2556_v40 = vpop.f32.mrf.mxu1  ;;  %3413 = vmatprep.mubr.bf16.mxu1 %v14269_v45 }
 0x4e2   :  { %v16614_v54 = vadd.f32 %v2556_v40, %v16419_v59  ;;  %3414 = vmatmul.mubr.bf16.gmra.mxu1 %v14267_v37  ;;  %v14297_v37 = vld [vmem:[#allocation2 + $0x5e0] ss:$16 sps:$4 sm:$0xff]  }
 0x4e3   :  { %v13412_v27 = vpop.f32.mrf.mxu1  ;;  %3421 = vmatprep.mubr.bf16.mxu1 %v14275_v9 }
 0x4e4   :  { %v16619_v6 = vadd.f32 %v13412_v27, %v16424_v35  ;;  %v16673_v27 = vpop.f32.mrf.mxu0 }
 0x4e5   :  { %v16625_v25 = vpop.f32.mrf.mxu1 }
 0x4e6   :  { %17962 = vst [vmem:[#allocation44_spill] sm:$0xff] %v16625_v25 }
 0x4ea   :  { %3422 = vmatmul.mubr.bf16.gmra.mxu1 %v14273_v0 }
 0x4ef   :  { %v13415_v59 = vpop.f32.mrf.mxu1 }
 0x4f0   :  { %v16630_v30 = vadd.f32 %v13415_v59, %v16435_v1  ;;  %v14281_v1 = vld [vmem:[#allocation2 + $0x584] ss:$16 sps:$4 sm:$0xff]  }
 0x4f1   :  { %v2572_v35 = vpop.f32.mrf.mxu1  ;;  %3429 = vmatprep.mubr.bf16.mxu1 %v14281_v1 }
 0x4f2   :  { %v16633_v23 = vadd.f32 %v2572_v35, %v16438_v50  ;;  %3430 = vmatmul.mubr.bf16.gmra.mxu1 %v14279_v48 }
 0x4f3   :  { %v13416_v12 = vpop.f32.mrf.mxu1  ;;  %3437 = vmatprep.mubr.bf16.mxu1 %v14287_v11 }
 0x4f4   :  { %v16638_v8 = vadd.f32 %v13416_v12, %v16443_v36  ;;  %v16680_v12 = vpop.f32.mrf.mxu0 }
 0x4f5   :  { %v16644_v62 = vpop.f32.mrf.mxu1 }
 0x4f6   :  { %17963 = vst [vmem:[#allocation45_spill] sm:$0xff] %v16644_v62  ;;  %v16682_v0 = vpop.f32.mrf.mxu0 }
 0x4fa   :  { %3438 = vmatmul.mubr.bf16.gmra.mxu1 %v14285_v58  ;;  %v16688_v58 = vpop.f32.mrf.mxu0 }
 0x4ff   :  { %v13419_v50 = vpop.f32.mrf.mxu1 }
 0x500   :  { %v16649_v56 = vadd.f32 %v13419_v50, %v16454_v4  ;;  %v14293_v4 = vld [vmem:[#allocation2 + $0x5c4] ss:$16 sps:$4 sm:$0xff]   ;;  %v12457_v50 = vadd.f32 %v16606_v22, %v16604_v10  ;;  %v12463_v10 = vadd.f32 %v16623_v55, %v16621_v20  ;;  %v12466_v22 = vadd.f32 %v16635_v31, %v16627_v16  ;;  %v16705_v20 = vld [vmem:[%s17943_s0 + $0xb8] sm:$0xff]  }
 0x501   :  { %v2588_v36 = vpop.f32.mrf.mxu1  ;;  %3445 = vmatprep.mubr.bf16.mxu1 %v14293_v4  ;;  %v12469_v55 = vadd.f32 %v16642_v39, %v16640_v26  ;;  %v12472_v16 = vadd.f32 %v16654_v21, %v16646_v41  ;;  %v16721_v26 = vld [vmem:[%s17943_s0 + $0xb0] sm:$0xff]   ;;  %v16727_v41 = vld [vmem:[%s17943_s0 + $0xe8] sm:$0xff]  }
 0x502   :  { %v16652_v60 = vadd.f32 %v2588_v36, %v16457_v13  ;;  %3446 = vmatmul.mubr.bf16.gmra.mxu1 %v14291_v28  ;;  %v12460_v36 = vadd.f32 %v16616_v7, %v16608_v57 }
 0x503   :  { %v13420_v34 = vpop.f32.mrf.mxu1  ;;  %3453 = vmatprep.mubr.bf16.mxu1 %v14299_v63 }
 0x504   :  { %v16657_v43 = vadd.f32 %v13420_v34, %v16462_v17 }
 0x505   :  { %v16663_v14 = vpop.f32.mrf.mxu1 }
 0x506   :  { %17964 = vst [vmem:[#allocation52_spill] sm:$0xff] %v16663_v14 }
 0x50a   :  { %3454 = vmatmul.mubr.bf16.gmra.mxu1 %v14297_v37 }
 0x50f   :  { %v13423_v13 = vpop.f32.mrf.mxu1 }
 0x510   :  { %v16668_v52 = vadd.f32 %v13423_v13, %v16473_v5 }
 0x511   :  { %v2604_v17 = vpop.f32.mrf.mxu1 }
 0x512   :  { %v16671_v18 = vadd.f32 %v2604_v17, %v17965_v15 }
 0x513   :  { %v13424_v40 = vpop.f32.mrf.mxu1 }
 0x514   :  { %v16676_v45 = vadd.f32 %v13424_v40, %v17966_v46  ;;  %v16690_v40 = vpop.f32.mrf.mxu0 }
 0x515   :  { %v16678_v59 = vpop.f32.mrf.mxu1 }
 0x516   :  { %17967 = vst [vmem:[#allocation49_spill] sm:$0xff] %v16678_v59  ;;  %v16697_v37 = vpop.f32.mrf.mxu0 }
 0x517   :  { %v12519_v35 = vpop.f32.mrf.mxu1 }
 0x519   :  { %v12520_v5 = vpop.f32.mrf.mxu1 }
 0x51a   :  { %v12521_v1 = vadd.f32 %v12520_v5, %v12519_v35 }
 0x51b   :  { %v12522_v9 = vpop.f32.mrf.mxu1 }
 0x51c   :  { %v2960_v4 = vadd.f32 %v12521_v1, %v12457_v50  ;;  %v16699_v50 = vpop.f32.mrf.mxu0 }
 0x51d   :  { %v12523_v48 = vpop.f32.mrf.mxu1 }
 0x51e   :  { %v12524_v34 = vadd.f32 %v12523_v48, %v12522_v9 }
 0x51f   :  { %v12525_v11 = vpop.f32.mrf.mxu1 }
 0x520   :  { %v2963_v28 = vadd.f32 %v12524_v34, %v12460_v36 }
 0x521   :  { %v12526_v13 = vpop.f32.mrf.mxu1 }
 0x522   :  { %v3022_v17 = vpack.c.bf16 %v2963_v28, %v2960_v4  ;;  %v12527_v63 = vadd.f32 %v12526_v13, %v12525_v11  ;;  %v16715_v11 = vld [vmem:[%s17943_s0 + $0xf0] sm:$0xff]   ;;  %v12488_v28 = vpop.f32.mrf.mxu0 }
 0x523   :  { %v12528_v15 = vpop.f32.mrf.mxu1 }
 0x524   :  { %13427 = vmatprep.mubr.msk.bf16.mxu0 %vm1311_vm1, %v3022_v17  ;;  %v2968_v35 = vadd.f32 %v12527_v63, %v12463_v10  ;;  %v12489_v63 = vpop.f32.mrf.mxu0 }
 0x525   :  { %v12529_v46 = vpop.f32.mrf.mxu1 }
 0x526   :  { %v12530_v57 = vadd.f32 %v12529_v46, %v12528_v15 }
 0x527   :  { %v12531_v7 = vpop.f32.mrf.mxu1 }
 0x528   :  { %v2971_v5 = vadd.f32 %v12530_v57, %v12466_v22  ;;  %v16734_v22 = vld [vmem:[%s17943_s0 + $0xa8] sm:$0xff]   ;;  %v12475_v57 = vadd.f32 %v16661_v61, %v16659_v32  ;;  %v16750_v32 = vld [vmem:[%s17943_s0 + $0xa0] sm:$0xff]  }
 0x529   :  { %v12532_v9 = vpop.f32.mrf.mxu1 }
 0x52a   :  { %v3023_v1 = vpack.c.bf16 %v2971_v5, %v2968_v35  ;;  %v12533_v36 = vadd.f32 %v12532_v9, %v12531_v7  ;;  %v12478_v7 = vadd.f32 %v16673_v27, %v16665_v33  ;;  %v16744_v5 = vld [vmem:[%s17943_s0 + $0xe0] sm:$0xff]   ;;  %v16756_v33 = vld [vmem:[%s17943_s0 + $0xd8] sm:$0xff]  }
 0x52b   :  { %v12534_v48 = vpop.f32.mrf.mxu1 }
 0x52c   :  { %13428 = vmatmul.mubr.msk.bf16.vlgmr.msra.gmra.mxu0 %vm1311_vm1, %v3023_v1  ;;  %v2976_v13 = vadd.f32 %v12533_v36, %v12469_v55  ;;  %v12491_v1 = vpop.f32.mrf.mxu0 }
 0x52d   :  { %v12535_v34 = vpop.f32.mrf.mxu1  ;;  %12641 = vmatpush3.bf16.msra.mxu0 %v16705_v20 }
 0x52e   :  { %v12536_v31 = vadd.f32 %v12535_v34, %v12534_v48  ;;  %12642 = vmatprep.subr.bf16.mxu0 %v16715_v11  ;;  %v12492_v55 = vpop.f32.mrf.mxu0 }
 0x52f   :  { %v12537_v4 = vpop.f32.mrf.mxu1 }
 0x530   :  { %v2979_v17 = vadd.f32 %v12536_v31, %v12472_v16 }
 0x531   :  { %v12538_v15 = vpop.f32.mrf.mxu1  ;;  %12643 = vmatpush3.bf16.msra.mxu0 %v16721_v26 }
 0x532   :  { %v3024_v39 = vpack.c.bf16 %v2979_v17, %v2976_v13  ;;  %12644 = vmatprep.subr.bf16.mxu0 %v16727_v41  ;;  %v12539_v46 = vadd.f32 %v12538_v15, %v12537_v4  ;;  %v16763_v4 = vld [vmem:[%s17943_s0 + $0x98] sm:$0xff]   ;;  %v12481_v13 = vadd.f32 %v16682_v0, %v16680_v12  ;;  %v12484_v17 = vadd.f32 %v16690_v40, %v16688_v58  ;;  %v16779_v12 = vld [vmem:[%s17943_s0 + $0x90] sm:$0xff]   ;;  %v16785_v58 = vld [vmem:[%s17943_s0 + $0xc8] sm:$0xff]  }
 0x533   :  { %v12540_v21 = vpop.f32.mrf.mxu1 }
 0x534   :  { %13431 = vmatprep.mubr.msk.bf16.mxu0 %vm1311_vm1, %v3024_v39  ;;  %v2984_v48 = vadd.f32 %v12539_v46, %v12475_v57  ;;  %v16773_v39 = vld [vmem:[%s17943_s0 + $0xd0] sm:$0xff]   ;;  %v12494_v46 = vpop.f32.mrf.mxu0 }
 0x535   :  { %v12541_v10 = vpop.f32.mrf.mxu1  ;;  %12645 = vmatpush3.bf16.msra.mxu0 %v16734_v22 }
 0x536   :  { %v12542_v35 = vadd.f32 %v12541_v10, %v12540_v21  ;;  %12646 = vmatprep.subr.bf16.mxu0 %v16744_v5 }
 0x537   :  { %v12543_v9 = vpop.f32.mrf.mxu1 }
 0x538   :  { %v2987_v36 = vadd.f32 %v12542_v35, %v12478_v7  ;;  %v12495_v35 = vpop.f32.mrf.mxu0 }
 0x539   :  { %v12544_v34 = vpop.f32.mrf.mxu1  ;;  %12647 = vmatpush3.bf16.msra.mxu0 %v16750_v32 }
 0x53a   :  { %v3025_v61 = vpack.c.bf16 %v2987_v36, %v2984_v48  ;;  %12648 = vmatprep.subr.bf16.mxu0 %v16756_v33  ;;  %v12545_v16 = vadd.f32 %v12544_v34, %v12543_v9  ;;  %v16792_v36 = vld [vmem:[%s17943_s0 + $0x88] sm:$0xff]   ;;  %v12487_v34 = vadd.f32 %v16699_v50, %v16697_v37  ;;  %v16812_v50 = vld [vmem:[%s17943_s0 + $0x78] sm:$0xff]  }
 0x53b   :  { %v12546_v27 = vpop.f32.mrf.mxu1  ;;  %17969 = vst [vmem:[#allocation53_spill] sm:$0xff] %v16812_v50 }
 0x53c   :  { %13432 = vmatmul.mubr.msk.bf16.gmra.mxu0 %vm1311_vm1, %v3025_v61  ;;  %v2992_v10 = vadd.f32 %v12545_v16, %v12481_v13  ;;  %v12490_v61 = vadd.f32 %v12489_v63, %v12488_v28  ;;  %v16800_v16 = vld [vmem:[%s17943_s0 + $0xc0] sm:$0xff]   ;;  %v12497_v13 = vpop.f32.mrf.mxu0 }
 0x53d   :  { %v12547_v31 = vpop.f32.mrf.mxu1  ;;  %12649 = vmatpush3.bf16.msra.mxu0 %v16763_v4 }
 0x53e   :  { %v12548_v15 = vadd.f32 %v12547_v31, %v12546_v27  ;;  %12650 = vmatprep.subr.bf16.mxu0 %v16773_v39  ;;  %v12498_v28 = vpop.f32.mrf.mxu0 }
 0x53f   :  { %v12549_v21 = vpop.f32.mrf.mxu1 }
 0x540   :  { %v2995_v57 = vadd.f32 %v12548_v15, %v12484_v17 }
 0x541   :  { %v12550_v7 = vpop.f32.mrf.mxu1  ;;  %12651 = vmatpush3.bf16.msra.mxu0 %v16779_v12 }
 0x542   :  { %v3026_v0 = vpack.c.bf16 %v2995_v57, %v2992_v10  ;;  %12652 = vmatprep.subr.bf16.mxu0 %v16785_v58  ;;  %v12551_v9 = vadd.f32 %v12550_v7, %v12549_v21  ;;  %v16806_v10 = vld [vmem:[%s17943_s0 + $0x80] sm:$0xff]  }
 0x543   :  { %v12552_v40 = vpop.f32.mrf.mxu1  ;;  %17968 = vst [vmem:[#allocation50_spill] sm:$0xff] %v16806_v10 }
 0x544   :  { %13435 = vmatprep.mubr.msk.bf16.mxu0 %vm1311_vm1, %v3026_v0  ;;  %v3000_v17 = vadd.f32 %v12551_v9, %v12487_v34  ;;  %v12493_v0 = vadd.f32 %v12492_v55, %v12491_v1  ;;  %v14260_v1 = vld [vmem:[#allocation2 + $0x50c] ss:$16 sps:$4 sm:$0xff]  }
 0x545   :  { %v12553_v48 = vpop.f32.mrf.mxu1  ;;  %12653 = vmatpush3.bf16.msra.mxu0 %v16792_v36 }
 0x546   :  { %v12554_v27 = vadd.f32 %v12553_v48, %v12552_v40  ;;  %12654 = vmatprep.subr.bf16.mxu0 %v16800_v16  ;;  %v12496_v40 = vadd.f32 %v12495_v35, %v12494_v46  ;;  %v12500_v48 = vpop.f32.mrf.mxu0  ;;  %v14258_v46 = vld [vmem:[#allocation2 + $0x508] ss:$16 sps:$4 sm:$0xff]   ;;  %v14266_v35 = vld [vmem:[#allocation2 + $0x52c] ss:$16 sps:$4 sm:$0xff]  }
 0x547   :  { %v12555_v31 = vpop.f32.mrf.mxu1 }
 0x548   :  { %v3003_v15 = vadd.f32 %v12554_v27, %v12490_v61  ;;  %v12501_v25 = vpop.f32.mrf.mxu0 }
 0x549   :  { %v12556_v21 = vpop.f32.mrf.mxu1  ;;  %12655 = vmatpush3.bf16.msra.mxu0 %v16806_v10 }
 0x54a   :  { %v3027_v37 = vpack.c.bf16 %v3003_v15, %v3000_v17  ;;  %12713 = vmatprep.subr.bf16.mxu0 %v16812_v50  ;;  %v12557_v57 = vadd.f32 %v12556_v21, %v12555_v31  ;;  %v12499_v50 = vadd.f32 %v12498_v28, %v12497_v13  ;;  %v12502_v31 = vadd.f32 %v12501_v25, %v12500_v48  ;;  %v16827_v25 = vld [vmem:[%s17943_s0 + $0x70] sm:$0xff]   ;;  %v16839_v13 = vld [vmem:[%s17943_s0 + $0x68] sm:$0xff]  }
 0x54b   :  { %v12558_v63 = vpop.f32.mrf.mxu1  ;;  %v14278_v28 = vld [vmem:[#allocation2 + $0x56c] ss:$16 sps:$4 sm:$0xff]  }
 0x54c   :  { %13436 = vmatmul.mubr.msk.bf16.gmra.mxu0 %vm1311_vm1, %v3027_v37  ;;  %v3008_v61 = vadd.f32 %v12557_v57, %v12493_v0  ;;  %v14276_v57 = vld [vmem:[#allocation2 + $0x568] ss:$16 sps:$4 sm:$0xff]   ;;  %v3568_v0 = vld [vmem:[#allocation4 + $0x14] sm:$0xf] }
 0x54d   :  { %v12559_v7 = vpop.f32.mrf.mxu1  ;;  %13952 = vmatprep.subr.msk.bf16.mxu1 %vm1336_vm0, %v3568_v0 }
 0x54e   :  { %v12560_v9 = vadd.f32 %v12559_v7, %v12558_v63  ;;  %v16821_v63 = vld [vmem:[%s17943_s0 + $0x38] sm:$0xff]  }
 0x54f   :  { %v12561_v34 = vpop.f32.mrf.mxu1  ;;  %v14284_v7 = vld [vmem:[#allocation2 + $0x58c] ss:$16 sps:$4 sm:$0xff]  }
 0x550   :  { %v3011_v27 = vadd.f32 %v12560_v9, %v12496_v40  ;;  %v14305_v40 = vld [vmem:[#allocation2 + $0x604] ss:$16 sps:$4 sm:$0xff]   ;;  %v14303_v9 = vld [vmem:[#allocation2 + $0x600] ss:$16 sps:$4 sm:$0xff]  }
 0x551   :  { %v12562_v17 = vpop.f32.mrf.mxu1 }
 0x552   :  { %v3028_v15 = vpack.c.bf16 %v3011_v27, %v3008_v61  ;;  %v12563_v14 = vadd.f32 %v12562_v17, %v12561_v34 }
 0x553   :  { %v12564_v62 = vpop.f32.mrf.mxu1 }
 0x554   :  { %13439 = vmatprep.mubr.msk.bf16.mxu0 %vm1311_vm1, %v3028_v15  ;;  %v3016_v37 = vadd.f32 %v12563_v14, %v12499_v50  ;;  %v14272_v14 = vld [vmem:[#allocation2 + $0x54c] ss:$16 sps:$4 sm:$0xff]   ;;  %v14270_v50 = vld [vmem:[#allocation2 + $0x548] ss:$16 sps:$4 sm:$0xff]  }
 0x555   :  { %v12565_v59 = vpop.f32.mrf.mxu1 }
 0x556   :  { %v12566_v21 = vadd.f32 %v12565_v59, %v12564_v62  ;;  %v14264_v62 = vld [vmem:[#allocation2 + $0x528] ss:$16 sps:$4 sm:$0xff]   ;;  %v16833_v59 = vld [vmem:[%s17943_s0 + $0x30] sm:$0xff]  }
 0x558   :  { %v3019_v10 = vadd.f32 %v12566_v21, %v12502_v31  ;;  %v14311_v31 = vld [vmem:[#allocation2 + $0x624] ss:$16 sps:$4 sm:$0xff]  }
 0x55a   :  { %v3029_v55 = vpack.c.bf16 %v3019_v10, %v3016_v37  ;;  %v16845_v10 = vld [vmem:[%s17943_s0 + $0x28] sm:$0xff]   ;;  %v14309_v37 = vld [vmem:[#allocation2 + $0x620] ss:$16 sps:$4 sm:$0xff]  }
 0x55c   :  { %13440 = vmatmul.mubr.msk.bf16.gmra.mxu0 %vm1311_vm1, %v3029_v55 }
 0x55d   :  { %3494 = vmatprep.mubr.bf16.mxu0 %v14260_v1 }
 0x564   :  { %3495 = vmatmul.mubr.bf16.vlgmr.msra.gmra.mxu0 %v14258_v46  ;;  %v14315_v46 = vld [vmem:[#allocation2 + $0x640] ss:$16 sps:$4 sm:$0xff]  }
 0x565   :  { %3502 = vmatprep.mubr.bf16.mxu0 %v14266_v35  ;;  %12714 = vmatpush3.bf16.msra.mxu0 %v16821_v63 }
 0x566   :  { %12715 = vmatprep.subr.bf16.mxu0 %v16827_v25 }
 0x569   :  { %12716 = vmatpush3.bf16.msra.mxu0 %v16833_v59 }
 0x56a   :  { %12717 = vmatprep.subr.bf16.mxu0 %v16839_v13 }
 0x56c   :  { %3503 = vmatmul.mubr.bf16.gmra.mxu0 %v14264_v62 }
 0x56d   :  { %3510 = vmatprep.mubr.bf16.mxu0 %v14272_v14  ;;  %12718 = vmatpush3.bf16.msra.mxu0 %v16845_v10 }
 0x56e   :  { %12719 = vmatprep.subr.bf16.mxu0 %v16539_v44  ;;  %v14282_v44 = vld [vmem:[#allocation2 + $0x588] ss:$16 sps:$4 sm:$0xff]  }
 0x571   :  { %12720 = vmatpush3.bf16.msra.mxu0 %v16545_v47  ;;  %v14290_v47 = vld [vmem:[#allocation2 + $0x5ac] ss:$16 sps:$4 sm:$0xff]  }
 0x572   :  { %12721 = vmatprep.subr.bf16.mxu0 %v16551_v42  ;;  %v14288_v42 = vld [vmem:[#allocation2 + $0x5a8] ss:$16 sps:$4 sm:$0xff]  }
 0x574   :  { %3511 = vmatmul.mubr.bf16.gmra.mxu0 %v14270_v50 }
 0x575   :  { %3518 = vmatprep.mubr.bf16.mxu0 %v14278_v28  ;;  %12722 = vmatpush3.bf16.msra.mxu0 %v16557_v24  ;;  %v14296_v24 = vld [vmem:[#allocation2 + $0x5cc] ss:$16 sps:$4 sm:$0xff]  }
 0x576   :  { %12723 = vmatprep.subr.bf16.mxu0 %v16563_v38  ;;  %v14294_v38 = vld [vmem:[#allocation2 + $0x5c8] ss:$16 sps:$4 sm:$0xff]  }
 0x579   :  { %12724 = vmatpush3.bf16.msra.mxu0 %v16569_v3  ;;  %v14302_v3 = vld [vmem:[#allocation2 + $0x5ec] ss:$16 sps:$4 sm:$0xff]  }
 0x57a   :  { %12725 = vmatprep.subr.bf16.mxu0 %v16575_v19  ;;  %v3594_v19 = vsel %vm1336_vm0, %v3568_v0, 0 }
 0x57b   :  { %13444 = vmatpush3.bf16.msra.mxu1 %v3594_v19 }
 0x57c   :  { %3519 = vmatmul.mubr.bf16.gmra.mxu0 %v14276_v57  ;;  %12777 = vmatprep.subr.bf16.mxu1 %v16601_v51 }
 0x57d   :  { %3526 = vmatprep.mubr.bf16.mxu0 %v14284_v7  ;;  %12726 = vmatpush3.bf16.msra.mxu0 %v16581_v2  ;;  %v14300_v2 = vld [vmem:[#allocation2 + $0x5e8] ss:$16 sps:$4 sm:$0xff]   ;;  %v14323_v7 = vld [vmem:[#allocation2 + $0x664] ss:$16 sps:$4 sm:$0xff]  }
 0x57e   :  { %12727 = vmatprep.subr.bf16.mxu0 %v16587_v29  ;;  %v16861_v29 = vpop.f32.mrf.mxu1 }
 0x581   :  { %12728 = vmatpush3.bf16.msra.mxu0 %v16593_v53  ;;  %v16863_v53 = vpop.f32.mrf.mxu1 }
 0x583   :  { %v16865_v34 = vpop.f32.mrf.mxu1 }
 0x584   :  { %3527 = vmatmul.mubr.bf16.gmra.mxu0 %v14282_v44 }
 0x585   :  { %3534 = vmatprep.mubr.bf16.mxu0 %v14290_v47  ;;  %v16873_v15 = vpop.f32.mrf.mxu1  ;;  %v14321_v47 = vld [vmem:[#allocation2 + $0x660] ss:$16 sps:$4 sm:$0xff]  }
 0x587   :  { %v16878_v1 = vpop.f32.mrf.mxu1 }
 0x589   :  { %v16880_v55 = vpop.f32.mrf.mxu1 }
 0x58b   :  { %v16884_v62 = vpop.f32.mrf.mxu1 }
 0x58c   :  { %3535 = vmatmul.mubr.bf16.gmra.mxu0 %v14288_v42 }
 0x58d   :  { %3542 = vmatprep.mubr.bf16.mxu0 %v14296_v24  ;;  %v16892_v57 = vpop.f32.mrf.mxu1 }
 0x594   :  { %3543 = vmatmul.mubr.bf16.gmra.mxu0 %v14294_v38  ;;  %v14327_v38 = vld [vmem:[#allocation2 + $0x680] ss:$16 sps:$4 sm:$0xff]  }
 0x595   :  { %3550 = vmatprep.mubr.bf16.mxu0 %v14302_v3 }
 0x59c   :  { %3551 = vmatmul.mubr.bf16.gmra.mxu0 %v14300_v2 }
 0x59d   :  { %3934 = vmatprep.mubr.bf16.mxu0 %v14305_v40 }
 0x5a2   :  { %v16897_v42 = vpop.f32.mrf.mxu1 }
 0x5a4   :  { %3935 = vmatmul.mubr.bf16.vlgmr.msra.gmra.mxu0 %v14303_v9  ;;  %v16899_v24 = vpop.f32.mrf.mxu1 }
 0x5a5   :  { %3942 = vmatprep.mubr.bf16.mxu0 %v14311_v31 }
 0x5a6   :  { %v16903_v0 = vpop.f32.mrf.mxu1 }
 0x5a8   :  { %v16911_v9 = vpop.f32.mrf.mxu1 }
 0x5aa   :  { %v16916_v31 = vpop.f32.mrf.mxu1 }
 0x5ac   :  { %3943 = vmatmul.mubr.bf16.gmra.mxu0 %v14309_v37  ;;  %v16918_v37 = vpop.f32.mrf.mxu1 }
 0x5ec   :  { %v13429_v48 = vpop.f32.mrf.mxu0 }
 0x5ed   :  { %v16868_v61 = vadd.f32 %v13429_v48, %v16611_v49  ;;  %v14317_v49 = vld [vmem:[#allocation2 + $0x644] ss:$16 sps:$4 sm:$0xff]  }
 0x5ee   :  { %v3093_v27 = vpop.f32.mrf.mxu0  ;;  %3950 = vmatprep.mubr.bf16.mxu0 %v14317_v49  ;;  %v14335_v48 = vld [vmem:[#allocation2 + $0x6a4] ss:$16 sps:$4 sm:$0xff]   ;;  %v14339_v49 = vld [vmem:[#allocation2 + $0x6c0] ss:$16 sps:$4 sm:$0xff]  }
 0x5ef   :  { %v16871_v17 = vadd.f32 %v3093_v27, %v16614_v54  ;;  %3951 = vmatmul.mubr.bf16.gmra.mxu0 %v14315_v46 }
 0x5f0   :  { %v13430_v51 = vpop.f32.mrf.mxu0  ;;  %3958 = vmatprep.mubr.bf16.mxu0 %v14323_v7 }
 0x5f1   :  { %v16876_v21 = vadd.f32 %v13430_v51, %v16619_v6  ;;  %v14333_v51 = vld [vmem:[#allocation2 + $0x6a0] ss:$16 sps:$4 sm:$0xff]  }
 0x5f2   :  { %v16882_v35 = vpop.f32.mrf.mxu0 }
 0x5f3   :  { %17970 = vst [vmem:[#allocation54_spill] sm:$0xff] %v16882_v35 }
 0x5f7   :  { %3959 = vmatmul.mubr.bf16.gmra.mxu0 %v14321_v47 }
 0x5fc   :  { %v13433_v54 = vpop.f32.mrf.mxu0 }
 0x5fd   :  { %v16887_v14 = vadd.f32 %v13433_v54, %v16630_v30  ;;  %v14329_v30 = vld [vmem:[#allocation2 + $0x684] ss:$16 sps:$4 sm:$0xff]   ;;  %v16922_v54 = vpop.f32.mrf.mxu1 }
 0x5fe   :  { %v3109_v6 = vpop.f32.mrf.mxu0  ;;  %3966 = vmatprep.mubr.bf16.mxu0 %v14329_v30  ;;  %v14347_v30 = vld [vmem:[#allocation2 + $0x6e4] ss:$16 sps:$4 sm:$0xff]  }
 0x5ff   :  { %v16890_v50 = vadd.f32 %v3109_v6, %v16633_v23  ;;  %3967 = vmatmul.mubr.bf16.gmra.mxu0 %v14327_v38  ;;  %v12614_v47 = vpop.f32.mrf.mxu1 }
 0x600   :  { %v13434_v28 = vpop.f32.mrf.mxu0  ;;  %3974 = vmatprep.mubr.bf16.mxu0 %v14335_v48 }
 0x601   :  { %v16895_v44 = vadd.f32 %v13434_v28, %v16638_v8  ;;  %v16935_v48 = vpop.f32.mrf.mxu1 }
 0x602   :  { %v16901_v3 = vpop.f32.mrf.mxu0 }
 0x603   :  { %17971 = vst [vmem:[#allocation55_spill] sm:$0xff] %v16901_v3 }
 0x607   :  { %3975 = vmatmul.mubr.bf16.gmra.mxu0 %v14333_v51 }
 0x60c   :  { %v13437_v23 = vpop.f32.mrf.mxu0 }
 0x60d   :  { %v16906_v19 = vadd.f32 %v13437_v23, %v16649_v56  ;;  %v14341_v56 = vld [vmem:[#allocation2 + $0x6c4] ss:$16 sps:$4 sm:$0xff]   ;;  %v14345_v23 = vld [vmem:[#allocation2 + $0x6e0] ss:$16 sps:$4 sm:$0xff]  }
 0x60e   :  { %v3125_v8 = vpop.f32.mrf.mxu0  ;;  %3982 = vmatprep.mubr.bf16.mxu0 %v14341_v56  ;;  %v16937_v56 = vpop.f32.mrf.mxu1 }
 0x60f   :  { %v16909_v2 = vadd.f32 %v3125_v8, %v16652_v60  ;;  %3983 = vmatmul.mubr.bf16.gmra.mxu0 %v14339_v49 }
 0x610   :  { %v13438_v40 = vpop.f32.mrf.mxu0  ;;  %3990 = vmatprep.mubr.bf16.mxu0 %v14347_v30  ;;  %v12619_v35 = vpop.f32.mrf.mxu1 }
 0x611   :  { %v16914_v27 = vadd.f32 %v13438_v40, %v16657_v43 }
 0x612   :  { %v16920_v46 = vpop.f32.mrf.mxu0 }
 0x613   :  { %17972 = vst [vmem:[#allocation56_spill] sm:$0xff] %v16920_v46 }
 0x617   :  { %3991 = vmatmul.mubr.bf16.gmra.mxu0 %v14345_v23 }
 0x61c   :  { %v13441_v60 = vpop.f32.mrf.mxu0 }
 0x61d   :  { %v16925_v6 = vadd.f32 %v13441_v60, %v16668_v52  ;;  %v12594_v60 = vadd.f32 %v16863_v53, %v16861_v29  ;;  %v12603_v29 = vadd.f32 %v16892_v57, %v16884_v62 }
 0x61e   :  { %v3141_v43 = vpop.f32.mrf.mxu0 }
 0x61f   :  { %v16928_v28 = vadd.f32 %v3141_v43, %v16671_v18 }
 0x620   :  { %v13442_v7 = vpop.f32.mrf.mxu0 }
 0x621   :  { %17973 = vst [vmem:[#allocation57_spill] sm:$0xff] %v16928_v28  ;;  %v16931_v38 = vadd.f32 %v13442_v7, %v16676_v45  ;;  %v12597_v45 = vadd.f32 %v16873_v15, %v16865_v34 }
 0x622   :  { %v16933_v8 = vpop.f32.mrf.mxu0 }
 0x623   :  { %17974 = vst [vmem:[#allocation58_spill] sm:$0xff] %v16931_v38  ;;  %17975 = vst [vmem:[#allocation59_spill] sm:$0xff] %v16933_v8  ;;  %v12620_v38 = vpop.f32.mrf.mxu1 }
 0x624   :  { %v12656_v40 = vpop.f32.mrf.mxu0 }
 0x625   :  { %v16948_v15 = vpop.f32.mrf.mxu1 }
 0x626   :  { %v12657_v52 = vpop.f32.mrf.mxu0 }
 0x627   :  { %v12658_v18 = vadd.f32 %v12657_v52, %v12656_v40  ;;  %v12600_v52 = vadd.f32 %v16880_v55, %v16878_v1  ;;  %v12606_v1 = vadd.f32 %v16899_v24, %v16897_v42  ;;  %v12609_v55 = vadd.f32 %v16911_v9, %v16903_v0 }
 0x628   :  { %v12659_v51 = vpop.f32.mrf.mxu0  ;;  %v12615_v24 = vadd.f32 %v12614_v47, %v16922_v54 }
 0x629   :  { %v3497_v30 = vadd.f32 %v12658_v18, %v12594_v60 }
 0x62a   :  { %v12660_v49 = vpop.f32.mrf.mxu0 }
 0x62b   :  { %v12661_v43 = vadd.f32 %v12660_v49, %v12659_v51 }
 0x62c   :  { %v12662_v7 = vpop.f32.mrf.mxu0 }
 0x62d   :  { %v3500_v23 = vadd.f32 %v12661_v43, %v12597_v45  ;;  %v12623_v43 = vpop.f32.mrf.mxu1 }
 0x62e   :  { %v12663_v3 = vpop.f32.mrf.mxu0 }
 0x62f   :  { %v3559_v46 = vpack.c.bf16 %v3500_v23, %v3497_v30  ;;  %v12664_v28 = vadd.f32 %v12663_v3, %v12662_v7 }
 0x630   :  { %v12665_v8 = vpop.f32.mrf.mxu0 }
 0x631   :  { %13445 = vmatprep.mubr.msk.bf16.mxu1 %vm1311_vm1, %v3559_v46  ;;  %v3505_v51 = vadd.f32 %v12664_v28, %v12600_v52  ;;  %v12625_v28 = vpop.f32.mrf.mxu1 }
 0x632   :  { %v12666_v40 = vpop.f32.mrf.mxu0 }
 0x633   :  { %v12667_v53 = vadd.f32 %v12666_v40, %v12665_v8  ;;  %v12626_v40 = vpop.f32.mrf.mxu1 }
 0x634   :  { %v12668_v34 = vpop.f32.mrf.mxu0 }
 0x635   :  { %v3508_v18 = vadd.f32 %v12667_v53, %v12603_v29  ;;  %v12628_v9 = vpop.f32.mrf.mxu1 }
 0x636   :  { %v12669_v49 = vpop.f32.mrf.mxu0 }
 0x637   :  { %v3560_v60 = vpack.c.bf16 %v3508_v18, %v3505_v51  ;;  %v12670_v3 = vadd.f32 %v12669_v49, %v12668_v34 }
 0x638   :  { %v12671_v45 = vpop.f32.mrf.mxu0 }
 0x639   :  { %13446 = vmatmul.mubr.msk.bf16.vlgmr.msra.gmra.mxu1 %vm1311_vm1, %v3560_v60  ;;  %v3513_v8 = vadd.f32 %v12670_v3, %v12606_v1 }
 0x63a   :  { %v12672_v46 = vpop.f32.mrf.mxu0  ;;  %12778 = vmatpush3.bf16.msra.mxu1 %v16705_v20 }
 0x63b   :  { %v12673_v62 = vadd.f32 %v12672_v46, %v12671_v45  ;;  %12779 = vmatprep.subr.bf16.mxu1 %v16715_v11  ;;  %v12612_v11 = vadd.f32 %v16918_v37, %v16916_v31  ;;  %v12621_v37 = vadd.f32 %v12620_v38, %v12619_v35  ;;  %v12627_v35 = vadd.f32 %v12626_v40, %v12625_v28 }
 0x63c   :  { %v12674_v57 = vpop.f32.mrf.mxu0 }
 0x63d   :  { %v3516_v7 = vadd.f32 %v12673_v62, %v12609_v55 }
 0x63e   :  { %v12675_v30 = vpop.f32.mrf.mxu0  ;;  %12780 = vmatpush3.bf16.msra.mxu1 %v16721_v26 }
 0x63f   :  { %v3561_v23 = vpack.c.bf16 %v3516_v7, %v3513_v8  ;;  %12781 = vmatprep.subr.bf16.mxu1 %v16727_v41  ;;  %v12676_v52 = vadd.f32 %v12675_v30, %v12674_v57  ;;  %v17977_v8 = vld [vmem:[#allocation53_spill] sm:$0xff] }
 0x640   :  { %v12677_v20 = vpop.f32.mrf.mxu0 }
 0x641   :  { %13449 = vmatprep.mubr.msk.bf16.mxu1 %vm1311_vm1, %v3561_v23  ;;  %v3521_v29 = vadd.f32 %v12676_v52, %v12612_v11 }
 0x642   :  { %v12678_v42 = vpop.f32.mrf.mxu0  ;;  %12782 = vmatpush3.bf16.msra.mxu1 %v16734_v22  ;;  %v12629_v22 = vpop.f32.mrf.mxu1 }
 0x643   :  { %v12679_v0 = vadd.f32 %v12678_v42, %v12677_v20  ;;  %12783 = vmatprep.subr.bf16.mxu1 %v16744_v5  ;;  %v12618_v5 = vadd.f32 %v16937_v56, %v16935_v48 }
 0x644   :  { %v12680_v26 = vpop.f32.mrf.mxu0 }
 0x645   :  { %v3524_v41 = vadd.f32 %v12679_v0, %v12615_v24 }
 0x646   :  { %v12681_v53 = vpop.f32.mrf.mxu0  ;;  %12784 = vmatpush3.bf16.msra.mxu1 %v16750_v32  ;;  %v12631_v32 = vpop.f32.mrf.mxu1 }
 0x647   :  { %v3562_v34 = vpack.c.bf16 %v3524_v41, %v3521_v29  ;;  %12785 = vmatprep.subr.bf16.mxu1 %v16756_v33  ;;  %v12682_v18 = vadd.f32 %v12681_v53, %v12680_v26 }
 0x648   :  { %v12683_v51 = vpop.f32.mrf.mxu0  ;;  %v12632_v46 = vpop.f32.mrf.mxu1 }
 0x649   :  { %13450 = vmatmul.mubr.msk.bf16.gmra.mxu1 %vm1311_vm1, %v3562_v34  ;;  %v3529_v49 = vadd.f32 %v12682_v18, %v12618_v5  ;;  %v14314_v5 = vld [vmem:[#allocation2 + $0x62c] ss:$16 sps:$4 sm:$0xff]  }
 0x64a   :  { %v12684_v31 = vpop.f32.mrf.mxu0  ;;  %12786 = vmatpush3.bf16.msra.mxu1 %v16763_v4  ;;  %v12634_v1 = vpop.f32.mrf.mxu1 }
 0x64b   :  { %v12685_v54 = vadd.f32 %v12684_v31, %v12683_v51  ;;  %12787 = vmatprep.subr.bf16.mxu1 %v16773_v39  ;;  %v12624_v39 = vadd.f32 %v12623_v43, %v16948_v15  ;;  %v12630_v15 = vadd.f32 %v12629_v22, %v12628_v9  ;;  %v12633_v43 = vadd.f32 %v12632_v46, %v12631_v32  ;;  %v14308_v9 = vld [vmem:[#allocation2 + $0x60c] ss:$16 sps:$4 sm:$0xff]   ;;  %v14306_v31 = vld [vmem:[#allocation2 + $0x608] ss:$16 sps:$4 sm:$0xff]   ;;  %v17039_v46 = vld [vmem:[%s17943_s0 + $0x40] sm:$0xff]  }
 0x64c   :  { %v12686_v47 = vpop.f32.mrf.mxu0  ;;  %v12635_v7 = vpop.f32.mrf.mxu1  ;;  %v14326_v32 = vld [vmem:[#allocation2 + $0x66c] ss:$16 sps:$4 sm:$0xff]  }
 0x64d   :  { %v3532_v60 = vadd.f32 %v12685_v54, %v12621_v37  ;;  %v12636_v41 = vadd.f32 %v12635_v7, %v12634_v1  ;;  %v14312_v37 = vld [vmem:[#allocation2 + $0x628] ss:$16 sps:$4 sm:$0xff]   ;;  %v14320_v54 = vld [vmem:[#allocation2 + $0x64c] ss:$16 sps:$4 sm:$0xff]   ;;  %v14353_v7 = vld [vmem:[#allocation2 + $0x704] ss:$16 sps:$4 sm:$0xff]  }
 0x64e   :  { %v12687_v33 = vpop.f32.mrf.mxu0  ;;  %12788 = vmatpush3.bf16.msra.mxu1 %v16779_v12  ;;  %v14350_v1 = vld [vmem:[#allocation2 + $0x6ec] ss:$16 sps:$4 sm:$0xff]  }
 0x64f   :  { %v3563_v45 = vpack.c.bf16 %v3532_v60, %v3529_v49  ;;  %12789 = vmatprep.subr.bf16.mxu1 %v16785_v58  ;;  %v12688_v4 = vadd.f32 %v12687_v33, %v12686_v47  ;;  %v17976_v58 = vld [vmem:[#allocation50_spill] sm:$0xff]  ;;  %v16991_v47 = vld [vmem:[%s17943_s0 + $0x60] sm:$0xff]   ;;  %v17021_v33 = vld [vmem:[%s17943_s0 + $0x10] sm:$0xff]  }
 0x650   :  { %v12689_v3 = vpop.f32.mrf.mxu0  ;;  %v14324_v49 = vld [vmem:[#allocation2 + $0x668] ss:$16 sps:$4 sm:$0xff]   ;;  %v14332_v60 = vld [vmem:[#allocation2 + $0x68c] ss:$16 sps:$4 sm:$0xff]  }
 0x651   :  { %13453 = vmatprep.mubr.msk.bf16.mxu1 %vm1311_vm1, %v3563_v45  ;;  %v3537_v12 = vadd.f32 %v12688_v4, %v12624_v39  ;;  %v17027_v45 = vld [vmem:[%s17943_s0 + $0x48] sm:$0xff]   ;;  %v17045_v39 = vld [vmem:[%s17943_s0] sm:$0xff]  }
 0x652   :  { %v12690_v48 = vpop.f32.mrf.mxu0  ;;  %12790 = vmatpush3.bf16.msra.mxu1 %v16792_v36  ;;  %v14330_v4 = vld [vmem:[#allocation2 + $0x688] ss:$16 sps:$4 sm:$0xff]  }
 0x653   :  { %v12691_v38 = vadd.f32 %v12690_v48, %v12689_v3  ;;  %12791 = vmatprep.subr.bf16.mxu1 %v16800_v16  ;;  %v12637_v16 = vpop.f32.mrf.mxu1  ;;  %v17033_v3 = vld [vmem:[%s17943_s0 + $0x8] sm:$0xff]  }
 0x654   :  { %v12692_v56 = vpop.f32.mrf.mxu0  ;;  %v14338_v48 = vld [vmem:[#allocation2 + $0x6ac] ss:$16 sps:$4 sm:$0xff]  }
 0x655   :  { %v3540_v55 = vadd.f32 %v12691_v38, %v12627_v35  ;;  %v12638_v24 = vpop.f32.mrf.mxu1  ;;  %v14336_v35 = vld [vmem:[#allocation2 + $0x6a8] ss:$16 sps:$4 sm:$0xff]   ;;  %v14344_v38 = vld [vmem:[#allocation2 + $0x6cc] ss:$16 sps:$4 sm:$0xff]  }
 0x656   :  { %v12693_v62 = vpop.f32.mrf.mxu0  ;;  %12792 = vmatpush3.bf16.msra.mxu1 %v17976_v58  ;;  %v12639_v53 = vadd.f32 %v12638_v24, %v12637_v16  ;;  %v14348_v58 = vld [vmem:[#allocation2 + $0x6e8] ss:$16 sps:$4 sm:$0xff]  }
 0x657   :  { %v3564_v57 = vpack.c.bf16 %v3540_v55, %v3537_v12  ;;  %12850 = vmatprep.subr.bf16.mxu1 %v17977_v8  ;;  %v12694_v23 = vadd.f32 %v12693_v62, %v12692_v56  ;;  %v14342_v56 = vld [vmem:[#allocation2 + $0x6c8] ss:$16 sps:$4 sm:$0xff]  }
 0x658   :  { %v12695_v30 = vpop.f32.mrf.mxu0  ;;  %v4105_v12 = vld [vmem:[#allocation4 + $0x18] sm:$0xf] }
 0x659   :  { %13454 = vmatmul.mubr.msk.bf16.gmra.mxu1 %vm1311_vm1, %v3564_v57  ;;  %v3545_v40 = vadd.f32 %v12694_v23, %v12630_v15  ;;  %13953 = vmatprep.subr.msk.bf16.mxu0 %vm1336_vm0, %v4105_v12  ;;  %v4131_v55 = vsel %vm1336_vm0, %v4105_v12, 0  ;;  %v17053_v62 = vld [vmem:[%s17943_s0 + $0xf8] sm:$0xff]   ;;  %v14387_v12 = vld [vmem:[#allocation2 + $0x7c0] ss:$16 sps:$4 sm:$0xff]  }
 0x65a   :  { %v12696_v36 = vpop.f32.mrf.mxu0  ;;  %13462 = vmatpush3.bf16.msra.mxu0 %v4131_v55 }
 0x65b   :  { %v12697_v28 = vadd.f32 %v12696_v36, %v12695_v30  ;;  %12914 = vmatprep.subr.bf16.mxu0 %v17053_v62  ;;  %v14351_v30 = vld [vmem:[#allocation2 + $0x700] ss:$16 sps:$4 sm:$0xff]  }
 0x65c   :  { %v12698_v20 = vpop.f32.mrf.mxu0 }
 0x65d   :  { %v3548_v52 = vadd.f32 %v12697_v28, %v12633_v43 }
 0x65e   :  { %v12699_v42 = vpop.f32.mrf.mxu0 }
 0x65f   :  { %v3565_v11 = vpack.c.bf16 %v3548_v52, %v3545_v40  ;;  %v12700_v26 = vadd.f32 %v12699_v42, %v12698_v20  ;;  %v14359_v40 = vld [vmem:[#allocation2 + $0x724] ss:$16 sps:$4 sm:$0xff]   ;;  %v14357_v42 = vld [vmem:[#allocation2 + $0x720] ss:$16 sps:$4 sm:$0xff]  }
 0x660   :  { %v12701_v0 = vpop.f32.mrf.mxu0 }
 0x661   :  { %13457 = vmatprep.mubr.msk.bf16.mxu1 %vm1311_vm1, %v3565_v11  ;;  %v3553_v51 = vadd.f32 %v12700_v26, %v12636_v41 }
 0x662   :  { %v12702_v29 = vpop.f32.mrf.mxu0 }
 0x663   :  { %v12703_v34 = vadd.f32 %v12702_v29, %v12701_v0  ;;  %v14363_v0 = vld [vmem:[#allocation2 + $0x740] ss:$16 sps:$4 sm:$0xff]  }
 0x664   :  { %v17056_v57 = vpop.f32.mrf.mxu0 }
 0x665   :  { %v3556_v18 = vadd.f32 %v12703_v34, %v12639_v53 }
 0x666   :  { %v17058_v8 = vpop.f32.mrf.mxu0 }
 0x667   :  { %v3566_v22 = vpack.c.bf16 %v3556_v18, %v3553_v51  ;;  %v14371_v18 = vld [vmem:[#allocation2 + $0x764] ss:$16 sps:$4 sm:$0xff]  }
 0x668   :  { %v17060_v36 = vpop.f32.mrf.mxu0 }
 0x669   :  { %13458 = vmatmul.mubr.msk.bf16.gmra.mxu1 %vm1311_vm1, %v3566_v22  ;;  %v14369_v22 = vld [vmem:[#allocation2 + $0x760] ss:$16 sps:$4 sm:$0xff]  }
 0x66a   :  { %4031 = vmatprep.mubr.bf16.mxu1 %v14308_v9  ;;  %v17068_v20 = vpop.f32.mrf.mxu0 }
 0x66c   :  { %v17073_v11 = vpop.f32.mrf.mxu0 }
 0x66e   :  { %v17075_v24 = vpop.f32.mrf.mxu0 }
 0x670   :  { %v17079_v29 = vpop.f32.mrf.mxu0 }
 0x671   :  { %4032 = vmatmul.mubr.bf16.vlgmr.msra.gmra.mxu1 %v14306_v31 }
 0x672   :  { %4039 = vmatprep.mubr.bf16.mxu1 %v14314_v5  ;;  %12851 = vmatpush3.bf16.msra.mxu1 %v16821_v63  ;;  %v14318_v63 = vld [vmem:[#allocation2 + $0x648] ss:$16 sps:$4 sm:$0xff]   ;;  %v17087_v51 = vpop.f32.mrf.mxu0 }
 0x673   :  { %12852 = vmatprep.subr.bf16.mxu1 %v16827_v25  ;;  %v16997_v25 = vld [vmem:[%s17943_s0 + $0x20] sm:$0xff]  }
 0x676   :  { %12853 = vmatpush3.bf16.msra.mxu1 %v16833_v59  ;;  %v17003_v59 = vld [vmem:[%s17943_s0 + $0x58] sm:$0xff]  }
 0x677   :  { %12854 = vmatprep.subr.bf16.mxu1 %v16839_v13  ;;  %v17009_v13 = vld [vmem:[%s17943_s0 + $0x18] sm:$0xff]  }
 0x679   :  { %4040 = vmatmul.mubr.bf16.gmra.mxu1 %v14312_v37  ;;  %v14375_v37 = vld [vmem:[#allocation2 + $0x780] ss:$16 sps:$4 sm:$0xff]  }
 0x67a   :  { %4047 = vmatprep.mubr.bf16.mxu1 %v14320_v54  ;;  %12855 = vmatpush3.bf16.msra.mxu1 %v16845_v10  ;;  %v17015_v10 = vld [vmem:[%s17943_s0 + $0x50] sm:$0xff]  }
 0x67b   :  { %12856 = vmatprep.subr.bf16.mxu1 %v16991_v47 }
 0x67e   :  { %12857 = vmatpush3.bf16.msra.mxu1 %v16997_v25 }
 0x67f   :  { %12858 = vmatprep.subr.bf16.mxu1 %v17003_v59 }
 0x681   :  { %4048 = vmatmul.mubr.bf16.gmra.mxu1 %v14318_v63 }
 0x682   :  { %4055 = vmatprep.mubr.bf16.mxu1 %v14326_v32  ;;  %12859 = vmatpush3.bf16.msra.mxu1 %v17009_v13 }
 0x683   :  { %12860 = vmatprep.subr.bf16.mxu1 %v17015_v10 }
 0x686   :  { %12861 = vmatpush3.bf16.msra.mxu1 %v17021_v33 }
 0x687   :  { %12862 = vmatprep.subr.bf16.mxu1 %v17027_v45 }
 0x689   :  { %4056 = vmatmul.mubr.bf16.gmra.mxu1 %v14324_v49 }
 0x68a   :  { %4063 = vmatprep.mubr.bf16.mxu1 %v14332_v60  ;;  %12863 = vmatpush3.bf16.msra.mxu1 %v17033_v3 }
 0x68b   :  { %12864 = vmatprep.subr.bf16.mxu1 %v17039_v46 }
 0x68e   :  { %12865 = vmatpush3.bf16.msra.mxu1 %v17045_v39 }
 0x691   :  { %4064 = vmatmul.mubr.bf16.gmra.mxu1 %v14330_v4 }
 0x692   :  { %4071 = vmatprep.mubr.bf16.mxu1 %v14338_v48  ;;  %v14383_v48 = vld [vmem:[#allocation2 + $0x7a4] ss:$16 sps:$4 sm:$0xff]  }
 0x699   :  { %4072 = vmatmul.mubr.bf16.gmra.mxu1 %v14336_v35 }
 0x69a   :  { %4079 = vmatprep.mubr.bf16.mxu1 %v14344_v38  ;;  %v14381_v38 = vld [vmem:[#allocation2 + $0x7a0] ss:$16 sps:$4 sm:$0xff]  }
 0x6a1   :  { %4080 = vmatmul.mubr.bf16.gmra.mxu1 %v14342_v56 }
 0x6a2   :  { %4087 = vmatprep.mubr.bf16.mxu1 %v14350_v1 }
 0x6a9   :  { %4088 = vmatmul.mubr.bf16.gmra.mxu1 %v14348_v58 }
 0x6aa   :  { %4471 = vmatprep.mubr.bf16.mxu1 %v14353_v7 }
 0x6af   :  { %v17092_v31 = vpop.f32.mrf.mxu0 }
 0x6b1   :  { %4472 = vmatmul.mubr.bf16.vlgmr.msra.gmra.mxu1 %v14351_v30  ;;  %v17094_v5 = vpop.f32.mrf.mxu0  ;;  %v17981_v30 = vld [vmem:[#allocation57_spill] sm:$0xff] }
 0x6b2   :  { %4479 = vmatprep.mubr.bf16.mxu1 %v14359_v40  ;;  %v14395_v40 = vld [vmem:[#allocation2 + $0x7e4] ss:$16 sps:$4 sm:$0xff]  }
 0x6b3   :  { %v17098_v63 = vpop.f32.mrf.mxu0 }
 0x6b5   :  { %v17106_v4 = vpop.f32.mrf.mxu0 }
 0x6b7   :  { %v17111_v56 = vpop.f32.mrf.mxu0 }
 0x6b9   :  { %4480 = vmatmul.mubr.bf16.gmra.mxu1 %v14357_v42  ;;  %v17113_v1 = vpop.f32.mrf.mxu0  ;;  %v17982_v42 = vld [vmem:[#allocation58_spill] sm:$0xff] }
 0x6bb   :  { %v17117_v58 = vpop.f32.mrf.mxu0 }
 0x6f9   :  { %v13447_v23 = vpop.f32.mrf.mxu1 }
 0x6fa   :  { %v17063_v15 = vadd.f32 %v13447_v23, %v16868_v61  ;;  %v14365_v61 = vld [vmem:[#allocation2 + $0x744] ss:$16 sps:$4 sm:$0xff]  }
 0x6fb   :  { %v3630_v43 = vpop.f32.mrf.mxu1  ;;  %4487 = vmatprep.mubr.bf16.mxu1 %v14365_v61 }
 0x6fc   :  { %v17066_v28 = vadd.f32 %v3630_v43, %v16871_v17  ;;  %4488 = vmatmul.mubr.bf16.gmra.mxu1 %v14363_v0  ;;  %v14393_v0 = vld [vmem:[#allocation2 + $0x7e0] ss:$16 sps:$4 sm:$0xff]  }
 0x6fd   :  { %v13448_v16 = vpop.f32.mrf.mxu1  ;;  %4495 = vmatprep.mubr.bf16.mxu1 %v14371_v18 }
 0x6fe   :  { %v17071_v52 = vadd.f32 %v13448_v16, %v16876_v21  ;;  %v17125_v16 = vpop.f32.mrf.mxu0 }
 0x6ff   :  { %v17077_v26 = vpop.f32.mrf.mxu1 }
 0x700   :  { %17978 = vst [vmem:[#allocation50_spill] sm:$0xff] %v17077_v26 }
 0x704   :  { %4496 = vmatmul.mubr.bf16.gmra.mxu1 %v14369_v22 }
 0x709   :  { %v13451_v17 = vpop.f32.mrf.mxu1 }
 0x70a   :  { %v17082_v41 = vadd.f32 %v13451_v17, %v16887_v14  ;;  %v14377_v14 = vld [vmem:[#allocation2 + $0x784] ss:$16 sps:$4 sm:$0xff]  }
 0x70b   :  { %v3646_v21 = vpop.f32.mrf.mxu1  ;;  %4503 = vmatprep.mubr.bf16.mxu1 %v14377_v14 }
 0x70c   :  { %v17085_v53 = vadd.f32 %v3646_v21, %v16890_v50  ;;  %4504 = vmatmul.mubr.bf16.gmra.mxu1 %v14375_v37 }
 0x70d   :  { %v13452_v34 = vpop.f32.mrf.mxu1  ;;  %4511 = vmatprep.mubr.bf16.mxu1 %v14383_v48 }
 0x70e   :  { %v17090_v9 = vadd.f32 %v13452_v34, %v16895_v44  ;;  %v17132_v34 = vpop.f32.mrf.mxu0 }
 0x70f   :  { %v17096_v54 = vpop.f32.mrf.mxu1 }
 0x710   :  { %17979 = vst [vmem:[#allocation53_spill] sm:$0xff] %v17096_v54  ;;  %v17134_v22 = vpop.f32.mrf.mxu0 }
 0x714   :  { %4512 = vmatmul.mubr.bf16.gmra.mxu1 %v14381_v38  ;;  %v17140_v38 = vpop.f32.mrf.mxu0 }
 0x719   :  { %v13455_v50 = vpop.f32.mrf.mxu1 }
 0x71a   :  { %v17101_v32 = vadd.f32 %v13455_v50, %v16906_v19  ;;  %v14389_v19 = vld [vmem:[#allocation2 + $0x7c4] ss:$16 sps:$4 sm:$0xff]   ;;  %v12731_v50 = vadd.f32 %v17058_v8, %v17056_v57  ;;  %v12737_v57 = vadd.f32 %v17075_v24, %v17073_v11  ;;  %v12740_v8 = vadd.f32 %v17087_v51, %v17079_v29  ;;  %v17157_v11 = vld [vmem:[%s17943_s0 + $0xb8] sm:$0xff]  }
 0x71b   :  { %v3662_v44 = vpop.f32.mrf.mxu1  ;;  %4519 = vmatprep.mubr.bf16.mxu1 %v14389_v19  ;;  %v12743_v24 = vadd.f32 %v17094_v5, %v17092_v31  ;;  %v12746_v29 = vadd.f32 %v17106_v4, %v17098_v63  ;;  %v17173_v31 = vld [vmem:[%s17943_s0 + $0xb0] sm:$0xff]   ;;  %v17179_v63 = vld [vmem:[%s17943_s0 + $0xe8] sm:$0xff]  }
 0x71c   :  { %v17104_v49 = vadd.f32 %v3662_v44, %v16909_v2  ;;  %4520 = vmatmul.mubr.bf16.gmra.mxu1 %v14387_v12  ;;  %v12734_v44 = vadd.f32 %v17068_v20, %v17060_v36 }
 0x71d   :  { %v13456_v60 = vpop.f32.mrf.mxu1  ;;  %4527 = vmatprep.mubr.bf16.mxu1 %v14395_v40 }
 0x71e   :  { %v17109_v35 = vadd.f32 %v13456_v60, %v16914_v27 }
 0x71f   :  { %v17115_v55 = vpop.f32.mrf.mxu1 }
 0x720   :  { %17980 = vst [vmem:[#allocation60_spill] sm:$0xff] %v17115_v55 }
 0x724   :  { %4528 = vmatmul.mubr.bf16.gmra.mxu1 %v14393_v0 }
 0x729   :  { %v13459_v2 = vpop.f32.mrf.mxu1 }
 0x72a   :  { %v17120_v7 = vadd.f32 %v13459_v2, %v16925_v6 }
 0x72b   :  { %v3678_v27 = vpop.f32.mrf.mxu1 }
 0x72c   :  { %v17123_v23 = vadd.f32 %v3678_v27, %v17981_v30 }
 0x72d   :  { %v13460_v43 = vpop.f32.mrf.mxu1 }
 0x72e   :  { %v17128_v61 = vadd.f32 %v13460_v43, %v17982_v42  ;;  %v17142_v43 = vpop.f32.mrf.mxu0 }
 0x72f   :  { %v17130_v17 = vpop.f32.mrf.mxu1 }
 0x730   :  { %17983 = vst [vmem:[#allocation57_spill] sm:$0xff] %v17130_v17  ;;  %v17149_v0 = vpop.f32.mrf.mxu0 }
 0x731   :  { %v12793_v21 = vpop.f32.mrf.mxu1 }
 0x733   :  { %v12794_v6 = vpop.f32.mrf.mxu1 }
 0x734   :  { %v12795_v14 = vadd.f32 %v12794_v6, %v12793_v21 }
 0x735   :  { %v12796_v18 = vpop.f32.mrf.mxu1 }
 0x736   :  { %v4034_v19 = vadd.f32 %v12795_v14, %v12731_v50  ;;  %v17151_v50 = vpop.f32.mrf.mxu0 }
 0x737   :  { %v12797_v37 = vpop.f32.mrf.mxu1 }
 0x738   :  { %v12798_v60 = vadd.f32 %v12797_v37, %v12796_v18 }
 0x739   :  { %v12799_v48 = vpop.f32.mrf.mxu1 }
 0x73a   :  { %v4037_v12 = vadd.f32 %v12798_v60, %v12734_v44 }
 0x73b   :  { %v12800_v2 = vpop.f32.mrf.mxu1 }
 0x73c   :  { %v4096_v27 = vpack.c.bf16 %v4037_v12, %v4034_v19  ;;  %v12801_v40 = vadd.f32 %v12800_v2, %v12799_v48  ;;  %v17167_v48 = vld [vmem:[%s17943_s0 + $0xf0] sm:$0xff]   ;;  %v12762_v12 = vpop.f32.mrf.mxu0 }
 0x73d   :  { %v12802_v30 = vpop.f32.mrf.mxu1 }
 0x73e   :  { %13463 = vmatprep.mubr.msk.bf16.mxu0 %vm1311_vm1, %v4096_v27  ;;  %v4042_v21 = vadd.f32 %v12801_v40, %v12737_v57  ;;  %v12763_v40 = vpop.f32.mrf.mxu0 }
 0x73f   :  { %v12803_v42 = vpop.f32.mrf.mxu1 }
 0x740   :  { %v12804_v36 = vadd.f32 %v12803_v42, %v12802_v30 }
 0x741   :  { %v12805_v20 = vpop.f32.mrf.mxu1 }
 0x742   :  { %v4045_v6 = vadd.f32 %v12804_v36, %v12740_v8  ;;  %v17186_v8 = vld [vmem:[%s17943_s0 + $0xa8] sm:$0xff]   ;;  %v12749_v36 = vadd.f32 %v17113_v1, %v17111_v56  ;;  %v17202_v56 = vld [vmem:[%s17943_s0 + $0xa0] sm:$0xff]  }
 0x743   :  { %v12806_v18 = vpop.f32.mrf.mxu1 }
 0x744   :  { %v4097_v14 = vpack.c.bf16 %v4045_v6, %v4042_v21  ;;  %v12807_v44 = vadd.f32 %v12806_v18, %v12805_v20  ;;  %v12752_v20 = vadd.f32 %v17125_v16, %v17117_v58  ;;  %v17196_v6 = vld [vmem:[%s17943_s0 + $0xe0] sm:$0xff]   ;;  %v17208_v58 = vld [vmem:[%s17943_s0 + $0xd8] sm:$0xff]  }
 0x745   :  { %v12808_v37 = vpop.f32.mrf.mxu1 }
 0x746   :  { %13464 = vmatmul.mubr.msk.bf16.vlgmr.msra.gmra.mxu0 %vm1311_vm1, %v4097_v14  ;;  %v4050_v2 = vadd.f32 %v12807_v44, %v12743_v24  ;;  %v12765_v14 = vpop.f32.mrf.mxu0 }
 0x747   :  { %v12809_v60 = vpop.f32.mrf.mxu1  ;;  %12915 = vmatpush3.bf16.msra.mxu0 %v17157_v11 }
 0x748   :  { %v12810_v51 = vadd.f32 %v12809_v60, %v12808_v37  ;;  %12916 = vmatprep.subr.bf16.mxu0 %v17167_v48  ;;  %v12766_v24 = vpop.f32.mrf.mxu0 }
 0x749   :  { %v12811_v19 = vpop.f32.mrf.mxu1 }
 0x74a   :  { %v4053_v27 = vadd.f32 %v12810_v51, %v12746_v29 }
 0x74b   :  { %v12812_v30 = vpop.f32.mrf.mxu1  ;;  %12917 = vmatpush3.bf16.msra.mxu0 %v17173_v31 }
 0x74c   :  { %v4098_v5 = vpack.c.bf16 %v4053_v27, %v4050_v2  ;;  %12918 = vmatprep.subr.bf16.mxu0 %v17179_v63  ;;  %v12813_v42 = vadd.f32 %v12812_v30, %v12811_v19  ;;  %v17215_v19 = vld [vmem:[%s17943_s0 + $0x98] sm:$0xff]   ;;  %v12755_v2 = vadd.f32 %v17134_v22, %v17132_v34  ;;  %v12758_v27 = vadd.f32 %v17142_v43, %v17140_v38  ;;  %v17231_v34 = vld [vmem:[%s17943_s0 + $0x90] sm:$0xff]   ;;  %v17237_v38 = vld [vmem:[%s17943_s0 + $0xc8] sm:$0xff]  }
 0x74d   :  { %v12814_v4 = vpop.f32.mrf.mxu1 }
 0x74e   :  { %13467 = vmatprep.mubr.msk.bf16.mxu0 %vm1311_vm1, %v4098_v5  ;;  %v4058_v37 = vadd.f32 %v12813_v42, %v12749_v36  ;;  %v17225_v5 = vld [vmem:[%s17943_s0 + $0xd0] sm:$0xff]   ;;  %v12768_v42 = vpop.f32.mrf.mxu0 }
 0x74f   :  { %v12815_v57 = vpop.f32.mrf.mxu1  ;;  %12919 = vmatpush3.bf16.msra.mxu0 %v17186_v8 }
 0x750   :  { %v12816_v21 = vadd.f32 %v12815_v57, %v12814_v4  ;;  %12920 = vmatprep.subr.bf16.mxu0 %v17196_v6 }
 0x751   :  { %v12817_v18 = vpop.f32.mrf.mxu1 }
 0x752   :  { %v4061_v44 = vadd.f32 %v12816_v21, %v12752_v20  ;;  %v12769_v21 = vpop.f32.mrf.mxu0 }
 0x753   :  { %v12818_v60 = vpop.f32.mrf.mxu1  ;;  %12921 = vmatpush3.bf16.msra.mxu0 %v17202_v56 }
 0x754   :  { %v4099_v1 = vpack.c.bf16 %v4061_v44, %v4058_v37  ;;  %12922 = vmatprep.subr.bf16.mxu0 %v17208_v58  ;;  %v12819_v29 = vadd.f32 %v12818_v60, %v12817_v18  ;;  %v17244_v44 = vld [vmem:[%s17943_s0 + $0x88] sm:$0xff]   ;;  %v12761_v60 = vadd.f32 %v17151_v50, %v17149_v0  ;;  %v15216_v50 = vld [vmem:[%s17943_s0 + $0x78] sm:$0xff]  }
 0x755   :  { %v12820_v16 = vpop.f32.mrf.mxu1 }
 0x756   :  { %13468 = vmatmul.mubr.msk.bf16.gmra.mxu0 %vm1311_vm1, %v4099_v1  ;;  %v4066_v57 = vadd.f32 %v12819_v29, %v12755_v2  ;;  %v12764_v1 = vadd.f32 %v12763_v40, %v12762_v12  ;;  %v17252_v29 = vld [vmem:[%s17943_s0 + $0xc0] sm:$0xff]   ;;  %v12771_v2 = vpop.f32.mrf.mxu0 }
 0x757   :  { %v12821_v51 = vpop.f32.mrf.mxu1  ;;  %12923 = vmatpush3.bf16.msra.mxu0 %v17215_v19 }
 0x758   :  { %v12822_v30 = vadd.f32 %v12821_v51, %v12820_v16  ;;  %12924 = vmatprep.subr.bf16.mxu0 %v17225_v5  ;;  %v12772_v12 = vpop.f32.mrf.mxu0 }
 0x759   :  { %v12823_v4 = vpop.f32.mrf.mxu1  ;;  %v12773_v17 = vadd.f32 %v12772_v12, %v12771_v2  ;;  %v15219_v2 = vld [vmem:[%s17943_s0 + $0x30] sm:$0xff]   ;;  %v15221_v12 = vld [vmem:[%s17943_s0 + $0x28] sm:$0xff]  }
 0x75a   :  { %v4069_v36 = vadd.f32 %v12822_v30, %v12758_v27 }
 0x75b   :  { %v12824_v20 = vpop.f32.mrf.mxu1  ;;  %12925 = vmatpush3.bf16.msra.mxu0 %v17231_v34 }
 0x75c   :  { %v4100_v22 = vpack.c.bf16 %v4069_v36, %v4066_v57  ;;  %12926 = vmatprep.subr.bf16.mxu0 %v17237_v38  ;;  %v12825_v18 = vadd.f32 %v12824_v20, %v12823_v4  ;;  %v17258_v57 = vld [vmem:[%s17943_s0 + $0x80] sm:$0xff]  }
 0x75d   :  { %v12826_v43 = vpop.f32.mrf.mxu1  ;;  %17984 = vst [vmem:[#allocation58_spill] sm:$0xff] %v17258_v57 }
 0x75e   :  { %13471 = vmatprep.mubr.msk.bf16.mxu0 %vm1311_vm1, %v4100_v22  ;;  %v4074_v27 = vadd.f32 %v12825_v18, %v12761_v60  ;;  %v12767_v22 = vadd.f32 %v12766_v24, %v12765_v14  ;;  %v14356_v14 = vld [vmem:[#allocation2 + $0x70c] ss:$16 sps:$4 sm:$0xff]  }
 0x75f   :  { %v12827_v37 = vpop.f32.mrf.mxu1  ;;  %12927 = vmatpush3.bf16.msra.mxu0 %v17244_v44 }
 0x760   :  { %v12828_v16 = vadd.f32 %v12827_v37, %v12826_v43  ;;  %12928 = vmatprep.subr.bf16.mxu0 %v17252_v29  ;;  %v12770_v43 = vadd.f32 %v12769_v21, %v12768_v42  ;;  %v12774_v37 = vpop.f32.mrf.mxu0  ;;  %v14354_v42 = vld [vmem:[#allocation2 + $0x708] ss:$16 sps:$4 sm:$0xff]   ;;  %v14362_v21 = vld [vmem:[#allocation2 + $0x72c] ss:$16 sps:$4 sm:$0xff]  }
 0x761   :  { %v12829_v51 = vpop.f32.mrf.mxu1 }
 0x762   :  { %v4077_v30 = vadd.f32 %v12828_v16, %v12764_v1 }
 0x763   :  { %v12830_v4 = vpop.f32.mrf.mxu1  ;;  %12929 = vmatpush3.bf16.msra.mxu0 %v17258_v57 }
 0x764   :  { %v4101_v0 = vpack.c.bf16 %v4077_v30, %v4074_v27  ;;  %12987 = vmatprep.subr.bf16.mxu0 %v15216_v50  ;;  %v12831_v36 = vadd.f32 %v12830_v4, %v12829_v51  ;;  %v12775_v30 = vpop.f32.mrf.mxu0 }
 0x765   :  { %v12832_v40 = vpop.f32.mrf.mxu1  ;;  %v12776_v51 = vadd.f32 %v12775_v30, %v12774_v37  ;;  %v14399_v37 = vld [vmem:[#allocation2 + $0x800] ss:$16 sps:$4 sm:$0xff]  }
 0x766   :  { %13472 = vmatmul.mubr.msk.bf16.gmra.mxu0 %vm1311_vm1, %v4101_v0  ;;  %v4082_v1 = vadd.f32 %v12831_v36, %v12767_v22  ;;  %v14374_v36 = vld [vmem:[#allocation2 + $0x76c] ss:$16 sps:$4 sm:$0xff]  }
 0x767   :  { %v12833_v20 = vpop.f32.mrf.mxu1  ;;  %v14380_v22 = vld [vmem:[#allocation2 + $0x78c] ss:$16 sps:$4 sm:$0xff]  }
 0x768   :  { %v12834_v18 = vadd.f32 %v12833_v20, %v12832_v40  ;;  %v14366_v40 = vld [vmem:[#allocation2 + $0x748] ss:$16 sps:$4 sm:$0xff]  }
 0x769   :  { %v12835_v60 = vpop.f32.mrf.mxu1  ;;  %v14372_v20 = vld [vmem:[#allocation2 + $0x768] ss:$16 sps:$4 sm:$0xff]  }
 0x76a   :  { %v4085_v16 = vadd.f32 %v12834_v18, %v12770_v43  ;;  %v4642_v43 = vld [vmem:[#allocation4 + $0x1c] sm:$0xf]  ;;  %v14401_v18 = vld [vmem:[#allocation2 + $0x804] ss:$16 sps:$4 sm:$0xff]  }
 0x76b   :  { %v12836_v26 = vpop.f32.mrf.mxu1  ;;  %13954 = vmatprep.subr.msk.bf16.mxu1 %vm1336_vm0, %v4642_v43 }
 0x76c   :  { %v4102_v27 = vpack.c.bf16 %v4085_v16, %v4082_v1  ;;  %v12837_v55 = vadd.f32 %v12836_v26, %v12835_v60  ;;  %v15217_v26 = vld [vmem:[%s17943_s0 + $0x38] sm:$0xff]  }
 0x76d   :  { %v12838_v54 = vpop.f32.mrf.mxu1 }
 0x76e   :  { %13475 = vmatprep.mubr.msk.bf16.mxu0 %vm1311_vm1, %v4102_v27  ;;  %v4090_v0 = vadd.f32 %v12837_v55, %v12773_v17  ;;  %v14360_v55 = vld [vmem:[#allocation2 + $0x728] ss:$16 sps:$4 sm:$0xff]   ;;  %v14368_v17 = vld [vmem:[#allocation2 + $0x74c] ss:$16 sps:$4 sm:$0xff]  }
 0x76f   :  { %v12839_v50 = vpop.f32.mrf.mxu1 }
 0x770   :  { %v12840_v4 = vadd.f32 %v12839_v50, %v12838_v54  ;;  %v15218_v54 = vld [vmem:[%s17943_s0 + $0x70] sm:$0xff]  }
 0x772   :  { %v4093_v57 = vadd.f32 %v12840_v4, %v12776_v51  ;;  %v14407_v51 = vld [vmem:[#allocation2 + $0x824] ss:$16 sps:$4 sm:$0xff]  }
 0x774   :  { %v4103_v24 = vpack.c.bf16 %v4093_v57, %v4090_v0  ;;  %v15220_v57 = vld [vmem:[%s17943_s0 + $0x68] sm:$0xff]   ;;  %v14405_v0 = vld [vmem:[#allocation2 + $0x820] ss:$16 sps:$4 sm:$0xff]  }
 0x776   :  { %13476 = vmatmul.mubr.msk.bf16.gmra.mxu0 %vm1311_vm1, %v4103_v24 }
 0x777   :  { %4568 = vmatprep.mubr.bf16.mxu0 %v14356_v14 }
 0x77e   :  { %4569 = vmatmul.mubr.bf16.vlgmr.msra.gmra.mxu0 %v14354_v42  ;;  %v14411_v42 = vld [vmem:[#allocation2 + $0x840] ss:$16 sps:$4 sm:$0xff]  }
 0x77f   :  { %4576 = vmatprep.mubr.bf16.mxu0 %v14362_v21  ;;  %12988 = vmatpush3.bf16.msra.mxu0 %v15217_v26 }
 0x780   :  { %12989 = vmatprep.subr.bf16.mxu0 %v15218_v54 }
 0x783   :  { %12990 = vmatpush3.bf16.msra.mxu0 %v15219_v2 }
 0x784   :  { %12991 = vmatprep.subr.bf16.mxu0 %v15220_v57  ;;  %v14419_v57 = vld [vmem:[#allocation2 + $0x864] ss:$16 sps:$4 sm:$0xff]  }
 0x786   :  { %4577 = vmatmul.mubr.bf16.gmra.mxu0 %v14360_v55 }
 0x787   :  { %4584 = vmatprep.mubr.bf16.mxu0 %v14368_v17  ;;  %12992 = vmatpush3.bf16.msra.mxu0 %v15221_v12 }
 0x788   :  { %12993 = vmatprep.subr.bf16.mxu0 %v16991_v47  ;;  %v14378_v47 = vld [vmem:[#allocation2 + $0x788] ss:$16 sps:$4 sm:$0xff]  }
 0x78b   :  { %12994 = vmatpush3.bf16.msra.mxu0 %v16997_v25  ;;  %v14386_v25 = vld [vmem:[#allocation2 + $0x7ac] ss:$16 sps:$4 sm:$0xff]  }
 0x78c   :  { %12995 = vmatprep.subr.bf16.mxu0 %v17003_v59  ;;  %v14384_v59 = vld [vmem:[#allocation2 + $0x7a8] ss:$16 sps:$4 sm:$0xff]  }
 0x78e   :  { %4585 = vmatmul.mubr.bf16.gmra.mxu0 %v14366_v40  ;;  %v14417_v40 = vld [vmem:[#allocation2 + $0x860] ss:$16 sps:$4 sm:$0xff]  }
 0x78f   :  { %4592 = vmatprep.mubr.bf16.mxu0 %v14374_v36  ;;  %12996 = vmatpush3.bf16.msra.mxu0 %v17009_v13  ;;  %v14392_v13 = vld [vmem:[#allocation2 + $0x7cc] ss:$16 sps:$4 sm:$0xff]  }
 0x790   :  { %12997 = vmatprep.subr.bf16.mxu0 %v17015_v10  ;;  %v14390_v10 = vld [vmem:[#allocation2 + $0x7c8] ss:$16 sps:$4 sm:$0xff]  }
 0x793   :  { %12998 = vmatpush3.bf16.msra.mxu0 %v17021_v33  ;;  %v14398_v33 = vld [vmem:[#allocation2 + $0x7ec] ss:$16 sps:$4 sm:$0xff]  }
 0x794   :  { %12999 = vmatprep.subr.bf16.mxu0 %v17027_v45  ;;  %v4668_v45 = vsel %vm1336_vm0, %v4642_v43, 0  ;;  %v14431_v43 = vld [vmem:[#allocation2 + $0x8a4] ss:$16 sps:$4 sm:$0xff]  }
 0x795   :  { %13480 = vmatpush3.bf16.msra.mxu1 %v4668_v45 }
 0x796   :  { %4593 = vmatmul.mubr.bf16.gmra.mxu0 %v14372_v20  ;;  %13051 = vmatprep.subr.bf16.mxu1 %v17053_v62 }
 0x797   :  { %4600 = vmatprep.mubr.bf16.mxu0 %v14380_v22  ;;  %13000 = vmatpush3.bf16.msra.mxu0 %v17033_v3  ;;  %v14396_v3 = vld [vmem:[#allocation2 + $0x7e8] ss:$16 sps:$4 sm:$0xff]   ;;  %v14423_v22 = vld [vmem:[#allocation2 + $0x880] ss:$16 sps:$4 sm:$0xff]  }
 0x798   :  { %13001 = vmatprep.subr.bf16.mxu0 %v17039_v46  ;;  %v17295_v46 = vpop.f32.mrf.mxu1 }
 0x79b   :  { %13002 = vmatpush3.bf16.msra.mxu0 %v17045_v39  ;;  %v17297_v39 = vpop.f32.mrf.mxu1 }
 0x79d   :  { %v17299_v1 = vpop.f32.mrf.mxu1 }
 0x79e   :  { %4601 = vmatmul.mubr.bf16.gmra.mxu0 %v14378_v47 }
 0x79f   :  { %4608 = vmatprep.mubr.bf16.mxu0 %v14386_v25  ;;  %v17307_v50 = vpop.f32.mrf.mxu1 }
 0x7a1   :  { %v17312_v14 = vpop.f32.mrf.mxu1 }
 0x7a3   :  { %v17314_v24 = vpop.f32.mrf.mxu1 }
 0x7a5   :  { %v17318_v26 = vpop.f32.mrf.mxu1 }
 0x7a6   :  { %4609 = vmatmul.mubr.bf16.gmra.mxu0 %v14384_v59 }
 0x7a7   :  { %4616 = vmatprep.mubr.bf16.mxu0 %v14392_v13  ;;  %v17326_v2 = vpop.f32.mrf.mxu1 }
 0x7ae   :  { %4617 = vmatmul.mubr.bf16.gmra.mxu0 %v14390_v10 }
 0x7af   :  { %4624 = vmatprep.mubr.bf16.mxu0 %v14398_v33 }
 0x7b6   :  { %4625 = vmatmul.mubr.bf16.gmra.mxu0 %v14396_v3  ;;  %v14429_v3 = vld [vmem:[#allocation2 + $0x8a0] ss:$16 sps:$4 sm:$0xff]  }
 0x7b7   :  { %5008 = vmatprep.mubr.bf16.mxu0 %v14401_v18 }
 0x7bc   :  { %v17331_v36 = vpop.f32.mrf.mxu1 }
 0x7be   :  { %5009 = vmatmul.mubr.bf16.vlgmr.msra.gmra.mxu0 %v14399_v37  ;;  %v17333_v20 = vpop.f32.mrf.mxu1 }
 0x7bf   :  { %5016 = vmatprep.mubr.bf16.mxu0 %v14407_v51 }
 0x7c0   :  { %v17337_v25 = vpop.f32.mrf.mxu1 }
 0x7c2   :  { %v17345_v33 = vpop.f32.mrf.mxu1 }
 0x7c4   :  { %v17350_v18 = vpop.f32.mrf.mxu1 }
 0x7c6   :  { %5017 = vmatmul.mubr.bf16.gmra.mxu0 %v14405_v0  ;;  %v17352_v37 = vpop.f32.mrf.mxu1 }
 0x806   :  { %v13465_v60 = vpop.f32.mrf.mxu0 }
 0x807   :  { %v17302_v16 = vadd.f32 %v13465_v60, %v17063_v15  ;;  %v14413_v15 = vld [vmem:[#allocation2 + $0x844] ss:$16 sps:$4 sm:$0xff]   ;;  %v14435_v60 = vld [vmem:[#allocation2 + $0x8c0] ss:$16 sps:$4 sm:$0xff]  }
 0x808   :  { %v4167_v27 = vpop.f32.mrf.mxu0  ;;  %5024 = vmatprep.mubr.bf16.mxu0 %v14413_v15 }
 0x809   :  { %v17305_v30 = vadd.f32 %v4167_v27, %v17066_v28  ;;  %5025 = vmatmul.mubr.bf16.gmra.mxu0 %v14411_v42 }
 0x80a   :  { %v13466_v62 = vpop.f32.mrf.mxu0  ;;  %5032 = vmatprep.mubr.bf16.mxu0 %v14419_v57 }
 0x80b   :  { %v17310_v4 = vadd.f32 %v13466_v62, %v17071_v52  ;;  %v17356_v62 = vpop.f32.mrf.mxu1 }
 0x80c   :  { %v17316_v21 = vpop.f32.mrf.mxu0 }
 0x80d   :  { %17985 = vst [vmem:[#allocation61_spill] sm:$0xff] %v17316_v21  ;;  %v12888_v42 = vpop.f32.mrf.mxu1 }
 0x811   :  { %5033 = vmatmul.mubr.bf16.gmra.mxu0 %v14417_v40 }
 0x816   :  { %v13469_v28 = vpop.f32.mrf.mxu0 }
 0x817   :  { %v17321_v54 = vadd.f32 %v13469_v28, %v17082_v41  ;;  %v14425_v41 = vld [vmem:[#allocation2 + $0x884] ss:$16 sps:$4 sm:$0xff]  }
 0x818   :  { %v4183_v52 = vpop.f32.mrf.mxu0  ;;  %5040 = vmatprep.mubr.bf16.mxu0 %v14425_v41  ;;  %v14443_v28 = vld [vmem:[#allocation2 + $0x8e4] ss:$16 sps:$4 sm:$0xff]   ;;  %v17369_v41 = vpop.f32.mrf.mxu1 }
 0x819   :  { %v17324_v55 = vadd.f32 %v4183_v52, %v17085_v53  ;;  %5041 = vmatmul.mubr.bf16.gmra.mxu0 %v14423_v22 }
 0x81a   :  { %v13470_v17 = vpop.f32.mrf.mxu0  ;;  %5048 = vmatprep.mubr.bf16.mxu0 %v14431_v43 }
 0x81b   :  { %v17329_v12 = vadd.f32 %v13470_v17, %v17090_v9  ;;  %v14441_v17 = vld [vmem:[#allocation2 + $0x8e0] ss:$16 sps:$4 sm:$0xff]  }
 0x81c   :  { %v17335_v47 = vpop.f32.mrf.mxu0 }
 0x821   :  { %5049 = vmatmul.mubr.bf16.gmra.mxu0 %v14429_v3 }
 0x826   :  { %v13473_v53 = vpop.f32.mrf.mxu0 }
 0x827   :  { %v17340_v59 = vadd.f32 %v13473_v53, %v17101_v32  ;;  %v14437_v32 = vld [vmem:[#allocation2 + $0x8c4] ss:$16 sps:$4 sm:$0xff]   ;;  %v17371_v53 = vpop.f32.mrf.mxu1 }
 0x828   :  { %v4199_v9 = vpop.f32.mrf.mxu0  ;;  %5056 = vmatprep.mubr.bf16.mxu0 %v14437_v32 }
 0x829   :  { %v17343_v13 = vadd.f32 %v4199_v9, %v17104_v49  ;;  %5057 = vmatmul.mubr.bf16.gmra.mxu0 %v14435_v60  ;;  %v12893_v32 = vpop.f32.mrf.mxu1 }
 0x82a   :  { %v13474_v10 = vpop.f32.mrf.mxu0  ;;  %5064 = vmatprep.mubr.bf16.mxu0 %v14443_v28 }
 0x82b   :  { %v17348_v45 = vadd.f32 %v13474_v10, %v17109_v35  ;;  %v12868_v10 = vadd.f32 %v17297_v39, %v17295_v46  ;;  %v12877_v46 = vadd.f32 %v17326_v2, %v17318_v26 }
 0x82c   :  { %v17354_v27 = vpop.f32.mrf.mxu0 }
 0x831   :  { %5065 = vmatmul.mubr.bf16.gmra.mxu0 %v14441_v17  ;;  %v12894_v17 = vpop.f32.mrf.mxu1 }
 0x836   :  { %v13477_v49 = vpop.f32.mrf.mxu0 }
 0x837   :  { %v17359_v51 = vadd.f32 %v13477_v49, %v17120_v7 }
 0x838   :  { %v4215_v35 = vpop.f32.mrf.mxu0 }
 0x839   :  { %v17362_v0 = vadd.f32 %v4215_v35, %v17123_v23 }
 0x83a   :  { %v13478_v15 = vpop.f32.mrf.mxu0 }
 0x83b   :  { %v17365_v52 = vadd.f32 %v13478_v15, %v17128_v61  ;;  %v12871_v61 = vadd.f32 %v17307_v50, %v17299_v1  ;;  %v17382_v50 = vpop.f32.mrf.mxu1 }
 0x83c   :  { %v17367_v57 = vpop.f32.mrf.mxu0 }
 0x83e   :  { %v12930_v40 = vpop.f32.mrf.mxu0 }
 0x840   :  { %v12931_v7 = vpop.f32.mrf.mxu0 }
 0x841   :  { %v12932_v23 = vadd.f32 %v12931_v7, %v12930_v40  ;;  %v12874_v7 = vadd.f32 %v17314_v24, %v17312_v14  ;;  %v12880_v14 = vadd.f32 %v17333_v20, %v17331_v36  ;;  %v12883_v24 = vadd.f32 %v17345_v33, %v17337_v25 }
 0x842   :  { %v12933_v22 = vpop.f32.mrf.mxu0  ;;  %v12889_v20 = vadd.f32 %v12888_v42, %v17356_v62 }
 0x843   :  { %v4571_v60 = vadd.f32 %v12932_v23, %v12868_v10 }
 0x844   :  { %v12934_v9 = vpop.f32.mrf.mxu0 }
 0x845   :  { %v12935_v43 = vadd.f32 %v12934_v9, %v12933_v22 }
 0x846   :  { %v12936_v3 = vpop.f32.mrf.mxu0 }
 0x847   :  { %v4574_v49 = vadd.f32 %v12935_v43, %v12871_v61  ;;  %v12897_v43 = vpop.f32.mrf.mxu1 }
 0x848   :  { %v12937_v35 = vpop.f32.mrf.mxu0 }
 0x849   :  { %v4633_v15 = vpack.c.bf16 %v4574_v49, %v4571_v60  ;;  %v12938_v21 = vadd.f32 %v12937_v35, %v12936_v3  ;;  %v12899_v2 = vpop.f32.mrf.mxu1 }
 0x84a   :  { %v12939_v28 = vpop.f32.mrf.mxu0 }
 0x84b   :  { %13481 = vmatprep.mubr.msk.bf16.mxu1 %vm1311_vm1, %v4633_v15  ;;  %v4579_v22 = vadd.f32 %v12938_v21, %v12874_v7 }
 0x84c   :  { %v12940_v40 = vpop.f32.mrf.mxu0 }
 0x84d   :  { %v12941_v39 = vadd.f32 %v12940_v40, %v12939_v28  ;;  %v12900_v40 = vpop.f32.mrf.mxu1 }
 0x84e   :  { %v12942_v1 = vpop.f32.mrf.mxu0 }
 0x84f   :  { %v4582_v23 = vadd.f32 %v12941_v39, %v12877_v46  ;;  %v12902_v33 = vpop.f32.mrf.mxu1 }
 0x850   :  { %v12943_v9 = vpop.f32.mrf.mxu0 }
 0x851   :  { %v4634_v10 = vpack.c.bf16 %v4582_v23, %v4579_v22  ;;  %v12944_v3 = vadd.f32 %v12943_v9, %v12942_v1 }
 0x852   :  { %v12945_v61 = vpop.f32.mrf.mxu0 }
 0x853   :  { %13482 = vmatmul.mubr.msk.bf16.vlgmr.msra.gmra.mxu1 %vm1311_vm1, %v4634_v10  ;;  %v4587_v49 = vadd.f32 %v12944_v3, %v12880_v14 }
 0x854   :  { %v12946_v60 = vpop.f32.mrf.mxu0  ;;  %13052 = vmatpush3.bf16.msra.mxu1 %v17157_v11 }
 0x855   :  { %v12947_v26 = vadd.f32 %v12946_v60, %v12945_v61  ;;  %13053 = vmatprep.subr.bf16.mxu1 %v17167_v48  ;;  %v12886_v48 = vadd.f32 %v17352_v37, %v17350_v18  ;;  %v12895_v37 = vadd.f32 %v12894_v17, %v12893_v32 }
 0x856   :  { %v12948_v21 = vpop.f32.mrf.mxu0 }
 0x857   :  { %v4590_v35 = vadd.f32 %v12947_v26, %v12883_v24 }
 0x858   :  { %v12949_v15 = vpop.f32.mrf.mxu0  ;;  %13054 = vmatpush3.bf16.msra.mxu1 %v17173_v31 }
 0x859   :  { %v4635_v28 = vpack.c.bf16 %v4590_v35, %v4587_v49  ;;  %13055 = vmatprep.subr.bf16.mxu1 %v17179_v63  ;;  %v12950_v7 = vadd.f32 %v12949_v15, %v12948_v21 }
 0x85a   :  { %v12951_v11 = vpop.f32.mrf.mxu0 }
 0x85b   :  { %13485 = vmatprep.mubr.msk.bf16.mxu1 %vm1311_vm1, %v4635_v28  ;;  %v4595_v46 = vadd.f32 %v12950_v7, %v12886_v48 }
 0x85c   :  { %v12952_v36 = vpop.f32.mrf.mxu0  ;;  %13056 = vmatpush3.bf16.msra.mxu1 %v17186_v8  ;;  %v12903_v8 = vpop.f32.mrf.mxu1 }
 0x85d   :  { %v12953_v25 = vadd.f32 %v12952_v36, %v12951_v11  ;;  %13057 = vmatprep.subr.bf16.mxu1 %v17196_v6  ;;  %v12892_v6 = vadd.f32 %v17371_v53, %v17369_v41  ;;  %v12901_v53 = vadd.f32 %v12900_v40, %v12899_v2  ;;  %v12904_v28 = vadd.f32 %v12903_v8, %v12902_v33  ;;  %v14404_v33 = vld [vmem:[#allocation2 + $0x80c] ss:$16 sps:$4 sm:$0xff]  }
 0x85e   :  { %v12954_v31 = vpop.f32.mrf.mxu0 }
 0x85f   :  { %v4598_v63 = vadd.f32 %v12953_v25, %v12889_v20 }
 0x860   :  { %v12955_v39 = vpop.f32.mrf.mxu0  ;;  %13058 = vmatpush3.bf16.msra.mxu1 %v17202_v56  ;;  %v12905_v56 = vpop.f32.mrf.mxu1 }
 0x861   :  { %v4636_v1 = vpack.c.bf16 %v4598_v63, %v4595_v46  ;;  %13059 = vmatprep.subr.bf16.mxu1 %v17208_v58  ;;  %v12956_v23 = vadd.f32 %v12955_v39, %v12954_v31 }
 0x862   :  { %v12957_v22 = vpop.f32.mrf.mxu0  ;;  %v12906_v60 = vpop.f32.mrf.mxu1 }
 0x863   :  { %13486 = vmatmul.mubr.msk.bf16.gmra.mxu1 %vm1311_vm1, %v4636_v1  ;;  %v4603_v9 = vadd.f32 %v12956_v23, %v12892_v6  ;;  %v14402_v23 = vld [vmem:[#allocation2 + $0x808] ss:$16 sps:$4 sm:$0xff]  }
 0x864   :  { %v12958_v18 = vpop.f32.mrf.mxu0  ;;  %13060 = vmatpush3.bf16.msra.mxu1 %v17215_v19  ;;  %v12908_v14 = vpop.f32.mrf.mxu1  ;;  %v14408_v6 = vld [vmem:[#allocation2 + $0x828] ss:$16 sps:$4 sm:$0xff]  }
 0x865   :  { %v12959_v62 = vadd.f32 %v12958_v18, %v12957_v22  ;;  %13061 = vmatprep.subr.bf16.mxu1 %v17225_v5  ;;  %v12898_v5 = vadd.f32 %v12897_v43, %v17382_v50  ;;  %v12907_v50 = vadd.f32 %v12906_v60, %v12905_v56  ;;  %v14410_v18 = vld [vmem:[#allocation2 + $0x82c] ss:$16 sps:$4 sm:$0xff]   ;;  %v14420_v56 = vld [vmem:[#allocation2 + $0x868] ss:$16 sps:$4 sm:$0xff]  }
 0x866   :  { %v12960_v42 = vpop.f32.mrf.mxu0  ;;  %v12909_v49 = vpop.f32.mrf.mxu1  ;;  %v14438_v60 = vld [vmem:[#allocation2 + $0x8c8] ss:$16 sps:$4 sm:$0xff]  }
 0x867   :  { %v4606_v10 = vadd.f32 %v12959_v62, %v12895_v37  ;;  %v12910_v46 = vadd.f32 %v12909_v49, %v12908_v14  ;;  %v14416_v37 = vld [vmem:[#allocation2 + $0x84c] ss:$16 sps:$4 sm:$0xff]   ;;  %v14414_v62 = vld [vmem:[#allocation2 + $0x848] ss:$16 sps:$4 sm:$0xff]  }
 0x868   :  { %v12961_v58 = vpop.f32.mrf.mxu0  ;;  %13062 = vmatpush3.bf16.msra.mxu1 %v17231_v34  ;;  %v12911_v2 = vpop.f32.mrf.mxu1 }
 0x869   :  { %v4637_v61 = vpack.c.bf16 %v4606_v10, %v4603_v9  ;;  %13063 = vmatprep.subr.bf16.mxu1 %v17237_v38  ;;  %v12962_v19 = vadd.f32 %v12961_v58, %v12960_v42  ;;  %v17986_v38 = vld [vmem:[#allocation58_spill] sm:$0xff] }
 0x86a   :  { %v12963_v3 = vpop.f32.mrf.mxu0  ;;  %v12912_v48 = vpop.f32.mrf.mxu1  ;;  %v14422_v42 = vld [vmem:[#allocation2 + $0x86c] ss:$16 sps:$4 sm:$0xff]   ;;  %v14426_v10 = vld [vmem:[#allocation2 + $0x888] ss:$16 sps:$4 sm:$0xff]  }
 0x86b   :  { %13489 = vmatprep.mubr.msk.bf16.mxu1 %vm1311_vm1, %v4637_v61  ;;  %v4611_v34 = vadd.f32 %v12962_v19, %v12898_v5  ;;  %v12913_v63 = vadd.f32 %v12912_v48, %v12911_v2  ;;  %v14428_v9 = vld [vmem:[#allocation2 + $0x88c] ss:$16 sps:$4 sm:$0xff]   ;;  %v14432_v61 = vld [vmem:[#allocation2 + $0x8a8] ss:$16 sps:$4 sm:$0xff]  }
 0x86c   :  { %v12964_v41 = vpop.f32.mrf.mxu0  ;;  %13064 = vmatpush3.bf16.msra.mxu1 %v17244_v44  ;;  %v14434_v58 = vld [vmem:[#allocation2 + $0x8ac] ss:$16 sps:$4 sm:$0xff]  }
 0x86d   :  { %v12965_v32 = vadd.f32 %v12964_v41, %v12963_v3  ;;  %13065 = vmatprep.subr.bf16.mxu1 %v17252_v29  ;;  %v14440_v3 = vld [vmem:[#allocation2 + $0x8cc] ss:$16 sps:$4 sm:$0xff]   ;;  %v5179_v41 = vld [vmem:[#allocation4 + $0x20] sm:$0xf] }
 0x86e   :  { %v12966_v17 = vpop.f32.mrf.mxu0  ;;  %v14446_v19 = vld [vmem:[#allocation2 + $0x8ec] ss:$16 sps:$4 sm:$0xff]   ;;  %13955 = vmatprep.subr.msk.bf16.mxu0 %vm1336_vm0, %v5179_v41  ;;  %v5205_v5 = vsel %vm1336_vm0, %v5179_v41, 0 }
 0x86f   :  { %v4614_v24 = vadd.f32 %v12965_v32, %v12901_v53  ;;  %13498 = vmatpush3.bf16.msra.mxu0 %v5205_v5  ;;  %v14444_v53 = vld [vmem:[#allocation2 + $0x8e8] ss:$16 sps:$4 sm:$0xff]  }
 0x870   :  { %v12967_v26 = vpop.f32.mrf.mxu0  ;;  %13066 = vmatpush3.bf16.msra.mxu1 %v17986_v38 }
 0x871   :  { %v4638_v21 = vpack.c.bf16 %v4614_v24, %v4611_v34  ;;  %v12968_v15 = vadd.f32 %v12967_v26, %v12966_v17 }
 0x872   :  { %v12969_v35 = vpop.f32.mrf.mxu0 }
 0x873   :  { %13490 = vmatmul.mubr.msk.bf16.gmra.mxu1 %vm1311_vm1, %v4638_v21  ;;  %v4619_v29 = vadd.f32 %v12968_v15, %v12904_v28 }
 0x874   :  { %v12970_v44 = vpop.f32.mrf.mxu0 }
 0x875   :  { %v12971_v43 = vadd.f32 %v12970_v44, %v12969_v35 }
 0x876   :  { %v12972_v11 = vpop.f32.mrf.mxu0 }
 0x877   :  { %v4622_v40 = vadd.f32 %v12971_v43, %v12907_v50 }
 0x878   :  { %v12973_v7 = vpop.f32.mrf.mxu0 }
 0x879   :  { %v4639_v36 = vpack.c.bf16 %v4622_v40, %v4619_v29  ;;  %v12974_v25 = vadd.f32 %v12973_v7, %v12972_v11 }
 0x87a   :  { %v12975_v20 = vpop.f32.mrf.mxu0 }
 0x87b   :  { %13493 = vmatprep.mubr.msk.bf16.mxu1 %vm1311_vm1, %v4639_v36  ;;  %v4627_v1 = vadd.f32 %v12974_v25, %v12910_v46 }
 0x87c   :  { %v12976_v31 = vpop.f32.mrf.mxu0 }
 0x87d   :  { %v12977_v39 = vadd.f32 %v12976_v31, %v12975_v20 }
 0x87e   :  { %v13003_v32 = vpop.f32.mrf.mxu0 }
 0x87f   :  { %v4630_v22 = vadd.f32 %v12977_v39, %v12913_v63 }
 0x880   :  { %v13004_v17 = vpop.f32.mrf.mxu0 }
 0x881   :  { %v4640_v8 = vpack.c.bf16 %v4630_v22, %v4627_v1 }
 0x882   :  { %v13006_v34 = vpop.f32.mrf.mxu0 }
 0x883   :  { %13494 = vmatmul.mubr.msk.bf16.gmra.mxu1 %vm1311_vm1, %v4640_v8 }
 0x884   :  { %5105 = vmatprep.mubr.bf16.mxu1 %v14404_v33  ;;  %v13007_v49 = vpop.f32.mrf.mxu0 }
 0x886   :  { %v13009_v15 = vpop.f32.mrf.mxu0 }
 0x888   :  { %v13010_v44 = vpop.f32.mrf.mxu0 }
 0x88a   :  { %v13012_v43 = vpop.f32.mrf.mxu0 }
 0x88b   :  { %5106 = vmatmul.mubr.bf16.vlgmr.msra.gmra.mxu1 %v14402_v23 }
 0x88c   :  { %5113 = vmatprep.mubr.bf16.mxu1 %v14410_v18  ;;  %v13013_v29 = vpop.f32.mrf.mxu0 }
 0x893   :  { %5114 = vmatmul.mubr.bf16.gmra.mxu1 %v14408_v6 }
 0x894   :  { %5121 = vmatprep.mubr.bf16.mxu1 %v14416_v37 }
 0x89b   :  { %5122 = vmatmul.mubr.bf16.gmra.mxu1 %v14414_v62 }
 0x89c   :  { %5129 = vmatprep.mubr.bf16.mxu1 %v14422_v42 }
 0x8a3   :  { %5130 = vmatmul.mubr.bf16.gmra.mxu1 %v14420_v56 }
 0x8a4   :  { %5137 = vmatprep.mubr.bf16.mxu1 %v14428_v9 }
 0x8ab   :  { %5138 = vmatmul.mubr.bf16.gmra.mxu1 %v14426_v10 }
 0x8ac   :  { %5145 = vmatprep.mubr.bf16.mxu1 %v14434_v58 }
 0x8b3   :  { %5146 = vmatmul.mubr.bf16.gmra.mxu1 %v14432_v61  ;;  %v13008_v61 = vadd.f32 %v13007_v49, %v13006_v34 }
 0x8b4   :  { %5153 = vmatprep.mubr.bf16.mxu1 %v14440_v3 }
 0x8bb   :  { %5154 = vmatmul.mubr.bf16.gmra.mxu1 %v14438_v60 }
 0x8bc   :  { %5161 = vmatprep.mubr.bf16.mxu1 %v14446_v19 }
 0x8c3   :  { %5162 = vmatmul.mubr.bf16.gmra.mxu1 %v14444_v53 }
 0x913   :  { %v13483_v14 = vpop.f32.mrf.mxu1 }
 0x914   :  { %v17419_v24 = vadd.f32 %v13483_v14, %v17302_v16 }
 0x915   :  { %v4704_v26 = vpop.f32.mrf.mxu1 }
 0x916   :  { %v17422_v38 = vadd.f32 %v4704_v26, %v17305_v30 }
 0x917   :  { %v13484_v21 = vpop.f32.mrf.mxu1 }
 0x918   :  { %v17425_v35 = vadd.f32 %v13484_v21, %v17310_v4  ;;  %v13015_v4 = vpop.f32.mrf.mxu0 }
 0x919   :  { %v17427_v28 = vpop.f32.mrf.mxu1 }
 0x91a   :  { %v13016_v7 = vpop.f32.mrf.mxu0 }
 0x91c   :  { %v13018_v20 = vpop.f32.mrf.mxu0 }
 0x91e   :  { %v13019_v46 = vpop.f32.mrf.mxu0 }
 0x923   :  { %v13487_v50 = vpop.f32.mrf.mxu1 }
 0x924   :  { %v17430_v2 = vadd.f32 %v13487_v50, %v17321_v54  ;;  %v13011_v50 = vadd.f32 %v13010_v44, %v13009_v15 }
 0x925   :  { %v4720_v16 = vpop.f32.mrf.mxu1 }
 0x926   :  { %v17433_v11 = vadd.f32 %v4720_v16, %v17324_v55  ;;  %v13014_v16 = vadd.f32 %v13013_v29, %v13012_v43 }
 0x927   :  { %v13488_v30 = vpop.f32.mrf.mxu1 }
 0x928   :  { %v17436_v40 = vadd.f32 %v13488_v30, %v17329_v12  ;;  %v13021_v12 = vpop.f32.mrf.mxu0 }
 0x929   :  { %v17438_v36 = vpop.f32.mrf.mxu1 }
 0x92a   :  { %v13022_v39 = vpop.f32.mrf.mxu0 }
 0x92c   :  { %v13024_v33 = vpop.f32.mrf.mxu0 }
 0x92e   :  { %v13025_v18 = vpop.f32.mrf.mxu0 }
 0x930   :  { %v13027_v62 = vpop.f32.mrf.mxu0 }
 0x932   :  { %v13028_v9 = vpop.f32.mrf.mxu0 }
 0x933   :  { %v13491_v48 = vpop.f32.mrf.mxu1 }
 0x934   :  { %v17441_v25 = vadd.f32 %v13491_v48, %v17340_v59 }
 0x935   :  { %v4736_v54 = vpop.f32.mrf.mxu1 }
 0x936   :  { %v17444_v31 = vadd.f32 %v4736_v54, %v17343_v13 }
 0x937   :  { %v13492_v55 = vpop.f32.mrf.mxu1 }
 0x938   :  { %v17447_v63 = vadd.f32 %v13492_v55, %v17348_v45 }
 0x939   :  { %v17449_v1 = vpop.f32.mrf.mxu1 }
 0x943   :  { %v13495_v22 = vpop.f32.mrf.mxu1 }
 0x944   :  { %v17452_v8 = vadd.f32 %v13495_v22, %v17359_v51  ;;  %v13005_v51 = vadd.f32 %v13004_v17, %v13003_v32 }
 0x945   :  { %v4752_v59 = vpop.f32.mrf.mxu1 }
 0x946   :  { %v17455_v23 = vadd.f32 %v4752_v59, %v17362_v0  ;;  %v13030_v0 = vpop.f32.mrf.mxu0 }
 0x947   :  { %v13496_v13 = vpop.f32.mrf.mxu1 }
 0x948   :  { %v17458_v6 = vadd.f32 %v13496_v13, %v17365_v52  ;;  %v13031_v14 = vpop.f32.mrf.mxu0 }
 0x949   :  { %v17460_v45 = vpop.f32.mrf.mxu1 }
 0x94a   :  { %v13033_v54 = vpop.f32.mrf.mxu0 }
 0x94b   :  { %v13067_v37 = vpop.f32.mrf.mxu1 }
 0x94c   :  { %v13034_v22 = vpop.f32.mrf.mxu0 }
 0x94d   :  { %v13068_v42 = vpop.f32.mrf.mxu1 }
 0x94e   :  { %v13069_v10 = vadd.f32 %v13068_v42, %v13067_v37  ;;  %v13017_v37 = vadd.f32 %v13016_v7, %v13015_v4  ;;  %v13020_v42 = vadd.f32 %v13019_v46, %v13018_v20 }
 0x94f   :  { %v13070_v56 = vpop.f32.mrf.mxu1 }
 0x950   :  { %v5108_v19 = vadd.f32 %v13069_v10, %v13005_v51 }
 0x951   :  { %v13071_v58 = vpop.f32.mrf.mxu1 }
 0x952   :  { %v13072_v3 = vadd.f32 %v13071_v58, %v13070_v56  ;;  %v13036_v58 = vpop.f32.mrf.mxu0 }
 0x953   :  { %v13073_v60 = vpop.f32.mrf.mxu1 }
 0x954   :  { %v5111_v41 = vadd.f32 %v13072_v3, %v13008_v61  ;;  %v13037_v61 = vpop.f32.mrf.mxu0 }
 0x955   :  { %v13074_v5 = vpop.f32.mrf.mxu1 }
 0x956   :  { %v5170_v53 = vpack.c.bf16 %v5111_v41, %v5108_v19  ;;  %v13075_v26 = vadd.f32 %v13074_v5, %v13073_v60  ;;  %v13023_v19 = vadd.f32 %v13022_v39, %v13021_v12  ;;  %v13026_v41 = vadd.f32 %v13025_v18, %v13024_v33 }
 0x957   :  { %v13076_v52 = vpop.f32.mrf.mxu1 }
 0x958   :  { %13499 = vmatprep.mubr.msk.bf16.mxu0 %vm1311_vm1, %v5170_v53  ;;  %v5116_v32 = vadd.f32 %v13075_v26, %v13011_v50 }
 0x959   :  { %v13077_v21 = vpop.f32.mrf.mxu1 }
 0x95a   :  { %v13078_v30 = vadd.f32 %v13077_v21, %v13076_v52  ;;  %v13039_v52 = vpop.f32.mrf.mxu0 }
 0x95b   :  { %v13079_v48 = vpop.f32.mrf.mxu1 }
 0x95c   :  { %v5119_v17 = vadd.f32 %v13078_v30, %v13014_v16  ;;  %v13040_v21 = vpop.f32.mrf.mxu0  ;;  %v13029_v30 = vadd.f32 %v13028_v9, %v13027_v62 }
 0x95d   :  { %v13080_v34 = vpop.f32.mrf.mxu1 }
 0x95e   :  { %v5171_v49 = vpack.c.bf16 %v5119_v17, %v5116_v32  ;;  %v13081_v59 = vadd.f32 %v13080_v34, %v13079_v48  ;;  %v13032_v48 = vadd.f32 %v13031_v14, %v13030_v0  ;;  %v13042_v34 = vpop.f32.mrf.mxu0 }
 0x95f   :  { %v13082_v55 = vpop.f32.mrf.mxu1 }
 0x960   :  { %13500 = vmatmul.mubr.msk.bf16.vlgmr.msra.gmra.mxu0 %vm1311_vm1, %v5171_v49  ;;  %v5124_v15 = vadd.f32 %v13081_v59, %v13017_v37  ;;  %v13035_v37 = vadd.f32 %v13034_v22, %v13033_v54 }
 0x961   :  { %v13083_v13 = vpop.f32.mrf.mxu1 }
 0x962   :  { %v13084_v56 = vadd.f32 %v13083_v13, %v13082_v55  ;;  %v13043_v55 = vpop.f32.mrf.mxu0 }
 0x963   :  { %v13085_v10 = vpop.f32.mrf.mxu1 }
 0x964   :  { %v5127_v44 = vadd.f32 %v13084_v56, %v13020_v42  ;;  %v13038_v42 = vadd.f32 %v13037_v61, %v13036_v58 }
 0x965   :  { %v13086_v43 = vpop.f32.mrf.mxu1 }
 0x966   :  { %v5172_v29 = vpack.c.bf16 %v5127_v44, %v5124_v15  ;;  %v13087_v3 = vadd.f32 %v13086_v43, %v13085_v10  ;;  %v13045_v15 = vpop.f32.mrf.mxu0 }
 0x967   :  { %v13088_v51 = vpop.f32.mrf.mxu1 }
 0x968   :  { %13503 = vmatprep.mubr.msk.bf16.mxu0 %vm1311_vm1, %v5172_v29  ;;  %v5132_v4 = vadd.f32 %v13087_v3, %v13023_v19  ;;  %v13046_v44 = vpop.f32.mrf.mxu0  ;;  %v13041_v3 = vadd.f32 %v13040_v21, %v13039_v52  ;;  %v14447_v21 = vld [vmem:[#allocation7] sm:$0xff]  }
 0x969   :  { %v13089_v60 = vpop.f32.mrf.mxu1  ;;  %13531 = vmatprep.mubr.bf16.mxu1 %v14447_v21 }
 0x96a   :  { %v13090_v5 = vadd.f32 %v13089_v60, %v13088_v51  ;;  %v13044_v60 = vadd.f32 %v13043_v55, %v13042_v34  ;;  %v17471_v34 = vld [vmem:[#allocation6] ss:$0 sm:$0xff] }
 0x96b   :  { %v13091_v53 = vpop.f32.mrf.mxu1 }
 0x96c   :  { %v5135_v7 = vadd.f32 %v13090_v5, %v13026_v41  ;;  %v13048_v41 = vpop.f32.mrf.mxu0 }
 0x96d   :  { %v13092_v20 = vpop.f32.mrf.mxu1 }
 0x96e   :  { %v5173_v46 = vpack.c.bf16 %v5135_v7, %v5132_v4  ;;  %v13093_v50 = vadd.f32 %v13092_v20, %v13091_v53  ;;  %v13049_v53 = vpop.f32.mrf.mxu0 }
 0x96f   :  { %v13094_v26 = vpop.f32.mrf.mxu1 }
 0x970   :  { %13504 = vmatmul.mubr.msk.bf16.gmra.mxu0 %vm1311_vm1, %v5173_v46  ;;  %v5140_v12 = vadd.f32 %v13093_v50, %v13029_v30  ;;  %v13047_v46 = vadd.f32 %v13046_v44, %v13045_v15 }
 0x971   :  { %v13095_v16 = vpop.f32.mrf.mxu1 }
 0x972   :  { %v13096_v32 = vadd.f32 %v13095_v16, %v13094_v26  ;;  %v13050_v26 = vadd.f32 %v13049_v53, %v13048_v41  ;;  %v17988_v41 = vld [vmem:[#allocation39_spill] sm:$0xff] }
 0x973   :  { %v13097_v17 = vpop.f32.mrf.mxu1 }
 0x974   :  { %v5143_v39 = vadd.f32 %v13096_v32, %v13032_v48  ;;  %v14448_v48 = vld [vmem:[#allocation7 + $0x10] sm:$0xff]  }
 0x975   :  { %v13098_v33 = vpop.f32.mrf.mxu1 }
 0x976   :  { %v5174_v18 = vpack.c.bf16 %v5143_v39, %v5140_v12  ;;  %v13099_v59 = vadd.f32 %v13098_v33, %v13097_v17 }
 0x977   :  { %v13100_v49 = vpop.f32.mrf.mxu1 }
 0x978   :  { %13507 = vmatprep.mubr.msk.bf16.mxu0 %vm1311_vm1, %v5174_v18  ;;  %v5148_v62 = vadd.f32 %v13099_v59, %v13035_v37 }
 0x979   :  { %v13101_v13 = vpop.f32.mrf.mxu1 }
 0x97a   :  { %v13102_v56 = vadd.f32 %v13101_v13, %v13100_v49 }
 0x97b   :  { %v13103_v10 = vpop.f32.mrf.mxu1 }
 0x97c   :  { %v5151_v9 = vadd.f32 %v13102_v56, %v13038_v42 }
 0x97d   :  { %v13104_v0 = vpop.f32.mrf.mxu1 }
 0x97e   :  { %v5175_v14 = vpack.c.bf16 %v5151_v9, %v5148_v62  ;;  %v13105_v29 = vadd.f32 %v13104_v0, %v13103_v10 }
 0x97f   :  { %v13106_v43 = vpop.f32.mrf.mxu1 }
 0x980   :  { %13508 = vmatmul.mubr.msk.bf16.gmra.mxu0 %vm1311_vm1, %v5175_v14  ;;  %v5156_v54 = vadd.f32 %v13105_v29, %v13041_v3 }
 0x981   :  { %v13107_v51 = vpop.f32.mrf.mxu1 }
 0x982   :  { %v13108_v19 = vadd.f32 %v13107_v51, %v13106_v43 }
 0x983   :  { %v13109_v5 = vpop.f32.mrf.mxu1 }
 0x984   :  { %v5159_v22 = vadd.f32 %v13108_v19, %v13044_v60 }
 0x985   :  { %v13110_v58 = vpop.f32.mrf.mxu1 }
 0x986   :  { %v5176_v61 = vpack.c.bf16 %v5159_v22, %v5156_v54  ;;  %v13111_v7 = vadd.f32 %v13110_v58, %v13109_v5  ;;  %v17989_v58 = vld [vmem:[#allocation42_spill] sm:$0xff] }
 0x987   :  { %v13112_v4 = vpop.f32.mrf.mxu1 }
 0x988   :  { %13511 = vmatprep.mubr.msk.bf16.mxu0 %vm1311_vm1, %v5176_v61  ;;  %v5164_v16 = vadd.f32 %v13111_v7, %v13047_v46  ;;  %v17990_v61 = vld [vmem:[#allocation38_spill] sm:$0xff] }
 0x989   :  { %v13113_v20 = vpop.f32.mrf.mxu1  ;;  %v1534_v53 = vadd.f32 %v17990_v61, %v17989_v58  ;;  %v18004_v61 = vld [vmem:[#allocation40_spill] sm:$0xff] }
 0x98a   :  { %v13114_v50 = vadd.f32 %v13113_v20, %v13112_v4  ;;  %v17991_v4 = vld [vmem:[#allocation51_spill] sm:$0xff] }
 0x98c   :  { %v5167_v30 = vadd.f32 %v13114_v50, %v13050_v26  ;;  %v17993_v26 = vld [vmem:[#allocation49_spill] sm:$0xff] }
 0x98e   :  { %v5177_v52 = vpack.c.bf16 %v5167_v30, %v5164_v16 }
 0x990   :  { %13512 = vmatmul.mubr.msk.bf16.gmra.mxu0 %vm1311_vm1, %v5177_v52  ;;  %v17995_v52 = vld [vmem:[#allocation59_spill] sm:$0xff] }
 0x991   :  { %13551 = vmatprep.mubr.bf16.mxu0 %v14448_v48 }
 0xa20   :  { %v13501_v32 = vpop.f32.mrf.mxu0 }
 0xa21   :  { %v5306_v17 = vadd.f32 %v13501_v32, %v17419_v24  ;;  %v17996_v32 = vld [vmem:[#allocation56_spill] sm:$0xff] }
 0xa22   :  { %v17473_v12 = vpop.f32.mrf.mxu0 }
 0xa23   :  { %v5329_v33 = vadd.f32 %v17471_v34, %v5306_v17 }
 0xa24   :  { %v13502_v39 = vpop.f32.mrf.mxu0 }
 0xa25   :  { %v5307_v18 = vadd.f32 %v13502_v39, %v17425_v35  ;;  %v5345_v55 = vmax.f32 %v5329_v33, 0.0  ;;  %v17997_v39 = vld [vmem:[#allocation57_spill] sm:$0xff] }
 0xa26   :  { %v17480_v37 = vpop.f32.mrf.mxu0 }
 0xa27   :  { %v5330_v49 = vadd.f32 %v17471_v34, %v5307_v18 }
 0xa29   :  { %v5346_v59 = vmax.f32 %v5330_v49, 0.0  ;;  %v17998_v49 = vld [vmem:[#allocation41_spill] sm:$0xff] }
 0xa2b   :  { %v17478_v13 = vpack.c.bf16 %v5346_v59, %v5345_v55  ;;  %v17999_v55 = vld [vmem:[#allocation37_spill] sm:$0xff] }
 0xa2c   :  { %v1518_v59 = vadd.f32 %v17999_v55, %v17998_v49  ;;  %v18011_v55 = vld [vmem:[#allocation61_spill] sm:$0xff] }
 0xa30   :  { %v13505_v42 = vpop.f32.mrf.mxu0 }
 0xa31   :  { %v5310_v24 = vadd.f32 %v13505_v42, %v17430_v2 }
 0xa32   :  { %v17483_v56 = vpop.f32.mrf.mxu0 }
 0xa33   :  { %v5333_v15 = vadd.f32 %v17471_v34, %v5310_v24  ;;  %v18000_v24 = vld [vmem:[#allocation60_spill] sm:$0xff] }
 0xa34   :  { %v13506_v10 = vpop.f32.mrf.mxu0 }
 0xa35   :  { %v5311_v62 = vadd.f32 %v13506_v10, %v17436_v40  ;;  %v5349_v9 = vmax.f32 %v5333_v15, 0.0  ;;  %v17987_v40 = vld [vmem:[#allocation43_spill] sm:$0xff] }
 0xa36   :  { %v17490_v44 = vpop.f32.mrf.mxu0  ;;  %v1550_v5 = vadd.f32 %v17988_v41, %v17987_v40 }
 0xa37   :  { %v5334_v35 = vadd.f32 %v17471_v34, %v5311_v62 }
 0xa38   :  { %v2095_v7 = vadd.f32 %v17991_v4, %v1550_v5  ;;  %v18003_v5 = vld [vmem:[#allocation55_spill] sm:$0xff]  ;;  %v18006_v4 = vld [vmem:[#allocation53_spill] sm:$0xff] }
 0xa39   :  { %v5350_v0 = vmax.f32 %v5334_v35, 0.0  ;;  %v18001_v35 = vld [vmem:[#allocation47_spill] sm:$0xff] }
 0xa3a   :  { %v2632_v50 = vadd.f32 %v17993_v26, %v2095_v7 }
 0xa3b   :  { %v17488_v14 = vpack.c.bf16 %v5350_v0, %v5349_v9  ;;  %v2087_v9 = vadd.f32 %v18001_v35, %v1518_v59 }
 0xa3c   :  { %v3169_v21 = vadd.f32 %v17995_v52, %v2632_v50  ;;  %v18007_v50 = vld [vmem:[#allocation46_spill] sm:$0xff] }
 0xa3e   :  { %v3706_v33 = vadd.f32 %v17997_v39, %v3169_v21 }
 0xa40   :  { %v13509_v43 = vpop.f32.mrf.mxu0  ;;  %v4243_v15 = vadd.f32 %v17367_v57, %v3706_v33  ;;  %v18010_v33 = vld [vmem:[#allocation50_spill] sm:$0xff] }
 0xa41   :  { %v5314_v29 = vadd.f32 %v13509_v43, %v17441_v25  ;;  %v17992_v25 = vld [vmem:[#allocation48_spill] sm:$0xff] }
 0xa42   :  { %v5273_v51 = vpop.f32.mrf.mxu0  ;;  %v2091_v46 = vadd.f32 %v17992_v25, %v1534_v53  ;;  %v18005_v53 = vld [vmem:[#allocation36_spill] sm:$0xff] }
 0xa43   :  { %v5337_v3 = vadd.f32 %v17471_v34, %v5314_v29  ;;  %v4780_v29 = vadd.f32 %v17460_v45, %v4243_v15  ;;  %v5312_v25 = vadd.f32 %v5273_v51, %v17444_v31  ;;  %v18008_v31 = vld [vmem:[#allocation44_spill] sm:$0xff]  ;;  %v5304_v15 = vadd.f32 %v17473_v12, %v17422_v38 }
 0xa44   :  { %v13510_v2 = vpop.f32.mrf.mxu0 }
 0xa45   :  { %v5315_v60 = vadd.f32 %v13510_v2, %v17447_v63  ;;  %v5353_v54 = vmax.f32 %v5337_v3, 0.0  ;;  %v17994_v63 = vld [vmem:[#allocation52_spill] sm:$0xff]  ;;  %v18002_v3 = vld [vmem:[#allocation45_spill] sm:$0xff] }
 0xa46   :  { %v5276_v16 = vpop.f32.mrf.mxu0  ;;  %v2628_v30 = vadd.f32 %v17994_v63, %v2091_v46 }
 0xa47   :  { %v5338_v19 = vadd.f32 %v17471_v34, %v5315_v60  ;;  %v2624_v60 = vadd.f32 %v18002_v3, %v2087_v9  ;;  %v14453_v3 = vld [vmem:[#allocation9 + $0x68] sm:$0xff]  }
 0xa48   :  { %v3165_v17 = vadd.f32 %v17996_v32, %v2628_v30 }
 0xa49   :  { %v5354_v22 = vmax.f32 %v5338_v19, 0.0 }
 0xa4a   :  { %v3702_v10 = vadd.f32 %v18000_v24, %v3165_v17 }
 0xa4b   :  { %v17501_v20 = vpack.c.bf16 %v5354_v22, %v5353_v54  ;;  %v3161_v54 = vadd.f32 %v18003_v5, %v2624_v60  ;;  %v14461_v60 = vld [vmem:[#allocation9 + $0x28] sm:$0xff]   ;;  %v14464_v5 = vld [vmem:[#allocation9 + $0x10] sm:$0xff]  }
 0xa4c   :  { %v4239_v43 = vadd.f32 %v17354_v27, %v3702_v10 }
 0xa4d   :  { %v3698_v7 = vadd.f32 %v18006_v4, %v3161_v54  ;;  %v14457_v54 = vld [vmem:[#allocation9 + $0x48] sm:$0xff]  }
 0xa4e   :  { %v4776_v40 = vadd.f32 %v17449_v1, %v4239_v43  ;;  %v14449_v43 = vld [vmem:[#allocation7 + $0x8] sm:$0xff]  }
 0xa4f   :  { %v4235_v30 = vadd.f32 %v17335_v47, %v3698_v7  ;;  %v18009_v47 = vld [vmem:[#allocation54_spill] sm:$0xff] }
 0xa50   :  { %v13513_v48 = vpop.f32.mrf.mxu0  ;;  %v5313_v22 = vadd.f32 %v5276_v16, %v4776_v40  ;;  %v14462_v40 = vld [vmem:[#allocation9 + $0x20] sm:$0xff]  }
 0xa51   :  { %v5318_v18 = vadd.f32 %v13513_v48, %v17452_v8  ;;  %v4772_v21 = vadd.f32 %v17438_v36, %v4235_v30  ;;  %v5335_v48 = vadd.f32 %v17471_v34, %v5312_v25  ;;  %v5308_v36 = vadd.f32 %v17483_v56, %v17433_v11  ;;  %v14467_v30 = vld [vmem:[#allocation7 + $0x20] sm:$0xff]  }
 0xa52   :  { %v5289_v42 = vpop.f32.mrf.mxu0  ;;  %v5336_v16 = vadd.f32 %v17471_v34, %v5313_v22  ;;  %v14458_v22 = vld [vmem:[#allocation9 + $0x40] sm:$0xff]  }
 0xa53   :  { %v5316_v62 = vadd.f32 %v5289_v42, %v17455_v23  ;;  %v5341_v2 = vadd.f32 %v17471_v34, %v5318_v18  ;;  %v5309_v17 = vadd.f32 %v17490_v44, %v4772_v21  ;;  %v5351_v49 = vmax.f32 %v5335_v48, 0.0  ;;  %v14470_v21 = vld [vmem:[#allocation7 + $0x38] sm:$0xff]   ;;  %v14471_v48 = vld [vmem:[#allocation7 + $0x40] sm:$0xff]  }
 0xa54   :  { %v13514_v0 = vpop.f32.mrf.mxu0  ;;  %v5352_v39 = vmax.f32 %v5336_v16, 0.0  ;;  %v5331_v10 = vadd.f32 %v17471_v34, %v5308_v36  ;;  %v14484_v36 = vld [vmem:[#allocation9 + $0x90] sm:$0xff]  }
 0xa55   :  { %v5319_v8 = vadd.f32 %v13514_v0, %v17458_v6  ;;  %v5339_v57 = vadd.f32 %v17471_v34, %v5316_v62  ;;  %v5357_v27 = vmax.f32 %v5341_v2, 0.0  ;;  %v1502_v6 = vadd.f32 %v18005_v53, %v18004_v61  ;;  %v14459_v0 = vld [vmem:[#allocation9 + $0x38] sm:$0xff]   ;;  %v14452_v2 = vld [vmem:[#allocation9 + $0x70] sm:$0xff]  }
 0xa56   :  { %v5292_v19 = vpop.f32.mrf.mxu0  ;;  %v5332_v42 = vadd.f32 %v17471_v34, %v5309_v17  ;;  %v17557_v44 = vpack.c.bf16 %v5352_v39, %v5351_v49  ;;  %v5347_v62 = vmax.f32 %v5331_v10, 0.0  ;;  %v14481_v17 = vld [vmem:[#allocation9 + $0xa8] sm:$0xff]   ;;  %v14482_v39 = vld [vmem:[#allocation9 + $0xa0] sm:$0xff]   ;;  %v14475_v10 = vld [vmem:[#allocation7 + $0x60] sm:$0xff]  }
 0xa57   :  { %v5342_v23 = vadd.f32 %v17471_v34, %v5319_v8  ;;  %v5317_v41 = vadd.f32 %v5292_v19, %v4780_v29  ;;  %v5355_v1 = vmax.f32 %v5339_v57, 0.0  ;;  %v2083_v63 = vadd.f32 %v18007_v50, %v1502_v6  ;;  %v14450_v29 = vld [vmem:[#allocation7 + $0x18] sm:$0xff]   ;;  %v14460_v8 = vld [vmem:[#allocation9 + $0x30] sm:$0xff]   ;;  %v14454_v19 = vld [vmem:[#allocation9 + $0x60] sm:$0xff]  }
 0xa58   :  { %v5348_v56 = vmax.f32 %v5332_v42, 0.0  ;;  %v14455_v57 = vld [vmem:[#allocation9 + $0x58] sm:$0xff]   ;;  %v14473_v49 = vld [vmem:[#allocation7 + $0x50] sm:$0xff]  }
 0xa59   :  { %v5358_v58 = vmax.f32 %v5342_v23, 0.0  ;;  %v5340_v45 = vadd.f32 %v17471_v34, %v5317_v41  ;;  %v2620_v51 = vadd.f32 %v18008_v31, %v2083_v63  ;;  %v14463_v23 = vld [vmem:[#allocation9 + $0x18] sm:$0xff]   ;;  %v14456_v41 = vld [vmem:[#allocation9 + $0x50] sm:$0xff]  }
 0xa5a   :  { %v17573_v35 = vpack.c.bf16 %v5348_v56, %v5347_v62  ;;  %v14468_v31 = vld [vmem:[#allocation7 + $0x28] sm:$0xff]   ;;  %v14477_v56 = vld [vmem:[#allocation7 + $0x70] sm:$0xff]   ;;  %v14485_v62 = vld [vmem:[#allocation7 + $0x80] sm:$0xff]  }
 0xa5b   :  { %v17530_v46 = vpack.c.bf16 %v5358_v58, %v5357_v27  ;;  %v5356_v26 = vmax.f32 %v5340_v45, 0.0  ;;  %v3157_v32 = vadd.f32 %v18009_v47, %v2620_v51  ;;  %v14465_v27 = vld [vmem:[#allocation9 + $0x8] sm:$0xff]   ;;  %v14466_v58 = vld [vmem:[#allocation9] sm:$0xff]   ;;  %v14479_v47 = vld [vmem:[#allocation9 + $0xb8] sm:$0xff]  }
 0xa5c   :  { %v14469_v51 = vld [vmem:[#allocation7 + $0x30] sm:$0xff]   ;;  %v17645_v42 = vld [vmem:[#allocation9 + $0xf8] sm:$0xff]  }
 0xa5d   :  { %v17535_v52 = vpack.c.bf16 %v5356_v26, %v5355_v1  ;;  %13515 = vmatprep.subr.bf16.mxu1 %v17530_v46  ;;  %13535 = vmatprep.subr.bf16.mxu0 %v17530_v46  ;;  %v3694_v18 = vadd.f32 %v18010_v33, %v3157_v32  ;;  %v14480_v32 = vld [vmem:[#allocation9 + $0xb0] sm:$0xff]   ;;  %v14483_v33 = vld [vmem:[#allocation9 + $0x98] sm:$0xff]  }
 0xa5e   :  { %13516 = vmatpush3.bf16.msra.mxu1 %v17530_v46  ;;  %13536 = vmatpush3.bf16.msra.mxu0 %v17530_v46 }
 0xa5f   :  { %13517 = vmatprep.subr.bf16.mxu1 %v17535_v52  ;;  %13537 = vmatprep.subr.bf16.mxu0 %v17535_v52  ;;  %v4231_v59 = vadd.f32 %v18011_v55, %v3694_v18  ;;  %v14472_v18 = vld [vmem:[#allocation7 + $0x48] sm:$0xff]   ;;  %v14487_v55 = vld [vmem:[#allocation9 + $0x88] sm:$0xff]  }
 0xa61   :  { %v4768_v24 = vadd.f32 %v17427_v28, %v4231_v59  ;;  %v14488_v59 = vld [vmem:[#allocation9 + $0x80] sm:$0xff]  }
 0xa62   :  { %13518 = vmatpush3.bf16.msra.mxu1 %v17535_v52  ;;  %13538 = vmatpush3.bf16.msra.mxu0 %v17535_v52 }
 0xa63   :  { %13519 = vmatprep.subr.bf16.mxu1 %v17501_v20  ;;  %13539 = vmatprep.subr.bf16.mxu0 %v17501_v20  ;;  %v5305_v11 = vadd.f32 %v17480_v37, %v4768_v24  ;;  %v5327_v37 = vadd.f32 %v17471_v34, %v5304_v15  ;;  %v14474_v24 = vld [vmem:[#allocation7 + $0x58] sm:$0xff]  }
 0xa64   :  { %v14478_v15 = vld [vmem:[#allocation7 + $0x78] sm:$0xff]  }
 0xa65   :  { %v5328_v28 = vadd.f32 %v17471_v34, %v5305_v11  ;;  %v5343_v12 = vmax.f32 %v5327_v37, 0.0  ;;  %v14451_v34 = vld [vmem:[#allocation9 + $0x78] sm:$0xff]  }
 0xa66   :  { %13520 = vmatpush3.bf16.msra.mxu1 %v17501_v20  ;;  %13540 = vmatpush3.bf16.msra.mxu0 %v17501_v20  ;;  %v14476_v11 = vld [vmem:[#allocation7 + $0x68] sm:$0xff]  }
 0xa67   :  { %13521 = vmatprep.subr.bf16.mxu1 %v17557_v44  ;;  %13541 = vmatprep.subr.bf16.mxu0 %v17557_v44  ;;  %v5344_v38 = vmax.f32 %v5328_v28, 0.0 }
 0xa69   :  { %v17584_v9 = vpack.c.bf16 %v5344_v38, %v5343_v12 }
 0xa6a   :  { %13522 = vmatpush3.bf16.msra.mxu1 %v17557_v44  ;;  %13542 = vmatpush3.bf16.msra.mxu0 %v17557_v44 }
 0xa6b   :  { %13523 = vmatprep.subr.bf16.mxu1 %v17488_v14  ;;  %13543 = vmatprep.subr.bf16.mxu0 %v17488_v14 }
 0xa6e   :  { %13524 = vmatpush3.bf16.msra.mxu1 %v17488_v14  ;;  %13544 = vmatpush3.bf16.msra.mxu0 %v17488_v14 }
 0xa6f   :  { %13525 = vmatprep.subr.bf16.mxu1 %v17573_v35  ;;  %13545 = vmatprep.subr.bf16.mxu0 %v17573_v35 }
 0xa72   :  { %13526 = vmatpush3.bf16.msra.mxu1 %v17573_v35  ;;  %13546 = vmatpush3.bf16.msra.mxu0 %v17573_v35 }
 0xa73   :  { %13527 = vmatprep.subr.bf16.mxu1 %v17478_v13  ;;  %13547 = vmatprep.subr.bf16.mxu0 %v17478_v13 }
 0xa76   :  { %13528 = vmatpush3.bf16.msra.mxu1 %v17478_v13  ;;  %13548 = vmatpush3.bf16.msra.mxu0 %v17478_v13 }
 0xa77   :  { %13529 = vmatprep.subr.bf16.mxu1 %v17584_v9  ;;  %13549 = vmatprep.subr.bf16.mxu0 %v17584_v9 }
 0xa7a   :  { %13530 = vmatpush3.bf16.msra.mxu1 %v17584_v9  ;;  %13550 = vmatpush3.bf16.msra.mxu0 %v17584_v9 }
 0xa7b   :  { %13555 = vmatprep.subr.bf16.mxu1 %v14451_v34  ;;  %13575 = vmatprep.subr.bf16.mxu0 %v14459_v0 }
 0xa7d   :  { %13532 = vmatmul.mubr.bf16.vlgmr.msra.gmra.mxu1 %v14449_v43  ;;  %13552 = vmatmul.mubr.bf16.vlgmr.msra.gmra.mxu0 %v14450_v29  ;;  %v14492_v43 = vld [vmem:[#allocation9 + $0xe0] sm:$0xff]   ;;  %v14494_v29 = vld [vmem:[#allocation9 + $0xd0] sm:$0xff]  }
 0xa7e   :  { %13556 = vmatpush3.bf16.msra.mxu1 %v14451_v34  ;;  %13576 = vmatpush3.bf16.msra.mxu0 %v14459_v0  ;;  %v14490_v0 = vld [vmem:[#allocation9 + $0xf0] sm:$0xff]  }
 0xa7f   :  { %13557 = vmatprep.subr.bf16.mxu1 %v14452_v2  ;;  %13577 = vmatprep.subr.bf16.mxu0 %v14460_v8 }
 0xa82   :  { %13558 = vmatpush3.bf16.msra.mxu1 %v14452_v2  ;;  %13578 = vmatpush3.bf16.msra.mxu0 %v14460_v8  ;;  %v14495_v2 = vld [vmem:[#allocation9 + $0xc8] sm:$0xff]  }
 0xa83   :  { %13559 = vmatprep.subr.bf16.mxu1 %v14453_v3  ;;  %13579 = vmatprep.subr.bf16.mxu0 %v14461_v60 }
 0xa86   :  { %13560 = vmatpush3.bf16.msra.mxu1 %v14453_v3  ;;  %13580 = vmatpush3.bf16.msra.mxu0 %v14461_v60  ;;  %v14496_v3 = vld [vmem:[#allocation9 + $0xc0] sm:$0xff]  }
 0xa87   :  { %13561 = vmatprep.subr.bf16.mxu1 %v14454_v19  ;;  %13581 = vmatprep.subr.bf16.mxu0 %v14462_v40 }
 0xa8a   :  { %13562 = vmatpush3.bf16.msra.mxu1 %v14454_v19  ;;  %13582 = vmatpush3.bf16.msra.mxu0 %v14462_v40  ;;  %v14497_v40 = vld [vmem:[#allocation9 + $0x138] sm:$0xff]  }
 0xa8b   :  { %13563 = vmatprep.subr.bf16.mxu1 %v14455_v57  ;;  %13583 = vmatprep.subr.bf16.mxu0 %v14463_v23 }
 0xa8e   :  { %13564 = vmatpush3.bf16.msra.mxu1 %v14455_v57  ;;  %13584 = vmatpush3.bf16.msra.mxu0 %v14463_v23 }
 0xa8f   :  { %13565 = vmatprep.subr.bf16.mxu1 %v14456_v41  ;;  %13585 = vmatprep.subr.bf16.mxu0 %v14464_v5 }
 0xa92   :  { %13566 = vmatpush3.bf16.msra.mxu1 %v14456_v41  ;;  %13586 = vmatpush3.bf16.msra.mxu0 %v14464_v5  ;;  %v14498_v5 = vld [vmem:[#allocation9 + $0x130] sm:$0xff]  }
 0xa93   :  { %13567 = vmatprep.subr.bf16.mxu1 %v14457_v54  ;;  %13587 = vmatprep.subr.bf16.mxu0 %v14465_v27 }
 0xa96   :  { %13568 = vmatpush3.bf16.msra.mxu1 %v14457_v54  ;;  %13588 = vmatpush3.bf16.msra.mxu0 %v14465_v27  ;;  %v14499_v54 = vld [vmem:[#allocation9 + $0x128] sm:$0xff]   ;;  %v14501_v27 = vld [vmem:[#allocation9 + $0x118] sm:$0xff]  }
 0xa97   :  { %13569 = vmatprep.subr.bf16.mxu1 %v14458_v22  ;;  %13589 = vmatprep.subr.bf16.mxu0 %v14466_v58 }
 0xa9a   :  { %13570 = vmatpush3.bf16.msra.mxu1 %v14458_v22  ;;  %13590 = vmatpush3.bf16.msra.mxu0 %v14466_v58  ;;  %v14500_v22 = vld [vmem:[#allocation9 + $0x120] sm:$0xff]   ;;  %v14502_v58 = vld [vmem:[#allocation9 + $0x110] sm:$0xff]  }
 0xa9b   :  { %13595 = vmatprep.subr.bf16.mxu1 %v17530_v46  ;;  %13615 = vmatprep.subr.bf16.mxu0 %v14479_v47 }
 0xb3d   :  { %v13533_v45 = vpop.f32.mrf.mxu1  ;;  %v13553_v61 = vpop.f32.mrf.mxu0 }
 0xb3f   :  { %v5417_v53 = vpop.f32.mrf.mxu1  ;;  %v5501_v6 = vpop.f32.mrf.mxu0 }
 0xb41   :  { %v13534_v4 = vpop.f32.mrf.mxu1  ;;  %v13554_v7 = vpop.f32.mrf.mxu0 }
 0xb42   :  { %v5433_v25 = vpack.c.bf16 %v13534_v4, %v13533_v45  ;;  %v5517_v16 = vpack.c.bf16 %v13554_v7, %v13553_v61  ;;  %v14503_v45 = vld [vmem:[#allocation9 + $0x108] sm:$0xff]   ;;  %v14505_v7 = vld [vmem:[#allocation9 + $0x178] sm:$0xff]  }
 0xb43   :  { %v5420_v1 = vpop.f32.mrf.mxu1  ;;  %v5504_v26 = vpop.f32.mrf.mxu0 }
 0xb44   :  { %v5432_v50 = vpack.c.bf16 %v5420_v1, %v5417_v53  ;;  %v5516_v63 = vpack.c.bf16 %v5504_v26, %v5501_v6  ;;  %v14504_v53 = vld [vmem:[#allocation9 + $0x100] sm:$0xff]  }
 0xb46   :  { %13571 = vmatprep.mubr.bf16.mxu1 %v5516_v63  ;;  %13591 = vmatprep.mubr.bf16.mxu0 %v5432_v50  ;;  %v14506_v50 = vld [vmem:[#allocation9 + $0x170] sm:$0xff]   ;;  %v14507_v63 = vld [vmem:[#allocation9 + $0x168] sm:$0xff]  }
 0xb47   :  { %13572 = vmatmul.mubr.bf16.vlgmr.msra.gmra.mxu1 %v5517_v16  ;;  %13592 = vmatmul.mubr.bf16.vlgmr.msra.gmra.mxu0 %v5433_v25  ;;  %v14509_v16 = vld [vmem:[#allocation9 + $0x158] sm:$0xff]  }
 0xb48   :  { %13596 = vmatpush3.bf16.msra.mxu1 %v17530_v46  ;;  %13611 = vmatprep.mubr.bf16.mxu1 %v14467_v30  ;;  %v14508_v30 = vld [vmem:[#allocation9 + $0x160] sm:$0xff]  }
 0xb49   :  { %13597 = vmatprep.subr.bf16.mxu1 %v17535_v52  ;;  %13616 = vmatpush3.bf16.msra.mxu0 %v14479_v47 }
 0xb4a   :  { %13617 = vmatprep.subr.bf16.mxu0 %v14480_v32 }
 0xb4c   :  { %13598 = vmatpush3.bf16.msra.mxu1 %v17535_v52 }
 0xb4d   :  { %13599 = vmatprep.subr.bf16.mxu1 %v17501_v20  ;;  %13618 = vmatpush3.bf16.msra.mxu0 %v14480_v32 }
 0xb4e   :  { %13619 = vmatprep.subr.bf16.mxu0 %v14481_v17 }
 0xb50   :  { %13600 = vmatpush3.bf16.msra.mxu1 %v17501_v20 }
 0xb51   :  { %13601 = vmatprep.subr.bf16.mxu1 %v17557_v44  ;;  %13620 = vmatpush3.bf16.msra.mxu0 %v14481_v17  ;;  %v14513_v17 = vld [vmem:[#allocation9 + $0x1b8] sm:$0xff]  }
 0xb52   :  { %13621 = vmatprep.subr.bf16.mxu0 %v14482_v39 }
 0xb54   :  { %13602 = vmatpush3.bf16.msra.mxu1 %v17557_v44 }
 0xb55   :  { %13603 = vmatprep.subr.bf16.mxu1 %v17488_v14  ;;  %13622 = vmatpush3.bf16.msra.mxu0 %v14482_v39 }
 0xb56   :  { %13623 = vmatprep.subr.bf16.mxu0 %v14483_v33 }
 0xb58   :  { %13604 = vmatpush3.bf16.msra.mxu1 %v17488_v14 }
 0xb59   :  { %13605 = vmatprep.subr.bf16.mxu1 %v17573_v35  ;;  %13624 = vmatpush3.bf16.msra.mxu0 %v14483_v33 }
 0xb5a   :  { %13625 = vmatprep.subr.bf16.mxu0 %v14484_v36 }
 0xb5c   :  { %13606 = vmatpush3.bf16.msra.mxu1 %v17573_v35 }
 0xb5d   :  { %13607 = vmatprep.subr.bf16.mxu1 %v17478_v13  ;;  %13626 = vmatpush3.bf16.msra.mxu0 %v14484_v36  ;;  %v14514_v36 = vld [vmem:[#allocation9 + $0x1b0] sm:$0xff]  }
 0xb5e   :  { %13627 = vmatprep.subr.bf16.mxu0 %v14487_v55 }
 0xb60   :  { %13608 = vmatpush3.bf16.msra.mxu1 %v17478_v13 }
 0xb61   :  { %13609 = vmatprep.subr.bf16.mxu1 %v17584_v9  ;;  %13628 = vmatpush3.bf16.msra.mxu0 %v14487_v55  ;;  %v14516_v55 = vld [vmem:[#allocation9 + $0x1a0] sm:$0xff]  }
 0xb62   :  { %13629 = vmatprep.subr.bf16.mxu0 %v14488_v59 }
 0xb64   :  { %13610 = vmatpush3.bf16.msra.mxu1 %v17584_v9 }
 0xb65   :  { %13635 = vmatprep.subr.bf16.mxu1 %v17530_v46  ;;  %13630 = vmatpush3.bf16.msra.mxu0 %v14488_v59  ;;  %v14517_v59 = vld [vmem:[#allocation9 + $0x198] sm:$0xff]  }
 0xb66   :  { %13655 = vmatprep.subr.bf16.mxu0 %v17645_v42 }
 0xb67   :  { %13612 = vmatmul.mubr.bf16.vlgmr.msra.gmra.mxu1 %v14468_v31  ;;  %v14510_v31 = vld [vmem:[#allocation9 + $0x150] sm:$0xff]  }
 0xb68   :  { %13636 = vmatpush3.bf16.msra.mxu1 %v17530_v46  ;;  %13651 = vmatprep.mubr.bf16.mxu1 %v14469_v51  ;;  %v14511_v51 = vld [vmem:[#allocation9 + $0x148] sm:$0xff]  }
 0xb69   :  { %13637 = vmatprep.subr.bf16.mxu1 %v17535_v52 }
 0xb6c   :  { %13638 = vmatpush3.bf16.msra.mxu1 %v17535_v52 }
 0xb6d   :  { %13639 = vmatprep.subr.bf16.mxu1 %v17501_v20 }
 0xb70   :  { %13640 = vmatpush3.bf16.msra.mxu1 %v17501_v20 }
 0xb71   :  { %13641 = vmatprep.subr.bf16.mxu1 %v17557_v44 }
 0xb74   :  { %13642 = vmatpush3.bf16.msra.mxu1 %v17557_v44 }
 0xb75   :  { %13643 = vmatprep.subr.bf16.mxu1 %v17488_v14 }
 0xb78   :  { %13644 = vmatpush3.bf16.msra.mxu1 %v17488_v14 }
 0xb79   :  { %13645 = vmatprep.subr.bf16.mxu1 %v17573_v35 }
 0xb7c   :  { %13646 = vmatpush3.bf16.msra.mxu1 %v17573_v35 }
 0xb7d   :  { %13647 = vmatprep.subr.bf16.mxu1 %v17478_v13 }
 0xb80   :  { %13648 = vmatpush3.bf16.msra.mxu1 %v17478_v13 }
 0xb81   :  { %13649 = vmatprep.subr.bf16.mxu1 %v17584_v9 }
 0xb84   :  { %13650 = vmatpush3.bf16.msra.mxu1 %v17584_v9 }
 0xb85   :  { %13675 = vmatprep.subr.bf16.mxu1 %v17530_v46 }
 0xb87   :  { %13652 = vmatmul.mubr.bf16.vlgmr.msra.gmra.mxu1 %v14470_v21 }
 0xb88   :  { %13676 = vmatpush3.bf16.msra.mxu1 %v17530_v46  ;;  %13691 = vmatprep.mubr.bf16.mxu1 %v14471_v48  ;;  %v14512_v48 = vld [vmem:[#allocation9 + $0x140] sm:$0xff]  }
 0xb89   :  { %13677 = vmatprep.subr.bf16.mxu1 %v17535_v52 }
 0xb8c   :  { %13678 = vmatpush3.bf16.msra.mxu1 %v17535_v52 }
 0xb8d   :  { %13679 = vmatprep.subr.bf16.mxu1 %v17501_v20 }
 0xb90   :  { %13680 = vmatpush3.bf16.msra.mxu1 %v17501_v20 }
 0xb91   :  { %13681 = vmatprep.subr.bf16.mxu1 %v17557_v44 }
 0xb94   :  { %13682 = vmatpush3.bf16.msra.mxu1 %v17557_v44 }
 0xb95   :  { %13683 = vmatprep.subr.bf16.mxu1 %v17488_v14 }
 0xb98   :  { %13684 = vmatpush3.bf16.msra.mxu1 %v17488_v14 }
 0xb99   :  { %13685 = vmatprep.subr.bf16.mxu1 %v17573_v35 }
 0xb9c   :  { %13686 = vmatpush3.bf16.msra.mxu1 %v17573_v35 }
 0xb9d   :  { %13687 = vmatprep.subr.bf16.mxu1 %v17478_v13 }
 0xba0   :  { %13688 = vmatpush3.bf16.msra.mxu1 %v17478_v13 }
 0xba1   :  { %13689 = vmatprep.subr.bf16.mxu1 %v17584_v9 }
 0xba4   :  { %13690 = vmatpush3.bf16.msra.mxu1 %v17584_v9 }
 0xba5   :  { %13715 = vmatprep.subr.bf16.mxu1 %v17530_v46 }
 0xba7   :  { %13692 = vmatmul.mubr.bf16.vlgmr.msra.gmra.mxu1 %v14472_v18 }
 0xba8   :  { %13716 = vmatpush3.bf16.msra.mxu1 %v17530_v46  ;;  %13731 = vmatprep.mubr.bf16.mxu1 %v14473_v49  ;;  %v14515_v49 = vld [vmem:[#allocation9 + $0x1a8] sm:$0xff]  }
 0xba9   :  { %13717 = vmatprep.subr.bf16.mxu1 %v17535_v52 }
 0xbac   :  { %13718 = vmatpush3.bf16.msra.mxu1 %v17535_v52 }
 0xbad   :  { %13719 = vmatprep.subr.bf16.mxu1 %v17501_v20 }
 0xbb0   :  { %13720 = vmatpush3.bf16.msra.mxu1 %v17501_v20 }
 0xbb1   :  { %13721 = vmatprep.subr.bf16.mxu1 %v17557_v44 }
 0xbb4   :  { %13722 = vmatpush3.bf16.msra.mxu1 %v17557_v44 }
 0xbb5   :  { %13723 = vmatprep.subr.bf16.mxu1 %v17488_v14 }
 0xbb8   :  { %13724 = vmatpush3.bf16.msra.mxu1 %v17488_v14 }
 0xbb9   :  { %13725 = vmatprep.subr.bf16.mxu1 %v17573_v35 }
 0xbbc   :  { %13726 = vmatpush3.bf16.msra.mxu1 %v17573_v35 }
 0xbbd   :  { %13727 = vmatprep.subr.bf16.mxu1 %v17478_v13 }
 0xbc0   :  { %13728 = vmatpush3.bf16.msra.mxu1 %v17478_v13 }
 0xbc1   :  { %13729 = vmatprep.subr.bf16.mxu1 %v17584_v9 }
 0xbc4   :  { %13730 = vmatpush3.bf16.msra.mxu1 %v17584_v9 }
 0xbc5   :  { %13755 = vmatprep.subr.bf16.mxu1 %v17530_v46 }
 0xbc7   :  { %13732 = vmatmul.mubr.bf16.vlgmr.msra.gmra.mxu1 %v14474_v24  ;;  %v14519_v24 = vld [vmem:[#allocation9 + $0x188] sm:$0xff]  }
 0xbc8   :  { %13756 = vmatpush3.bf16.msra.mxu1 %v17530_v46  ;;  %13771 = vmatprep.mubr.bf16.mxu1 %v14475_v10 }
 0xbc9   :  { %13757 = vmatprep.subr.bf16.mxu1 %v17535_v52 }
 0xbcc   :  { %13758 = vmatpush3.bf16.msra.mxu1 %v17535_v52 }
 0xbcd   :  { %13759 = vmatprep.subr.bf16.mxu1 %v17501_v20 }
 0xbd0   :  { %13760 = vmatpush3.bf16.msra.mxu1 %v17501_v20 }
 0xbd1   :  { %13761 = vmatprep.subr.bf16.mxu1 %v17557_v44 }
 0xbd4   :  { %13762 = vmatpush3.bf16.msra.mxu1 %v17557_v44 }
 0xbd5   :  { %13763 = vmatprep.subr.bf16.mxu1 %v17488_v14 }
 0xbd8   :  { %13764 = vmatpush3.bf16.msra.mxu1 %v17488_v14 }
 0xbd9   :  { %13765 = vmatprep.subr.bf16.mxu1 %v17573_v35 }
 0xbdc   :  { %13766 = vmatpush3.bf16.msra.mxu1 %v17573_v35 }
 0xbdd   :  { %13767 = vmatprep.subr.bf16.mxu1 %v17478_v13 }
 0xbe0   :  { %13768 = vmatpush3.bf16.msra.mxu1 %v17478_v13 }
 0xbe1   :  { %13769 = vmatprep.subr.bf16.mxu1 %v17584_v9 }
 0xbe4   :  { %13770 = vmatpush3.bf16.msra.mxu1 %v17584_v9 }
 0xbe5   :  { %13795 = vmatprep.subr.bf16.mxu1 %v17530_v46 }
 0xbe7   :  { %13772 = vmatmul.mubr.bf16.vlgmr.msra.gmra.mxu1 %v14476_v11  ;;  %v14520_v11 = vld [vmem:[#allocation9 + $0x180] sm:$0xff]  }
 0xbe8   :  { %13796 = vmatpush3.bf16.msra.mxu1 %v17530_v46  ;;  %13811 = vmatprep.mubr.bf16.mxu1 %v14477_v56 }
 0xbe9   :  { %13797 = vmatprep.subr.bf16.mxu1 %v17535_v52 }
 0xbec   :  { %13798 = vmatpush3.bf16.msra.mxu1 %v17535_v52 }
 0xbed   :  { %13799 = vmatprep.subr.bf16.mxu1 %v17501_v20 }
 0xbf0   :  { %13800 = vmatpush3.bf16.msra.mxu1 %v17501_v20 }
 0xbf1   :  { %13801 = vmatprep.subr.bf16.mxu1 %v17557_v44 }
 0xbf4   :  { %13802 = vmatpush3.bf16.msra.mxu1 %v17557_v44 }
 0xbf5   :  { %13803 = vmatprep.subr.bf16.mxu1 %v17488_v14 }
 0xbf8   :  { %13804 = vmatpush3.bf16.msra.mxu1 %v17488_v14 }
 0xbf9   :  { %13805 = vmatprep.subr.bf16.mxu1 %v17573_v35 }
 0xbfc   :  { %13806 = vmatpush3.bf16.msra.mxu1 %v17573_v35 }
 0xbfd   :  { %13807 = vmatprep.subr.bf16.mxu1 %v17478_v13 }
 0xc00   :  { %13808 = vmatpush3.bf16.msra.mxu1 %v17478_v13 }
 0xc01   :  { %13809 = vmatprep.subr.bf16.mxu1 %v17584_v9 }
 0xc04   :  { %13810 = vmatpush3.bf16.msra.mxu1 %v17584_v9 }
 0xc05   :  { %13835 = vmatprep.subr.bf16.mxu1 %v17530_v46 }
 0xc07   :  { %13812 = vmatmul.mubr.bf16.vlgmr.msra.gmra.mxu1 %v14478_v15  ;;  %v17701_v28 = vpop.f32.mrf.mxu1 }
 0xc08   :  { %13836 = vmatpush3.bf16.msra.mxu1 %v17530_v46  ;;  %13851 = vmatprep.mubr.bf16.mxu1 %v14485_v62  ;;  %v14521_v62 = vld [vmem:[#allocation9 + $0x1f8] sm:$0xff]  }
 0xc09   :  { %13837 = vmatprep.subr.bf16.mxu1 %v17535_v52  ;;  %v17705_v46 = vpop.f32.mrf.mxu1 }
 0xc0c   :  { %13838 = vmatpush3.bf16.msra.mxu1 %v17535_v52  ;;  %v14486_v52 = vld [vmem:[#allocation7 + $0x88] sm:$0xff]  }
 0xc0d   :  { %13839 = vmatprep.subr.bf16.mxu1 %v17501_v20 }
 0xc10   :  { %13840 = vmatpush3.bf16.msra.mxu1 %v17501_v20  ;;  %v17709_v20 = vpop.f32.mrf.mxu1 }
 0xc11   :  { %13841 = vmatprep.subr.bf16.mxu1 %v17557_v44 }
 0xc14   :  { %13842 = vmatpush3.bf16.msra.mxu1 %v17557_v44 }
 0xc15   :  { %13843 = vmatprep.subr.bf16.mxu1 %v17488_v14 }
 0xc18   :  { %13844 = vmatpush3.bf16.msra.mxu1 %v17488_v14  ;;  %v17713_v14 = vpop.f32.mrf.mxu1 }
 0xc19   :  { %13845 = vmatprep.subr.bf16.mxu1 %v17573_v35 }
 0xc1c   :  { %13846 = vmatpush3.bf16.msra.mxu1 %v17573_v35 }
 0xc1d   :  { %13847 = vmatprep.subr.bf16.mxu1 %v17478_v13 }
 0xc20   :  { %13848 = vmatpush3.bf16.msra.mxu1 %v17478_v13  ;;  %v14491_v13 = vld [vmem:[#allocation9 + $0xe8] sm:$0xff]  }
 0xc21   :  { %13849 = vmatprep.subr.bf16.mxu1 %v17584_v9 }
 0xc24   :  { %13850 = vmatpush3.bf16.msra.mxu1 %v17584_v9  ;;  %v14493_v9 = vld [vmem:[#allocation9 + $0xd8] sm:$0xff]  }
 0xc27   :  { %v13613_v44 = vpop.f32.mrf.mxu1  ;;  %13852 = vmatmul.mubr.bf16.vlgmr.msra.gmra.mxu1 %v14486_v52 }
 0xc29   :  { %v5780_v37 = vpop.f32.mrf.mxu1 }
 0xc2b   :  { %v13614_v38 = vpop.f32.mrf.mxu1 }
 0xc2c   :  { %v5796_v34 = vpack.c.bf16 %v13614_v38, %v13613_v44  ;;  %v14522_v38 = vld [vmem:[#allocation9 + $0x1f0] sm:$0xff]  }
 0xc2d   :  { %v5783_v35 = vpop.f32.mrf.mxu1 }
 0xc2e   :  { %v5795_v12 = vpack.c.bf16 %v5783_v35, %v5780_v37  ;;  %v14523_v35 = vld [vmem:[#allocation9 + $0x1e8] sm:$0xff]  }
 0xc30   :  { %13631 = vmatprep.mubr.bf16.mxu0 %v5795_v12  ;;  %v14524_v12 = vld [vmem:[#allocation9 + $0x1e0] sm:$0xff]  }
 0xc31   :  { %13632 = vmatmul.mubr.bf16.vlgmr.msra.gmra.mxu0 %v5796_v34  ;;  %v14525_v34 = vld [vmem:[#allocation9 + $0x1d8] sm:$0xff]  }
 0xc32   :  { %13656 = vmatpush3.bf16.msra.mxu0 %v17645_v42  ;;  %v14518_v42 = vld [vmem:[#allocation9 + $0x190] sm:$0xff]  }
 0xc33   :  { %13657 = vmatprep.subr.bf16.mxu0 %v14490_v0 }
 0xc36   :  { %13658 = vmatpush3.bf16.msra.mxu0 %v14490_v0  ;;  %v14526_v0 = vld [vmem:[#allocation9 + $0x1d0] sm:$0xff]  }
 0xc37   :  { %13659 = vmatprep.subr.bf16.mxu0 %v14491_v13 }
 0xc3a   :  { %13660 = vmatpush3.bf16.msra.mxu0 %v14491_v13  ;;  %v14527_v13 = vld [vmem:[#allocation9 + $0x1c8] sm:$0xff]  }
 0xc3b   :  { %13661 = vmatprep.subr.bf16.mxu0 %v14492_v43 }
 0xc3e   :  { %13662 = vmatpush3.bf16.msra.mxu0 %v14492_v43 }
 0xc3f   :  { %13663 = vmatprep.subr.bf16.mxu0 %v14493_v9 }
 0xc42   :  { %13664 = vmatpush3.bf16.msra.mxu0 %v14493_v9  ;;  %v14528_v9 = vld [vmem:[#allocation9 + $0x1c0] sm:$0xff]  }
 0xc43   :  { %13665 = vmatprep.subr.bf16.mxu0 %v14494_v29 }
 0xc46   :  { %13666 = vmatpush3.bf16.msra.mxu0 %v14494_v29 }
 0xc47   :  { %v13653_v8 = vpop.f32.mrf.mxu1  ;;  %13667 = vmatprep.subr.bf16.mxu0 %v14495_v2 }
 0xc49   :  { %v5966_v60 = vpop.f32.mrf.mxu1 }
 0xc4a   :  { %13668 = vmatpush3.bf16.msra.mxu0 %v14495_v2 }
 0xc4b   :  { %v13654_v19 = vpop.f32.mrf.mxu1  ;;  %13669 = vmatprep.subr.bf16.mxu0 %v14496_v3 }
 0xc4c   :  { %v5982_v41 = vpack.c.bf16 %v13654_v19, %v13653_v8  ;;  %v14529_v8 = vld [vmem:[#allocation9 + $0x238] sm:$0xff]  }
 0xc4d   :  { %v5969_v57 = vpop.f32.mrf.mxu1 }
 0xc4e   :  { %v5981_v23 = vpack.c.bf16 %v5969_v57, %v5966_v60  ;;  %13670 = vmatpush3.bf16.msra.mxu0 %v14496_v3  ;;  %v14531_v57 = vld [vmem:[#allocation9 + $0x228] sm:$0xff]  }
 0xc4f   :  { %13695 = vmatprep.subr.bf16.mxu0 %v14497_v40 }
 0xc50   :  { %13671 = vmatprep.mubr.bf16.mxu0 %v5981_v23  ;;  %v14532_v23 = vld [vmem:[#allocation9 + $0x220] sm:$0xff]  }
 0xc51   :  { %13672 = vmatmul.mubr.bf16.vlgmr.msra.gmra.mxu0 %v5982_v41  ;;  %v14533_v41 = vld [vmem:[#allocation9 + $0x218] sm:$0xff]  }
 0xc52   :  { %13696 = vmatpush3.bf16.msra.mxu0 %v14497_v40  ;;  %v14530_v40 = vld [vmem:[#allocation9 + $0x230] sm:$0xff]  }
 0xc53   :  { %13697 = vmatprep.subr.bf16.mxu0 %v14498_v5 }
 0xc56   :  { %13698 = vmatpush3.bf16.msra.mxu0 %v14498_v5  ;;  %v14534_v5 = vld [vmem:[#allocation9 + $0x210] sm:$0xff]  }
 0xc57   :  { %13699 = vmatprep.subr.bf16.mxu0 %v14499_v54 }
 0xc5a   :  { %13700 = vmatpush3.bf16.msra.mxu0 %v14499_v54  ;;  %v14535_v54 = vld [vmem:[#allocation9 + $0x208] sm:$0xff]  }
 0xc5b   :  { %13701 = vmatprep.subr.bf16.mxu0 %v14500_v22 }
 0xc5e   :  { %13702 = vmatpush3.bf16.msra.mxu0 %v14500_v22 }
 0xc5f   :  { %13703 = vmatprep.subr.bf16.mxu0 %v14501_v27 }
 0xc62   :  { %13704 = vmatpush3.bf16.msra.mxu0 %v14501_v27  ;;  %v14536_v27 = vld [vmem:[#allocation9 + $0x200] sm:$0xff]  }
 0xc63   :  { %13705 = vmatprep.subr.bf16.mxu0 %v14502_v58 }
 0xc66   :  { %13706 = vmatpush3.bf16.msra.mxu0 %v14502_v58 }
 0xc67   :  { %v13693_v61 = vpop.f32.mrf.mxu1  ;;  %13707 = vmatprep.subr.bf16.mxu0 %v14503_v45 }
 0xc69   :  { %v6152_v6 = vpop.f32.mrf.mxu1 }
 0xc6a   :  { %13708 = vmatpush3.bf16.msra.mxu0 %v14503_v45 }
 0xc6b   :  { %v13694_v4 = vpop.f32.mrf.mxu1  ;;  %13709 = vmatprep.subr.bf16.mxu0 %v14504_v53 }
 0xc6c   :  { %v6168_v26 = vpack.c.bf16 %v13694_v4, %v13693_v61  ;;  %v15582_v4 = vmov 0.0  }
 0xc6d   :  { %v6155_v25 = vpop.f32.mrf.mxu1  ;;  %13875 = vmatprep.subr.bf16.mxu1 %v15582_v4  ;;  %13879 = vmatprep.mubr.msk.bf16.mxu1 %vm15583_vm2, %v15582_v4 }
 0xc6e   :  { %v6167_v1 = vpack.c.bf16 %v6155_v25, %v6152_v6  ;;  %13710 = vmatpush3.bf16.msra.mxu0 %v14504_v53  ;;  %v14542_v25 = vld [vmem:[#allocation13 + $0x1ec] ss:$16 sps:$4 sm:$0xff]  }
 0xc6f   :  { %13735 = vmatprep.subr.bf16.mxu0 %v14505_v7 }
 0xc70   :  { %13711 = vmatprep.mubr.bf16.mxu0 %v6167_v1  ;;  %v13593_v1 = vpop.f32.mrf.mxu0 }
 0xc71   :  { %13712 = vmatmul.mubr.bf16.vlgmr.msra.gmra.mxu0 %v6168_v26  ;;  %v14548_v26 = vld [vmem:[#allocation13 + $0x1cc] ss:$16 sps:$4 sm:$0xff]  }
 0xc72   :  { %13736 = vmatpush3.bf16.msra.mxu0 %v14505_v7  ;;  %v14540_v7 = vld [vmem:[#allocation13 + $0x1e8] ss:$16 sps:$4 sm:$0xff]  }
 0xc73   :  { %13737 = vmatprep.subr.bf16.mxu0 %v14506_v50 }
 0xc76   :  { %13738 = vmatpush3.bf16.msra.mxu0 %v14506_v50  ;;  %v14546_v50 = vld [vmem:[#allocation13 + $0x1c8] ss:$16 sps:$4 sm:$0xff]  }
 0xc77   :  { %13739 = vmatprep.subr.bf16.mxu0 %v14507_v63 }
 0xc7a   :  { %13740 = vmatpush3.bf16.msra.mxu0 %v14507_v63  ;;  %v5714_v63 = vpop.f32.mrf.mxu0 }
 0xc7b   :  { %13741 = vmatprep.subr.bf16.mxu0 %v14508_v30 }
 0xc7e   :  { %13742 = vmatpush3.bf16.msra.mxu0 %v14508_v30  ;;  %v14554_v30 = vld [vmem:[#allocation13 + $0x1ac] ss:$16 sps:$4 sm:$0xff]  }
 0xc7f   :  { %13743 = vmatprep.subr.bf16.mxu0 %v14509_v16 }
 0xc82   :  { %13744 = vmatpush3.bf16.msra.mxu0 %v14509_v16  ;;  %v14552_v16 = vld [vmem:[#allocation13 + $0x1a8] ss:$16 sps:$4 sm:$0xff]  }
 0xc83   :  { %13745 = vmatprep.subr.bf16.mxu0 %v14510_v31 }
 0xc86   :  { %13746 = vmatpush3.bf16.msra.mxu0 %v14510_v31  ;;  %v13594_v31 = vpop.f32.mrf.mxu0 }
 0xc87   :  { %v13733_v21 = vpop.f32.mrf.mxu1  ;;  %13747 = vmatprep.subr.bf16.mxu0 %v14511_v51 }
 0xc89   :  { %v6338_v47 = vpop.f32.mrf.mxu1 }
 0xc8a   :  { %13748 = vmatpush3.bf16.msra.mxu0 %v14511_v51  ;;  %v14560_v51 = vld [vmem:[#allocation13 + $0x18c] ss:$16 sps:$4 sm:$0xff]  }
 0xc8b   :  { %v13734_v32 = vpop.f32.mrf.mxu1  ;;  %13749 = vmatprep.subr.bf16.mxu0 %v14512_v48 }
 0xc8c   :  { %v6354_v18 = vpack.c.bf16 %v13734_v32, %v13733_v21  ;;  %v14558_v21 = vld [vmem:[#allocation13 + $0x188] ss:$16 sps:$4 sm:$0xff]  }
 0xc8d   :  { %v6341_v39 = vpop.f32.mrf.mxu1 }
 0xc8e   :  { %v6353_v33 = vpack.c.bf16 %v6341_v39, %v6338_v47  ;;  %13750 = vmatpush3.bf16.msra.mxu0 %v14512_v48  ;;  %v5717_v48 = vpop.f32.mrf.mxu0  ;;  %v14566_v47 = vld [vmem:[#allocation13 + $0x16c] ss:$16 sps:$4 sm:$0xff]  }
 0xc8f   :  { %13775 = vmatprep.subr.bf16.mxu0 %v14513_v17  ;;  %v14572_v39 = vld [vmem:[#allocation13 + $0x14c] ss:$16 sps:$4 sm:$0xff]  }
 0xc90   :  { %13751 = vmatprep.mubr.bf16.mxu0 %v6353_v33 }
 0xc91   :  { %13752 = vmatmul.mubr.bf16.vlgmr.msra.gmra.mxu0 %v6354_v18  ;;  %v14570_v18 = vld [vmem:[#allocation13 + $0x148] ss:$16 sps:$4 sm:$0xff]  }
 0xc92   :  { %13776 = vmatpush3.bf16.msra.mxu0 %v14513_v17  ;;  %v14564_v17 = vld [vmem:[#allocation13 + $0x168] ss:$16 sps:$4 sm:$0xff]  }
 0xc93   :  { %13777 = vmatprep.subr.bf16.mxu0 %v14514_v36 }
 0xc96   :  { %13778 = vmatpush3.bf16.msra.mxu0 %v14514_v36 }
 0xc97   :  { %13779 = vmatprep.subr.bf16.mxu0 %v14515_v49 }
 0xc9a   :  { %13780 = vmatpush3.bf16.msra.mxu0 %v14515_v49 }
 0xc9b   :  { %13781 = vmatprep.subr.bf16.mxu0 %v14516_v55 }
 0xc9e   :  { %13782 = vmatpush3.bf16.msra.mxu0 %v14516_v55 }
 0xc9f   :  { %13783 = vmatprep.subr.bf16.mxu0 %v14517_v59 }
 0xca2   :  { %13784 = vmatpush3.bf16.msra.mxu0 %v14517_v59 }
 0xca3   :  { %13785 = vmatprep.subr.bf16.mxu0 %v14518_v42 }
 0xca6   :  { %13786 = vmatpush3.bf16.msra.mxu0 %v14518_v42 }
 0xca7   :  { %v13773_v10 = vpop.f32.mrf.mxu1  ;;  %13787 = vmatprep.subr.bf16.mxu0 %v14519_v24 }
 0xca9   :  { %v6524_v56 = vpop.f32.mrf.mxu1 }
 0xcaa   :  { %13788 = vmatpush3.bf16.msra.mxu0 %v14519_v24 }
 0xcab   :  { %v13774_v15 = vpop.f32.mrf.mxu1  ;;  %13789 = vmatprep.subr.bf16.mxu0 %v14520_v11 }
 0xcac   :  { %v6540_v37 = vpack.c.bf16 %v13774_v15, %v13773_v10 }
 0xcad   :  { %v6527_v52 = vpop.f32.mrf.mxu1 }
 0xcae   :  { %v6539_v44 = vpack.c.bf16 %v6527_v52, %v6524_v56  ;;  %13790 = vmatpush3.bf16.msra.mxu0 %v14520_v11 }
 0xcaf   :  { %13815 = vmatprep.subr.bf16.mxu0 %v14521_v62 }
 0xcb0   :  { %13791 = vmatprep.mubr.bf16.mxu0 %v6539_v44 }
 0xcb1   :  { %13792 = vmatmul.mubr.bf16.vlgmr.msra.gmra.mxu0 %v6540_v37 }
 0xcb2   :  { %13816 = vmatpush3.bf16.msra.mxu0 %v14521_v62 }
 0xcb3   :  { %13817 = vmatprep.subr.bf16.mxu0 %v14522_v38 }
 0xcb6   :  { %13818 = vmatpush3.bf16.msra.mxu0 %v14522_v38 }
 0xcb7   :  { %13819 = vmatprep.subr.bf16.mxu0 %v14523_v35 }
 0xcba   :  { %13820 = vmatpush3.bf16.msra.mxu0 %v14523_v35 }
 0xcbb   :  { %13821 = vmatprep.subr.bf16.mxu0 %v14524_v12 }
 0xcbe   :  { %13822 = vmatpush3.bf16.msra.mxu0 %v14524_v12 }
 0xcbf   :  { %13823 = vmatprep.subr.bf16.mxu0 %v14525_v34 }
 0xcc2   :  { %13824 = vmatpush3.bf16.msra.mxu0 %v14525_v34 }
 0xcc3   :  { %13825 = vmatprep.subr.bf16.mxu0 %v14526_v0 }
 0xcc6   :  { %13826 = vmatpush3.bf16.msra.mxu0 %v14526_v0 }
 0xcc7   :  { %v13813_v43 = vpop.f32.mrf.mxu1  ;;  %13827 = vmatprep.subr.bf16.mxu0 %v14527_v13 }
 0xcc9   :  { %v6710_v29 = vpop.f32.mrf.mxu1 }
 0xcca   :  { %13828 = vmatpush3.bf16.msra.mxu0 %v14527_v13  ;;  %v5723_v13 = vadd.f32 %v13593_v1, %v17701_v28 }
 0xccb   :  { %v13814_v2 = vpop.f32.mrf.mxu1  ;;  %13829 = vmatprep.subr.bf16.mxu0 %v14528_v9 }
 0xccc   :  { %v6726_v19 = vpack.c.bf16 %v13814_v2, %v13813_v43  ;;  %v5715_v43 = vadd.f32 %v5714_v63, %v17705_v46  ;;  %v5726_v2 = vadd.f32 %v13594_v31, %v17709_v20 }
 0xccd   :  { %v6713_v3 = vpop.f32.mrf.mxu1 }
 0xcce   :  { %v6725_v60 = vpack.c.bf16 %v6713_v3, %v6710_v29  ;;  %13830 = vmatpush3.bf16.msra.mxu0 %v14528_v9 }
 0xccf   :  { %13855 = vmatprep.subr.bf16.mxu0 %v14529_v8 }
 0xcd0   :  { %13831 = vmatprep.mubr.bf16.mxu0 %v6725_v60  ;;  %v5718_v60 = vadd.f32 %v5717_v48, %v17713_v14 }
 0xcd1   :  { %13832 = vmatmul.mubr.bf16.vlgmr.msra.gmra.mxu0 %v6726_v19 }
 0xcd2   :  { %13856 = vmatpush3.bf16.msra.mxu0 %v14529_v8 }
 0xcd3   :  { %13857 = vmatprep.subr.bf16.mxu0 %v14530_v40 }
 0xcd6   :  { %13858 = vmatpush3.bf16.msra.mxu0 %v14530_v40 }
 0xcd7   :  { %13859 = vmatprep.subr.bf16.mxu0 %v14531_v57 }
 0xcda   :  { %13860 = vmatpush3.bf16.msra.mxu0 %v14531_v57 }
 0xcdb   :  { %13861 = vmatprep.subr.bf16.mxu0 %v14532_v23 }
 0xcde   :  { %13862 = vmatpush3.bf16.msra.mxu0 %v14532_v23 }
 0xcdf   :  { %13863 = vmatprep.subr.bf16.mxu0 %v14533_v41 }
 0xce2   :  { %13864 = vmatpush3.bf16.msra.mxu0 %v14533_v41 }
 0xce3   :  { %13865 = vmatprep.subr.bf16.mxu0 %v14534_v5 }
 0xce6   :  { %13866 = vmatpush3.bf16.msra.mxu0 %v14534_v5 }
 0xce7   :  { %v13853_v22 = vpop.f32.mrf.mxu1  ;;  %13867 = vmatprep.subr.bf16.mxu0 %v14535_v54 }
 0xce9   :  { %v6896_v58 = vpop.f32.mrf.mxu1 }
 0xcea   :  { %13868 = vmatpush3.bf16.msra.mxu0 %v14535_v54 }
 0xceb   :  { %v13854_v45 = vpop.f32.mrf.mxu1  ;;  %13869 = vmatprep.subr.bf16.mxu0 %v14536_v27 }
 0xcec   :  { %v6912_v6 = vpack.c.bf16 %v13854_v45, %v13853_v22 }
 0xced   :  { %v6899_v61 = vpop.f32.mrf.mxu1 }
 0xcee   :  { %v6911_v53 = vpack.c.bf16 %v6899_v61, %v6896_v58  ;;  %13870 = vmatpush3.bf16.msra.mxu0 %v14536_v27 }
 0xcef   :  { %7406 = vmatprep.subr.bf16.mxu0 %v14542_v25 }
 0xcf0   :  { %13871 = vmatprep.mubr.bf16.mxu0 %v6911_v53 }
 0xcf1   :  { %13872 = vmatmul.mubr.bf16.vlgmr.msra.gmra.mxu0 %v6912_v6  ;;  %v13633_v32 = vpop.f32.mrf.mxu0 }
 0xcf2   :  { %7407 = vmatpush1.bf16.msra.mxu0 %v14540_v7  ;;  %v5913_v9 = vadd.f32 %v13633_v32, %v5723_v13  ;;  %v14567_v13 = vld [vmem:[#allocation13 + $0x140] ss:$16 sps:$4 sm:$0xff]  }
 0xcf3   :  { %7408 = vmatprep.subr.bf16.mxu0 %v14548_v26  ;;  %v5896_v33 = vpop.f32.mrf.mxu0 }
 0xcf4   :  { %v5911_v8 = vadd.f32 %v5896_v33, %v5715_v43  ;;  %v14575_v43 = vld [vmem:[#allocation13 + $0x124] ss:$16 sps:$4 sm:$0xff]  }
 0xcf5   :  { %v13634_v36 = vpop.f32.mrf.mxu0 }
 0xcf6   :  { %7409 = vmatpush1.bf16.msra.mxu0 %v14546_v50  ;;  %v5914_v19 = vadd.f32 %v13634_v36, %v5726_v2  ;;  %v11489_v50 = vld [vmem:[#allocation10] ss:$0 sm:$0xff] }
 0xcf7   :  { %7410 = vmatprep.subr.bf16.mxu0 %v14554_v30  ;;  %v5899_v49 = vpop.f32.mrf.mxu0  ;;  %v14576_v2 = vld [vmem:[#allocation13 + $0x128] ss:$16 sps:$4 sm:$0xff]  }
 0xcf8   :  { %v5912_v41 = vadd.f32 %v5899_v49, %v5718_v60  ;;  %v14579_v60 = vld [vmem:[#allocation13 + $0x100] ss:$16 sps:$4 sm:$0xff]  }
 0xcfa   :  { %7411 = vmatpush1.bf16.msra.mxu0 %v14552_v16 }
 0xcfb   :  { %7412 = vmatprep.subr.bf16.mxu0 %v14560_v51 }
 0xcfe   :  { %7413 = vmatpush1.bf16.msra.mxu0 %v14558_v21 }
 0xcff   :  { %7414 = vmatprep.subr.bf16.mxu0 %v14566_v47 }
 0xd02   :  { %7415 = vmatpush1.bf16.msra.mxu0 %v14564_v17 }
 0xd03   :  { %7416 = vmatprep.subr.bf16.mxu0 %v14572_v39 }
 0xd06   :  { %7417 = vmatpush1.bf16.msra.mxu0 %v14570_v18 }
 0xd11   :  { %v13673_v55 = vpop.f32.mrf.mxu0 }
 0xd12   :  { %v6099_v3 = vadd.f32 %v13673_v55, %v5913_v9  ;;  %v14578_v9 = vld [vmem:[#allocation13 + $0x12c] ss:$16 sps:$4 sm:$0xff]  }
 0xd13   :  { %v6082_v59 = vpop.f32.mrf.mxu0  ;;  %7418 = vmatprep.subr.bf16.mxu0 %v14578_v9  ;;  %v14645_v9 = vld [vmem:[#allocation13 + $0x2a0] ss:$16 sps:$4 sm:$0xff]  }
 0xd14   :  { %v6097_v40 = vadd.f32 %v6082_v59, %v5911_v8  ;;  %7419 = vmatpush1.bf16.msra.mxu0 %v14576_v2  ;;  %v14581_v8 = vld [vmem:[#allocation13 + $0x104] ss:$16 sps:$4 sm:$0xff]  }
 0xd15   :  { %v13674_v42 = vpop.f32.mrf.mxu0  ;;  %v14653_v2 = vld [vmem:[#allocation13 + $0x284] ss:$16 sps:$4 sm:$0xff]  }
 0xd16   :  { %v6100_v5 = vadd.f32 %v13674_v42, %v5914_v19  ;;  %v14582_v19 = vld [vmem:[#allocation13 + $0x108] ss:$16 sps:$4 sm:$0xff]  }
 0xd17   :  { %v6085_v24 = vpop.f32.mrf.mxu0 }
 0xd18   :  { %v6098_v27 = vadd.f32 %v6085_v24, %v5912_v41 }
 0xd31   :  { %v13713_v10 = vpop.f32.mrf.mxu0 }
 0xd32   :  { %v6285_v57 = vadd.f32 %v13713_v10, %v6099_v3  ;;  %v7048_v10 = vld [vmem:[#allocation12] sm:$0xf] }
 0xd33   :  { %v6268_v11 = vpop.f32.mrf.mxu0  ;;  %v14584_v3 = vld [vmem:[#allocation13 + $0x10c] ss:$16 sps:$4 sm:$0xff]  }
 0xd34   :  { %v6283_v54 = vadd.f32 %v6268_v11, %v6097_v40  ;;  %v14539_v11 = vld [vmem:[#allocation13 + $0x1e4] ss:$16 sps:$4 sm:$0xff]   ;;  %7420 = vmatprep.subr.bf16.mxu0 %v14584_v3  ;;  %v14651_v3 = vld [vmem:[#allocation13 + $0x280] ss:$16 sps:$4 sm:$0xff]  }
 0xd35   :  { %v13714_v56 = vpop.f32.mrf.mxu0  ;;  %7421 = vmatpush1.bf16.msra.mxu0 %v14582_v19  ;;  %v14587_v40 = vld [vmem:[#allocation13 + $0xe4] ss:$16 sps:$4 sm:$0xff]  }
 0xd36   :  { %v6286_v28 = vadd.f32 %v13714_v56, %v6100_v5  ;;  %v7127_v56 = vld [vmem:[#allocation12 + $0x4] sm:$0xf]  ;;  %v14659_v19 = vld [vmem:[#allocation13 + $0x264] ss:$16 sps:$4 sm:$0xff]  }
 0xd37   :  { %v6271_v15 = vpop.f32.mrf.mxu0 }
 0xd38   :  { %v6284_v61 = vadd.f32 %v6271_v15, %v6098_v27  ;;  %v14537_v15 = vld [vmem:[#allocation13 + $0x1e0] ss:$16 sps:$4 sm:$0xff]  }
 0xd51   :  { %v13753_v62 = vpop.f32.mrf.mxu0 }
 0xd52   :  { %v6471_v22 = vadd.f32 %v13753_v62, %v6285_v57  ;;  %v14545_v62 = vld [vmem:[#allocation13 + $0x1c4] ss:$16 sps:$4 sm:$0xff]   ;;  %v14590_v57 = vld [vmem:[#allocation13 + $0xec] ss:$16 sps:$4 sm:$0xff]  }
 0xd53   :  { %v6454_v52 = vpop.f32.mrf.mxu0  ;;  %7648 = vmatprep.subr.bf16.mxu0 %v14590_v57  ;;  %v14657_v57 = vld [vmem:[#allocation13 + $0x260] ss:$16 sps:$4 sm:$0xff]  }
 0xd54   :  { %v6469_v58 = vadd.f32 %v6454_v52, %v6283_v54  ;;  %v14543_v52 = vld [vmem:[#allocation13 + $0x1c0] ss:$16 sps:$4 sm:$0xff]  }
 0xd55   :  { %v13754_v44 = vpop.f32.mrf.mxu0 }
 0xd56   :  { %v6472_v53 = vadd.f32 %v13754_v44, %v6286_v28  ;;  %v14551_v44 = vld [vmem:[#allocation13 + $0x1a4] ss:$16 sps:$4 sm:$0xff]   ;;  %v14585_v28 = vld [vmem:[#allocation13 + $0xe0] ss:$16 sps:$4 sm:$0xff]  }
 0xd57   :  { %v6457_v37 = vpop.f32.mrf.mxu0 }
 0xd58   :  { %v6470_v25 = vadd.f32 %v6457_v37, %v6284_v61  ;;  %v14549_v37 = vld [vmem:[#allocation13 + $0x1a0] ss:$16 sps:$4 sm:$0xff]   ;;  %v14596_v61 = vld [vmem:[#allocation13 + $0xcc] ss:$16 sps:$4 sm:$0xff]  }
 0xd71   :  { %v13793_v38 = vpop.f32.mrf.mxu0 }
 0xd72   :  { %v6657_v46 = vadd.f32 %v13793_v38, %v6471_v22  ;;  %v14557_v38 = vld [vmem:[#allocation13 + $0x184] ss:$16 sps:$4 sm:$0xff]  }
 0xd73   :  { %v6640_v35 = vpop.f32.mrf.mxu0 }
 0xd74   :  { %v6655_v20 = vadd.f32 %v6640_v35, %v6469_v58  ;;  %v14555_v35 = vld [vmem:[#allocation13 + $0x180] ss:$16 sps:$4 sm:$0xff]   ;;  %v14588_v58 = vld [vmem:[#allocation13 + $0xe8] ss:$16 sps:$4 sm:$0xff]  }
 0xd75   :  { %v13794_v12 = vpop.f32.mrf.mxu0 }
 0xd76   :  { %v6658_v14 = vadd.f32 %v13794_v12, %v6472_v53  ;;  %v14563_v12 = vld [vmem:[#allocation13 + $0x164] ss:$16 sps:$4 sm:$0xff]  }
 0xd77   :  { %v6643_v34 = vpop.f32.mrf.mxu0 }
 0xd78   :  { %v6656_v30 = vadd.f32 %v6643_v34, %v6470_v25  ;;  %v14561_v34 = vld [vmem:[#allocation13 + $0x160] ss:$16 sps:$4 sm:$0xff]   ;;  %v14599_v25 = vld [vmem:[#allocation13 + $0xa4] ss:$16 sps:$4 sm:$0xff]  }
 0xd91   :  { %v13833_v0 = vpop.f32.mrf.mxu0 }
 0xd92   :  { %v6843_v6 = vadd.f32 %v13833_v0, %v6657_v46  ;;  %v14569_v0 = vld [vmem:[#allocation13 + $0x144] ss:$16 sps:$4 sm:$0xff]  }
 0xd93   :  { %v6826_v29 = vpop.f32.mrf.mxu0 }
 0xd94   :  { %v6841_v1 = vadd.f32 %v6826_v29, %v6655_v20  ;;  %v14573_v29 = vld [vmem:[#allocation13 + $0x120] ss:$16 sps:$4 sm:$0xff]  }
 0xd95   :  { %v13834_v23 = vpop.f32.mrf.mxu0 }
 0xd96   :  { %v6844_v16 = vadd.f32 %v13834_v23, %v6658_v14  ;;  %v15584_v23 = vmov 0   ;;  %v14602_v14 = vld [vmem:[#allocation13 + $0xac] ss:$16 sps:$4 sm:$0xff]  }
 0xd97   :  { %v6829_v45 = vpop.f32.mrf.mxu0  ;;  %7438 = vmatprep.mubr.bf16.mxu0 %v15584_v23 }
 0xd98   :  { %v6842_v21 = vadd.f32 %v6829_v45, %v6656_v30  ;;  %v14593_v45 = vld [vmem:[#allocation13 + $0xc4] ss:$16 sps:$4 sm:$0xff]   ;;  %v14608_v30 = vld [vmem:[#allocation13 + $0x8c] ss:$16 sps:$4 sm:$0xff]  }
 0xdb1   :  { %v13873_v7 = vpop.f32.mrf.mxu0 }
 0xdb2   :  { %v7029_v26 = vadd.f32 %v13873_v7, %v6843_v6  ;;  %v14591_v6 = vld [vmem:[#allocation13 + $0xc0] ss:$16 sps:$4 sm:$0xff]   ;;  %v14594_v7 = vld [vmem:[#allocation13 + $0xc8] ss:$16 sps:$4 sm:$0xff]  }
 0xdb3   :  { %v7012_v63 = vpop.f32.mrf.mxu0 }
 0xdb4   :  { %v7027_v31 = vadd.f32 %v7012_v63, %v6841_v1  ;;  %v7040_v48 = vadd.f32 %v11489_v50, %v7029_v26  ;;  %v14597_v26 = vld [vmem:[#allocation13 + $0xa0] ss:$16 sps:$4 sm:$0xff]   ;;  %v14605_v63 = vld [vmem:[#allocation13 + $0x84] ss:$16 sps:$4 sm:$0xff]  }
 0xdb5   :  { %v13874_v51 = vpop.f32.mrf.mxu0 }
 0xdb6   :  { %v7030_v47 = vadd.f32 %v13874_v51, %v6844_v16  ;;  %v7038_v17 = vadd.f32 %v11489_v50, %v7027_v31  ;;  %v7044_v18 = vmax.f32 %v7040_v48, 0.0  ;;  %v14603_v16 = vld [vmem:[#allocation13 + $0x80] ss:$16 sps:$4 sm:$0xff]   ;;  %v14606_v31 = vld [vmem:[#allocation13 + $0x88] ss:$16 sps:$4 sm:$0xff]  }
 0xdb7   :  { %v7015_v32 = vpop.f32.mrf.mxu0  ;;  %v14611_v51 = vld [vmem:[#allocation13 + $0x64] ss:$16 sps:$4 sm:$0xff]   ;;  %v14609_v48 = vld [vmem:[#allocation13 + $0x60] ss:$16 sps:$4 sm:$0xff]  }
 0xdb8   :  { %v7041_v39 = vadd.f32 %v11489_v50, %v7030_v47  ;;  %v7028_v33 = vadd.f32 %v7015_v32, %v6842_v21  ;;  %v7042_v55 = vmax.f32 %v7038_v17, 0.0  ;;  %v14614_v21 = vld [vmem:[#allocation13 + $0x6c] ss:$16 sps:$4 sm:$0xff]   ;;  %v14612_v47 = vld [vmem:[#allocation13 + $0x68] ss:$16 sps:$4 sm:$0xff]  }
 0xdb9   :  { %v14617_v32 = vld [vmem:[#allocation13 + $0x44] ss:$16 sps:$4 sm:$0xff]   ;;  %v14620_v17 = vld [vmem:[#allocation13 + $0x4c] ss:$16 sps:$4 sm:$0xff]  }
 0xdba   :  { %v7045_v36 = vmax.f32 %v7041_v39, 0.0  ;;  %v7039_v49 = vadd.f32 %v11489_v50, %v7028_v33  ;;  %v14600_v50 = vld [vmem:[#allocation13 + $0xa8] ss:$16 sps:$4 sm:$0xff]   ;;  %v14615_v39 = vld [vmem:[#allocation13 + $0x40] ss:$16 sps:$4 sm:$0xff]  }
 0xdbb   :  { %v14618_v33 = vld [vmem:[#allocation13 + $0x48] ss:$16 sps:$4 sm:$0xff]  }
 0xdbc   :  { %v17723_v59 = vpack.c.bf16 %v7045_v36, %v7044_v18  ;;  %v7043_v42 = vmax.f32 %v7039_v49, 0.0  ;;  %v14623_v18 = vld [vmem:[#allocation13 + $0x24] ss:$16 sps:$4 sm:$0xff]   ;;  %v14626_v36 = vld [vmem:[#allocation13 + $0x2c] ss:$16 sps:$4 sm:$0xff]  }
 0xdbd   :  { %v14621_v49 = vld [vmem:[#allocation13 + $0x20] ss:$16 sps:$4 sm:$0xff]  }
 0xdbe   :  { %v17725_v24 = vpack.c.bf16 %v7043_v42, %v7042_v55  ;;  %13876 = vmatpush3.bf16.msra.mxu1 %v17723_v59  ;;  %v14624_v55 = vld [vmem:[#allocation13 + $0x28] ss:$16 sps:$4 sm:$0xff]   ;;  %v14629_v42 = vld [vmem:[#allocation13 + $0x4] ss:$16 sps:$4 sm:$0xff]  }
 0xdbf   :  { %13877 = vmatprep.subr.bf16.mxu1 %v15582_v4 }
 0xdc2   :  { %13878 = vmatpush3.bf16.msra.mxu1 %v17725_v24 }
 0xdc3   :  { %13883 = vmatprep.subr.bf16.mxu1 %v15582_v4 }
 0xdc5   :  { %13880 = vmatmul.mubr.msk.bf16.vlgmr.msra.gmra.mxu1 %vm7049_vm3, %v7048_v10  ;;  %v14632_v10 = vld [vmem:[#allocation13 + $0xc] ss:$16 sps:$4 sm:$0xff]  }
 0xdc6   :  { %13884 = vmatpush3.bf16.msra.mxu1 %v17723_v59  ;;  %13887 = vmatprep.mubr.msk.bf16.mxu1 %vm15583_vm2, %v15582_v4 }
 0xdc7   :  { %13885 = vmatprep.subr.bf16.mxu1 %v15582_v4 }
 0xdca   :  { %13886 = vmatpush3.bf16.msra.mxu1 %v17725_v24 }
 0xdcb   :  { %7365 = vmatprep.subr.bf16.mxu1 %v14539_v11  ;;  %v14627_v11 = vld [vmem:[#allocation13] ss:$16 sps:$4 sm:$0xff]  }
 0xdcd   :  { %13888 = vmatmul.mubr.msk.bf16.vlgmr.msra.gmra.mxu1 %vm7049_vm3, %v7127_v56  ;;  %v14630_v56 = vld [vmem:[#allocation13 + $0x8] ss:$16 sps:$4 sm:$0xff]  }
 0xdce   :  { %7366 = vmatpush1.bf16.msra.mxu1 %v14537_v15  ;;  %7397 = vmatprep.mubr.bf16.mxu1 %v15584_v23 }
 0xdcf   :  { %7367 = vmatprep.subr.bf16.mxu1 %v14545_v62  ;;  %v7690_v62 = vld [vmem:[#allocation12 + $0x8] sm:$0xf] }
 0xdd2   :  { %7368 = vmatpush1.bf16.msra.mxu1 %v14543_v52  ;;  %v14633_v52 = vld [vmem:[#allocation13 + $0x2e0] ss:$16 sps:$4 sm:$0xff]  }
 0xdd3   :  { %7369 = vmatprep.subr.bf16.mxu1 %v14551_v44  ;;  %v14635_v44 = vld [vmem:[#allocation13 + $0x2e4] ss:$16 sps:$4 sm:$0xff]  }
 0xdd6   :  { %7370 = vmatpush1.bf16.msra.mxu1 %v14549_v37  ;;  %v14636_v37 = vld [vmem:[#allocation13 + $0x2e8] ss:$16 sps:$4 sm:$0xff]  }
 0xdd7   :  { %7371 = vmatprep.subr.bf16.mxu1 %v14557_v38  ;;  %v14638_v38 = vld [vmem:[#allocation13 + $0x2ec] ss:$16 sps:$4 sm:$0xff]  }
 0xdda   :  { %7372 = vmatpush1.bf16.msra.mxu1 %v14555_v35  ;;  %v14641_v35 = vld [vmem:[#allocation13 + $0x2c4] ss:$16 sps:$4 sm:$0xff]  }
 0xddb   :  { %7373 = vmatprep.subr.bf16.mxu1 %v14563_v12  ;;  %v14644_v12 = vld [vmem:[#allocation13 + $0x2cc] ss:$16 sps:$4 sm:$0xff]  }
 0xdde   :  { %7374 = vmatpush1.bf16.msra.mxu1 %v14561_v34  ;;  %v14639_v34 = vld [vmem:[#allocation13 + $0x2c0] ss:$16 sps:$4 sm:$0xff]  }
 0xddf   :  { %7375 = vmatprep.subr.bf16.mxu1 %v14569_v0  ;;  %v14642_v0 = vld [vmem:[#allocation13 + $0x2c8] ss:$16 sps:$4 sm:$0xff]  }
 0xde2   :  { %7376 = vmatpush1.bf16.msra.mxu1 %v14567_v13  ;;  %v14647_v13 = vld [vmem:[#allocation13 + $0x2a4] ss:$16 sps:$4 sm:$0xff]  }
 0xde3   :  { %7377 = vmatprep.subr.bf16.mxu1 %v14575_v43  ;;  %v14650_v43 = vld [vmem:[#allocation13 + $0x2ac] ss:$16 sps:$4 sm:$0xff]  }
 0xde6   :  { %7378 = vmatpush1.bf16.msra.mxu1 %v14573_v29  ;;  %v14648_v29 = vld [vmem:[#allocation13 + $0x2a8] ss:$16 sps:$4 sm:$0xff]  }
 0xde7   :  { %7379 = vmatprep.subr.bf16.mxu1 %v14581_v8  ;;  %v14656_v8 = vld [vmem:[#allocation13 + $0x28c] ss:$16 sps:$4 sm:$0xff]  }
 0xdea   :  { %7380 = vmatpush1.bf16.msra.mxu1 %v14579_v60  ;;  %v14654_v60 = vld [vmem:[#allocation13 + $0x288] ss:$16 sps:$4 sm:$0xff]  }
 0xdeb   :  { %7607 = vmatprep.subr.bf16.mxu1 %v14587_v40  ;;  %v14662_v40 = vld [vmem:[#allocation13 + $0x26c] ss:$16 sps:$4 sm:$0xff]  }
 0xe85   :  { %v17740_v41 = vpop.f32.mrf.mxu1 }
 0xe86   :  { %v7093_v15 = vpack.c.bf16 %v17740_v41, %v17740_v41  ;;  %v14660_v41 = vld [vmem:[#allocation13 + $0x268] ss:$16 sps:$4 sm:$0xff]  }
 0xe87   :  { %v13881_v5 = vpop.f32.mrf.mxu1 }
 0xe88   :  { %v14665_v5 = vld [vmem:[#allocation13 + $0x244] ss:$16 sps:$4 sm:$0xff]  }
 0xe89   :  { %v7090_v54 = vpop.f32.mrf.mxu1 }
 0xe8a   :  { %v14668_v54 = vld [vmem:[#allocation13 + $0x24c] ss:$16 sps:$4 sm:$0xff]  }
 0xe8b   :  { %v13882_v22 = vpop.f32.mrf.mxu1 }
 0xe8c   :  { %v14663_v22 = vld [vmem:[#allocation13 + $0x240] ss:$16 sps:$4 sm:$0xff]  }
 0xe8d   :  { %v7165_v27 = vpop.f32.mrf.mxu1 }
 0xe8e   :  { %v7171_v46 = vpack.c.bf16 %v7165_v27, %v7165_v27  ;;  %v14666_v27 = vld [vmem:[#allocation13 + $0x248] ss:$16 sps:$4 sm:$0xff]  }
 0xe8f   :  { %v13889_v53 = vpop.f32.mrf.mxu1 }
 0xe90   :  { %7398 = vmatmul.mubr.bf16.vlgmr.msra.gmra.mxu1 %v7171_v46  ;;  %7439 = vmatmul.mubr.bf16.vlgmr.msra.gmra.mxu0 %v7171_v46  ;;  %v14674_v46 = vld [vmem:[#allocation13 + $0x22c] ss:$16 sps:$4 sm:$0xff]   ;;  %v14675_v53 = vld [vmem:[#allocation13 + $0x200] ss:$16 sps:$4 sm:$0xff]  }
 0xe91   :  { %7608 = vmatpush1.bf16.msra.mxu1 %v14585_v28  ;;  %7649 = vmatpush1.bf16.msra.mxu0 %v14588_v58  ;;  %v7168_v20 = vpop.f32.mrf.mxu1  ;;  %v14671_v28 = vld [vmem:[#allocation13 + $0x224] ss:$16 sps:$4 sm:$0xff]   ;;  %v14669_v58 = vld [vmem:[#allocation13 + $0x220] ss:$16 sps:$4 sm:$0xff]  }
 0xe92   :  { %7609 = vmatprep.subr.bf16.mxu1 %v14593_v45  ;;  %7650 = vmatprep.subr.bf16.mxu0 %v14596_v61  ;;  %v14672_v45 = vld [vmem:[#allocation13 + $0x228] ss:$16 sps:$4 sm:$0xff]   ;;  %v14677_v61 = vld [vmem:[#allocation13 + $0x204] ss:$16 sps:$4 sm:$0xff]   ;;  %v14680_v20 = vld [vmem:[#allocation13 + $0x20c] ss:$16 sps:$4 sm:$0xff]  }
 0xe93   :  { %v13890_v1 = vpop.f32.mrf.mxu1  ;;  %7639 = vmatprep.mubr.bf16.mxu1 %v15584_v23  ;;  %7680 = vmatprep.mubr.bf16.mxu0 %v15584_v23 }
 0xe95   :  { %7610 = vmatpush1.bf16.msra.mxu1 %v14591_v6  ;;  %7651 = vmatpush1.bf16.msra.mxu0 %v14594_v7  ;;  %v14678_v6 = vld [vmem:[#allocation13 + $0x208] ss:$16 sps:$4 sm:$0xff]   ;;  %v14683_v7 = vld [vmem:[#allocation13 + $0x3e4] ss:$16 sps:$4 sm:$0xff]  }
 0xe96   :  { %7611 = vmatprep.subr.bf16.mxu1 %v14599_v25  ;;  %7652 = vmatprep.subr.bf16.mxu0 %v14602_v14 }
 0xe99   :  { %7612 = vmatpush1.bf16.msra.mxu1 %v14597_v26  ;;  %7653 = vmatpush1.bf16.msra.mxu0 %v14600_v50 }
 0xe9a   :  { %7613 = vmatprep.subr.bf16.mxu1 %v14605_v63  ;;  %7654 = vmatprep.subr.bf16.mxu0 %v14608_v30 }
 0xe9d   :  { %7614 = vmatpush1.bf16.msra.mxu1 %v14603_v16  ;;  %7655 = vmatpush1.bf16.msra.mxu0 %v14606_v31 }
 0xe9e   :  { %7615 = vmatprep.subr.bf16.mxu1 %v14611_v51  ;;  %7656 = vmatprep.subr.bf16.mxu0 %v14614_v21 }
 0xea1   :  { %7616 = vmatpush1.bf16.msra.mxu1 %v14609_v48  ;;  %7657 = vmatpush1.bf16.msra.mxu0 %v14612_v47 }
 0xea2   :  { %7617 = vmatprep.subr.bf16.mxu1 %v14617_v32  ;;  %7658 = vmatprep.subr.bf16.mxu0 %v14620_v17 }
 0xea5   :  { %7618 = vmatpush1.bf16.msra.mxu1 %v14615_v39  ;;  %7659 = vmatpush1.bf16.msra.mxu0 %v14618_v33 }
 0xea6   :  { %7619 = vmatprep.subr.bf16.mxu1 %v14623_v18  ;;  %7660 = vmatprep.subr.bf16.mxu0 %v14626_v36 }
 0xea9   :  { %7620 = vmatpush1.bf16.msra.mxu1 %v14621_v49  ;;  %7661 = vmatpush1.bf16.msra.mxu0 %v14624_v55 }
 0xeaa   :  { %7621 = vmatprep.subr.bf16.mxu1 %v14629_v42  ;;  %7662 = vmatprep.subr.bf16.mxu0 %v14632_v10  ;;  %v14681_v10 = vld [vmem:[#allocation13 + $0x3e0] ss:$16 sps:$4 sm:$0xff]  }
 0xead   :  { %7622 = vmatpush1.bf16.msra.mxu1 %v14627_v11  ;;  %7663 = vmatpush1.bf16.msra.mxu0 %v14630_v56  ;;  %v14689_v56 = vld [vmem:[#allocation13 + $0x3c4] ss:$16 sps:$4 sm:$0xff]  }
 0xeae   :  { %13891 = vmatprep.subr.bf16.mxu1 %v15582_v4  ;;  %7969 = vmatprep.subr.bf16.mxu0 %v14638_v38  ;;  %v8015_v38 = vld [vmem:[#allocation12 + $0xc] sm:$0xf] }
 0xeb0   :  { %7640 = vmatmul.mubr.bf16.vlgmr.msra.gmra.mxu1 %v7093_v15  ;;  %7681 = vmatmul.mubr.bf16.vlgmr.msra.gmra.mxu0 %v7093_v15 }
 0xeb1   :  { %13892 = vmatpush3.bf16.msra.mxu1 %v17723_v59  ;;  %13895 = vmatprep.mubr.msk.bf16.mxu1 %vm15583_vm2, %v15582_v4 }
 0xeb2   :  { %13893 = vmatprep.subr.bf16.mxu1 %v15582_v4  ;;  %8001 = vmatprep.mubr.bf16.mxu0 %v15584_v23 }
 0xeb3   :  { %7970 = vmatpush1.bf16.msra.mxu0 %v14636_v37  ;;  %v14695_v37 = vld [vmem:[#allocation13 + $0x3a4] ss:$16 sps:$4 sm:$0xff]  }
 0xeb4   :  { %7971 = vmatprep.subr.bf16.mxu0 %v14644_v12  ;;  %v14692_v12 = vld [vmem:[#allocation13 + $0x3cc] ss:$16 sps:$4 sm:$0xff]  }
 0xeb5   :  { %13894 = vmatpush3.bf16.msra.mxu1 %v17725_v24 }
 0xeb6   :  { %7928 = vmatprep.subr.bf16.mxu1 %v14635_v44 }
 0xeb7   :  { %7972 = vmatpush1.bf16.msra.mxu0 %v14642_v0  ;;  %v14701_v0 = vld [vmem:[#allocation13 + $0x384] ss:$16 sps:$4 sm:$0xff]  }
 0xeb8   :  { %13896 = vmatmul.mubr.msk.bf16.vlgmr.msra.gmra.mxu1 %vm7049_vm3, %v7690_v62  ;;  %7973 = vmatprep.subr.bf16.mxu0 %v14650_v43  ;;  %v14686_v62 = vld [vmem:[#allocation13 + $0x3ec] ss:$16 sps:$4 sm:$0xff]  }
 0xeb9   :  { %7960 = vmatprep.mubr.bf16.mxu1 %v15584_v23  ;;  %7929 = vmatpush1.bf16.msra.mxu1 %v14633_v52  ;;  %v14687_v52 = vld [vmem:[#allocation13 + $0x3c0] ss:$16 sps:$4 sm:$0xff]   ;;  %v14698_v43 = vld [vmem:[#allocation13 + $0x3ac] ss:$16 sps:$4 sm:$0xff]  }
 0xeba   :  { %7930 = vmatprep.subr.bf16.mxu1 %v14641_v35  ;;  %v14684_v35 = vld [vmem:[#allocation13 + $0x3e8] ss:$16 sps:$4 sm:$0xff]  }
 0xebb   :  { %7974 = vmatpush1.bf16.msra.mxu0 %v14648_v29  ;;  %v14707_v29 = vld [vmem:[#allocation13 + $0x364] ss:$16 sps:$4 sm:$0xff]  }
 0xebc   :  { %7975 = vmatprep.subr.bf16.mxu0 %v14656_v8  ;;  %v14704_v8 = vld [vmem:[#allocation13 + $0x38c] ss:$16 sps:$4 sm:$0xff]  }
 0xebd   :  { %7931 = vmatpush1.bf16.msra.mxu1 %v14639_v34  ;;  %v14693_v34 = vld [vmem:[#allocation13 + $0x3a0] ss:$16 sps:$4 sm:$0xff]  }
 0xebe   :  { %7932 = vmatprep.subr.bf16.mxu1 %v14647_v13  ;;  %v14690_v13 = vld [vmem:[#allocation13 + $0x3c8] ss:$16 sps:$4 sm:$0xff]  }
 0xebf   :  { %7976 = vmatpush1.bf16.msra.mxu0 %v14654_v60  ;;  %v14713_v60 = vld [vmem:[#allocation13 + $0x344] ss:$16 sps:$4 sm:$0xff]  }
 0xec0   :  { %7977 = vmatprep.subr.bf16.mxu0 %v14662_v40  ;;  %v14710_v40 = vld [vmem:[#allocation13 + $0x36c] ss:$16 sps:$4 sm:$0xff]  }
 0xec1   :  { %7933 = vmatpush1.bf16.msra.mxu1 %v14645_v9  ;;  %v14699_v9 = vld [vmem:[#allocation13 + $0x380] ss:$16 sps:$4 sm:$0xff]  }
 0xec2   :  { %7934 = vmatprep.subr.bf16.mxu1 %v14653_v2  ;;  %v14696_v2 = vld [vmem:[#allocation13 + $0x3a8] ss:$16 sps:$4 sm:$0xff]  }
 0xec3   :  { %7978 = vmatpush1.bf16.msra.mxu0 %v14660_v41  ;;  %v14708_v41 = vld [vmem:[#allocation13 + $0x368] ss:$16 sps:$4 sm:$0xff]  }
 0xec4   :  { %7979 = vmatprep.subr.bf16.mxu0 %v14668_v54  ;;  %v14714_v54 = vld [vmem:[#allocation13 + $0x348] ss:$16 sps:$4 sm:$0xff]  }
 0xec5   :  { %7935 = vmatpush1.bf16.msra.mxu1 %v14651_v3  ;;  %v14705_v3 = vld [vmem:[#allocation13 + $0x360] ss:$16 sps:$4 sm:$0xff]  }
 0xec6   :  { %7936 = vmatprep.subr.bf16.mxu1 %v14659_v19  ;;  %v14702_v19 = vld [vmem:[#allocation13 + $0x388] ss:$16 sps:$4 sm:$0xff]  }
 0xec7   :  { %7980 = vmatpush1.bf16.msra.mxu0 %v14666_v27  ;;  %v14717_v27 = vld [vmem:[#allocation13 + $0x320] ss:$16 sps:$4 sm:$0xff]  }
 0xec8   :  { %7981 = vmatprep.subr.bf16.mxu0 %v14674_v46  ;;  %v14725_v46 = vld [vmem:[#allocation13 + $0x304] ss:$16 sps:$4 sm:$0xff]  }
 0xec9   :  { %7937 = vmatpush1.bf16.msra.mxu1 %v14657_v57  ;;  %v14711_v57 = vld [vmem:[#allocation13 + $0x340] ss:$16 sps:$4 sm:$0xff]  }
 0xeca   :  { %7938 = vmatprep.subr.bf16.mxu1 %v14665_v5  ;;  %v14716_v5 = vld [vmem:[#allocation13 + $0x34c] ss:$16 sps:$4 sm:$0xff]  }
 0xecb   :  { %7982 = vmatpush1.bf16.msra.mxu0 %v14672_v45  ;;  %v14723_v45 = vld [vmem:[#allocation13 + $0x300] ss:$16 sps:$4 sm:$0xff]  }
 0xecc   :  { %7983 = vmatprep.subr.bf16.mxu0 %v14680_v20  ;;  %v14731_v20 = vld [vmem:[#allocation13 + $0x4e4] ss:$16 sps:$4 sm:$0xff]  }
 0xecd   :  { %7939 = vmatpush1.bf16.msra.mxu1 %v14663_v22  ;;  %v14719_v22 = vld [vmem:[#allocation13 + $0x324] ss:$16 sps:$4 sm:$0xff]  }
 0xece   :  { %7940 = vmatprep.subr.bf16.mxu1 %v14671_v28  ;;  %v14722_v28 = vld [vmem:[#allocation13 + $0x32c] ss:$16 sps:$4 sm:$0xff]  }
 0xecf   :  { %7984 = vmatpush1.bf16.msra.mxu0 %v14678_v6 }
 0xed0   :  { %8253 = vmatprep.subr.bf16.mxu0 %v14683_v7 }
 0xed1   :  { %7941 = vmatpush1.bf16.msra.mxu1 %v14669_v58  ;;  %v14720_v58 = vld [vmem:[#allocation13 + $0x328] ss:$16 sps:$4 sm:$0xff]  }
 0xed2   :  { %7942 = vmatprep.subr.bf16.mxu1 %v14677_v61  ;;  %v14726_v61 = vld [vmem:[#allocation13 + $0x308] ss:$16 sps:$4 sm:$0xff]  }
 0xed5   :  { %7943 = vmatpush1.bf16.msra.mxu1 %v14675_v53  ;;  %v14728_v53 = vld [vmem:[#allocation13 + $0x30c] ss:$16 sps:$4 sm:$0xff]  }
 0xed6   :  { %13899 = vmatprep.subr.bf16.mxu1 %v15582_v4 }
 0xf50   :  { %v7399_v25 = vpop.f32.mrf.mxu1  ;;  %v7440_v14 = vpop.f32.mrf.mxu0 }
 0xf52   :  { %v7401_v1 = vpop.f32.mrf.mxu1  ;;  %v7442_v26 = vpop.f32.mrf.mxu0 }
 0xf54   :  { %v7403_v50 = vpop.f32.mrf.mxu1  ;;  %v7444_v63 = vpop.f32.mrf.mxu0 }
 0xf56   :  { %v7404_v30 = vpop.f32.mrf.mxu1  ;;  %v7445_v16 = vpop.f32.mrf.mxu0 }
 0xf70   :  { %v7641_v31 = vpop.f32.mrf.mxu1  ;;  %v7682_v51 = vpop.f32.mrf.mxu0 }
 0xf71   :  { %v17756_v21 = vadd.f32 %v7641_v31, %v7399_v25  ;;  %v17758_v48 = vadd.f32 %v7682_v51, %v7440_v14 }
 0xf72   :  { %v7643_v47 = vpop.f32.mrf.mxu1  ;;  %v7684_v32 = vpop.f32.mrf.mxu0 }
 0xf73   :  { %v17760_v17 = vadd.f32 %v7643_v47, %v7401_v1  ;;  %v17762_v39 = vadd.f32 %v7684_v32, %v7442_v26 }
 0xf74   :  { %v7645_v33 = vpop.f32.mrf.mxu1  ;;  %v7686_v18 = vpop.f32.mrf.mxu0 }
 0xf75   :  { %v14729_v33 = vld [vmem:[#allocation13 + $0x4e0] ss:$16 sps:$4 sm:$0xff]   ;;  %v14737_v18 = vld [vmem:[#allocation13 + $0x4c4] ss:$16 sps:$4 sm:$0xff]  }
 0xf76   :  { %v7646_v36 = vpop.f32.mrf.mxu1  ;;  %v7687_v49 = vpop.f32.mrf.mxu0 }
 0xf77   :  { %v14743_v49 = vld [vmem:[#allocation13 + $0x4a4] ss:$16 sps:$4 sm:$0xff]  }
 0xf78   :  { %v7728_v55 = vpop.f32.mrf.mxu1 }
 0xf79   :  { %v7734_v42 = vpack.c.bf16 %v7728_v55, %v7728_v55  ;;  %v8340_v55 = vld [vmem:[#allocation12 + $0x10] sm:$0xf] }
 0xf7a   :  { %v13897_v11 = vpop.f32.mrf.mxu1 }
 0xf7b   :  { %7961 = vmatmul.mubr.bf16.vlgmr.msra.gmra.mxu1 %v7734_v42  ;;  %8002 = vmatmul.mubr.bf16.vlgmr.msra.gmra.mxu0 %v7734_v42  ;;  %v14732_v42 = vld [vmem:[#allocation13 + $0x4e8] ss:$16 sps:$4 sm:$0xff]   ;;  %v14741_v11 = vld [vmem:[#allocation13 + $0x4a0] ss:$16 sps:$4 sm:$0xff]  }
 0xf7c   :  { %13900 = vmatpush3.bf16.msra.mxu1 %v17723_v59  ;;  %v7731_v15 = vpop.f32.mrf.mxu1  ;;  %13903 = vmatprep.mubr.msk.bf16.mxu1 %vm15583_vm2, %v15582_v4 }
 0xf7d   :  { %13901 = vmatprep.subr.bf16.mxu1 %v15582_v4  ;;  %8254 = vmatpush1.bf16.msra.mxu0 %v14681_v10  ;;  %v14740_v10 = vld [vmem:[#allocation13 + $0x4cc] ss:$16 sps:$4 sm:$0xff]   ;;  %v14738_v15 = vld [vmem:[#allocation13 + $0x4c8] ss:$16 sps:$4 sm:$0xff]  }
 0xf7e   :  { %v13898_v44 = vpop.f32.mrf.mxu1  ;;  %8255 = vmatprep.subr.bf16.mxu0 %v14689_v56  ;;  %8285 = vmatprep.mubr.bf16.mxu0 %v15584_v23  ;;  %v14749_v56 = vld [vmem:[#allocation13 + $0x484] ss:$16 sps:$4 sm:$0xff]  }
 0xf7f   :  { %v14755_v44 = vld [vmem:[#allocation13 + $0x464] ss:$16 sps:$4 sm:$0xff]  }
 0xf80   :  { %13902 = vmatpush3.bf16.msra.mxu1 %v17725_v24 }
 0xf81   :  { %8294 = vmatprep.subr.bf16.mxu1 %v14686_v62  ;;  %8256 = vmatpush1.bf16.msra.mxu0 %v14687_v52  ;;  %v14746_v62 = vld [vmem:[#allocation13 + $0x4ac] ss:$16 sps:$4 sm:$0xff]   ;;  %v14747_v52 = vld [vmem:[#allocation13 + $0x480] ss:$16 sps:$4 sm:$0xff]  }
 0xf82   :  { %8257 = vmatprep.subr.bf16.mxu0 %v14695_v37  ;;  %v14744_v37 = vld [vmem:[#allocation13 + $0x4a8] ss:$16 sps:$4 sm:$0xff]  }
 0xf83   :  { %13904 = vmatmul.mubr.msk.bf16.vlgmr.msra.gmra.mxu1 %vm7049_vm3, %v8015_v38  ;;  %v14752_v38 = vld [vmem:[#allocation13 + $0x48c] ss:$16 sps:$4 sm:$0xff]  }
 0xf84   :  { %8295 = vmatpush1.bf16.msra.mxu1 %v14684_v35  ;;  %8326 = vmatprep.mubr.bf16.mxu1 %v15584_v23  ;;  %v14753_v35 = vld [vmem:[#allocation13 + $0x460] ss:$16 sps:$4 sm:$0xff]  }
 0xf85   :  { %8296 = vmatprep.subr.bf16.mxu1 %v14692_v12  ;;  %8258 = vmatpush1.bf16.msra.mxu0 %v14693_v34  ;;  %v14761_v12 = vld [vmem:[#allocation13 + $0x444] ss:$16 sps:$4 sm:$0xff]   ;;  %v14750_v34 = vld [vmem:[#allocation13 + $0x488] ss:$16 sps:$4 sm:$0xff]  }
 0xf86   :  { %8259 = vmatprep.subr.bf16.mxu0 %v14701_v0  ;;  %v14758_v0 = vld [vmem:[#allocation13 + $0x46c] ss:$16 sps:$4 sm:$0xff]  }
 0xf88   :  { %8297 = vmatpush1.bf16.msra.mxu1 %v14690_v13  ;;  %v14759_v13 = vld [vmem:[#allocation13 + $0x440] ss:$16 sps:$4 sm:$0xff]  }
 0xf89   :  { %8298 = vmatprep.subr.bf16.mxu1 %v14698_v43  ;;  %8260 = vmatpush1.bf16.msra.mxu0 %v14699_v9  ;;  %v14756_v43 = vld [vmem:[#allocation13 + $0x468] ss:$16 sps:$4 sm:$0xff]   ;;  %v14764_v9 = vld [vmem:[#allocation13 + $0x44c] ss:$16 sps:$4 sm:$0xff]  }
 0xf8a   :  { %8261 = vmatprep.subr.bf16.mxu0 %v14707_v29  ;;  %v14762_v29 = vld [vmem:[#allocation13 + $0x448] ss:$16 sps:$4 sm:$0xff]  }
 0xf8c   :  { %8299 = vmatpush1.bf16.msra.mxu1 %v14696_v2  ;;  %v14767_v2 = vld [vmem:[#allocation13 + $0x424] ss:$16 sps:$4 sm:$0xff]  }
 0xf8d   :  { %8300 = vmatprep.subr.bf16.mxu1 %v14704_v8  ;;  %8262 = vmatpush1.bf16.msra.mxu0 %v14705_v3  ;;  %v14765_v8 = vld [vmem:[#allocation13 + $0x420] ss:$16 sps:$4 sm:$0xff]   ;;  %v14770_v3 = vld [vmem:[#allocation13 + $0x42c] ss:$16 sps:$4 sm:$0xff]  }
 0xf8e   :  { %8263 = vmatprep.subr.bf16.mxu0 %v14713_v60  ;;  %v14768_v60 = vld [vmem:[#allocation13 + $0x428] ss:$16 sps:$4 sm:$0xff]  }
 0xf90   :  { %8301 = vmatpush1.bf16.msra.mxu1 %v14702_v19  ;;  %v14773_v19 = vld [vmem:[#allocation13 + $0x404] ss:$16 sps:$4 sm:$0xff]  }
 0xf91   :  { %8302 = vmatprep.subr.bf16.mxu1 %v14710_v40  ;;  %8264 = vmatpush1.bf16.msra.mxu0 %v14711_v57  ;;  %v14771_v40 = vld [vmem:[#allocation13 + $0x400] ss:$16 sps:$4 sm:$0xff]   ;;  %v14774_v57 = vld [vmem:[#allocation13 + $0x408] ss:$16 sps:$4 sm:$0xff]  }
 0xf92   :  { %8265 = vmatprep.subr.bf16.mxu0 %v14719_v22 }
 0xf94   :  { %8303 = vmatpush1.bf16.msra.mxu1 %v14708_v41  ;;  %v14776_v41 = vld [vmem:[#allocation13 + $0x40c] ss:$16 sps:$4 sm:$0xff]  }
 0xf95   :  { %8304 = vmatprep.subr.bf16.mxu1 %v14716_v5  ;;  %8266 = vmatpush1.bf16.msra.mxu0 %v14717_v27  ;;  %v14779_v5 = vld [vmem:[#allocation13 + $0x5e4] ss:$16 sps:$4 sm:$0xff]  }
 0xf96   :  { %8267 = vmatprep.subr.bf16.mxu0 %v14725_v46 }
 0xf98   :  { %8305 = vmatpush1.bf16.msra.mxu1 %v14714_v54 }
 0xf99   :  { %8306 = vmatprep.subr.bf16.mxu1 %v14722_v28  ;;  %8268 = vmatpush1.bf16.msra.mxu0 %v14723_v45 }
 0xf9a   :  { %13907 = vmatprep.subr.bf16.mxu0 %v15582_v4 }
 0xf9c   :  { %8307 = vmatpush1.bf16.msra.mxu1 %v14720_v58 }
 0xf9d   :  { %8308 = vmatprep.subr.bf16.mxu1 %v14728_v53 }
 0xfa0   :  { %8309 = vmatpush1.bf16.msra.mxu1 %v14726_v61 }
 0xfa1   :  { %8578 = vmatprep.subr.bf16.mxu1 %v14731_v20 }
0x103b   :  { %v7962_v6 = vpop.f32.mrf.mxu1  ;;  %v8003_v7 = vpop.f32.mrf.mxu0 }
0x103c   :  { %v17774_v25 = vadd.f32 %v7962_v6, %v17756_v21  ;;  %v17777_v14 = vadd.f32 %v8003_v7, %v17758_v48 }
0x103d   :  { %v7964_v1 = vpop.f32.mrf.mxu1  ;;  %v8005_v26 = vpop.f32.mrf.mxu0 }
0x103e   :  { %v17780_v50 = vadd.f32 %v7964_v1, %v17760_v17  ;;  %v17783_v63 = vadd.f32 %v8005_v26, %v17762_v39  ;;  %v14734_v17 = vld [vmem:[#allocation13 + $0x4ec] ss:$16 sps:$4 sm:$0xff]   ;;  %v14735_v39 = vld [vmem:[#allocation13 + $0x4c0] ss:$16 sps:$4 sm:$0xff]  }
0x103f   :  { %v7966_v30 = vpop.f32.mrf.mxu1  ;;  %v8007_v16 = vpop.f32.mrf.mxu0 }
0x1040   :  { %v14777_v30 = vld [vmem:[#allocation13 + $0x5e0] ss:$16 sps:$4 sm:$0xff]   ;;  %v14785_v16 = vld [vmem:[#allocation13 + $0x5c4] ss:$16 sps:$4 sm:$0xff]  }
0x1041   :  { %v7967_v31 = vpop.f32.mrf.mxu1  ;;  %v8008_v51 = vpop.f32.mrf.mxu0 }
0x1042   :  { %v14791_v51 = vld [vmem:[#allocation13 + $0x5a4] ss:$16 sps:$4 sm:$0xff]  }
0x1043   :  { %v8053_v47 = vpop.f32.mrf.mxu1 }
0x1044   :  { %v8059_v32 = vpack.c.bf16 %v8053_v47, %v8053_v47  ;;  %v8665_v47 = vld [vmem:[#allocation12 + $0x14] sm:$0xf] }
0x1045   :  { %v13905_v21 = vpop.f32.mrf.mxu1 }
0x1046   :  { %8286 = vmatmul.mubr.bf16.vlgmr.msra.gmra.mxu0 %v8059_v32  ;;  %8327 = vmatmul.mubr.bf16.vlgmr.msra.gmra.mxu1 %v8059_v32  ;;  %v14780_v32 = vld [vmem:[#allocation13 + $0x5e8] ss:$16 sps:$4 sm:$0xff]   ;;  %v14789_v21 = vld [vmem:[#allocation13 + $0x5a0] ss:$16 sps:$4 sm:$0xff]  }
0x1047   :  { %13908 = vmatpush3.bf16.msra.mxu0 %v17723_v59  ;;  %v8056_v48 = vpop.f32.mrf.mxu1  ;;  %13911 = vmatprep.mubr.msk.bf16.mxu0 %vm15583_vm2, %v15582_v4 }
0x1048   :  { %13909 = vmatprep.subr.bf16.mxu0 %v15582_v4  ;;  %8579 = vmatpush1.bf16.msra.mxu1 %v14729_v33  ;;  %v14788_v33 = vld [vmem:[#allocation13 + $0x5cc] ss:$16 sps:$4 sm:$0xff]   ;;  %v14786_v48 = vld [vmem:[#allocation13 + $0x5c8] ss:$16 sps:$4 sm:$0xff]  }
0x1049   :  { %v13906_v36 = vpop.f32.mrf.mxu1  ;;  %8580 = vmatprep.subr.bf16.mxu1 %v14737_v18  ;;  %8610 = vmatprep.mubr.bf16.mxu1 %v15584_v23  ;;  %v14797_v18 = vld [vmem:[#allocation13 + $0x584] ss:$16 sps:$4 sm:$0xff]  }
0x104a   :  { %v14803_v36 = vld [vmem:[#allocation13 + $0x564] ss:$16 sps:$4 sm:$0xff]  }
0x104b   :  { %13910 = vmatpush3.bf16.msra.mxu0 %v17725_v24 }
0x104c   :  { %8619 = vmatprep.subr.bf16.mxu0 %v14734_v17  ;;  %8581 = vmatpush1.bf16.msra.mxu1 %v14735_v39  ;;  %v14794_v17 = vld [vmem:[#allocation13 + $0x5ac] ss:$16 sps:$4 sm:$0xff]   ;;  %v14795_v39 = vld [vmem:[#allocation13 + $0x580] ss:$16 sps:$4 sm:$0xff]  }
0x104d   :  { %8582 = vmatprep.subr.bf16.mxu1 %v14743_v49  ;;  %v14792_v49 = vld [vmem:[#allocation13 + $0x5a8] ss:$16 sps:$4 sm:$0xff]  }
0x104e   :  { %13912 = vmatmul.mubr.msk.bf16.vlgmr.msra.gmra.mxu0 %vm7049_vm3, %v8340_v55  ;;  %v14800_v55 = vld [vmem:[#allocation13 + $0x58c] ss:$16 sps:$4 sm:$0xff]  }
0x104f   :  { %8620 = vmatpush1.bf16.msra.mxu0 %v14732_v42  ;;  %8651 = vmatprep.mubr.bf16.mxu0 %v15584_v23  ;;  %v14801_v42 = vld [vmem:[#allocation13 + $0x560] ss:$16 sps:$4 sm:$0xff]  }
0x1050   :  { %8621 = vmatprep.subr.bf16.mxu0 %v14740_v10  ;;  %8583 = vmatpush1.bf16.msra.mxu1 %v14741_v11  ;;  %v14809_v10 = vld [vmem:[#allocation13 + $0x544] ss:$16 sps:$4 sm:$0xff]   ;;  %v14798_v11 = vld [vmem:[#allocation13 + $0x588] ss:$16 sps:$4 sm:$0xff]  }
0x1051   :  { %8584 = vmatprep.subr.bf16.mxu1 %v14749_v56  ;;  %v14806_v56 = vld [vmem:[#allocation13 + $0x56c] ss:$16 sps:$4 sm:$0xff]  }
0x1053   :  { %8622 = vmatpush1.bf16.msra.mxu0 %v14738_v15  ;;  %v14807_v15 = vld [vmem:[#allocation13 + $0x540] ss:$16 sps:$4 sm:$0xff]  }
0x1054   :  { %8623 = vmatprep.subr.bf16.mxu0 %v14746_v62  ;;  %8585 = vmatpush1.bf16.msra.mxu1 %v14747_v52  ;;  %v14804_v62 = vld [vmem:[#allocation13 + $0x568] ss:$16 sps:$4 sm:$0xff]   ;;  %v14812_v52 = vld [vmem:[#allocation13 + $0x54c] ss:$16 sps:$4 sm:$0xff]  }
0x1055   :  { %8586 = vmatprep.subr.bf16.mxu1 %v14755_v44  ;;  %v14810_v44 = vld [vmem:[#allocation13 + $0x548] ss:$16 sps:$4 sm:$0xff]  }
0x1057   :  { %8624 = vmatpush1.bf16.msra.mxu0 %v14744_v37  ;;  %v14815_v37 = vld [vmem:[#allocation13 + $0x524] ss:$16 sps:$4 sm:$0xff]  }
0x1058   :  { %8625 = vmatprep.subr.bf16.mxu0 %v14752_v38  ;;  %8587 = vmatpush1.bf16.msra.mxu1 %v14753_v35  ;;  %v14813_v38 = vld [vmem:[#allocation13 + $0x520] ss:$16 sps:$4 sm:$0xff]   ;;  %v14818_v35 = vld [vmem:[#allocation13 + $0x52c] ss:$16 sps:$4 sm:$0xff]  }
0x1059   :  { %8588 = vmatprep.subr.bf16.mxu1 %v14761_v12  ;;  %v14816_v12 = vld [vmem:[#allocation13 + $0x528] ss:$16 sps:$4 sm:$0xff]  }
0x105b   :  { %8626 = vmatpush1.bf16.msra.mxu0 %v14750_v34  ;;  %v14821_v34 = vld [vmem:[#allocation13 + $0x504] ss:$16 sps:$4 sm:$0xff]  }
0x105c   :  { %8627 = vmatprep.subr.bf16.mxu0 %v14758_v0  ;;  %8589 = vmatpush1.bf16.msra.mxu1 %v14759_v13  ;;  %v14819_v0 = vld [vmem:[#allocation13 + $0x500] ss:$16 sps:$4 sm:$0xff]   ;;  %v14822_v13 = vld [vmem:[#allocation13 + $0x508] ss:$16 sps:$4 sm:$0xff]  }
0x105d   :  { %8590 = vmatprep.subr.bf16.mxu1 %v14767_v2 }
0x105f   :  { %8628 = vmatpush1.bf16.msra.mxu0 %v14756_v43  ;;  %v14824_v43 = vld [vmem:[#allocation13 + $0x50c] ss:$16 sps:$4 sm:$0xff]  }
0x1060   :  { %8629 = vmatprep.subr.bf16.mxu0 %v14764_v9  ;;  %8591 = vmatpush1.bf16.msra.mxu1 %v14765_v8  ;;  %v14827_v9 = vld [vmem:[#allocation13 + $0x6e4] ss:$16 sps:$4 sm:$0xff]  }
0x1061   :  { %8592 = vmatprep.subr.bf16.mxu1 %v14773_v19 }
0x1063   :  { %8630 = vmatpush1.bf16.msra.mxu0 %v14762_v29 }
0x1064   :  { %8631 = vmatprep.subr.bf16.mxu0 %v14770_v3  ;;  %8593 = vmatpush1.bf16.msra.mxu1 %v14771_v40 }
0x1065   :  { %13915 = vmatprep.subr.bf16.mxu1 %v15582_v4 }
0x1067   :  { %8632 = vmatpush1.bf16.msra.mxu0 %v14768_v60 }
0x1068   :  { %8633 = vmatprep.subr.bf16.mxu0 %v14776_v41 }
0x106b   :  { %8634 = vmatpush1.bf16.msra.mxu0 %v14774_v57 }
0x106c   :  { %8903 = vmatprep.subr.bf16.mxu0 %v14779_v5 }
0x1106   :  { %v8287_v54 = vpop.f32.mrf.mxu0  ;;  %v8328_v22 = vpop.f32.mrf.mxu1 }
0x1107   :  { %v17795_v27 = vadd.f32 %v8287_v54, %v17774_v25  ;;  %v17798_v28 = vadd.f32 %v8328_v22, %v17777_v14 }
0x1108   :  { %v8289_v58 = vpop.f32.mrf.mxu0  ;;  %v8330_v46 = vpop.f32.mrf.mxu1 }
0x1109   :  { %v17801_v45 = vadd.f32 %v8289_v58, %v17780_v50  ;;  %v17804_v61 = vadd.f32 %v8330_v46, %v17783_v63  ;;  %v14782_v50 = vld [vmem:[#allocation13 + $0x5ec] ss:$16 sps:$4 sm:$0xff]   ;;  %v14783_v63 = vld [vmem:[#allocation13 + $0x5c0] ss:$16 sps:$4 sm:$0xff]  }
0x110a   :  { %v8291_v53 = vpop.f32.mrf.mxu0  ;;  %v8332_v20 = vpop.f32.mrf.mxu1 }
0x110b   :  { %v14825_v53 = vld [vmem:[#allocation13 + $0x6e0] ss:$16 sps:$4 sm:$0xff]   ;;  %v14833_v20 = vld [vmem:[#allocation13 + $0x6c4] ss:$16 sps:$4 sm:$0xff]  }
0x110c   :  { %v8292_v6 = vpop.f32.mrf.mxu0  ;;  %v8333_v7 = vpop.f32.mrf.mxu1 }
0x110d   :  { %v14839_v7 = vld [vmem:[#allocation13 + $0x6a4] ss:$16 sps:$4 sm:$0xff]  }
0x110e   :  { %v8378_v1 = vpop.f32.mrf.mxu0 }
0x110f   :  { %v8384_v26 = vpack.c.bf16 %v8378_v1, %v8378_v1  ;;  %v8990_v1 = vld [vmem:[#allocation12 + $0x18] sm:$0xf] }
0x1110   :  { %v13913_v25 = vpop.f32.mrf.mxu0 }
0x1111   :  { %8611 = vmatmul.mubr.bf16.vlgmr.msra.gmra.mxu1 %v8384_v26  ;;  %8652 = vmatmul.mubr.bf16.vlgmr.msra.gmra.mxu0 %v8384_v26  ;;  %v14828_v26 = vld [vmem:[#allocation13 + $0x6e8] ss:$16 sps:$4 sm:$0xff]   ;;  %v14837_v25 = vld [vmem:[#allocation13 + $0x6a0] ss:$16 sps:$4 sm:$0xff]  }
0x1112   :  { %13916 = vmatpush3.bf16.msra.mxu1 %v17723_v59  ;;  %v8381_v14 = vpop.f32.mrf.mxu0  ;;  %13919 = vmatprep.mubr.msk.bf16.mxu1 %vm15583_vm2, %v15582_v4 }
0x1113   :  { %13917 = vmatprep.subr.bf16.mxu1 %v15582_v4  ;;  %8904 = vmatpush1.bf16.msra.mxu0 %v14777_v30  ;;  %v14836_v30 = vld [vmem:[#allocation13 + $0x6cc] ss:$16 sps:$4 sm:$0xff]   ;;  %v14834_v14 = vld [vmem:[#allocation13 + $0x6c8] ss:$16 sps:$4 sm:$0xff]  }
0x1114   :  { %v13914_v31 = vpop.f32.mrf.mxu0  ;;  %8905 = vmatprep.subr.bf16.mxu0 %v14785_v16  ;;  %8935 = vmatprep.mubr.bf16.mxu0 %v15584_v23  ;;  %v14845_v16 = vld [vmem:[#allocation13 + $0x684] ss:$16 sps:$4 sm:$0xff]  }
0x1115   :  { %v14851_v31 = vld [vmem:[#allocation13 + $0x664] ss:$16 sps:$4 sm:$0xff]  }
0x1116   :  { %13918 = vmatpush3.bf16.msra.mxu1 %v17725_v24 }
0x1117   :  { %8944 = vmatprep.subr.bf16.mxu1 %v14782_v50  ;;  %8906 = vmatpush1.bf16.msra.mxu0 %v14783_v63  ;;  %v14842_v50 = vld [vmem:[#allocation13 + $0x6ac] ss:$16 sps:$4 sm:$0xff]   ;;  %v14843_v63 = vld [vmem:[#allocation13 + $0x680] ss:$16 sps:$4 sm:$0xff]  }
0x1118   :  { %8907 = vmatprep.subr.bf16.mxu0 %v14791_v51  ;;  %v14840_v51 = vld [vmem:[#allocation13 + $0x6a8] ss:$16 sps:$4 sm:$0xff]  }
0x1119   :  { %13920 = vmatmul.mubr.msk.bf16.vlgmr.msra.gmra.mxu1 %vm7049_vm3, %v8665_v47  ;;  %v14848_v47 = vld [vmem:[#allocation13 + $0x68c] ss:$16 sps:$4 sm:$0xff]  }
0x111a   :  { %8945 = vmatpush1.bf16.msra.mxu1 %v14780_v32  ;;  %8976 = vmatprep.mubr.bf16.mxu1 %v15584_v23  ;;  %v14849_v32 = vld [vmem:[#allocation13 + $0x660] ss:$16 sps:$4 sm:$0xff]  }
0x111b   :  { %8946 = vmatprep.subr.bf16.mxu1 %v14788_v33  ;;  %8908 = vmatpush1.bf16.msra.mxu0 %v14789_v21  ;;  %v14857_v33 = vld [vmem:[#allocation13 + $0x644] ss:$16 sps:$4 sm:$0xff]   ;;  %v14846_v21 = vld [vmem:[#allocation13 + $0x688] ss:$16 sps:$4 sm:$0xff]  }
0x111c   :  { %8909 = vmatprep.subr.bf16.mxu0 %v14797_v18  ;;  %v14854_v18 = vld [vmem:[#allocation13 + $0x66c] ss:$16 sps:$4 sm:$0xff]  }
0x111e   :  { %8947 = vmatpush1.bf16.msra.mxu1 %v14786_v48  ;;  %v14855_v48 = vld [vmem:[#allocation13 + $0x640] ss:$16 sps:$4 sm:$0xff]  }
0x111f   :  { %8948 = vmatprep.subr.bf16.mxu1 %v14794_v17  ;;  %8910 = vmatpush1.bf16.msra.mxu0 %v14795_v39  ;;  %v14852_v17 = vld [vmem:[#allocation13 + $0x668] ss:$16 sps:$4 sm:$0xff]   ;;  %v14860_v39 = vld [vmem:[#allocation13 + $0x64c] ss:$16 sps:$4 sm:$0xff]  }
0x1120   :  { %8911 = vmatprep.subr.bf16.mxu0 %v14803_v36  ;;  %v14858_v36 = vld [vmem:[#allocation13 + $0x648] ss:$16 sps:$4 sm:$0xff]  }
0x1122   :  { %8949 = vmatpush1.bf16.msra.mxu1 %v14792_v49  ;;  %v14863_v49 = vld [vmem:[#allocation13 + $0x624] ss:$16 sps:$4 sm:$0xff]  }
0x1123   :  { %8950 = vmatprep.subr.bf16.mxu1 %v14800_v55  ;;  %8912 = vmatpush1.bf16.msra.mxu0 %v14801_v42  ;;  %v14861_v55 = vld [vmem:[#allocation13 + $0x620] ss:$16 sps:$4 sm:$0xff]   ;;  %v14866_v42 = vld [vmem:[#allocation13 + $0x62c] ss:$16 sps:$4 sm:$0xff]  }
0x1124   :  { %8913 = vmatprep.subr.bf16.mxu0 %v14809_v10  ;;  %v14864_v10 = vld [vmem:[#allocation13 + $0x628] ss:$16 sps:$4 sm:$0xff]  }
0x1126   :  { %8951 = vmatpush1.bf16.msra.mxu1 %v14798_v11  ;;  %v14869_v11 = vld [vmem:[#allocation13 + $0x604] ss:$16 sps:$4 sm:$0xff]  }
0x1127   :  { %8952 = vmatprep.subr.bf16.mxu1 %v14806_v56  ;;  %8914 = vmatpush1.bf16.msra.mxu0 %v14807_v15  ;;  %v14867_v56 = vld [vmem:[#allocation13 + $0x600] ss:$16 sps:$4 sm:$0xff]   ;;  %v14870_v15 = vld [vmem:[#allocation13 + $0x608] ss:$16 sps:$4 sm:$0xff]  }
0x1128   :  { %8915 = vmatprep.subr.bf16.mxu0 %v14815_v37 }
0x112a   :  { %8953 = vmatpush1.bf16.msra.mxu1 %v14804_v62  ;;  %v14872_v62 = vld [vmem:[#allocation13 + $0x60c] ss:$16 sps:$4 sm:$0xff]  }
0x112b   :  { %8954 = vmatprep.subr.bf16.mxu1 %v14812_v52  ;;  %8916 = vmatpush1.bf16.msra.mxu0 %v14813_v38  ;;  %v14875_v52 = vld [vmem:[#allocation13 + $0x7e4] ss:$16 sps:$4 sm:$0xff]  }
0x112c   :  { %8917 = vmatprep.subr.bf16.mxu0 %v14821_v34 }
0x112e   :  { %8955 = vmatpush1.bf16.msra.mxu1 %v14810_v44 }
0x112f   :  { %8956 = vmatprep.subr.bf16.mxu1 %v14818_v35  ;;  %8918 = vmatpush1.bf16.msra.mxu0 %v14819_v0 }
0x1130   :  { %13923 = vmatprep.subr.bf16.mxu0 %v15582_v4 }
0x1132   :  { %8957 = vmatpush1.bf16.msra.mxu1 %v14816_v12 }
0x1133   :  { %8958 = vmatprep.subr.bf16.mxu1 %v14824_v43 }
0x1136   :  { %8959 = vmatpush1.bf16.msra.mxu1 %v14822_v13 }
0x1137   :  { %9228 = vmatprep.subr.bf16.mxu1 %v14827_v9 }
0x11d1   :  { %v8612_v29 = vpop.f32.mrf.mxu1  ;;  %v8653_v2 = vpop.f32.mrf.mxu0 }
0x11d2   :  { %v17816_v8 = vadd.f32 %v8612_v29, %v17795_v27  ;;  %v17819_v3 = vadd.f32 %v8653_v2, %v17798_v28 }
0x11d3   :  { %v8614_v60 = vpop.f32.mrf.mxu1  ;;  %v8655_v19 = vpop.f32.mrf.mxu0 }
0x11d4   :  { %v17822_v40 = vadd.f32 %v8614_v60, %v17801_v45  ;;  %v17825_v57 = vadd.f32 %v8655_v19, %v17804_v61  ;;  %v14830_v45 = vld [vmem:[#allocation13 + $0x6ec] ss:$16 sps:$4 sm:$0xff]   ;;  %v14831_v61 = vld [vmem:[#allocation13 + $0x6c0] ss:$16 sps:$4 sm:$0xff]  }
0x11d5   :  { %v8616_v41 = vpop.f32.mrf.mxu1  ;;  %v8657_v5 = vpop.f32.mrf.mxu0 }
0x11d6   :  { %v14873_v41 = vld [vmem:[#allocation13 + $0x7e0] ss:$16 sps:$4 sm:$0xff]   ;;  %v14881_v5 = vld [vmem:[#allocation13 + $0x7c4] ss:$16 sps:$4 sm:$0xff]  }
0x11d7   :  { %v8617_v54 = vpop.f32.mrf.mxu1  ;;  %v8658_v22 = vpop.f32.mrf.mxu0 }
0x11d8   :  { %v14887_v22 = vld [vmem:[#allocation13 + $0x7a4] ss:$16 sps:$4 sm:$0xff]  }
0x11d9   :  { %v8703_v58 = vpop.f32.mrf.mxu1 }
0x11da   :  { %v8709_v46 = vpack.c.bf16 %v8703_v58, %v8703_v58  ;;  %v9315_v58 = vld [vmem:[#allocation12 + $0x1c] sm:$0xf] }
0x11db   :  { %v13921_v27 = vpop.f32.mrf.mxu1 }
0x11dc   :  { %8936 = vmatmul.mubr.bf16.vlgmr.msra.gmra.mxu0 %v8709_v46  ;;  %8977 = vmatmul.mubr.bf16.vlgmr.msra.gmra.mxu1 %v8709_v46  ;;  %v14876_v46 = vld [vmem:[#allocation13 + $0x7e8] ss:$16 sps:$4 sm:$0xff]   ;;  %v14885_v27 = vld [vmem:[#allocation13 + $0x7a0] ss:$16 sps:$4 sm:$0xff]  }
0x11dd   :  { %13924 = vmatpush3.bf16.msra.mxu0 %v17723_v59  ;;  %v8706_v28 = vpop.f32.mrf.mxu1  ;;  %13927 = vmatprep.mubr.msk.bf16.mxu0 %vm15583_vm2, %v15582_v4 }
0x11de   :  { %13925 = vmatprep.subr.bf16.mxu0 %v15582_v4  ;;  %9229 = vmatpush1.bf16.msra.mxu1 %v14825_v53  ;;  %v14884_v53 = vld [vmem:[#allocation13 + $0x7cc] ss:$16 sps:$4 sm:$0xff]   ;;  %v14882_v28 = vld [vmem:[#allocation13 + $0x7c8] ss:$16 sps:$4 sm:$0xff]  }
0x11df   :  { %v13922_v6 = vpop.f32.mrf.mxu1  ;;  %9230 = vmatprep.subr.bf16.mxu1 %v14833_v20  ;;  %9260 = vmatprep.mubr.bf16.mxu1 %v15584_v23  ;;  %v14893_v20 = vld [vmem:[#allocation13 + $0x784] ss:$16 sps:$4 sm:$0xff]  }
0x11e0   :  { %v14899_v6 = vld [vmem:[#allocation13 + $0x764] ss:$16 sps:$4 sm:$0xff]  }
0x11e1   :  { %13926 = vmatpush3.bf16.msra.mxu0 %v17725_v24 }
0x11e2   :  { %9269 = vmatprep.subr.bf16.mxu0 %v14830_v45  ;;  %9231 = vmatpush1.bf16.msra.mxu1 %v14831_v61  ;;  %v14890_v45 = vld [vmem:[#allocation13 + $0x7ac] ss:$16 sps:$4 sm:$0xff]   ;;  %v14891_v61 = vld [vmem:[#allocation13 + $0x780] ss:$16 sps:$4 sm:$0xff]  }
0x11e3   :  { %9232 = vmatprep.subr.bf16.mxu1 %v14839_v7  ;;  %v14888_v7 = vld [vmem:[#allocation13 + $0x7a8] ss:$16 sps:$4 sm:$0xff]  }
0x11e4   :  { %13928 = vmatmul.mubr.msk.bf16.vlgmr.msra.gmra.mxu0 %vm7049_vm3, %v8990_v1  ;;  %v14896_v1 = vld [vmem:[#allocation13 + $0x78c] ss:$16 sps:$4 sm:$0xff]  }
0x11e5   :  { %9270 = vmatpush1.bf16.msra.mxu0 %v14828_v26  ;;  %9301 = vmatprep.mubr.bf16.mxu0 %v15584_v23  ;;  %v14897_v26 = vld [vmem:[#allocation13 + $0x760] ss:$16 sps:$4 sm:$0xff]  }
0x11e6   :  { %9271 = vmatprep.subr.bf16.mxu0 %v14836_v30  ;;  %9233 = vmatpush1.bf16.msra.mxu1 %v14837_v25  ;;  %v14905_v30 = vld [vmem:[#allocation13 + $0x744] ss:$16 sps:$4 sm:$0xff]   ;;  %v14894_v25 = vld [vmem:[#allocation13 + $0x788] ss:$16 sps:$4 sm:$0xff]  }
0x11e7   :  { %9234 = vmatprep.subr.bf16.mxu1 %v14845_v16  ;;  %v14902_v16 = vld [vmem:[#allocation13 + $0x76c] ss:$16 sps:$4 sm:$0xff]  }
0x11e9   :  { %9272 = vmatpush1.bf16.msra.mxu0 %v14834_v14  ;;  %v14903_v14 = vld [vmem:[#allocation13 + $0x740] ss:$16 sps:$4 sm:$0xff]  }
0x11ea   :  { %9273 = vmatprep.subr.bf16.mxu0 %v14842_v50  ;;  %9235 = vmatpush1.bf16.msra.mxu1 %v14843_v63  ;;  %v14900_v50 = vld [vmem:[#allocation13 + $0x768] ss:$16 sps:$4 sm:$0xff]   ;;  %v14908_v63 = vld [vmem:[#allocation13 + $0x74c] ss:$16 sps:$4 sm:$0xff]  }
0x11eb   :  { %9236 = vmatprep.subr.bf16.mxu1 %v14851_v31  ;;  %v14906_v31 = vld [vmem:[#allocation13 + $0x748] ss:$16 sps:$4 sm:$0xff]  }
0x11ed   :  { %9274 = vmatpush1.bf16.msra.mxu0 %v14840_v51  ;;  %v14911_v51 = vld [vmem:[#allocation13 + $0x724] ss:$16 sps:$4 sm:$0xff]  }
0x11ee   :  { %9275 = vmatprep.subr.bf16.mxu0 %v14848_v47  ;;  %9237 = vmatpush1.bf16.msra.mxu1 %v14849_v32  ;;  %v14909_v47 = vld [vmem:[#allocation13 + $0x720] ss:$16 sps:$4 sm:$0xff]   ;;  %v14914_v32 = vld [vmem:[#allocation13 + $0x72c] ss:$16 sps:$4 sm:$0xff]  }
0x11ef   :  { %9238 = vmatprep.subr.bf16.mxu1 %v14857_v33  ;;  %v14912_v33 = vld [vmem:[#allocation13 + $0x728] ss:$16 sps:$4 sm:$0xff]  }
0x11f1   :  { %9276 = vmatpush1.bf16.msra.mxu0 %v14846_v21  ;;  %v14917_v21 = vld [vmem:[#allocation13 + $0x704] ss:$16 sps:$4 sm:$0xff]  }
0x11f2   :  { %9277 = vmatprep.subr.bf16.mxu0 %v14854_v18  ;;  %9239 = vmatpush1.bf16.msra.mxu1 %v14855_v48  ;;  %v14915_v18 = vld [vmem:[#allocation13 + $0x700] ss:$16 sps:$4 sm:$0xff]   ;;  %v14918_v48 = vld [vmem:[#allocation13 + $0x708] ss:$16 sps:$4 sm:$0xff]  }
0x11f3   :  { %9240 = vmatprep.subr.bf16.mxu1 %v14863_v49 }
0x11f5   :  { %9278 = vmatpush1.bf16.msra.mxu0 %v14852_v17  ;;  %v14920_v17 = vld [vmem:[#allocation13 + $0x70c] ss:$16 sps:$4 sm:$0xff]  }
0x11f6   :  { %9279 = vmatprep.subr.bf16.mxu0 %v14860_v39  ;;  %9241 = vmatpush1.bf16.msra.mxu1 %v14861_v55  ;;  %v14923_v39 = vld [vmem:[#allocation13 + $0x8e4] ss:$16 sps:$4 sm:$0xff]  }
0x11f7   :  { %9242 = vmatprep.subr.bf16.mxu1 %v14869_v11 }
0x11f9   :  { %9280 = vmatpush1.bf16.msra.mxu0 %v14858_v36 }
0x11fa   :  { %9281 = vmatprep.subr.bf16.mxu0 %v14866_v42  ;;  %9243 = vmatpush1.bf16.msra.mxu1 %v14867_v56 }
0x11fb   :  { %13931 = vmatprep.subr.bf16.mxu1 %v15582_v4 }
0x11fd   :  { %9282 = vmatpush1.bf16.msra.mxu0 %v14864_v10 }
0x11fe   :  { %9283 = vmatprep.subr.bf16.mxu0 %v14872_v62 }
0x1201   :  { %9284 = vmatpush1.bf16.msra.mxu0 %v14870_v15 }
0x1202   :  { %9553 = vmatprep.subr.bf16.mxu0 %v14875_v52 }
0x129c   :  { %v8937_v44 = vpop.f32.mrf.mxu0  ;;  %v8978_v37 = vpop.f32.mrf.mxu1 }
0x129d   :  { %v17837_v38 = vadd.f32 %v8937_v44, %v17816_v8  ;;  %v17840_v35 = vadd.f32 %v8978_v37, %v17819_v3 }
0x129e   :  { %v8939_v12 = vpop.f32.mrf.mxu0  ;;  %v8980_v34 = vpop.f32.mrf.mxu1 }
0x129f   :  { %v17843_v0 = vadd.f32 %v8939_v12, %v17822_v40  ;;  %v17846_v13 = vadd.f32 %v8980_v34, %v17825_v57  ;;  %v14878_v40 = vld [vmem:[#allocation13 + $0x7ec] ss:$16 sps:$4 sm:$0xff]   ;;  %v14879_v57 = vld [vmem:[#allocation13 + $0x7c0] ss:$16 sps:$4 sm:$0xff]  }
0x12a0   :  { %v8941_v43 = vpop.f32.mrf.mxu0  ;;  %v8982_v9 = vpop.f32.mrf.mxu1 }
0x12a1   :  { %v14921_v43 = vld [vmem:[#allocation13 + $0x8e0] ss:$16 sps:$4 sm:$0xff]   ;;  %v14929_v9 = vld [vmem:[#allocation13 + $0x8c4] ss:$16 sps:$4 sm:$0xff]  }
0x12a2   :  { %v8942_v29 = vpop.f32.mrf.mxu0  ;;  %v8983_v2 = vpop.f32.mrf.mxu1 }
0x12a3   :  { %v14935_v2 = vld [vmem:[#allocation13 + $0x8a4] ss:$16 sps:$4 sm:$0xff]  }
0x12a4   :  { %v9028_v60 = vpop.f32.mrf.mxu0 }
0x12a5   :  { %v9034_v19 = vpack.c.bf16 %v9028_v60, %v9028_v60  ;;  %v9640_v60 = vld [vmem:[#allocation12 + $0x20] sm:$0xf] }
0x12a6   :  { %v13929_v8 = vpop.f32.mrf.mxu0 }
0x12a7   :  { %9261 = vmatmul.mubr.bf16.vlgmr.msra.gmra.mxu1 %v9034_v19  ;;  %9302 = vmatmul.mubr.bf16.vlgmr.msra.gmra.mxu0 %v9034_v19  ;;  %v14924_v19 = vld [vmem:[#allocation13 + $0x8e8] ss:$16 sps:$4 sm:$0xff]   ;;  %v14941_v8 = vld [vmem:[#allocation13 + $0x884] ss:$16 sps:$4 sm:$0xff]  }
0x12a8   :  { %13932 = vmatpush3.bf16.msra.mxu1 %v17723_v59  ;;  %v9031_v3 = vpop.f32.mrf.mxu0  ;;  %13935 = vmatprep.mubr.msk.bf16.mxu1 %vm15583_vm2, %v15582_v4 }
0x12a9   :  { %13933 = vmatprep.subr.bf16.mxu1 %v15582_v4  ;;  %9554 = vmatpush1.bf16.msra.mxu0 %v14873_v41  ;;  %v14933_v41 = vld [vmem:[#allocation13 + $0x8a0] ss:$16 sps:$4 sm:$0xff]  }
0x12aa   :  { %v13930_v54 = vpop.f32.mrf.mxu0  ;;  %9555 = vmatprep.subr.bf16.mxu0 %v14881_v5  ;;  %9585 = vmatprep.mubr.bf16.mxu0 %v15584_v23  ;;  %v14938_v5 = vld [vmem:[#allocation13 + $0x8ac] ss:$16 sps:$4 sm:$0xff]   ;;  %v14939_v3 = vld [vmem:[#allocation13 + $0x880] ss:$16 sps:$4 sm:$0xff]  }
0x12ab   :  { %v14945_v54 = vld [vmem:[#allocation13 + $0x860] ss:$16 sps:$4 sm:$0xff]  }
0x12ac   :  { %13934 = vmatpush3.bf16.msra.mxu1 %v17725_v24 }
0x12ad   :  { %9594 = vmatprep.subr.bf16.mxu1 %v14878_v40  ;;  %9556 = vmatpush1.bf16.msra.mxu0 %v14879_v57  ;;  %v14936_v40 = vld [vmem:[#allocation13 + $0x8a8] ss:$16 sps:$4 sm:$0xff]   ;;  %v14944_v57 = vld [vmem:[#allocation13 + $0x88c] ss:$16 sps:$4 sm:$0xff]  }
0x12ae   :  { %9557 = vmatprep.subr.bf16.mxu0 %v14887_v22  ;;  %v14953_v22 = vld [vmem:[#allocation13 + $0x844] ss:$16 sps:$4 sm:$0xff]  }
0x12af   :  { %13936 = vmatmul.mubr.msk.bf16.vlgmr.msra.gmra.mxu1 %vm7049_vm3, %v9315_v58  ;;  %v14942_v58 = vld [vmem:[#allocation13 + $0x888] ss:$16 sps:$4 sm:$0xff]  }
0x12b0   :  { %9595 = vmatpush1.bf16.msra.mxu1 %v14876_v46  ;;  %9626 = vmatprep.mubr.bf16.mxu1 %v15584_v23  ;;  %v14950_v46 = vld [vmem:[#allocation13 + $0x86c] ss:$16 sps:$4 sm:$0xff]  }
0x12b1   :  { %9596 = vmatprep.subr.bf16.mxu1 %v14884_v53  ;;  %9558 = vmatpush1.bf16.msra.mxu0 %v14885_v27  ;;  %v14951_v53 = vld [vmem:[#allocation13 + $0x840] ss:$16 sps:$4 sm:$0xff]   ;;  %v14948_v27 = vld [vmem:[#allocation13 + $0x868] ss:$16 sps:$4 sm:$0xff]  }
0x12b2   :  { %9559 = vmatprep.subr.bf16.mxu0 %v14893_v20  ;;  %v14956_v20 = vld [vmem:[#allocation13 + $0x84c] ss:$16 sps:$4 sm:$0xff]  }
0x12b4   :  { %9597 = vmatpush1.bf16.msra.mxu1 %v14882_v28  ;;  %v14954_v28 = vld [vmem:[#allocation13 + $0x848] ss:$16 sps:$4 sm:$0xff]  }
0x12b5   :  { %9598 = vmatprep.subr.bf16.mxu1 %v14890_v45  ;;  %9560 = vmatpush1.bf16.msra.mxu0 %v14891_v61  ;;  %v14959_v45 = vld [vmem:[#allocation13 + $0x824] ss:$16 sps:$4 sm:$0xff]   ;;  %v14962_v61 = vld [vmem:[#allocation13 + $0x82c] ss:$16 sps:$4 sm:$0xff]  }
0x12b6   :  { %9561 = vmatprep.subr.bf16.mxu0 %v14899_v6  ;;  %v14957_v6 = vld [vmem:[#allocation13 + $0x820] ss:$16 sps:$4 sm:$0xff]  }
0x12b8   :  { %9599 = vmatpush1.bf16.msra.mxu1 %v14888_v7  ;;  %v14960_v7 = vld [vmem:[#allocation13 + $0x828] ss:$16 sps:$4 sm:$0xff]  }
0x12b9   :  { %9600 = vmatprep.subr.bf16.mxu1 %v14896_v1  ;;  %9562 = vmatpush1.bf16.msra.mxu0 %v14897_v26  ;;  %v14963_v1 = vld [vmem:[#allocation13 + $0x800] ss:$16 sps:$4 sm:$0xff]   ;;  %v14965_v26 = vld [vmem:[#allocation13 + $0x804] ss:$16 sps:$4 sm:$0xff]  }
0x12ba   :  { %9563 = vmatprep.subr.bf16.mxu0 %v14905_v30  ;;  %v14966_v30 = vld [vmem:[#allocation13 + $0x808] ss:$16 sps:$4 sm:$0xff]  }
0x12bc   :  { %9601 = vmatpush1.bf16.msra.mxu1 %v14894_v25  ;;  %v14968_v25 = vld [vmem:[#allocation13 + $0x80c] ss:$16 sps:$4 sm:$0xff]  }
0x12bd   :  { %9602 = vmatprep.subr.bf16.mxu1 %v14902_v16  ;;  %9564 = vmatpush1.bf16.msra.mxu0 %v14903_v14 }
0x12be   :  { %9565 = vmatprep.subr.bf16.mxu0 %v14911_v51 }
0x12c0   :  { %9603 = vmatpush1.bf16.msra.mxu1 %v14900_v50 }
0x12c1   :  { %9604 = vmatprep.subr.bf16.mxu1 %v14908_v63  ;;  %9566 = vmatpush1.bf16.msra.mxu0 %v14909_v47 }
0x12c2   :  { %9567 = vmatprep.subr.bf16.mxu0 %v14917_v21 }
0x12c4   :  { %9605 = vmatpush1.bf16.msra.mxu1 %v14906_v31 }
0x12c5   :  { %9606 = vmatprep.subr.bf16.mxu1 %v14914_v32  ;;  %9568 = vmatpush1.bf16.msra.mxu0 %v14915_v18 }
0x12c6   :  { %13939 = vmatprep.subr.bf16.mxu0 %v15582_v4 }
0x12c8   :  { %9607 = vmatpush1.bf16.msra.mxu1 %v14912_v33 }
0x12c9   :  { %9608 = vmatprep.subr.bf16.mxu1 %v14920_v17 }
0x12cc   :  { %9609 = vmatpush1.bf16.msra.mxu1 %v14918_v48 }
0x12cd   :  { %9878 = vmatprep.subr.bf16.mxu1 %v14923_v39 }
0x1367   :  { %v9262_v36 = vpop.f32.mrf.mxu1  ;;  %v9303_v49 = vpop.f32.mrf.mxu0 }
0x1368   :  { %v17858_v55 = vadd.f32 %v9262_v36, %v17837_v38  ;;  %v17861_v42 = vadd.f32 %v9303_v49, %v17840_v35 }
0x1369   :  { %v9264_v10 = vpop.f32.mrf.mxu1  ;;  %v9305_v11 = vpop.f32.mrf.mxu0 }
0x136a   :  { %v17864_v56 = vadd.f32 %v9264_v10, %v17843_v0  ;;  %v17867_v15 = vadd.f32 %v9305_v11, %v17846_v13  ;;  %v14926_v0 = vld [vmem:[#allocation13 + $0x8ec] ss:$16 sps:$4 sm:$0xff]   ;;  %v14927_v13 = vld [vmem:[#allocation13 + $0x8c0] ss:$16 sps:$4 sm:$0xff]  }
0x136b   :  { %v9266_v62 = vpop.f32.mrf.mxu1  ;;  %v9307_v52 = vpop.f32.mrf.mxu0 }
0x136d   :  { %v9267_v44 = vpop.f32.mrf.mxu1  ;;  %v9308_v37 = vpop.f32.mrf.mxu0 }
0x136f   :  { %v9353_v12 = vpop.f32.mrf.mxu1 }
0x1370   :  { %v9359_v34 = vpack.c.bf16 %v9353_v12, %v9353_v12 }
0x1371   :  { %v13937_v38 = vpop.f32.mrf.mxu1 }
0x1372   :  { %9586 = vmatmul.mubr.bf16.vlgmr.msra.gmra.mxu0 %v9359_v34  ;;  %9627 = vmatmul.mubr.bf16.vlgmr.msra.gmra.mxu1 %v9359_v34 }
0x1373   :  { %13940 = vmatpush3.bf16.msra.mxu0 %v17723_v59  ;;  %v9356_v35 = vpop.f32.mrf.mxu1  ;;  %13943 = vmatprep.mubr.msk.bf16.mxu0 %vm15583_vm2, %v15582_v4  ;;  %v14932_v59 = vld [vmem:[#allocation13 + $0x8cc] ss:$16 sps:$4 sm:$0xff]  }
0x1374   :  { %13941 = vmatprep.subr.bf16.mxu0 %v15582_v4  ;;  %9879 = vmatpush1.bf16.msra.mxu1 %v14921_v43  ;;  %v14930_v4 = vld [vmem:[#allocation13 + $0x8c8] ss:$16 sps:$4 sm:$0xff]  }
0x1375   :  { %v13938_v29 = vpop.f32.mrf.mxu1  ;;  %9880 = vmatprep.subr.bf16.mxu1 %v14929_v9  ;;  %9910 = vmatprep.mubr.bf16.mxu1 %v15584_v23 }
0x1377   :  { %13942 = vmatpush3.bf16.msra.mxu0 %v17725_v24  ;;  %v14947_v24 = vld [vmem:[#allocation13 + $0x864] ss:$16 sps:$4 sm:$0xff]  }
0x1378   :  { %9919 = vmatprep.subr.bf16.mxu0 %v14926_v0  ;;  %9881 = vmatpush1.bf16.msra.mxu1 %v14927_v13 }
0x1379   :  { %9882 = vmatprep.subr.bf16.mxu1 %v14935_v2 }
0x137a   :  { %13944 = vmatmul.mubr.msk.bf16.vlgmr.msra.gmra.mxu0 %vm7049_vm3, %v9640_v60 }
0x137b   :  { %9920 = vmatpush1.bf16.msra.mxu0 %v14924_v19  ;;  %9951 = vmatprep.mubr.bf16.mxu0 %v15584_v23 }
0x137c   :  { %9921 = vmatprep.subr.bf16.mxu0 %v14932_v59  ;;  %9883 = vmatpush1.bf16.msra.mxu1 %v14933_v41 }
0x137d   :  { %9884 = vmatprep.subr.bf16.mxu1 %v14941_v8 }
0x137f   :  { %9922 = vmatpush1.bf16.msra.mxu0 %v14930_v4 }
0x1380   :  { %9923 = vmatprep.subr.bf16.mxu0 %v14938_v5  ;;  %9885 = vmatpush1.bf16.msra.mxu1 %v14939_v3 }
0x1381   :  { %9886 = vmatprep.subr.bf16.mxu1 %v14947_v24 }
0x1383   :  { %9924 = vmatpush1.bf16.msra.mxu0 %v14936_v40 }
0x1384   :  { %9925 = vmatprep.subr.bf16.mxu0 %v14944_v57  ;;  %9887 = vmatpush1.bf16.msra.mxu1 %v14945_v54 }
0x1385   :  { %9888 = vmatprep.subr.bf16.mxu1 %v14953_v22 }
0x1387   :  { %9926 = vmatpush1.bf16.msra.mxu0 %v14942_v58 }
0x1388   :  { %9927 = vmatprep.subr.bf16.mxu0 %v14950_v46  ;;  %9889 = vmatpush1.bf16.msra.mxu1 %v14951_v53 }
0x1389   :  { %9890 = vmatprep.subr.bf16.mxu1 %v14959_v45 }
0x138b   :  { %9928 = vmatpush1.bf16.msra.mxu0 %v14948_v27  ;;  %v14971_v27 = vld [vmem:[#allocation18 + $0x74] ss:$8 sps:$4 sm:$0xff]  }
0x138c   :  { %9929 = vmatprep.subr.bf16.mxu0 %v14956_v20  ;;  %9891 = vmatpush1.bf16.msra.mxu1 %v14957_v6  ;;  %v14974_v20 = vld [vmem:[#allocation18 + $0x174] ss:$8 sps:$4 sm:$0xff]   ;;  %v14969_v6 = vld [vmem:[#allocation18 + $0x70] ss:$8 sps:$4 sm:$0xff]  }
0x138d   :  { %9892 = vmatprep.subr.bf16.mxu1 %v14965_v26  ;;  %v14980_v26 = vld [vmem:[#allocation18 + $0x164] ss:$8 sps:$4 sm:$0xff]  }
0x138f   :  { %9930 = vmatpush1.bf16.msra.mxu0 %v14954_v28 }
0x1390   :  { %9931 = vmatprep.subr.bf16.mxu0 %v14962_v61  ;;  %9893 = vmatpush1.bf16.msra.mxu1 %v14963_v1  ;;  %v9998_v61 = vld [vmem:[#allocation16] sm:$0x1]  ;;  %v14977_v1 = vld [vmem:[#allocation18 + $0x64] ss:$8 sps:$4 sm:$0xff]  }
0x1393   :  { %9932 = vmatpush1.bf16.msra.mxu0 %v14960_v7  ;;  %v14972_v7 = vld [vmem:[#allocation18 + $0x170] ss:$8 sps:$4 sm:$0xff]  }
0x1394   :  { %9933 = vmatprep.subr.bf16.mxu0 %v14968_v25  ;;  %v14978_v25 = vld [vmem:[#allocation18 + $0x160] ss:$8 sps:$4 sm:$0xff]  }
0x1397   :  { %9934 = vmatpush1.bf16.msra.mxu0 %v14966_v30  ;;  %v14975_v30 = vld [vmem:[#allocation18 + $0x60] ss:$8 sps:$4 sm:$0xff]  }
0x1432   :  { %v9587_v16 = vpop.f32.mrf.mxu0  ;;  %v9628_v14 = vpop.f32.mrf.mxu1 }
0x1433   :  { %v9635_v50 = vadd.f32 %v9587_v16, %v17858_v55  ;;  %v9637_v63 = vadd.f32 %v9628_v14, %v17861_v42  ;;  %v9966_v42 = vlaneseq  ;;  %v14983_v16 = vld [vmem:[#allocation18 + $0x54] ss:$8 sps:$4 sm:$0xff]  }
0x1434   :  { %v9589_v31 = vpop.f32.mrf.mxu0  ;;  %v9630_v51 = vpop.f32.mrf.mxu1  ;;  %v14986_v14 = vld [vmem:[#allocation18 + $0x154] ss:$8 sps:$4 sm:$0xff]  }
0x1435   :  { %v9636_v47 = vadd.f32 %v9589_v31, %v17864_v56  ;;  %v9638_v32 = vadd.f32 %v9630_v51, %v17867_v15  ;;  %v17883_v10 = vshrl.u32 %v9966_v42, 7  ;;  %v9964_v15 = vld [vmem:[#allocation15] sm:$0xf]  ;;  %v14989_v31 = vld [vmem:[#allocation18 + $0x44] ss:$8 sps:$4 sm:$0xff]  }
0x1436   :  { %v9591_v33 = vpop.f32.mrf.mxu0  ;;  %v9632_v21 = vpop.f32.mrf.mxu1  ;;  %v14992_v51 = vld [vmem:[#allocation18 + $0x144] ss:$8 sps:$4 sm:$0xff]   ;;  %v15010_v42 = vld [vmem:[#allocation18 + $0x114] ss:$8 sps:$4 sm:$0xff]  }
0x1437   :  { %v9968_v11 = vsub.s32 0, %v17883_v10  ;;  %v9976_v56 = vsub.s32 2, %v17883_v10  ;;  %v9972_v62 = vsub.s32 1, %v17883_v10  ;;  %v9980_v52 = vsub.s32 3, %v17883_v10  ;;  %v14995_v33 = vld [vmem:[#allocation18 + $0x34] ss:$8 sps:$4 sm:$0xff]  }
0x1438   :  { %v9592_v18 = vpop.f32.mrf.mxu0  ;;  %v9633_v48 = vpop.f32.mrf.mxu1  ;;  %v14998_v21 = vld [vmem:[#allocation18 + $0x134] ss:$8 sps:$4 sm:$0xff]  }
0x1439   :  { %v9969_v44 = vrot.slane %v9964_v15, %v9968_v11  ;;  %v9977_v37 = vrot.slane %v9964_v15, %v9976_v56  ;;  %v9973_v9 = vrot.slane %v9964_v15, %v9972_v62  ;;  %v9981_v35 = vrot.slane %v9964_v15, %v9980_v52  ;;  %v14993_v18 = vld [vmem:[#allocation18 + $0x30] ss:$8 sps:$4 sm:$0xff]   ;;  %v15013_v52 = vld [vmem:[#allocation18 + $0x4] ss:$8 sps:$4 sm:$0xff]  }
0x143a   :  { %v9678_v17 = vpop.f32.mrf.mxu0  ;;  %v14996_v48 = vld [vmem:[#allocation18 + $0x130] ss:$8 sps:$4 sm:$0xff]  }
0x143b   :  { %v9684_v39 = vpack.c.bf16 %v9678_v17, %v9678_v17  ;;  %v15001_v17 = vld [vmem:[#allocation18 + $0x24] ss:$8 sps:$4 sm:$0xff]   ;;  %v15005_v56 = vld [vmem:[#allocation18 + $0x10] ss:$8 sps:$4 sm:$0xff]  }
0x143c   :  { %v13945_v36 = vpop.f32.mrf.mxu0  ;;  %v15008_v15 = vld [vmem:[#allocation18 + $0x110] ss:$8 sps:$4 sm:$0xff]  }
0x143d   :  { %9911 = vmatmul.mubr.bf16.vlgmr.msra.gmra.mxu1 %v9684_v39  ;;  %9952 = vmatmul.mubr.bf16.vlgmr.msra.gmra.mxu0 %v9684_v39  ;;  %v15004_v39 = vld [vmem:[#allocation18 + $0x124] ss:$8 sps:$4 sm:$0xff]   ;;  %v14999_v36 = vld [vmem:[#allocation18 + $0x20] ss:$8 sps:$4 sm:$0xff]  }
0x143e   :  { %v9681_v49 = vpop.f32.mrf.mxu0  ;;  %10046 = vmatprep.mubr.bf16.mxu1 %v15584_v23  ;;  %10087 = vmatprep.mubr.bf16.mxu0 %v15584_v23 }
0x143f   :  { %v15002_v49 = vld [vmem:[#allocation18 + $0x120] ss:$8 sps:$4 sm:$0xff]  }
0x1440   :  { %v13946_v55 = vpop.f32.mrf.mxu0 }
0x1441   :  { %v15007_v55 = vld [vmem:[#allocation18 + $0x14] ss:$8 sps:$4 sm:$0xff]  }
0x14fd   :  { %v9912_v12 = vpop.f32.mrf.mxu1  ;;  %v9953_v34 = vpop.f32.mrf.mxu0 }
0x14fe   :  { %v9960_v43 = vadd.f32 %v9912_v12, %v9635_v50  ;;  %v9962_v38 = vadd.f32 %v9953_v34, %v9637_v63  ;;  %v14981_v50 = vld [vmem:[#allocation18 + $0x50] ss:$8 sps:$4 sm:$0xff]   ;;  %v15014_v12 = vld [vmem:[#allocation18 + $0x100] ss:$8 sps:$4 sm:$0xff]   ;;  %v15019_v34 = vld [vmem:[#allocation18 + $0xf4] ss:$8 sps:$4 sm:$0xff]  }
0x14ff   :  { %v9914_v0 = vpop.f32.mrf.mxu1  ;;  %v9955_v13 = vpop.f32.mrf.mxu0  ;;  %v14984_v63 = vld [vmem:[#allocation18 + $0x150] ss:$8 sps:$4 sm:$0xff]  }
0x1500   :  { %v9986_v29 = vadd.f32 %v9969_v44, %v9960_v43  ;;  %v9988_v2 = vadd.f32 %v9977_v37, %v9962_v38  ;;  %v9961_v60 = vadd.f32 %v9914_v0, %v9636_v47  ;;  %v9963_v19 = vadd.f32 %v9955_v13, %v9638_v32  ;;  %v14987_v47 = vld [vmem:[#allocation18 + $0x40] ss:$8 sps:$4 sm:$0xff]   ;;  %v15016_v44 = vld [vmem:[#allocation18 + $0x104] ss:$8 sps:$4 sm:$0xff]   ;;  %v15022_v43 = vld [vmem:[#allocation18 + $0x1f4] ss:$8 sps:$4 sm:$0xff]  }
0x1501   :  { %v9916_v59 = vpop.f32.mrf.mxu1  ;;  %v9957_v41 = vpop.f32.mrf.mxu0  ;;  %v14990_v32 = vld [vmem:[#allocation18 + $0x140] ss:$8 sps:$4 sm:$0xff]   ;;  %v15017_v38 = vld [vmem:[#allocation18 + $0xf0] ss:$8 sps:$4 sm:$0xff]   ;;  %v15028_v0 = vld [vmem:[#allocation18 + $0x1e4] ss:$8 sps:$4 sm:$0xff]  }
0x1502   :  { %v9990_v8 = vmax.f32 %v9986_v29, 0.0  ;;  %v9992_v4 = vmax.f32 %v9988_v2, 0.0  ;;  %v9987_v5 = vadd.f32 %v9973_v9, %v9961_v60  ;;  %v9989_v3 = vadd.f32 %v9981_v35, %v9963_v19  ;;  %v15011_v37 = vld [vmem:[#allocation18] ss:$8 sps:$4 sm:$0xff]   ;;  %v15020_v9 = vld [vmem:[#allocation18 + $0x1f0] ss:$8 sps:$4 sm:$0xff]  }
0x1503   :  { %v9917_v24 = vpop.f32.mrf.mxu1  ;;  %v9958_v40 = vpop.f32.mrf.mxu0  ;;  %v15025_v35 = vld [vmem:[#allocation18 + $0xe4] ss:$8 sps:$4 sm:$0xff]   ;;  %v15023_v13 = vld [vmem:[#allocation18 + $0xe0] ss:$8 sps:$4 sm:$0xff]   ;;  %v15031_v2 = vld [vmem:[#allocation18 + $0xd4] ss:$8 sps:$4 sm:$0xff]  }
0x1504   :  { %v9994_v57 = vpack.c.bf16 %v9990_v8, %v9990_v8  ;;  %v9996_v54 = vpack.c.bf16 %v9992_v4, %v9992_v4  ;;  %v9991_v22 = vmax.f32 %v9987_v5, 0.0  ;;  %v9993_v58 = vmax.f32 %v9989_v3, 0.0  ;;  %v15026_v29 = vld [vmem:[#allocation18 + $0x1e0] ss:$8 sps:$4 sm:$0xff]   ;;  %v15034_v60 = vld [vmem:[#allocation18 + $0x1d4] ss:$8 sps:$4 sm:$0xff]  }
0x1505   :  { %v15029_v19 = vld [vmem:[#allocation18 + $0xd0] ss:$8 sps:$4 sm:$0xff]   ;;  %v15037_v41 = vld [vmem:[#allocation18 + $0xc4] ss:$8 sps:$4 sm:$0xff]   ;;  %v15035_v4 = vld [vmem:[#allocation18 + $0xc0] ss:$8 sps:$4 sm:$0xff]  }
0x1506   :  { %v9995_v46 = vpack.c.bf16 %v9991_v22, %v9991_v22  ;;  %v9997_v53 = vpack.c.bf16 %v9993_v58, %v9993_v58  ;;  %v10003_v28 = vsel %vm1336_vm0, %v9994_v57, 0  ;;  %v10009_v45 = vsel %vm1336_vm0, %v9996_v54, 0  ;;  %v15032_v59 = vld [vmem:[#allocation18 + $0x1d0] ss:$8 sps:$4 sm:$0xff]   ;;  %v15040_v8 = vld [vmem:[#allocation18 + $0x1c4] ss:$8 sps:$4 sm:$0xff]  }
0x1507   :  { %v15038_v5 = vld [vmem:[#allocation18 + $0x1c0] ss:$8 sps:$4 sm:$0xff]   ;;  %v15043_v3 = vld [vmem:[#allocation18 + $0xb4] ss:$8 sps:$4 sm:$0xff]   ;;  %v15041_v40 = vld [vmem:[#allocation18 + $0xb0] ss:$8 sps:$4 sm:$0xff]  }
0x1508   :  { %11787 = vmatprep.subr.msk.bf16.mxu1 %vm1336_vm0, %v9995_v46  ;;  %11789 = vmatprep.subr.msk.bf16.mxu0 %vm1336_vm0, %v9997_v53  ;;  %v15046_v24 = vld [vmem:[#allocation18 + $0x1b4] ss:$8 sps:$4 sm:$0xff]   ;;  %v15044_v57 = vld [vmem:[#allocation18 + $0x1b0] ss:$8 sps:$4 sm:$0xff]   ;;  %v15049_v54 = vld [vmem:[#allocation18 + $0xa4] ss:$8 sps:$4 sm:$0xff]  }
0x1509   :  { %10029 = vmatpush1.bf16.msra.mxu1 %v10003_v28  ;;  %10070 = vmatpush1.bf16.msra.mxu0 %v10009_v45  ;;  %v15052_v22 = vld [vmem:[#allocation18 + $0x1a4] ss:$8 sps:$4 sm:$0xff]   ;;  %v15047_v58 = vld [vmem:[#allocation18 + $0xa0] ss:$8 sps:$4 sm:$0xff]   ;;  %v15055_v53 = vld [vmem:[#allocation18 + $0x94] ss:$8 sps:$4 sm:$0xff]  }
0x150a   :  { %10496 = vmatprep.subr.bf16.mxu1 %v14971_v27  ;;  %10537 = vmatprep.subr.bf16.mxu0 %v14974_v20  ;;  %v15050_v46 = vld [vmem:[#allocation18 + $0x1a0] ss:$8 sps:$4 sm:$0xff]   ;;  %v15058_v27 = vld [vmem:[#allocation18 + $0x194] ss:$8 sps:$4 sm:$0xff]   ;;  %v15053_v20 = vld [vmem:[#allocation18 + $0x90] ss:$8 sps:$4 sm:$0xff]  }
0x150b   :  { %v15056_v28 = vld [vmem:[#allocation18 + $0x190] ss:$8 sps:$4 sm:$0xff]   ;;  %v15061_v45 = vld [vmem:[#allocation18 + $0x84] ss:$8 sps:$4 sm:$0xff]  }
0x150c   :  { %11788 = vmatmul.mubr.msk.bf16.vlgmr.msra.gmra.mxu1 %vm1311_vm1, %v9998_v61  ;;  %11790 = vmatmul.mubr.msk.bf16.vlgmr.msra.gmra.mxu0 %vm1311_vm1, %v9998_v61  ;;  %v15064_v61 = vld [vmem:[#allocation18 + $0x184] ss:$8 sps:$4 sm:$0xff]  }
0x150d   :  { %10497 = vmatpush1.bf16.msra.mxu1 %v14969_v6  ;;  %10538 = vmatpush1.bf16.msra.mxu0 %v14972_v7  ;;  %v15059_v6 = vld [vmem:[#allocation18 + $0x80] ss:$8 sps:$4 sm:$0xff]  }
0x150e   :  { %10498 = vmatprep.subr.bf16.mxu1 %v14977_v1  ;;  %10539 = vmatprep.subr.bf16.mxu0 %v14980_v26  ;;  %v15062_v7 = vld [vmem:[#allocation18 + $0x180] ss:$8 sps:$4 sm:$0xff]  }
0x150f   :  { %v15065_v1 = vld [vmem:[#allocation21 + $0x78] sm:$0xff]  }
0x1511   :  { %10499 = vmatpush1.bf16.msra.mxu1 %v14975_v30  ;;  %10540 = vmatpush1.bf16.msra.mxu0 %v14978_v25 }
0x1512   :  { %10500 = vmatprep.subr.bf16.mxu1 %v14983_v16  ;;  %10541 = vmatprep.subr.bf16.mxu0 %v14986_v14 }
0x1515   :  { %10501 = vmatpush1.bf16.msra.mxu1 %v14981_v50  ;;  %10542 = vmatpush1.bf16.msra.mxu0 %v14984_v63 }
0x1516   :  { %10502 = vmatprep.subr.bf16.mxu1 %v14989_v31  ;;  %10543 = vmatprep.subr.bf16.mxu0 %v14992_v51  ;;  %v15066_v31 = vld [vmem:[#allocation21 + $0x38] sm:$0xff]  }
0x1519   :  { %10503 = vmatpush1.bf16.msra.mxu1 %v14987_v47  ;;  %10544 = vmatpush1.bf16.msra.mxu0 %v14990_v32 }
0x151a   :  { %10504 = vmatprep.subr.bf16.mxu1 %v14995_v33  ;;  %10545 = vmatprep.subr.bf16.mxu0 %v14998_v21  ;;  %v15067_v33 = vld [vmem:[#allocation21 + $0x70] sm:$0xff]  }
0x151d   :  { %10505 = vmatpush1.bf16.msra.mxu1 %v14993_v18  ;;  %10546 = vmatpush1.bf16.msra.mxu0 %v14996_v48  ;;  %v15068_v48 = vld [vmem:[#allocation21 + $0x30] sm:$0xff]  }
0x151e   :  { %10506 = vmatprep.subr.bf16.mxu1 %v15001_v17  ;;  %10547 = vmatprep.subr.bf16.mxu0 %v15004_v39  ;;  %v15069_v17 = vld [vmem:[#allocation21 + $0x68] sm:$0xff]  }
0x151f   :  { %v15070_v39 = vld [vmem:[#allocation21 + $0x28] sm:$0xff]  }
0x1521   :  { %10507 = vmatpush1.bf16.msra.mxu1 %v14999_v36  ;;  %10548 = vmatpush1.bf16.msra.mxu0 %v15002_v49  ;;  %v15071_v36 = vld [vmem:[#allocation21 + $0x60] sm:$0xff]  }
0x1522   :  { %10508 = vmatprep.subr.bf16.mxu1 %v15007_v55  ;;  %10549 = vmatprep.subr.bf16.mxu0 %v15010_v42  ;;  %v15072_v49 = vld [vmem:[#allocation21 + $0x20] sm:$0xff]   ;;  %v15073_v55 = vld [vmem:[#allocation21 + $0x58] sm:$0xff]  }
0x1523   :  { %v15074_v42 = vld [vmem:[#allocation21 + $0x18] sm:$0xff]  }
0x1525   :  { %10509 = vmatpush1.bf16.msra.mxu1 %v15005_v56  ;;  %10550 = vmatpush1.bf16.msra.mxu0 %v15008_v15  ;;  %v15075_v56 = vld [vmem:[#allocation21 + $0x50] sm:$0xff]  }
0x1526   :  { %10510 = vmatprep.subr.bf16.mxu1 %v15013_v52  ;;  %10551 = vmatprep.subr.bf16.mxu0 %v15016_v44  ;;  %v15076_v15 = vld [vmem:[#allocation21 + $0x10] sm:$0xff]   ;;  %v15077_v52 = vld [vmem:[#allocation21 + $0x48] sm:$0xff]  }
0x1527   :  { %v15078_v44 = vld [vmem:[#allocation21 + $0x8] sm:$0xff]  }
0x1529   :  { %10511 = vmatpush1.bf16.msra.mxu1 %v15011_v37  ;;  %10552 = vmatpush1.bf16.msra.mxu0 %v15014_v12  ;;  %v15079_v37 = vld [vmem:[#allocation21 + $0x40] sm:$0xff]  }
0x152a   :  { %10512 = vmatprep.subr.bf16.mxu1 %v15019_v34  ;;  %10553 = vmatprep.subr.bf16.mxu0 %v15022_v43  ;;  %v15080_v12 = vld [vmem:[#allocation21] sm:$0xff]   ;;  %v15081_v34 = vld [vmem:[#allocation25 + $0x70] ss:$8 sps:$4 sm:$0xff]  }
0x152b   :  { %v15083_v43 = vld [vmem:[#allocation25 + $0x74] ss:$8 sps:$4 sm:$0xff]  }
0x152d   :  { %10513 = vmatpush2.bf16.msra.mxu1 %v15017_v38  ;;  %10554 = vmatpush2.bf16.msra.mxu0 %v15020_v9  ;;  %v15086_v38 = vld [vmem:[#allocation25 + $0x64] ss:$8 sps:$4 sm:$0xff]   ;;  %v15084_v9 = vld [vmem:[#allocation25 + $0x60] ss:$8 sps:$4 sm:$0xff]  }
0x152e   :  { %10514 = vmatprep.subr.bf16.mxu1 %v15025_v35  ;;  %10555 = vmatprep.subr.bf16.mxu0 %v15028_v0  ;;  %v15089_v35 = vld [vmem:[#allocation25 + $0x54] ss:$8 sps:$4 sm:$0xff]   ;;  %v15087_v0 = vld [vmem:[#allocation25 + $0x50] ss:$8 sps:$4 sm:$0xff]  }
0x1531   :  { %10515 = vmatpush2.bf16.msra.mxu1 %v15023_v13  ;;  %10556 = vmatpush2.bf16.msra.mxu0 %v15026_v29  ;;  %v15092_v13 = vld [vmem:[#allocation25 + $0x44] ss:$8 sps:$4 sm:$0xff]   ;;  %v15090_v29 = vld [vmem:[#allocation25 + $0x40] ss:$8 sps:$4 sm:$0xff]  }
0x1532   :  { %10516 = vmatprep.subr.bf16.mxu1 %v15031_v2  ;;  %10557 = vmatprep.subr.bf16.mxu0 %v15034_v60  ;;  %v15095_v2 = vld [vmem:[#allocation25 + $0x34] ss:$8 sps:$4 sm:$0xff]   ;;  %v15093_v60 = vld [vmem:[#allocation25 + $0x30] ss:$8 sps:$4 sm:$0xff]  }
0x1535   :  { %10517 = vmatpush2.bf16.msra.mxu1 %v15029_v19  ;;  %10558 = vmatpush2.bf16.msra.mxu0 %v15032_v59  ;;  %v15098_v19 = vld [vmem:[#allocation25 + $0x24] ss:$8 sps:$4 sm:$0xff]   ;;  %v15096_v59 = vld [vmem:[#allocation25 + $0x20] ss:$8 sps:$4 sm:$0xff]  }
0x1536   :  { %10518 = vmatprep.subr.bf16.mxu1 %v15037_v41  ;;  %10559 = vmatprep.subr.bf16.mxu0 %v15040_v8  ;;  %v10164_v41 = vld [vmem:[#allocation19] sm:$0x3] }
0x1537   :  { %v10169_v8 = vrot.slane %v10164_v41, %v9968_v11  ;;  %v15585_v11 = vmov 1966171168  }
0x1539   :  { %10519 = vmatpush2.bf16.msra.mxu1 %v15035_v4  ;;  %10560 = vmatpush2.bf16.msra.mxu0 %v15038_v5  ;;  %v10173_v4 = vrot.slane %v10164_v41, %v9972_v62  ;;  %v10907_v62 = vunpack.c.l.s4 %v15585_v11 }
0x153a   :  { %10520 = vmatprep.subr.bf16.mxu1 %v15043_v3  ;;  %10561 = vmatprep.subr.bf16.mxu0 %v15046_v24 }
0x153d   :  { %10521 = vmatpush2.bf16.msra.mxu1 %v15041_v40  ;;  %10562 = vmatpush2.bf16.msra.mxu0 %v15044_v57 }
0x153e   :  { %10522 = vmatprep.subr.bf16.mxu1 %v15049_v54  ;;  %10563 = vmatprep.subr.bf16.mxu0 %v15052_v22 }
0x1541   :  { %10523 = vmatpush2.bf16.msra.mxu1 %v15047_v58  ;;  %10564 = vmatpush2.bf16.msra.mxu0 %v15050_v46 }
0x1542   :  { %10524 = vmatprep.subr.bf16.mxu1 %v15055_v53  ;;  %10565 = vmatprep.subr.bf16.mxu0 %v15058_v27 }
0x1545   :  { %10525 = vmatpush2.bf16.msra.mxu1 %v15053_v20  ;;  %10566 = vmatpush2.bf16.msra.mxu0 %v15056_v28 }
0x1546   :  { %10526 = vmatprep.subr.bf16.mxu1 %v15061_v45  ;;  %10567 = vmatprep.subr.bf16.mxu0 %v15064_v61 }
0x1549   :  { %10527 = vmatpush2.bf16.msra.mxu1 %v15059_v6  ;;  %10568 = vmatpush2.bf16.msra.mxu0 %v15062_v7  ;;  %v10908_v7 = vunpack.c.0.s8 %v10907_v62 }
0x154a   :  { %13331 = vmatprep.subr.bf16.mxu1 %v15065_v1  ;;  %10856 = vmatprep.subr.bf16.mxu0 %v15083_v43  ;;  %v11888_v1 = vld.sshfl [vmem:[#allocation24] sm:$0x11 pattern:$0x75316420] }
0x15cc   :  { %v10048_v26 = vpop.f32.mrf.mxu1  ;;  %v10089_v30 = vpop.f32.mrf.mxu0 }
0x15cd   :  { %v10098_v25 = vpack.c.bf16 %v10089_v30, %v10089_v30  ;;  %v10096_v51 = vpack.c.bf16 %v10048_v26, %v10048_v26  ;;  %v10905_v26 = vcombine.high %v11888_v1, %v11888_v1  ;;  %v10911_v30 = vsub.s32 %v10908_v7, %v17883_v10 }
0x15ce   :  { %v10050_v16 = vpop.f32.mrf.mxu1  ;;  %v10091_v14 = vpop.f32.mrf.mxu0 }
0x15cf   :  { %v10097_v50 = vpack.c.bf16 %v10050_v16, %v10050_v16  ;;  %v10099_v63 = vpack.c.bf16 %v10091_v14, %v10091_v14  ;;  %v10912_v16 = vrot.slane %v11888_v1, %v10911_v30  ;;  %v15099_v14 = vld [vmem:[#allocation25 + $0x10] ss:$8 sps:$4 sm:$0xff]  }
0x15d0   :  { %v10052_v47 = vpop.f32.mrf.mxu1  ;;  %v10093_v32 = vpop.f32.mrf.mxu0 }
0x15d1   :  { %10528 = vmatprep.mubr.bf16.mxu1 %v10097_v50  ;;  %10569 = vmatprep.mubr.bf16.mxu0 %v10099_v63  ;;  %v15101_v50 = vld [vmem:[#allocation25 + $0x14] ss:$8 sps:$4 sm:$0xff]   ;;  %v10926_v63 = vsel %vm10924_vm4, %v10912_v16, 0 }
0x15d2   :  { %v10053_v21 = vpop.f32.mrf.mxu1  ;;  %10529 = vmatmul.mubr.bf16.vlgmr.msra.gmra.mxu1 %v10096_v51  ;;  %10570 = vmatmul.mubr.bf16.vlgmr.msra.gmra.mxu0 %v10098_v25  ;;  %v10094_v18 = vpop.f32.mrf.mxu0  ;;  %v10919_v25 = vrot.slane %v10905_v26, %v10911_v30  ;;  %v15102_v51 = vld [vmem:[#allocation25] ss:$8 sps:$4 sm:$0xff]   ;;  %v11855_v32 = vld [vmem:[#allocation22] ss:$0 sm:$0xff] }
0x15d3   :  { %13332 = vmatpush3.bf16.msra.mxu1 %v15066_v31  ;;  %10888 = vmatprep.mubr.bf16.mxu0 %v15584_v23  ;;  %v15104_v31 = vld [vmem:[#allocation25 + $0x4] ss:$8 sps:$4 sm:$0xff]  }
0x15d4   :  { %13333 = vmatprep.subr.bf16.mxu1 %v15067_v33  ;;  %10857 = vmatpush1.bf16.msra.mxu0 %v15081_v34 }
0x15d5   :  { %10858 = vmatprep.subr.bf16.mxu0 %v15086_v38 }
0x15d7   :  { %13334 = vmatpush3.bf16.msra.mxu1 %v15068_v48 }
0x15d8   :  { %13335 = vmatprep.subr.bf16.mxu1 %v15069_v17  ;;  %10859 = vmatpush1.bf16.msra.mxu0 %v15084_v9 }
0x15d9   :  { %10860 = vmatprep.subr.bf16.mxu0 %v15089_v35 }
0x15db   :  { %13336 = vmatpush3.bf16.msra.mxu1 %v15070_v39 }
0x15dc   :  { %13337 = vmatprep.subr.bf16.mxu1 %v15071_v36  ;;  %10861 = vmatpush1.bf16.msra.mxu0 %v15087_v0 }
0x15dd   :  { %10862 = vmatprep.subr.bf16.mxu0 %v15092_v13 }
0x15df   :  { %13338 = vmatpush3.bf16.msra.mxu1 %v15072_v49 }
0x15e0   :  { %13339 = vmatprep.subr.bf16.mxu1 %v15073_v55  ;;  %10863 = vmatpush1.bf16.msra.mxu0 %v15090_v29 }
0x15e1   :  { %10864 = vmatprep.subr.bf16.mxu0 %v15095_v2 }
0x15e3   :  { %13340 = vmatpush3.bf16.msra.mxu1 %v15074_v42 }
0x15e4   :  { %13341 = vmatprep.subr.bf16.mxu1 %v15075_v56  ;;  %10865 = vmatpush1.bf16.msra.mxu0 %v15093_v60  ;;  %v15586_v56 = vmov 1983009808  }
0x15e5   :  { %10866 = vmatprep.subr.bf16.mxu0 %v15098_v19 }
0x15e7   :  { %13342 = vmatpush3.bf16.msra.mxu1 %v15076_v15  ;;  %v10977_v15 = vunpack.c.l.s4 %v15586_v56 }
0x15e8   :  { %13343 = vmatprep.subr.bf16.mxu1 %v15077_v52  ;;  %10867 = vmatpush1.bf16.msra.mxu0 %v15096_v59 }
0x15e9   :  { %10868 = vmatprep.subr.bf16.mxu0 %v15101_v50  ;;  %v10978_v52 = vunpack.c.0.s8 %v10977_v15 }
0x15eb   :  { %13344 = vmatpush3.bf16.msra.mxu1 %v15078_v44 }
0x15ec   :  { %13345 = vmatprep.subr.bf16.mxu1 %v15079_v37  ;;  %10869 = vmatpush1.bf16.msra.mxu0 %v15099_v14 }
0x15ed   :  { %10870 = vmatprep.subr.bf16.mxu0 %v15104_v31 }
0x15ef   :  { %13346 = vmatpush3.bf16.msra.mxu1 %v15080_v12  ;;  %v10981_v12 = vsub.s32 %v10978_v52, %v17883_v10 }
0x15f0   :  { %11889 = vmatprep.subr.msk.bf16.mxu1 %vm10924_vm4, %v10919_v25  ;;  %10871 = vmatpush1.bf16.msra.mxu0 %v15102_v51 }
0x1692   :  { %v10530_v5 = vpop.f32.mrf.mxu1  ;;  %v10571_v3 = vpop.f32.mrf.mxu0 }
0x1693   :  { %v10531_v24 = vadd.f32 %v10530_v5, %v10169_v8 }
0x1694   :  { %v10532_v40 = vpop.f32.mrf.mxu1  ;;  %v10573_v57 = vpop.f32.mrf.mxu0 }
0x1695   :  { %v10572_v54 = vadd.f32 %v10571_v3, %v10531_v24  ;;  %v10533_v22 = vadd.f32 %v10532_v40, %v10173_v4 }
0x1696   :  { %v10534_v58 = vpop.f32.mrf.mxu1  ;;  %v10575_v46 = vpop.f32.mrf.mxu0 }
0x1697   :  { %v10574_v53 = vadd.f32 %v10573_v57, %v10533_v22  ;;  %v10578_v27 = vmax.f32 %v10572_v54, 0.0 }
0x1698   :  { %v10535_v20 = vpop.f32.mrf.mxu1  ;;  %v10576_v28 = vpop.f32.mrf.mxu0 }
0x1699   :  { %v10579_v45 = vmax.f32 %v10574_v53, 0.0  ;;  %v10580_v6 = vpack.c.bf16 %v10578_v27, %v10578_v27 }
0x169b   :  { %v10581_v61 = vpack.c.bf16 %v10579_v45, %v10579_v45 }
0x169d   :  { %10749 = vmatprep.mubr.bf16.mxu1 %v10581_v61 }
0x169e   :  { %10750 = vmatmul.mubr.bf16.vlgmr.msra.gmra.mxu1 %v10580_v6 }
0x169f   :  { %10963 = vmatprep.mubr.bf16.mxu1 %v15584_v23  ;;  %10946 = vmatpush1.bf16.msra.mxu1 %v10926_v63  ;;  %v10757_v23 = vld [vmem:[%s17928_s15] sm:$0x1] }
0x16a6   :  { %11890 = vmatmul.mubr.msk.bf16.vlgmr.msra.gmra.mxu1 %vm10920_vm5, %v10757_v23 }
0x175e   :  { %v13347_v47 = vpop.f32.mrf.mxu1 }
0x1760   :  { %v13348_v33 = vpop.f32.mrf.mxu1 }
0x1761   :  { %v13349_v21 = vadd.f32 %v13348_v33, %v13347_v47 }
0x1762   :  { %v13350_v18 = vpop.f32.mrf.mxu1 }
0x1763   :  { %v10752_v48 = vadd.f32 %v13349_v21, %v11855_v32 }
0x1764   :  { %v13351_v17 = vpop.f32.mrf.mxu1 }
0x1765   :  { %v10759_v39 = vpack.c.bf16 %v10752_v48, %v10752_v48 }
0x1766   :  { %v10965_v36 = vpop.f32.mrf.mxu1 }
0x1767   :  { %10889 = vmatmul.mubr.bf16.vlgmr.msra.gmra.mxu0 %v10759_v39 }
0x1768   :  { %v10967_v49 = vpop.f32.mrf.mxu1 }
0x176a   :  { %v10969_v55 = vpop.f32.mrf.mxu1 }
0x176c   :  { %v10970_v42 = vpop.f32.mrf.mxu1 }
0x1827   :  { %v10890_v44 = vpop.f32.mrf.mxu0 }
0x1828   :  { %v10966_v37 = vadd.f32 %v10965_v36, %v10890_v44 }
0x1829   :  { %v10892_v34 = vpop.f32.mrf.mxu0 }
0x182a   :  { %v10975_v43 = vcombine.low %v10752_v48, %v10966_v37  ;;  %v10968_v38 = vadd.f32 %v10967_v49, %v10892_v34 }
0x182b   :  { %v10894_v9 = vpop.f32.mrf.mxu0 }
0x182c   :  { %v10982_v35 = vrot.slane %v10975_v43, %v10981_v12  ;;  %v10989_v0 = vrot.slane %v10968_v38, %v10981_v12 }
0x182d   :  { %v10895_v13 = vpop.f32.mrf.mxu0 }
0x182e   :  { %v10990_v29 = vcombine.low %v10982_v35, %v10989_v0 }
0x1830   :  { %10992 = vst [vmem:[%s17931_s18] sm:$0x3f] %v10990_v29 }
0x1831   :  { %10997 = vsyncpa [#allocation3], 1 }
0x1832   :  { %10998 = vsyncpa [#allocation5], 1 }
0x1833   :  { %10999 = vsyncpa [#allocation8], 1 }
0x1834   :  { %11000 = vsyncpa [#allocation11], 1 }
0x1835   :  { %11001 = vsyncpa [#allocation14], 1 }
0x1836   :  { %11002 = vsyncpa [#allocation17], 1 }
0x1837   :  { %11003 = vsyncpa [#allocation20], 1 }
0x1838   :  { %11004 = vsyncpa [#allocation23], 1 }
0x1839   :  { %11005 = vsyncpa [#allocation26], 1 }

</bundles_post_ra>
